<compile_context>
chip_gen: v6e
topology: v6e:2x2x1
jax: 0.10.0
libtpu: 0.0.40
codegen_flags: <defaults>
</compile_context>

<pallas_src>
import functools

import jax
import jax.numpy as jnp
from jax.experimental import pallas as pl
from jax.experimental.pallas import tpu as pltpu


# ----------------------------------------------------------------------------
# Kernel A: fused  conv1(im2col matmul)+ReLU  ->  conv2  -> polyphase gamma/beta
#   p_ref  : (1, 4, H*W, ks*ks*L)  im2col patches of the resized segmap, dim1
#                                  = full-res phase p = 2*py + px so that row
#                                  (r*W+c) of slice p is the 3x3 patch at
#                                  full-res position (2r+py, 2c+px).
#   w1_ref : (ks*ks*L, nh)         shared conv weights (flattened HWIO)
#   b1_ref : (1, nh)
#   w2_ref : (ks*ks, nh, 2*Cq)     gamma|beta conv weights, per-tap
#   b2_ref : (1, 2*Cq)
#   o_ref  : (1, 8, Cq, H*W)       dim1 = 2*phase + {0:gamma, 1:beta},
#                                  phase order (0,0),(0,1),(1,0),(1,1);
#                                  spatial (H*W) on lanes.
#   apad_ref (scratch): (4, H+1, W+1, nh) polyphase, zero-padded hidden
#                                  activation (VMEM only):
#                                  apad[2*sy+sx, qy, qx] == padded_actv[2qy+sy, 2qx+sx]
def _segmap_to_gb_kernel(p_ref, w1_ref, b1_ref, w2_ref, b2_ref, o_ref, apad_ref,
                         *, H, W, Cq, ks):
    HW = H * W
    nh = w1_ref.shape[1]
    C2 = w2_ref.shape[2]

    # conv1 (3x3 SAME): one matmul per activation phase; bias + ReLU.
    # The activation is written straight into the polyphase padded scratch, so
    # every conv2 tap read below is a *contiguous* (H, W, nh) slice.
    apad_ref[...] = jnp.zeros_like(apad_ref)
    b1 = b1_ref[...]                                              # (1, nh)
    for ay in (0, 1):
        for ax in (0, 1):
            p = 2 * ay + ax
            a = jnp.dot(p_ref[0, p], w1_ref[...],
                        preferred_element_type=jnp.float32)
            a = jnp.maximum(a + b1, 0.0)                          # (HW, nh)
            # phase (ay, ax) lands in parity slot (1-ay, 1-ax), offset (ay, ax)
            slot = 2 * (1 - ay) + (1 - ax)
            apad_ref[slot, ay:ay + H, ax:ax + W, :] = a.reshape(H, W, nh)

    # conv2 (3x3 SAME) fused with the stride-2 polyphase split:
    #   gb_phase(i,j)[r,c] = sum_{di,dj} padded_actv[2r+i+di, 2c+j+dj] @ w2[di,dj] + b2
    bias2 = jnp.broadcast_to(b2_ref[...], (HW, C2))               # hoisted broadcast
    for k, (i, j) in enumerate(((0, 0), (0, 1), (1, 0), (1, 1))):
        acc = bias2                                               # bias folded in init
        for di in range(ks):
            py, oy = (i + di) % 2, (i + di) // 2
            for dj in range(ks):
                px, ox = (j + dj) % 2, (j + dj) // 2
                s = apad_ref[2 * py + px, oy:oy + H, ox:ox + W, :]  # contiguous (H,W,nh)
                acc = acc + jnp.dot(s.reshape(HW, nh), w2_ref[di * ks + dj],
                                    preferred_element_type=jnp.float32)
        t = acc.T                                                 # (C2, HW) spatial on lanes
        o_ref[0, 2 * k] = t[:Cq]                                  # gamma, phase k
        o_ref[0, 2 * k + 1] = t[Cq:]                              # beta,  phase k


def _segmap_to_gb(patches, w1, b1, w2, b2, *, H, W, Cq, ks):
    N = patches.shape[0]
    K1 = patches.shape[-1]
    nh = w1.shape[1]
    C2 = w2.shape[2]
    HW = H * W
    kern = functools.partial(_segmap_to_gb_kernel, H=H, W=W, Cq=Cq, ks=ks)
    return pl.pallas_call(
        kern,
        out_shape=jax.ShapeDtypeStruct((N, 8, Cq, HW), jnp.float32),
        grid=(N,),
        in_specs=[
            pl.BlockSpec((1, 4, HW, K1), lambda n: (n, 0, 0, 0)),
            pl.BlockSpec((K1, nh), lambda n: (0, 0)),        # constant -> VMEM resident
            pl.BlockSpec((1, nh), lambda n: (0, 0)),
            pl.BlockSpec((ks * ks, nh, C2), lambda n: (0, 0, 0)),
            pl.BlockSpec((1, C2), lambda n: (0, 0)),
        ],
        out_specs=pl.BlockSpec((1, 8, Cq, HW), lambda n: (n, 0, 0, 0)),
        scratch_shapes=[pltpu.VMEM((4, H + 1, W + 1, nh), jnp.float32)],
        compiler_params=pltpu.CompilerParams(
            dimension_semantics=("parallel",),
            vmem_limit_bytes=48 * 1024 * 1024),
    )(patches, w1, b1, w2, b2)


# ----------------------------------------------------------------------------
# Kernel B: fused  IWT -> InstanceNorm(affine=False) -> SPADE -> HWT
#   x_ref  : (1, 4, tc, HW)  wavelet bands (ll, lh, hl, hh), spatial on lanes
#   gb_ref : (1, 8, tc, HW)  dim1 = 2*phase + {gamma, beta}
#   o_ref  : (1, 4, tc, HW)  output wavelet bands
def _iwt_in_spade_hwt_kernel(x_ref, gb_ref, o_ref, *, eps):
    ll, lh, hl, hh = x_ref[0, 0], x_ref[0, 1], x_ref[0, 2], x_ref[0, 3]

    # inverse Haar, butterfly form (polyphase e_ij[r,c] = x_full[2r+i, 2c+j])
    a, b = ll + lh, ll - lh
    c, d = hl + hh, hl - hh
    e00, e01 = 0.5 * (a + c), 0.5 * (a - c)
    e10, e11 = 0.5 * (b + d), 0.5 * (b - d)

    HW = ll.shape[1]
    inv_n = jnp.float32(1.0 / (4.0 * HW))

    # InstanceNorm2d(affine=False): per-(sample, channel) stats over the full
    # image; two-pass mean/var (no E[x^2]-E[x]^2 cancellation).
    mean = jnp.sum(e00 + e01 + e10 + e11, axis=1, keepdims=True) * inv_n
    c00, c01, c10, c11 = e00 - mean, e01 - mean, e10 - mean, e11 - mean
    var = jnp.sum(c00 * c00 + c01 * c01 + c10 * c10 + c11 * c11,
                  axis=1, keepdims=True) * inv_n
    inv = jax.lax.rsqrt(var + eps)

    def mod(cij, k):
        return (cij * inv) * (1.0 + gb_ref[0, 2 * k]) + gb_ref[0, 2 * k + 1]

    o00, o01, o10, o11 = mod(c00, 0), mod(c01, 1), mod(c10, 2), mod(c11, 3)

    # forward Haar, butterfly form
    pa, pb = o00 + o01, o00 - o01
    pc, pd = o10 + o11, o10 - o11
    o_ref[0, 0] = 0.5 * (pa + pc)   # ll
    o_ref[0, 1] = 0.5 * (pa - pc)   # lh
    o_ref[0, 2] = 0.5 * (pb + pd)   # hl
    o_ref[0, 3] = 0.5 * (pb - pd)   # hh


def _pick_channel_tile(Cq, max_tile=256):
    if Cq <= max_tile:
        return Cq
    for t in range(max_tile, 0, -1):
        if Cq % t == 0 and t % 8 == 0:
            return t
    return Cq


def _spade_norm(x_sub, gb_sub, *, eps):
    N, _, Cq, HW = x_sub.shape
    tc = _pick_channel_tile(Cq)
    kern = functools.partial(_iwt_in_spade_hwt_kernel, eps=eps)
    x_spec = pl.BlockSpec((1, 4, tc, HW), lambda n, t: (n, 0, t, 0))
    gb_spec = pl.BlockSpec((1, 8, tc, HW), lambda n, t: (n, 0, t, 0))
    return pl.pallas_call(
        kern,
        out_shape=jax.ShapeDtypeStruct((N, 4, Cq, HW), jnp.float32),
        grid=(N, Cq // tc),
        in_specs=[x_spec, gb_spec],
        out_specs=x_spec,
        compiler_params=pltpu.CompilerParams(
            dimension_semantics=("parallel", "parallel"),
            vmem_limit_bytes=48 * 1024 * 1024),
    )(x_sub, gb_sub)


# ----------------------------------------------------------------------------
# Wrapper: layout plumbing is reshape-only for x; the segmap branch fuses
# nearest-resize + zero-pad + im2col into one gather on the small segmap,
# emitted directly in polyphase output-row order (no transpose / full-res
# intermediate).
def iwt_spade_hwt(x, segmap, params, *, ks=3, eps=1e-5):
    N, C, H, W = x.shape
    Cq = C // 4
    Hf, Wf = 2 * H, 2 * W
    pw = ks // 2
    assert ks == 3, "kernel A polyphase padding is specialized for 3x3 convs"
    L = segmap.shape[1]
    Hs, Ws = segmap.shape[2], segmap.shape[3]
    nh = params["w_shared"].shape[3]

    # fused nearest-resize (src = floor(dst*in/out)) + zero pad + im2col,
    # ordered (phase_y, phase_x, r, c) so row (r*W+c) of slice p=2py+px is the
    # patch at full-res position (2r+py, 2c+px).
    seg_t = jnp.transpose(segmap, (0, 2, 3, 1))                        # (N,Hs,Ws,L)
    ry = (jnp.arange(2)[:, None, None] + 2 * jnp.arange(H)[None, :, None]
          + jnp.arange(ks)[None, None, :] - pw)                        # (2,H,ks)
    cx = (jnp.arange(2)[:, None, None] + 2 * jnp.arange(W)[None, :, None]
          + jnp.arange(ks)[None, None, :] - pw)                        # (2,W,ks)
    ry_ok = (ry >= 0) & (ry < Hf)
    cx_ok = (cx >= 0) & (cx < Wf)
    src_r = (jnp.clip(ry, 0, Hf - 1) * Hs) // Hf
    src_c = (jnp.clip(cx, 0, Wf - 1) * Ws) // Wf
    r_idx = src_r[:, None, :, None, :, None]                           # (2,1,H,1,ks,1)
    c_idx = src_c[None, :, None, :, None, :]                           # (1,2,1,W,1,ks)
    g = seg_t[:, r_idx, c_idx, :]                                      # (N,2,2,H,W,ks,ks,L)
    m = ry_ok[:, None, :, None, :, None] & cx_ok[None, :, None, :, None, :]
    g = g * m[None, ..., None].astype(g.dtype)
    patches = g.reshape(N, 4, H * W, ks * ks * L)

    w1 = params["w_shared"].reshape(ks * ks * L, nh)
    b1 = params["b_shared"].reshape(1, nh)
    w2 = params["w_gb"].reshape(ks * ks, nh, 2 * Cq)
    b2 = params["b_gb"].reshape(1, 2 * Cq)

    gb_sub = _segmap_to_gb(patches, w1, b1, w2, b2, H=H, W=W, Cq=Cq, ks=ks)

    # x (N, 4*Cq, H, W) -> (N, 4, Cq, H*W): pure reshape, no transpose.
    x_sub = x.reshape(N, 4, Cq, H * W)
    out_sub = _spade_norm(x_sub, gb_sub, eps=eps)
    return out_sub.reshape(N, 4 * Cq, H, W)


# ----------------------------------------------------------------------------
# Pure-JAX reference (mirrors the PyTorch forward) for a self-check.
def nearest_resize_nchw(x, out_h, out_w):
    _, _, in_h, in_w = x.shape
    idx_h = (jnp.arange(out_h) * in_h) // out_h
    idx_w = (jnp.arange(out_w) * in_w) // out_w
    return x[:, :, idx_h[:, None], idx_w[None, :]]


def reference(x, segmap, params, *, ks=3, eps=1e-5):
    N, C, H, W = x.shape
    Cq = C // 4
    ll, lh, hl, hh = jnp.split(x, 4, axis=1)
    xf = jnp.zeros((N, Cq, 2 * H, 2 * W), jnp.float32)
    xf = xf.at[:, :, 0::2, 0::2].set(0.5 * (ll + lh + hl + hh))
    xf = xf.at[:, :, 0::2, 1::2].set(0.5 * (ll + lh - hl - hh))
    xf = xf.at[:, :, 1::2, 0::2].set(0.5 * (ll - lh + hl - hh))
    xf = xf.at[:, :, 1::2, 1::2].set(0.5 * (ll - lh - hl + hh))
    mean = xf.mean(axis=(2, 3), keepdims=True)
    var = xf.var(axis=(2, 3), keepdims=True)
    normalized = (xf - mean) * jax.lax.rsqrt(var + eps)

    seg = nearest_resize_nchw(segmap, 2 * H, 2 * W)

    def conv(inp, w, b):
        out = jax.lax.conv_general_dilated(
            inp, w, window_strides=(1, 1), padding="SAME",
            dimension_numbers=("NCHW", "HWIO", "NCHW"))
        return out + b.reshape(1, -1, 1, 1)

    actv = jax.nn.relu(conv(seg, params["w_shared"], params["b_shared"][0]))
    gb = conv(actv, params["w_gb"], params["b_gb"][0])
    gamma, beta = gb[:, :Cq], gb[:, Cq:]
    out_full = normalized * (1.0 + gamma) + beta

    a = out_full[:, :, 0::2, 0::2]
    b2 = out_full[:, :, 0::2, 1::2]
    c = out_full[:, :, 1::2, 0::2]
    d = out_full[:, :, 1::2, 1::2]
    return jnp.concatenate([0.5 * (a + b2 + c + d), 0.5 * (a + b2 - c - d),
                            0.5 * (a - b2 + c - d), 0.5 * (a - b2 - c + d)],
                           axis=1)


# ----------------------------------------------------------------------------
if __name__ == "__main__":
    N, norm_nc, label_nc = 2, 16, 4
    H = W = 8          # wavelet-domain spatial size (full-res image is 16x16)
    Hs = Ws = 8        # segmap spatial size (nearest-resized to 16x16)
    ks, nhidden = 3, 128
    Cq = norm_nc // 4

    key = jax.random.PRNGKey(0)
    sub = jax.random.split(key, 8)
    params = {
        "w_shared": 0.05 * jax.random.normal(sub[0], (ks, ks, label_nc, nhidden), jnp.float32),
        "b_shared": 0.05 * jax.random.normal(sub[1], (1, nhidden), jnp.float32),
    }
    w_gamma = 0.05 * jax.random.normal(sub[2], (ks, ks, nhidden, Cq), jnp.float32)
    b_gamma = 0.05 * jax.random.normal(sub[3], (1, Cq), jnp.float32)
    w_beta = 0.05 * jax.random.normal(sub[4], (ks, ks, nhidden, Cq), jnp.float32)
    b_beta = 0.05 * jax.random.normal(sub[5], (1, Cq), jnp.float32)
    params["w_gb"] = jnp.concatenate([w_gamma, w_beta], axis=-1)
    params["b_gb"] = jnp.concatenate([b_gamma, b_beta], axis=-1)

    x = jax.random.normal(sub[6], (N, norm_nc, H, W), jnp.float32)
    segmap = jax.random.normal(sub[7], (N, label_nc, Hs, Ws), jnp.float32)

    fwd = jax.jit(functools.partial(iwt_spade_hwt, ks=ks, eps=1e-5))
    out = jax.block_until_ready(fwd(x, segmap, params))

    ref = reference(x, segmap, params, ks=ks)
    assert out.shape == (N, norm_nc, H, W)
    err = float(jnp.max(jnp.abs(out - ref)))
    assert jnp.allclose(out, ref, atol=5e-3, rtol=5e-3), f"max abs err {err}"
    print("KERNEL_OK")
</pallas_src>

<mosaic_0001>
module attributes {stable_mosaic.version = 11 : i64} {
  func.func @_segmap_to_gb_kernel(%arg0: i32, %arg1: memref<1x4x64x36xf32, #tpu.memory_space<vmem>>, %arg2: memref<36x128xf32, #tpu.memory_space<vmem>>, %arg3: memref<1x128xf32, #tpu.memory_space<vmem>>, %arg4: memref<9x128x8xf32, #tpu.memory_space<vmem>>, %arg5: memref<1x8xf32, #tpu.memory_space<vmem>>, %arg6: memref<1x8x4x64xf32, #tpu.memory_space<vmem>>, %arg7: memref<4x9x9x128xf32, #tpu.memory_space<vmem>>) attributes {dimension_semantics = [#tpu.dimension_semantics<parallel>], iteration_bounds = array<i64: 2>, scalar_prefetch = 0 : i64, scratch_operands = 1 : i64, tpu.core_type = #tpu.core_type<tc>, window_params = [{transform_indices = @transform_0, window_bounds = array<i64: 1, 4, 64, 36>}, {pipeline_mode = #tpu.pipeline_mode<synchronous>, transform_indices = @transform_1, window_bounds = array<i64: 36, 128>}, {pipeline_mode = #tpu.pipeline_mode<synchronous>, transform_indices = @transform_2, window_bounds = array<i64: 1, 128>}, {pipeline_mode = #tpu.pipeline_mode<synchronous>, transform_indices = @transform_3, window_bounds = array<i64: 9, 128, 8>}, {pipeline_mode = #tpu.pipeline_mode<synchronous>, transform_indices = @transform_4, window_bounds = array<i64: 1, 8>}, {transform_indices = @transform_5, window_bounds = array<i64: 1, 8, 4, 64>}]} {
    %cst = arith.constant 0.000000e+00 : f32
    %0 = vector.broadcast %cst : f32 to vector<4x9x9x128xf32>
    %c0 = arith.constant 0 : index
    %c0_0 = arith.constant 0 : index
    %c0_1 = arith.constant 0 : index
    %c0_2 = arith.constant 0 : index
    %1 = vector.load %arg7[%c0, %c0_0, %c0_1, %c0_2] : memref<4x9x9x128xf32, #tpu.memory_space<vmem>>, vector<4x9x9x128xf32>
    tpu.vector_store %arg7[%c0, %c0_0, %c0_1, %c0_2], %0 {strides = array<i32>} : memref<4x9x9x128xf32, #tpu.memory_space<vmem>>, vector<4x9x9x128xf32>,
    %c0_3 = arith.constant 0 : index
    %c0_4 = arith.constant 0 : index
    %2 = vector.load %arg3[%c0_3, %c0_4] : memref<1x128xf32, #tpu.memory_space<vmem>>, vector<1x128xf32>
    %c0_5 = arith.constant 0 : index
    %c0_6 = arith.constant 0 : index
    %c0_7 = arith.constant 0 : index
    %c0_8 = arith.constant 0 : index
    %3 = vector.load %arg1[%c0_5, %c0_6, %c0_7, %c0_8] : memref<1x4x64x36xf32, #tpu.memory_space<vmem>>, vector<1x1x64x36xf32>
    %4 = vector.shape_cast %3 : vector<1x1x64x36xf32> to vector<64x36xf32>
    %c0_9 = arith.constant 0 : index
    %c0_10 = arith.constant 0 : index
    %5 = vector.load %arg2[%c0_9, %c0_10] : memref<36x128xf32, #tpu.memory_space<vmem>>, vector<36x128xf32>
    %cst_11 = arith.constant dense<0.000000e+00> : vector<64x128xf32>
    %6 = tpu.matmul %4, %5, %cst_11 {dimension_numbers = #tpu.dot_dimension_numbers<[1], [0], [0], [1], [0, 0, 1, 1], [], []>} : vector<64x36xf32>, vector<36x128xf32>, vector<64x128xf32> -> vector<64x128xf32>
    %7 = vector.broadcast %2 : vector<1x128xf32> to vector<64x128xf32>
    %8 = arith.addf %6, %7 : vector<64x128xf32>
    %cst_12 = arith.constant 0.000000e+00 : f32
    %9 = vector.broadcast %cst_12 : f32 to vector<64x128xf32>
    %10 = arith.maximumf %8, %9 : vector<64x128xf32>
    %11 = vector.shape_cast %10 : vector<64x128xf32> to vector<8x8x128xf32>
    %c3 = arith.constant 3 : index
    %c0_13 = arith.constant 0 : index
    %c0_14 = arith.constant 0 : index
    %c0_15 = arith.constant 0 : index
    %12 = vector.load %arg7[%c3, %c0_13, %c0_14, %c0_15] : memref<4x9x9x128xf32, #tpu.memory_space<vmem>>, vector<1x8x8x128xf32>
    %13 = vector.shape_cast %12 : vector<1x8x8x128xf32> to vector<8x8x128xf32>
    %14 = vector.shape_cast %11 : vector<8x8x128xf32> to vector<1x8x8x128xf32>
    tpu.vector_store %arg7[%c3, %c0_13, %c0_14, %c0_15], %14 {strides = array<i32>} : memref<4x9x9x128xf32, #tpu.memory_space<vmem>>, vector<1x8x8x128xf32>,
    %c0_16 = arith.constant 0 : index
    %c1 = arith.constant 1 : index
    %c0_17 = arith.constant 0 : index
    %c0_18 = arith.constant 0 : index
    %15 = vector.load %arg1[%c0_16, %c1, %c0_17, %c0_18] : memref<1x4x64x36xf32, #tpu.memory_space<vmem>>, vector<1x1x64x36xf32>
    %16 = vector.shape_cast %15 : vector<1x1x64x36xf32> to vector<64x36xf32>
    %c0_19 = arith.constant 0 : index
    %c0_20 = arith.constant 0 : index
    %17 = vector.load %arg2[%c0_19, %c0_20] : memref<36x128xf32, #tpu.memory_space<vmem>>, vector<36x128xf32>
    %cst_21 = arith.constant dense<0.000000e+00> : vector<64x128xf32>
    %18 = tpu.matmul %16, %17, %cst_21 {dimension_numbers = #tpu.dot_dimension_numbers<[1], [0], [0], [1], [0, 0, 1, 1], [], []>} : vector<64x36xf32>, vector<36x128xf32>, vector<64x128xf32> -> vector<64x128xf32>
    %19 = vector.broadcast %2 : vector<1x128xf32> to vector<64x128xf32>
    %20 = arith.addf %18, %19 : vector<64x128xf32>
    %cst_22 = arith.constant 0.000000e+00 : f32
    %21 = vector.broadcast %cst_22 : f32 to vector<64x128xf32>
    %22 = arith.maximumf %20, %21 : vector<64x128xf32>
    %23 = vector.shape_cast %22 : vector<64x128xf32> to vector<8x8x128xf32>
    %c2 = arith.constant 2 : index
    %c0_23 = arith.constant 0 : index
    %c1_24 = arith.constant 1 : index
    %c0_25 = arith.constant 0 : index
    %24 = vector.load %arg7[%c2, %c0_23, %c1_24, %c0_25] : memref<4x9x9x128xf32, #tpu.memory_space<vmem>>, vector<1x8x8x128xf32>
    %25 = vector.shape_cast %24 : vector<1x8x8x128xf32> to vector<8x8x128xf32>
    %26 = vector.shape_cast %23 : vector<8x8x128xf32> to vector<1x8x8x128xf32>
    tpu.vector_store %arg7[%c2, %c0_23, %c1_24, %c0_25], %26 {strides = array<i32>} : memref<4x9x9x128xf32, #tpu.memory_space<vmem>>, vector<1x8x8x128xf32>,
    %c0_26 = arith.constant 0 : index
    %c2_27 = arith.constant 2 : index
    %c0_28 = arith.constant 0 : index
    %c0_29 = arith.constant 0 : index
    %27 = vector.load %arg1[%c0_26, %c2_27, %c0_28, %c0_29] : memref<1x4x64x36xf32, #tpu.memory_space<vmem>>, vector<1x1x64x36xf32>
    %28 = vector.shape_cast %27 : vector<1x1x64x36xf32> to vector<64x36xf32>
    %c0_30 = arith.constant 0 : index
    %c0_31 = arith.constant 0 : index
    %29 = vector.load %arg2[%c0_30, %c0_31] : memref<36x128xf32, #tpu.memory_space<vmem>>, vector<36x128xf32>
    %cst_32 = arith.constant dense<0.000000e+00> : vector<64x128xf32>
    %30 = tpu.matmul %28, %29, %cst_32 {dimension_numbers = #tpu.dot_dimension_numbers<[1], [0], [0], [1], [0, 0, 1, 1], [], []>} : vector<64x36xf32>, vector<36x128xf32>, vector<64x128xf32> -> vector<64x128xf32>
    %31 = vector.broadcast %2 : vector<1x128xf32> to vector<64x128xf32>
    %32 = arith.addf %30, %31 : vector<64x128xf32>
    %cst_33 = arith.constant 0.000000e+00 : f32
    %33 = vector.broadcast %cst_33 : f32 to vector<64x128xf32>
    %34 = arith.maximumf %32, %33 : vector<64x128xf32>
    %35 = vector.shape_cast %34 : vector<64x128xf32> to vector<8x8x128xf32>
    %c1_34 = arith.constant 1 : index
    %c1_35 = arith.constant 1 : index
    %c0_36 = arith.constant 0 : index
    %c0_37 = arith.constant 0 : index
    %36 = vector.load %arg7[%c1_34, %c1_35, %c0_36, %c0_37] : memref<4x9x9x128xf32, #tpu.memory_space<vmem>>, vector<1x8x8x128xf32>
    %37 = vector.shape_cast %36 : vector<1x8x8x128xf32> to vector<8x8x128xf32>
    %38 = vector.shape_cast %35 : vector<8x8x128xf32> to vector<1x8x8x128xf32>
    tpu.vector_store %arg7[%c1_34, %c1_35, %c0_36, %c0_37], %38 {strides = array<i32>} : memref<4x9x9x128xf32, #tpu.memory_space<vmem>>, vector<1x8x8x128xf32>,
    %c0_38 = arith.constant 0 : index
    %c3_39 = arith.constant 3 : index
    %c0_40 = arith.constant 0 : index
    %c0_41 = arith.constant 0 : index
    %39 = vector.load %arg1[%c0_38, %c3_39, %c0_40, %c0_41] : memref<1x4x64x36xf32, #tpu.memory_space<vmem>>, vector<1x1x64x36xf32>
    %40 = vector.shape_cast %39 : vector<1x1x64x36xf32> to vector<64x36xf32>
    %c0_42 = arith.constant 0 : index
    %c0_43 = arith.constant 0 : index
    %41 = vector.load %arg2[%c0_42, %c0_43] : memref<36x128xf32, #tpu.memory_space<vmem>>, vector<36x128xf32>
    %cst_44 = arith.constant dense<0.000000e+00> : vector<64x128xf32>
    %42 = tpu.matmul %40, %41, %cst_44 {dimension_numbers = #tpu.dot_dimension_numbers<[1], [0], [0], [1], [0, 0, 1, 1], [], []>} : vector<64x36xf32>, vector<36x128xf32>, vector<64x128xf32> -> vector<64x128xf32>
    %43 = vector.broadcast %2 : vector<1x128xf32> to vector<64x128xf32>
    %44 = arith.addf %42, %43 : vector<64x128xf32>
    %cst_45 = arith.constant 0.000000e+00 : f32
    %45 = vector.broadcast %cst_45 : f32 to vector<64x128xf32>
    %46 = arith.maximumf %44, %45 : vector<64x128xf32>
    %47 = vector.shape_cast %46 : vector<64x128xf32> to vector<8x8x128xf32>
    %c0_46 = arith.constant 0 : index
    %c1_47 = arith.constant 1 : index
    %c1_48 = arith.constant 1 : index
    %c0_49 = arith.constant 0 : index
    %48 = vector.load %arg7[%c0_46, %c1_47, %c1_48, %c0_49] : memref<4x9x9x128xf32, #tpu.memory_space<vmem>>, vector<1x8x8x128xf32>
    %49 = vector.shape_cast %48 : vector<1x8x8x128xf32> to vector<8x8x128xf32>
    %50 = vector.shape_cast %47 : vector<8x8x128xf32> to vector<1x8x8x128xf32>
    tpu.vector_store %arg7[%c0_46, %c1_47, %c1_48, %c0_49], %50 {strides = array<i32>} : memref<4x9x9x128xf32, #tpu.memory_space<vmem>>, vector<1x8x8x128xf32>,
    %c0_50 = arith.constant 0 : index
    %c0_51 = arith.constant 0 : index
    %51 = vector.load %arg5[%c0_50, %c0_51] : memref<1x8xf32, #tpu.memory_space<vmem>>, vector<1x8xf32>
    %52 = vector.shape_cast %51 : vector<1x8xf32> to vector<1x8xf32>
    %53 = vector.broadcast %52 : vector<1x8xf32> to vector<64x8xf32>
    %c0_52 = arith.constant 0 : index
    %c0_53 = arith.constant 0 : index
    %c0_54 = arith.constant 0 : index
    %c0_55 = arith.constant 0 : index
    %54 = vector.load %arg7[%c0_52, %c0_53, %c0_54, %c0_55] : memref<4x9x9x128xf32, #tpu.memory_space<vmem>>, vector<1x8x8x128xf32>
    %55 = vector.shape_cast %54 : vector<1x8x8x128xf32> to vector<8x8x128xf32>
    %56 = vector.shape_cast %55 : vector<8x8x128xf32> to vector<64x128xf32>
    %c0_56 = arith.constant 0 : index
    %c0_57 = arith.constant 0 : index
    %c0_58 = arith.constant 0 : index
    %57 = vector.load %arg4[%c0_56, %c0_57, %c0_58] : memref<9x128x8xf32, #tpu.memory_space<vmem>>, vector<1x128x8xf32>
    %58 = vector.shape_cast %57 : vector<1x128x8xf32> to vector<128x8xf32>
    %cst_59 = arith.constant dense<0.000000e+00> : vector<64x8xf32>
    %59 = tpu.matmul %56, %58, %cst_59 {dimension_numbers = #tpu.dot_dimension_numbers<[1], [0], [0], [1], [0, 0, 1, 1], [], []>} : vector<64x128xf32>, vector<128x8xf32>, vector<64x8xf32> -> vector<64x8xf32>
    %60 = arith.addf %53, %59 : vector<64x8xf32>
    %c1_60 = arith.constant 1 : index
    %c0_61 = arith.constant 0 : index
    %c0_62 = arith.constant 0 : index
    %c0_63 = arith.constant 0 : index
    %61 = vector.load %arg7[%c1_60, %c0_61, %c0_62, %c0_63] : memref<4x9x9x128xf32, #tpu.memory_space<vmem>>, vector<1x8x8x128xf32>
    %62 = vector.shape_cast %61 : vector<1x8x8x128xf32> to vector<8x8x128xf32>
    %63 = vector.shape_cast %62 : vector<8x8x128xf32> to vector<64x128xf32>
    %c1_64 = arith.constant 1 : index
    %c0_65 = arith.constant 0 : index
    %c0_66 = arith.constant 0 : index
    %64 = vector.load %arg4[%c1_64, %c0_65, %c0_66] : memref<9x128x8xf32, #tpu.memory_space<vmem>>, vector<1x128x8xf32>
    %65 = vector.shape_cast %64 : vector<1x128x8xf32> to vector<128x8xf32>
    %cst_67 = arith.constant dense<0.000000e+00> : vector<64x8xf32>
    %66 = tpu.matmul %63, %65, %cst_67 {dimension_numbers = #tpu.dot_dimension_numbers<[1], [0], [0], [1], [0, 0, 1, 1], [], []>} : vector<64x128xf32>, vector<128x8xf32>, vector<64x8xf32> -> vector<64x8xf32>
    %67 = arith.addf %60, %66 : vector<64x8xf32>
    %c0_68 = arith.constant 0 : index
    %c0_69 = arith.constant 0 : index
    %c1_70 = arith.constant 1 : index
    %c0_71 = arith.constant 0 : index
    %68 = vector.load %arg7[%c0_68, %c0_69, %c1_70, %c0_71] : memref<4x9x9x128xf32, #tpu.memory_space<vmem>>, vector<1x8x8x128xf32>
    %69 = vector.shape_cast %68 : vector<1x8x8x128xf32> to vector<8x8x128xf32>
    %70 = vector.shape_cast %69 : vector<8x8x128xf32> to vector<64x128xf32>
    %c2_72 = arith.constant 2 : index
    %c0_73 = arith.constant 0 : index
    %c0_74 = arith.constant 0 : index
    %71 = vector.load %arg4[%c2_72, %c0_73, %c0_74] : memref<9x128x8xf32, #tpu.memory_space<vmem>>, vector<1x128x8xf32>
    %72 = vector.shape_cast %71 : vector<1x128x8xf32> to vector<128x8xf32>
    %cst_75 = arith.constant dense<0.000000e+00> : vector<64x8xf32>
    %73 = tpu.matmul %70, %72, %cst_75 {dimension_numbers = #tpu.dot_dimension_numbers<[1], [0], [0], [1], [0, 0, 1, 1], [], []>} : vector<64x128xf32>, vector<128x8xf32>, vector<64x8xf32> -> vector<64x8xf32>
    %74 = arith.addf %67, %73 : vector<64x8xf32>
    %c2_76 = arith.constant 2 : index
    %c0_77 = arith.constant 0 : index
    %c0_78 = arith.constant 0 : index
    %c0_79 = arith.constant 0 : index
    %75 = vector.load %arg7[%c2_76, %c0_77, %c0_78, %c0_79] : memref<4x9x9x128xf32, #tpu.memory_space<vmem>>, vector<1x8x8x128xf32>
    %76 = vector.shape_cast %75 : vector<1x8x8x128xf32> to vector<8x8x128xf32>
    %77 = vector.shape_cast %76 : vector<8x8x128xf32> to vector<64x128xf32>
    %c3_80 = arith.constant 3 : index
    %c0_81 = arith.constant 0 : index
    %c0_82 = arith.constant 0 : index
    %78 = vector.load %arg4[%c3_80, %c0_81, %c0_82] : memref<9x128x8xf32, #tpu.memory_space<vmem>>, vector<1x128x8xf32>
    %79 = vector.shape_cast %78 : vector<1x128x8xf32> to vector<128x8xf32>
    %cst_83 = arith.constant dense<0.000000e+00> : vector<64x8xf32>
    %80 = tpu.matmul %77, %79, %cst_83 {dimension_numbers = #tpu.dot_dimension_numbers<[1], [0], [0], [1], [0, 0, 1, 1], [], []>} : vector<64x128xf32>, vector<128x8xf32>, vector<64x8xf32> -> vector<64x8xf32>
    %81 = arith.addf %74, %80 : vector<64x8xf32>
    %c3_84 = arith.constant 3 : index
    %c0_85 = arith.constant 0 : index
    %c0_86 = arith.constant 0 : index
    %c0_87 = arith.constant 0 : index
    %82 = vector.load %arg7[%c3_84, %c0_85, %c0_86, %c0_87] : memref<4x9x9x128xf32, #tpu.memory_space<vmem>>, vector<1x8x8x128xf32>
    %83 = vector.shape_cast %82 : vector<1x8x8x128xf32> to vector<8x8x128xf32>
    %84 = vector.shape_cast %83 : vector<8x8x128xf32> to vector<64x128xf32>
    %c4 = arith.constant 4 : index
    %c0_88 = arith.constant 0 : index
    %c0_89 = arith.constant 0 : index
    %85 = vector.load %arg4[%c4, %c0_88, %c0_89] : memref<9x128x8xf32, #tpu.memory_space<vmem>>, vector<1x128x8xf32>
    %86 = vector.shape_cast %85 : vector<1x128x8xf32> to vector<128x8xf32>
    %cst_90 = arith.constant dense<0.000000e+00> : vector<64x8xf32>
    %87 = tpu.matmul %84, %86, %cst_90 {dimension_numbers = #tpu.dot_dimension_numbers<[1], [0], [0], [1], [0, 0, 1, 1], [], []>} : vector<64x128xf32>, vector<128x8xf32>, vector<64x8xf32> -> vector<64x8xf32>
    %88 = arith.addf %81, %87 : vector<64x8xf32>
    %c2_91 = arith.constant 2 : index
    %c0_92 = arith.constant 0 : index
    %c1_93 = arith.constant 1 : index
    %c0_94 = arith.constant 0 : index
    %89 = vector.load %arg7[%c2_91, %c0_92, %c1_93, %c0_94] : memref<4x9x9x128xf32, #tpu.memory_space<vmem>>, vector<1x8x8x128xf32>
    %90 = vector.shape_cast %89 : vector<1x8x8x128xf32> to vector<8x8x128xf32>
    %91 = vector.shape_cast %90 : vector<8x8x128xf32> to vector<64x128xf32>
    %c5 = arith.constant 5 : index
    %c0_95 = arith.constant 0 : index
    %c0_96 = arith.constant 0 : index
    %92 = vector.load %arg4[%c5, %c0_95, %c0_96] : memref<9x128x8xf32, #tpu.memory_space<vmem>>, vector<1x128x8xf32>
    %93 = vector.shape_cast %92 : vector<1x128x8xf32> to vector<128x8xf32>
    %cst_97 = arith.constant dense<0.000000e+00> : vector<64x8xf32>
    %94 = tpu.matmul %91, %93, %cst_97 {dimension_numbers = #tpu.dot_dimension_numbers<[1], [0], [0], [1], [0, 0, 1, 1], [], []>} : vector<64x128xf32>, vector<128x8xf32>, vector<64x8xf32> -> vector<64x8xf32>
    %95 = arith.addf %88, %94 : vector<64x8xf32>
    %c0_98 = arith.constant 0 : index
    %c1_99 = arith.constant 1 : index
    %c0_100 = arith.constant 0 : index
    %c0_101 = arith.constant 0 : index
    %96 = vector.load %arg7[%c0_98, %c1_99, %c0_100, %c0_101] : memref<4x9x9x128xf32, #tpu.memory_space<vmem>>, vector<1x8x8x128xf32>
    %97 = vector.shape_cast %96 : vector<1x8x8x128xf32> to vector<8x8x128xf32>
    %98 = vector.shape_cast %97 : vector<8x8x128xf32> to vector<64x128xf32>
    %c6 = arith.constant 6 : index
    %c0_102 = arith.constant 0 : index
    %c0_103 = arith.constant 0 : index
    %99 = vector.load %arg4[%c6, %c0_102, %c0_103] : memref<9x128x8xf32, #tpu.memory_space<vmem>>, vector<1x128x8xf32>
    %100 = vector.shape_cast %99 : vector<1x128x8xf32> to vector<128x8xf32>
    %cst_104 = arith.constant dense<0.000000e+00> : vector<64x8xf32>
    %101 = tpu.matmul %98, %100, %cst_104 {dimension_numbers = #tpu.dot_dimension_numbers<[1], [0], [0], [1], [0, 0, 1, 1], [], []>} : vector<64x128xf32>, vector<128x8xf32>, vector<64x8xf32> -> vector<64x8xf32>
    %102 = arith.addf %95, %101 : vector<64x8xf32>
    %c1_105 = arith.constant 1 : index
    %c1_106 = arith.constant 1 : index
    %c0_107 = arith.constant 0 : index
    %c0_108 = arith.constant 0 : index
    %103 = vector.load %arg7[%c1_105, %c1_106, %c0_107, %c0_108] : memref<4x9x9x128xf32, #tpu.memory_space<vmem>>, vector<1x8x8x128xf32>
    %104 = vector.shape_cast %103 : vector<1x8x8x128xf32> to vector<8x8x128xf32>
    %105 = vector.shape_cast %104 : vector<8x8x128xf32> to vector<64x128xf32>
    %c7 = arith.constant 7 : index
    %c0_109 = arith.constant 0 : index
    %c0_110 = arith.constant 0 : index
    %106 = vector.load %arg4[%c7, %c0_109, %c0_110] : memref<9x128x8xf32, #tpu.memory_space<vmem>>, vector<1x128x8xf32>
    %107 = vector.shape_cast %106 : vector<1x128x8xf32> to vector<128x8xf32>
    %cst_111 = arith.constant dense<0.000000e+00> : vector<64x8xf32>
    %108 = tpu.matmul %105, %107, %cst_111 {dimension_numbers = #tpu.dot_dimension_numbers<[1], [0], [0], [1], [0, 0, 1, 1], [], []>} : vector<64x128xf32>, vector<128x8xf32>, vector<64x8xf32> -> vector<64x8xf32>
    %109 = arith.addf %102, %108 : vector<64x8xf32>
    %c0_112 = arith.constant 0 : index
    %c1_113 = arith.constant 1 : index
    %c1_114 = arith.constant 1 : index
    %c0_115 = arith.constant 0 : index
    %110 = vector.load %arg7[%c0_112, %c1_113, %c1_114, %c0_115] : memref<4x9x9x128xf32, #tpu.memory_space<vmem>>, vector<1x8x8x128xf32>
    %111 = vector.shape_cast %110 : vector<1x8x8x128xf32> to vector<8x8x128xf32>
    %112 = vector.shape_cast %111 : vector<8x8x128xf32> to vector<64x128xf32>
    %c8 = arith.constant 8 : index
    %c0_116 = arith.constant 0 : index
    %c0_117 = arith.constant 0 : index
    %113 = vector.load %arg4[%c8, %c0_116, %c0_117] : memref<9x128x8xf32, #tpu.memory_space<vmem>>, vector<1x128x8xf32>
    %114 = vector.shape_cast %113 : vector<1x128x8xf32> to vector<128x8xf32>
    %cst_118 = arith.constant dense<0.000000e+00> : vector<64x8xf32>
    %115 = tpu.matmul %112, %114, %cst_118 {dimension_numbers = #tpu.dot_dimension_numbers<[1], [0], [0], [1], [0, 0, 1, 1], [], []>} : vector<64x128xf32>, vector<128x8xf32>, vector<64x8xf32> -> vector<64x8xf32>
    %116 = arith.addf %109, %115 : vector<64x8xf32>
    %117 = tpu.transpose %116, [1, 0] : vector<64x8xf32> -> vector<8x64xf32>
    %118 = vector.extract_strided_slice %117 {offsets = [0, 0], sizes = [4, 64], strides = [1, 1]} : vector<8x64xf32> to vector<4x64xf32>
    %c0_119 = arith.constant 0 : index
    %c0_120 = arith.constant 0 : index
    %c0_121 = arith.constant 0 : index
    %c0_122 = arith.constant 0 : index
    %119 = vector.load %arg6[%c0_119, %c0_120, %c0_121, %c0_122] : memref<1x8x4x64xf32, #tpu.memory_space<vmem>>, vector<1x1x4x64xf32>
    %120 = vector.shape_cast %119 : vector<1x1x4x64xf32> to vector<4x64xf32>
    %121 = vector.shape_cast %118 : vector<4x64xf32> to vector<1x1x4x64xf32>
    tpu.vector_store %arg6[%c0_119, %c0_120, %c0_121, %c0_122], %121 {strides = array<i32>} : memref<1x8x4x64xf32, #tpu.memory_space<vmem>>, vector<1x1x4x64xf32>,
    %122 = vector.extract_strided_slice %117 {offsets = [4, 0], sizes = [4, 64], strides = [1, 1]} : vector<8x64xf32> to vector<4x64xf32>
    %c0_123 = arith.constant 0 : index
    %c1_124 = arith.constant 1 : index
    %c0_125 = arith.constant 0 : index
    %c0_126 = arith.constant 0 : index
    %123 = vector.load %arg6[%c0_123, %c1_124, %c0_125, %c0_126] : memref<1x8x4x64xf32, #tpu.memory_space<vmem>>, vector<1x1x4x64xf32>
    %124 = vector.shape_cast %123 : vector<1x1x4x64xf32> to vector<4x64xf32>
    %125 = vector.shape_cast %122 : vector<4x64xf32> to vector<1x1x4x64xf32>
    tpu.vector_store %arg6[%c0_123, %c1_124, %c0_125, %c0_126], %125 {strides = array<i32>} : memref<1x8x4x64xf32, #tpu.memory_space<vmem>>, vector<1x1x4x64xf32>,
    %c1_127 = arith.constant 1 : index
    %c0_128 = arith.constant 0 : index
    %c0_129 = arith.constant 0 : index
    %c0_130 = arith.constant 0 : index
    %126 = vector.load %arg7[%c1_127, %c0_128, %c0_129, %c0_130] : memref<4x9x9x128xf32, #tpu.memory_space<vmem>>, vector<1x8x8x128xf32>
    %127 = vector.shape_cast %126 : vector<1x8x8x128xf32> to vector<8x8x128xf32>
    %128 = vector.shape_cast %127 : vector<8x8x128xf32> to vector<64x128xf32>
    %c0_131 = arith.constant 0 : index
    %c0_132 = arith.constant 0 : index
    %c0_133 = arith.constant 0 : index
    %129 = vector.load %arg4[%c0_131, %c0_132, %c0_133] : memref<9x128x8xf32, #tpu.memory_space<vmem>>, vector<1x128x8xf32>
    %130 = vector.shape_cast %129 : vector<1x128x8xf32> to vector<128x8xf32>
    %cst_134 = arith.constant dense<0.000000e+00> : vector<64x8xf32>
    %131 = tpu.matmul %128, %130, %cst_134 {dimension_numbers = #tpu.dot_dimension_numbers<[1], [0], [0], [1], [0, 0, 1, 1], [], []>} : vector<64x128xf32>, vector<128x8xf32>, vector<64x8xf32> -> vector<64x8xf32>
    %132 = arith.addf %53, %131 : vector<64x8xf32>
    %c0_135 = arith.constant 0 : index
    %c0_136 = arith.constant 0 : index
    %c1_137 = arith.constant 1 : index
    %c0_138 = arith.constant 0 : index
    %133 = vector.load %arg7[%c0_135, %c0_136, %c1_137, %c0_138] : memref<4x9x9x128xf32, #tpu.memory_space<vmem>>, vector<1x8x8x128xf32>
    %134 = vector.shape_cast %133 : vector<1x8x8x128xf32> to vector<8x8x128xf32>
    %135 = vector.shape_cast %134 : vector<8x8x128xf32> to vector<64x128xf32>
    %c1_139 = arith.constant 1 : index
    %c0_140 = arith.constant 0 : index
    %c0_141 = arith.constant 0 : index
    %136 = vector.load %arg4[%c1_139, %c0_140, %c0_141] : memref<9x128x8xf32, #tpu.memory_space<vmem>>, vector<1x128x8xf32>
    %137 = vector.shape_cast %136 : vector<1x128x8xf32> to vector<128x8xf32>
    %cst_142 = arith.constant dense<0.000000e+00> : vector<64x8xf32>
    %138 = tpu.matmul %135, %137, %cst_142 {dimension_numbers = #tpu.dot_dimension_numbers<[1], [0], [0], [1], [0, 0, 1, 1], [], []>} : vector<64x128xf32>, vector<128x8xf32>, vector<64x8xf32> -> vector<64x8xf32>
    %139 = arith.addf %132, %138 : vector<64x8xf32>
    %c1_143 = arith.constant 1 : index
    %c0_144 = arith.constant 0 : index
    %c1_145 = arith.constant 1 : index
    %c0_146 = arith.constant 0 : index
    %140 = vector.load %arg7[%c1_143, %c0_144, %c1_145, %c0_146] : memref<4x9x9x128xf32, #tpu.memory_space<vmem>>, vector<1x8x8x128xf32>
    %141 = vector.shape_cast %140 : vector<1x8x8x128xf32> to vector<8x8x128xf32>
    %142 = vector.shape_cast %141 : vector<8x8x128xf32> to vector<64x128xf32>
    %c2_147 = arith.constant 2 : index
    %c0_148 = arith.constant 0 : index
    %c0_149 = arith.constant 0 : index
    %143 = vector.load %arg4[%c2_147, %c0_148, %c0_149] : memref<9x128x8xf32, #tpu.memory_space<vmem>>, vector<1x128x8xf32>
    %144 = vector.shape_cast %143 : vector<1x128x8xf32> to vector<128x8xf32>
    %cst_150 = arith.constant dense<0.000000e+00> : vector<64x8xf32>
    %145 = tpu.matmul %142, %144, %cst_150 {dimension_numbers = #tpu.dot_dimension_numbers<[1], [0], [0], [1], [0, 0, 1, 1], [], []>} : vector<64x128xf32>, vector<128x8xf32>, vector<64x8xf32> -> vector<64x8xf32>
    %146 = arith.addf %139, %145 : vector<64x8xf32>
    %c3_151 = arith.constant 3 : index
    %c0_152 = arith.constant 0 : index
    %c0_153 = arith.constant 0 : index
    %c0_154 = arith.constant 0 : index
    %147 = vector.load %arg7[%c3_151, %c0_152, %c0_153, %c0_154] : memref<4x9x9x128xf32, #tpu.memory_space<vmem>>, vector<1x8x8x128xf32>
    %148 = vector.shape_cast %147 : vector<1x8x8x128xf32> to vector<8x8x128xf32>
    %149 = vector.shape_cast %148 : vector<8x8x128xf32> to vector<64x128xf32>
    %c3_155 = arith.constant 3 : index
    %c0_156 = arith.constant 0 : index
    %c0_157 = arith.constant 0 : index
    %150 = vector.load %arg4[%c3_155, %c0_156, %c0_157] : memref<9x128x8xf32, #tpu.memory_space<vmem>>, vector<1x128x8xf32>
    %151 = vector.shape_cast %150 : vector<1x128x8xf32> to vector<128x8xf32>
    %cst_158 = arith.constant dense<0.000000e+00> : vector<64x8xf32>
    %152 = tpu.matmul %149, %151, %cst_158 {dimension_numbers = #tpu.dot_dimension_numbers<[1], [0], [0], [1], [0, 0, 1, 1], [], []>} : vector<64x128xf32>, vector<128x8xf32>, vector<64x8xf32> -> vector<64x8xf32>
    %153 = arith.addf %146, %152 : vector<64x8xf32>
    %c2_159 = arith.constant 2 : index
    %c0_160 = arith.constant 0 : index
    %c1_161 = arith.constant 1 : index
    %c0_162 = arith.constant 0 : index
    %154 = vector.load %arg7[%c2_159, %c0_160, %c1_161, %c0_162] : memref<4x9x9x128xf32, #tpu.memory_space<vmem>>, vector<1x8x8x128xf32>
    %155 = vector.shape_cast %154 : vector<1x8x8x128xf32> to vector<8x8x128xf32>
    %156 = vector.shape_cast %155 : vector<8x8x128xf32> to vector<64x128xf32>
    %c4_163 = arith.constant 4 : index
    %c0_164 = arith.constant 0 : index
    %c0_165 = arith.constant 0 : index
    %157 = vector.load %arg4[%c4_163, %c0_164, %c0_165] : memref<9x128x8xf32, #tpu.memory_space<vmem>>, vector<1x128x8xf32>
    %158 = vector.shape_cast %157 : vector<1x128x8xf32> to vector<128x8xf32>
    %cst_166 = arith.constant dense<0.000000e+00> : vector<64x8xf32>
    %159 = tpu.matmul %156, %158, %cst_166 {dimension_numbers = #tpu.dot_dimension_numbers<[1], [0], [0], [1], [0, 0, 1, 1], [], []>} : vector<64x128xf32>, vector<128x8xf32>, vector<64x8xf32> -> vector<64x8xf32>
    %160 = arith.addf %153, %159 : vector<64x8xf32>
    %c3_167 = arith.constant 3 : index
    %c0_168 = arith.constant 0 : index
    %c1_169 = arith.constant 1 : index
    %c0_170 = arith.constant 0 : index
    %161 = vector.load %arg7[%c3_167, %c0_168, %c1_169, %c0_170] : memref<4x9x9x128xf32, #tpu.memory_space<vmem>>, vector<1x8x8x128xf32>
    %162 = vector.shape_cast %161 : vector<1x8x8x128xf32> to vector<8x8x128xf32>
    %163 = vector.shape_cast %162 : vector<8x8x128xf32> to vector<64x128xf32>
    %c5_171 = arith.constant 5 : index
    %c0_172 = arith.constant 0 : index
    %c0_173 = arith.constant 0 : index
    %164 = vector.load %arg4[%c5_171, %c0_172, %c0_173] : memref<9x128x8xf32, #tpu.memory_space<vmem>>, vector<1x128x8xf32>
    %165 = vector.shape_cast %164 : vector<1x128x8xf32> to vector<128x8xf32>
    %cst_174 = arith.constant dense<0.000000e+00> : vector<64x8xf32>
    %166 = tpu.matmul %163, %165, %cst_174 {dimension_numbers = #tpu.dot_dimension_numbers<[1], [0], [0], [1], [0, 0, 1, 1], [], []>} : vector<64x128xf32>, vector<128x8xf32>, vector<64x8xf32> -> vector<64x8xf32>
    %167 = arith.addf %160, %166 : vector<64x8xf32>
    %c1_175 = arith.constant 1 : index
    %c1_176 = arith.constant 1 : index
    %c0_177 = arith.constant 0 : index
    %c0_178 = arith.constant 0 : index
    %168 = vector.load %arg7[%c1_175, %c1_176, %c0_177, %c0_178] : memref<4x9x9x128xf32, #tpu.memory_space<vmem>>, vector<1x8x8x128xf32>
    %169 = vector.shape_cast %168 : vector<1x8x8x128xf32> to vector<8x8x128xf32>
    %170 = vector.shape_cast %169 : vector<8x8x128xf32> to vector<64x128xf32>
    %c6_179 = arith.constant 6 : index
    %c0_180 = arith.constant 0 : index
    %c0_181 = arith.constant 0 : index
    %171 = vector.load %arg4[%c6_179, %c0_180, %c0_181] : memref<9x128x8xf32, #tpu.memory_space<vmem>>, vector<1x128x8xf32>
    %172 = vector.shape_cast %171 : vector<1x128x8xf32> to vector<128x8xf32>
    %cst_182 = arith.constant dense<0.000000e+00> : vector<64x8xf32>
    %173 = tpu.matmul %170, %172, %cst_182 {dimension_numbers = #tpu.dot_dimension_numbers<[1], [0], [0], [1], [0, 0, 1, 1], [], []>} : vector<64x128xf32>, vector<128x8xf32>, vector<64x8xf32> -> vector<64x8xf32>
    %174 = arith.addf %167, %173 : vector<64x8xf32>
    %c0_183 = arith.constant 0 : index
    %c1_184 = arith.constant 1 : index
    %c1_185 = arith.constant 1 : index
    %c0_186 = arith.constant 0 : index
    %175 = vector.load %arg7[%c0_183, %c1_184, %c1_185, %c0_186] : memref<4x9x9x128xf32, #tpu.memory_space<vmem>>, vector<1x8x8x128xf32>
    %176 = vector.shape_cast %175 : vector<1x8x8x128xf32> to vector<8x8x128xf32>
    %177 = vector.shape_cast %176 : vector<8x8x128xf32> to vector<64x128xf32>
    %c7_187 = arith.constant 7 : index
    %c0_188 = arith.constant 0 : index
    %c0_189 = arith.constant 0 : index
    %178 = vector.load %arg4[%c7_187, %c0_188, %c0_189] : memref<9x128x8xf32, #tpu.memory_space<vmem>>, vector<1x128x8xf32>
    %179 = vector.shape_cast %178 : vector<1x128x8xf32> to vector<128x8xf32>
    %cst_190 = arith.constant dense<0.000000e+00> : vector<64x8xf32>
    %180 = tpu.matmul %177, %179, %cst_190 {dimension_numbers = #tpu.dot_dimension_numbers<[1], [0], [0], [1], [0, 0, 1, 1], [], []>} : vector<64x128xf32>, vector<128x8xf32>, vector<64x8xf32> -> vector<64x8xf32>
    %181 = arith.addf %174, %180 : vector<64x8xf32>
    %c1_191 = arith.constant 1 : index
    %c1_192 = arith.constant 1 : index
    %c1_193 = arith.constant 1 : index
    %c0_194 = arith.constant 0 : index
    %182 = vector.load %arg7[%c1_191, %c1_192, %c1_193, %c0_194] : memref<4x9x9x128xf32, #tpu.memory_space<vmem>>, vector<1x8x8x128xf32>
    %183 = vector.shape_cast %182 : vector<1x8x8x128xf32> to vector<8x8x128xf32>
    %184 = vector.shape_cast %183 : vector<8x8x128xf32> to vector<64x128xf32>
    %c8_195 = arith.constant 8 : index
    %c0_196 = arith.constant 0 : index
    %c0_197 = arith.constant 0 : index
    %185 = vector.load %arg4[%c8_195, %c0_196, %c0_197] : memref<9x128x8xf32, #tpu.memory_space<vmem>>, vector<1x128x8xf32>
    %186 = vector.shape_cast %185 : vector<1x128x8xf32> to vector<128x8xf32>
    %cst_198 = arith.constant dense<0.000000e+00> : vector<64x8xf32>
    %187 = tpu.matmul %184, %186, %cst_198 {dimension_numbers = #tpu.dot_dimension_numbers<[1], [0], [0], [1], [0, 0, 1, 1], [], []>} : vector<64x128xf32>, vector<128x8xf32>, vector<64x8xf32> -> vector<64x8xf32>
    %188 = arith.addf %181, %187 : vector<64x8xf32>
    %189 = tpu.transpose %188, [1, 0] : vector<64x8xf32> -> vector<8x64xf32>
    %190 = vector.extract_strided_slice %189 {offsets = [0, 0], sizes = [4, 64], strides = [1, 1]} : vector<8x64xf32> to vector<4x64xf32>
    %c0_199 = arith.constant 0 : index
    %c2_200 = arith.constant 2 : index
    %c0_201 = arith.constant 0 : index
    %c0_202 = arith.constant 0 : index
    %191 = vector.load %arg6[%c0_199, %c2_200, %c0_201, %c0_202] : memref<1x8x4x64xf32, #tpu.memory_space<vmem>>, vector<1x1x4x64xf32>
    %192 = vector.shape_cast %191 : vector<1x1x4x64xf32> to vector<4x64xf32>
    %193 = vector.shape_cast %190 : vector<4x64xf32> to vector<1x1x4x64xf32>
    tpu.vector_store %arg6[%c0_199, %c2_200, %c0_201, %c0_202], %193 {strides = array<i32>} : memref<1x8x4x64xf32, #tpu.memory_space<vmem>>, vector<1x1x4x64xf32>,
    %194 = vector.extract_strided_slice %189 {offsets = [4, 0], sizes = [4, 64], strides = [1, 1]} : vector<8x64xf32> to vector<4x64xf32>
    %c0_203 = arith.constant 0 : index
    %c3_204 = arith.constant 3 : index
    %c0_205 = arith.constant 0 : index
    %c0_206 = arith.constant 0 : index
    %195 = vector.load %arg6[%c0_203, %c3_204, %c0_205, %c0_206] : memref<1x8x4x64xf32, #tpu.memory_space<vmem>>, vector<1x1x4x64xf32>
    %196 = vector.shape_cast %195 : vector<1x1x4x64xf32> to vector<4x64xf32>
    %197 = vector.shape_cast %194 : vector<4x64xf32> to vector<1x1x4x64xf32>
    tpu.vector_store %arg6[%c0_203, %c3_204, %c0_205, %c0_206], %197 {strides = array<i32>} : memref<1x8x4x64xf32, #tpu.memory_space<vmem>>, vector<1x1x4x64xf32>,
    %c2_207 = arith.constant 2 : index
    %c0_208 = arith.constant 0 : index
    %c0_209 = arith.constant 0 : index
    %c0_210 = arith.constant 0 : index
    %198 = vector.load %arg7[%c2_207, %c0_208, %c0_209, %c0_210] : memref<4x9x9x128xf32, #tpu.memory_space<vmem>>, vector<1x8x8x128xf32>
    %199 = vector.shape_cast %198 : vector<1x8x8x128xf32> to vector<8x8x128xf32>
    %200 = vector.shape_cast %199 : vector<8x8x128xf32> to vector<64x128xf32>
    %c0_211 = arith.constant 0 : index
    %c0_212 = arith.constant 0 : index
    %c0_213 = arith.constant 0 : index
    %201 = vector.load %arg4[%c0_211, %c0_212, %c0_213] : memref<9x128x8xf32, #tpu.memory_space<vmem>>, vector<1x128x8xf32>
    %202 = vector.shape_cast %201 : vector<1x128x8xf32> to vector<128x8xf32>
    %cst_214 = arith.constant dense<0.000000e+00> : vector<64x8xf32>
    %203 = tpu.matmul %200, %202, %cst_214 {dimension_numbers = #tpu.dot_dimension_numbers<[1], [0], [0], [1], [0, 0, 1, 1], [], []>} : vector<64x128xf32>, vector<128x8xf32>, vector<64x8xf32> -> vector<64x8xf32>
    %204 = arith.addf %53, %203 : vector<64x8xf32>
    %c3_215 = arith.constant 3 : index
    %c0_216 = arith.constant 0 : index
    %c0_217 = arith.constant 0 : index
    %c0_218 = arith.constant 0 : index
    %205 = vector.load %arg7[%c3_215, %c0_216, %c0_217, %c0_218] : memref<4x9x9x128xf32, #tpu.memory_space<vmem>>, vector<1x8x8x128xf32>
    %206 = vector.shape_cast %205 : vector<1x8x8x128xf32> to vector<8x8x128xf32>
    %207 = vector.shape_cast %206 : vector<8x8x128xf32> to vector<64x128xf32>
    %c1_219 = arith.constant 1 : index
    %c0_220 = arith.constant 0 : index
    %c0_221 = arith.constant 0 : index
    %208 = vector.load %arg4[%c1_219, %c0_220, %c0_221] : memref<9x128x8xf32, #tpu.memory_space<vmem>>, vector<1x128x8xf32>
    %209 = vector.shape_cast %208 : vector<1x128x8xf32> to vector<128x8xf32>
    %cst_222 = arith.constant dense<0.000000e+00> : vector<64x8xf32>
    %210 = tpu.matmul %207, %209, %cst_222 {dimension_numbers = #tpu.dot_dimension_numbers<[1], [0], [0], [1], [0, 0, 1, 1], [], []>} : vector<64x128xf32>, vector<128x8xf32>, vector<64x8xf32> -> vector<64x8xf32>
    %211 = arith.addf %204, %210 : vector<64x8xf32>
    %c2_223 = arith.constant 2 : index
    %c0_224 = arith.constant 0 : index
    %c1_225 = arith.constant 1 : index
    %c0_226 = arith.constant 0 : index
    %212 = vector.load %arg7[%c2_223, %c0_224, %c1_225, %c0_226] : memref<4x9x9x128xf32, #tpu.memory_space<vmem>>, vector<1x8x8x128xf32>
    %213 = vector.shape_cast %212 : vector<1x8x8x128xf32> to vector<8x8x128xf32>
    %214 = vector.shape_cast %213 : vector<8x8x128xf32> to vector<64x128xf32>
    %c2_227 = arith.constant 2 : index
    %c0_228 = arith.constant 0 : index
    %c0_229 = arith.constant 0 : index
    %215 = vector.load %arg4[%c2_227, %c0_228, %c0_229] : memref<9x128x8xf32, #tpu.memory_space<vmem>>, vector<1x128x8xf32>
    %216 = vector.shape_cast %215 : vector<1x128x8xf32> to vector<128x8xf32>
    %cst_230 = arith.constant dense<0.000000e+00> : vector<64x8xf32>
    %217 = tpu.matmul %214, %216, %cst_230 {dimension_numbers = #tpu.dot_dimension_numbers<[1], [0], [0], [1], [0, 0, 1, 1], [], []>} : vector<64x128xf32>, vector<128x8xf32>, vector<64x8xf32> -> vector<64x8xf32>
    %218 = arith.addf %211, %217 : vector<64x8xf32>
    %c0_231 = arith.constant 0 : index
    %c1_232 = arith.constant 1 : index
    %c0_233 = arith.constant 0 : index
    %c0_234 = arith.constant 0 : index
    %219 = vector.load %arg7[%c0_231, %c1_232, %c0_233, %c0_234] : memref<4x9x9x128xf32, #tpu.memory_space<vmem>>, vector<1x8x8x128xf32>
    %220 = vector.shape_cast %219 : vector<1x8x8x128xf32> to vector<8x8x128xf32>
    %221 = vector.shape_cast %220 : vector<8x8x128xf32> to vector<64x128xf32>
    %c3_235 = arith.constant 3 : index
    %c0_236 = arith.constant 0 : index
    %c0_237 = arith.constant 0 : index
    %222 = vector.load %arg4[%c3_235, %c0_236, %c0_237] : memref<9x128x8xf32, #tpu.memory_space<vmem>>, vector<1x128x8xf32>
    %223 = vector.shape_cast %222 : vector<1x128x8xf32> to vector<128x8xf32>
    %cst_238 = arith.constant dense<0.000000e+00> : vector<64x8xf32>
    %224 = tpu.matmul %221, %223, %cst_238 {dimension_numbers = #tpu.dot_dimension_numbers<[1], [0], [0], [1], [0, 0, 1, 1], [], []>} : vector<64x128xf32>, vector<128x8xf32>, vector<64x8xf32> -> vector<64x8xf32>
    %225 = arith.addf %218, %224 : vector<64x8xf32>
    %c1_239 = arith.constant 1 : index
    %c1_240 = arith.constant 1 : index
    %c0_241 = arith.constant 0 : index
    %c0_242 = arith.constant 0 : index
    %226 = vector.load %arg7[%c1_239, %c1_240, %c0_241, %c0_242] : memref<4x9x9x128xf32, #tpu.memory_space<vmem>>, vector<1x8x8x128xf32>
    %227 = vector.shape_cast %226 : vector<1x8x8x128xf32> to vector<8x8x128xf32>
    %228 = vector.shape_cast %227 : vector<8x8x128xf32> to vector<64x128xf32>
    %c4_243 = arith.constant 4 : index
    %c0_244 = arith.constant 0 : index
    %c0_245 = arith.constant 0 : index
    %229 = vector.load %arg4[%c4_243, %c0_244, %c0_245] : memref<9x128x8xf32, #tpu.memory_space<vmem>>, vector<1x128x8xf32>
    %230 = vector.shape_cast %229 : vector<1x128x8xf32> to vector<128x8xf32>
    %cst_246 = arith.constant dense<0.000000e+00> : vector<64x8xf32>
    %231 = tpu.matmul %228, %230, %cst_246 {dimension_numbers = #tpu.dot_dimension_numbers<[1], [0], [0], [1], [0, 0, 1, 1], [], []>} : vector<64x128xf32>, vector<128x8xf32>, vector<64x8xf32> -> vector<64x8xf32>
    %232 = arith.addf %225, %231 : vector<64x8xf32>
    %c0_247 = arith.constant 0 : index
    %c1_248 = arith.constant 1 : index
    %c1_249 = arith.constant 1 : index
    %c0_250 = arith.constant 0 : index
    %233 = vector.load %arg7[%c0_247, %c1_248, %c1_249, %c0_250] : memref<4x9x9x128xf32, #tpu.memory_space<vmem>>, vector<1x8x8x128xf32>
    %234 = vector.shape_cast %233 : vector<1x8x8x128xf32> to vector<8x8x128xf32>
    %235 = vector.shape_cast %234 : vector<8x8x128xf32> to vector<64x128xf32>
    %c5_251 = arith.constant 5 : index
    %c0_252 = arith.constant 0 : index
    %c0_253 = arith.constant 0 : index
    %236 = vector.load %arg4[%c5_251, %c0_252, %c0_253] : memref<9x128x8xf32, #tpu.memory_space<vmem>>, vector<1x128x8xf32>
    %237 = vector.shape_cast %236 : vector<1x128x8xf32> to vector<128x8xf32>
    %cst_254 = arith.constant dense<0.000000e+00> : vector<64x8xf32>
    %238 = tpu.matmul %235, %237, %cst_254 {dimension_numbers = #tpu.dot_dimension_numbers<[1], [0], [0], [1], [0, 0, 1, 1], [], []>} : vector<64x128xf32>, vector<128x8xf32>, vector<64x8xf32> -> vector<64x8xf32>
    %239 = arith.addf %232, %238 : vector<64x8xf32>
    %c2_255 = arith.constant 2 : index
    %c1_256 = arith.constant 1 : index
    %c0_257 = arith.constant 0 : index
    %c0_258 = arith.constant 0 : index
    %240 = vector.load %arg7[%c2_255, %c1_256, %c0_257, %c0_258] : memref<4x9x9x128xf32, #tpu.memory_space<vmem>>, vector<1x8x8x128xf32>
    %241 = vector.shape_cast %240 : vector<1x8x8x128xf32> to vector<8x8x128xf32>
    %242 = vector.shape_cast %241 : vector<8x8x128xf32> to vector<64x128xf32>
    %c6_259 = arith.constant 6 : index
    %c0_260 = arith.constant 0 : index
    %c0_261 = arith.constant 0 : index
    %243 = vector.load %arg4[%c6_259, %c0_260, %c0_261] : memref<9x128x8xf32, #tpu.memory_space<vmem>>, vector<1x128x8xf32>
    %244 = vector.shape_cast %243 : vector<1x128x8xf32> to vector<128x8xf32>
    %cst_262 = arith.constant dense<0.000000e+00> : vector<64x8xf32>
    %245 = tpu.matmul %242, %244, %cst_262 {dimension_numbers = #tpu.dot_dimension_numbers<[1], [0], [0], [1], [0, 0, 1, 1], [], []>} : vector<64x128xf32>, vector<128x8xf32>, vector<64x8xf32> -> vector<64x8xf32>
    %246 = arith.addf %239, %245 : vector<64x8xf32>
    %c3_263 = arith.constant 3 : index
    %c1_264 = arith.constant 1 : index
    %c0_265 = arith.constant 0 : index
    %c0_266 = arith.constant 0 : index
    %247 = vector.load %arg7[%c3_263, %c1_264, %c0_265, %c0_266] : memref<4x9x9x128xf32, #tpu.memory_space<vmem>>, vector<1x8x8x128xf32>
    %248 = vector.shape_cast %247 : vector<1x8x8x128xf32> to vector<8x8x128xf32>
    %249 = vector.shape_cast %248 : vector<8x8x128xf32> to vector<64x128xf32>
    %c7_267 = arith.constant 7 : index
    %c0_268 = arith.constant 0 : index
    %c0_269 = arith.constant 0 : index
    %250 = vector.load %arg4[%c7_267, %c0_268, %c0_269] : memref<9x128x8xf32, #tpu.memory_space<vmem>>, vector<1x128x8xf32>
    %251 = vector.shape_cast %250 : vector<1x128x8xf32> to vector<128x8xf32>
    %cst_270 = arith.constant dense<0.000000e+00> : vector<64x8xf32>
    %252 = tpu.matmul %249, %251, %cst_270 {dimension_numbers = #tpu.dot_dimension_numbers<[1], [0], [0], [1], [0, 0, 1, 1], [], []>} : vector<64x128xf32>, vector<128x8xf32>, vector<64x8xf32> -> vector<64x8xf32>
    %253 = arith.addf %246, %252 : vector<64x8xf32>
    %c2_271 = arith.constant 2 : index
    %c1_272 = arith.constant 1 : index
    %c1_273 = arith.constant 1 : index
    %c0_274 = arith.constant 0 : index
    %254 = vector.load %arg7[%c2_271, %c1_272, %c1_273, %c0_274] : memref<4x9x9x128xf32, #tpu.memory_space<vmem>>, vector<1x8x8x128xf32>
    %255 = vector.shape_cast %254 : vector<1x8x8x128xf32> to vector<8x8x128xf32>
    %256 = vector.shape_cast %255 : vector<8x8x128xf32> to vector<64x128xf32>
    %c8_275 = arith.constant 8 : index
    %c0_276 = arith.constant 0 : index
    %c0_277 = arith.constant 0 : index
    %257 = vector.load %arg4[%c8_275, %c0_276, %c0_277] : memref<9x128x8xf32, #tpu.memory_space<vmem>>, vector<1x128x8xf32>
    %258 = vector.shape_cast %257 : vector<1x128x8xf32> to vector<128x8xf32>
    %cst_278 = arith.constant dense<0.000000e+00> : vector<64x8xf32>
    %259 = tpu.matmul %256, %258, %cst_278 {dimension_numbers = #tpu.dot_dimension_numbers<[1], [0], [0], [1], [0, 0, 1, 1], [], []>} : vector<64x128xf32>, vector<128x8xf32>, vector<64x8xf32> -> vector<64x8xf32>
    %260 = arith.addf %253, %259 : vector<64x8xf32>
    %261 = tpu.transpose %260, [1, 0] : vector<64x8xf32> -> vector<8x64xf32>
    %262 = vector.extract_strided_slice %261 {offsets = [0, 0], sizes = [4, 64], strides = [1, 1]} : vector<8x64xf32> to vector<4x64xf32>
    %c0_279 = arith.constant 0 : index
    %c4_280 = arith.constant 4 : index
    %c0_281 = arith.constant 0 : index
    %c0_282 = arith.constant 0 : index
    %263 = vector.load %arg6[%c0_279, %c4_280, %c0_281, %c0_282] : memref<1x8x4x64xf32, #tpu.memory_space<vmem>>, vector<1x1x4x64xf32>
    %264 = vector.shape_cast %263 : vector<1x1x4x64xf32> to vector<4x64xf32>
    %265 = vector.shape_cast %262 : vector<4x64xf32> to vector<1x1x4x64xf32>
    tpu.vector_store %arg6[%c0_279, %c4_280, %c0_281, %c0_282], %265 {strides = array<i32>} : memref<1x8x4x64xf32, #tpu.memory_space<vmem>>, vector<1x1x4x64xf32>,
    %266 = vector.extract_strided_slice %261 {offsets = [4, 0], sizes = [4, 64], strides = [1, 1]} : vector<8x64xf32> to vector<4x64xf32>
    %c0_283 = arith.constant 0 : index
    %c5_284 = arith.constant 5 : index
    %c0_285 = arith.constant 0 : index
    %c0_286 = arith.constant 0 : index
    %267 = vector.load %arg6[%c0_283, %c5_284, %c0_285, %c0_286] : memref<1x8x4x64xf32, #tpu.memory_space<vmem>>, vector<1x1x4x64xf32>
    %268 = vector.shape_cast %267 : vector<1x1x4x64xf32> to vector<4x64xf32>
    %269 = vector.shape_cast %266 : vector<4x64xf32> to vector<1x1x4x64xf32>
    tpu.vector_store %arg6[%c0_283, %c5_284, %c0_285, %c0_286], %269 {strides = array<i32>} : memref<1x8x4x64xf32, #tpu.memory_space<vmem>>, vector<1x1x4x64xf32>,
    %c3_287 = arith.constant 3 : index
    %c0_288 = arith.constant 0 : index
    %c0_289 = arith.constant 0 : index
    %c0_290 = arith.constant 0 : index
    %270 = vector.load %arg7[%c3_287, %c0_288, %c0_289, %c0_290] : memref<4x9x9x128xf32, #tpu.memory_space<vmem>>, vector<1x8x8x128xf32>
    %271 = vector.shape_cast %270 : vector<1x8x8x128xf32> to vector<8x8x128xf32>
    %272 = vector.shape_cast %271 : vector<8x8x128xf32> to vector<64x128xf32>
    %c0_291 = arith.constant 0 : index
    %c0_292 = arith.constant 0 : index
    %c0_293 = arith.constant 0 : index
    %273 = vector.load %arg4[%c0_291, %c0_292, %c0_293] : memref<9x128x8xf32, #tpu.memory_space<vmem>>, vector<1x128x8xf32>
    %274 = vector.shape_cast %273 : vector<1x128x8xf32> to vector<128x8xf32>
    %cst_294 = arith.constant dense<0.000000e+00> : vector<64x8xf32>
    %275 = tpu.matmul %272, %274, %cst_294 {dimension_numbers = #tpu.dot_dimension_numbers<[1], [0], [0], [1], [0, 0, 1, 1], [], []>} : vector<64x128xf32>, vector<128x8xf32>, vector<64x8xf32> -> vector<64x8xf32>
    %276 = arith.addf %53, %275 : vector<64x8xf32>
    %c2_295 = arith.constant 2 : index
    %c0_296 = arith.constant 0 : index
    %c1_297 = arith.constant 1 : index
    %c0_298 = arith.constant 0 : index
    %277 = vector.load %arg7[%c2_295, %c0_296, %c1_297, %c0_298] : memref<4x9x9x128xf32, #tpu.memory_space<vmem>>, vector<1x8x8x128xf32>
    %278 = vector.shape_cast %277 : vector<1x8x8x128xf32> to vector<8x8x128xf32>
    %279 = vector.shape_cast %278 : vector<8x8x128xf32> to vector<64x128xf32>
    %c1_299 = arith.constant 1 : index
    %c0_300 = arith.constant 0 : index
    %c0_301 = arith.constant 0 : index
    %280 = vector.load %arg4[%c1_299, %c0_300, %c0_301] : memref<9x128x8xf32, #tpu.memory_space<vmem>>, vector<1x128x8xf32>
    %281 = vector.shape_cast %280 : vector<1x128x8xf32> to vector<128x8xf32>
    %cst_302 = arith.constant dense<0.000000e+00> : vector<64x8xf32>
    %282 = tpu.matmul %279, %281, %cst_302 {dimension_numbers = #tpu.dot_dimension_numbers<[1], [0], [0], [1], [0, 0, 1, 1], [], []>} : vector<64x128xf32>, vector<128x8xf32>, vector<64x8xf32> -> vector<64x8xf32>
    %283 = arith.addf %276, %282 : vector<64x8xf32>
    %c3_303 = arith.constant 3 : index
    %c0_304 = arith.constant 0 : index
    %c1_305 = arith.constant 1 : index
    %c0_306 = arith.constant 0 : index
    %284 = vector.load %arg7[%c3_303, %c0_304, %c1_305, %c0_306] : memref<4x9x9x128xf32, #tpu.memory_space<vmem>>, vector<1x8x8x128xf32>
    %285 = vector.shape_cast %284 : vector<1x8x8x128xf32> to vector<8x8x128xf32>
    %286 = vector.shape_cast %285 : vector<8x8x128xf32> to vector<64x128xf32>
    %c2_307 = arith.constant 2 : index
    %c0_308 = arith.constant 0 : index
    %c0_309 = arith.constant 0 : index
    %287 = vector.load %arg4[%c2_307, %c0_308, %c0_309] : memref<9x128x8xf32, #tpu.memory_space<vmem>>, vector<1x128x8xf32>
    %288 = vector.shape_cast %287 : vector<1x128x8xf32> to vector<128x8xf32>
    %cst_310 = arith.constant dense<0.000000e+00> : vector<64x8xf32>
    %289 = tpu.matmul %286, %288, %cst_310 {dimension_numbers = #tpu.dot_dimension_numbers<[1], [0], [0], [1], [0, 0, 1, 1], [], []>} : vector<64x128xf32>, vector<128x8xf32>, vector<64x8xf32> -> vector<64x8xf32>
    %290 = arith.addf %283, %289 : vector<64x8xf32>
    %c1_311 = arith.constant 1 : index
    %c1_312 = arith.constant 1 : index
    %c0_313 = arith.constant 0 : index
    %c0_314 = arith.constant 0 : index
    %291 = vector.load %arg7[%c1_311, %c1_312, %c0_313, %c0_314] : memref<4x9x9x128xf32, #tpu.memory_space<vmem>>, vector<1x8x8x128xf32>
    %292 = vector.shape_cast %291 : vector<1x8x8x128xf32> to vector<8x8x128xf32>
    %293 = vector.shape_cast %292 : vector<8x8x128xf32> to vector<64x128xf32>
    %c3_315 = arith.constant 3 : index
    %c0_316 = arith.constant 0 : index
    %c0_317 = arith.constant 0 : index
    %294 = vector.load %arg4[%c3_315, %c0_316, %c0_317] : memref<9x128x8xf32, #tpu.memory_space<vmem>>, vector<1x128x8xf32>
    %295 = vector.shape_cast %294 : vector<1x128x8xf32> to vector<128x8xf32>
    %cst_318 = arith.constant dense<0.000000e+00> : vector<64x8xf32>
    %296 = tpu.matmul %293, %295, %cst_318 {dimension_numbers = #tpu.dot_dimension_numbers<[1], [0], [0], [1], [0, 0, 1, 1], [], []>} : vector<64x128xf32>, vector<128x8xf32>, vector<64x8xf32> -> vector<64x8xf32>
    %297 = arith.addf %290, %296 : vector<64x8xf32>
    %c0_319 = arith.constant 0 : index
    %c1_320 = arith.constant 1 : index
    %c1_321 = arith.constant 1 : index
    %c0_322 = arith.constant 0 : index
    %298 = vector.load %arg7[%c0_319, %c1_320, %c1_321, %c0_322] : memref<4x9x9x128xf32, #tpu.memory_space<vmem>>, vector<1x8x8x128xf32>
    %299 = vector.shape_cast %298 : vector<1x8x8x128xf32> to vector<8x8x128xf32>
    %300 = vector.shape_cast %299 : vector<8x8x128xf32> to vector<64x128xf32>
    %c4_323 = arith.constant 4 : index
    %c0_324 = arith.constant 0 : index
    %c0_325 = arith.constant 0 : index
    %301 = vector.load %arg4[%c4_323, %c0_324, %c0_325] : memref<9x128x8xf32, #tpu.memory_space<vmem>>, vector<1x128x8xf32>
    %302 = vector.shape_cast %301 : vector<1x128x8xf32> to vector<128x8xf32>
    %cst_326 = arith.constant dense<0.000000e+00> : vector<64x8xf32>
    %303 = tpu.matmul %300, %302, %cst_326 {dimension_numbers = #tpu.dot_dimension_numbers<[1], [0], [0], [1], [0, 0, 1, 1], [], []>} : vector<64x128xf32>, vector<128x8xf32>, vector<64x8xf32> -> vector<64x8xf32>
    %304 = arith.addf %297, %303 : vector<64x8xf32>
    %c1_327 = arith.constant 1 : index
    %c1_328 = arith.constant 1 : index
    %c1_329 = arith.constant 1 : index
    %c0_330 = arith.constant 0 : index
    %305 = vector.load %arg7[%c1_327, %c1_328, %c1_329, %c0_330] : memref<4x9x9x128xf32, #tpu.memory_space<vmem>>, vector<1x8x8x128xf32>
    %306 = vector.shape_cast %305 : vector<1x8x8x128xf32> to vector<8x8x128xf32>
    %307 = vector.shape_cast %306 : vector<8x8x128xf32> to vector<64x128xf32>
    %c5_331 = arith.constant 5 : index
    %c0_332 = arith.constant 0 : index
    %c0_333 = arith.constant 0 : index
    %308 = vector.load %arg4[%c5_331, %c0_332, %c0_333] : memref<9x128x8xf32, #tpu.memory_space<vmem>>, vector<1x128x8xf32>
    %309 = vector.shape_cast %308 : vector<1x128x8xf32> to vector<128x8xf32>
    %cst_334 = arith.constant dense<0.000000e+00> : vector<64x8xf32>
    %310 = tpu.matmul %307, %309, %cst_334 {dimension_numbers = #tpu.dot_dimension_numbers<[1], [0], [0], [1], [0, 0, 1, 1], [], []>} : vector<64x128xf32>, vector<128x8xf32>, vector<64x8xf32> -> vector<64x8xf32>
    %311 = arith.addf %304, %310 : vector<64x8xf32>
    %c3_335 = arith.constant 3 : index
    %c1_336 = arith.constant 1 : index
    %c0_337 = arith.constant 0 : index
    %c0_338 = arith.constant 0 : index
    %312 = vector.load %arg7[%c3_335, %c1_336, %c0_337, %c0_338] : memref<4x9x9x128xf32, #tpu.memory_space<vmem>>, vector<1x8x8x128xf32>
    %313 = vector.shape_cast %312 : vector<1x8x8x128xf32> to vector<8x8x128xf32>
    %314 = vector.shape_cast %313 : vector<8x8x128xf32> to vector<64x128xf32>
    %c6_339 = arith.constant 6 : index
    %c0_340 = arith.constant 0 : index
    %c0_341 = arith.constant 0 : index
    %315 = vector.load %arg4[%c6_339, %c0_340, %c0_341] : memref<9x128x8xf32, #tpu.memory_space<vmem>>, vector<1x128x8xf32>
    %316 = vector.shape_cast %315 : vector<1x128x8xf32> to vector<128x8xf32>
    %cst_342 = arith.constant dense<0.000000e+00> : vector<64x8xf32>
    %317 = tpu.matmul %314, %316, %cst_342 {dimension_numbers = #tpu.dot_dimension_numbers<[1], [0], [0], [1], [0, 0, 1, 1], [], []>} : vector<64x128xf32>, vector<128x8xf32>, vector<64x8xf32> -> vector<64x8xf32>
    %318 = arith.addf %311, %317 : vector<64x8xf32>
    %c2_343 = arith.constant 2 : index
    %c1_344 = arith.constant 1 : index
    %c1_345 = arith.constant 1 : index
    %c0_346 = arith.constant 0 : index
    %319 = vector.load %arg7[%c2_343, %c1_344, %c1_345, %c0_346] : memref<4x9x9x128xf32, #tpu.memory_space<vmem>>, vector<1x8x8x128xf32>
    %320 = vector.shape_cast %319 : vector<1x8x8x128xf32> to vector<8x8x128xf32>
    %321 = vector.shape_cast %320 : vector<8x8x128xf32> to vector<64x128xf32>
    %c7_347 = arith.constant 7 : index
    %c0_348 = arith.constant 0 : index
    %c0_349 = arith.constant 0 : index
    %322 = vector.load %arg4[%c7_347, %c0_348, %c0_349] : memref<9x128x8xf32, #tpu.memory_space<vmem>>, vector<1x128x8xf32>
    %323 = vector.shape_cast %322 : vector<1x128x8xf32> to vector<128x8xf32>
    %cst_350 = arith.constant dense<0.000000e+00> : vector<64x8xf32>
    %324 = tpu.matmul %321, %323, %cst_350 {dimension_numbers = #tpu.dot_dimension_numbers<[1], [0], [0], [1], [0, 0, 1, 1], [], []>} : vector<64x128xf32>, vector<128x8xf32>, vector<64x8xf32> -> vector<64x8xf32>
    %325 = arith.addf %318, %324 : vector<64x8xf32>
    %c3_351 = arith.constant 3 : index
    %c1_352 = arith.constant 1 : index
    %c1_353 = arith.constant 1 : index
    %c0_354 = arith.constant 0 : index
    %326 = vector.load %arg7[%c3_351, %c1_352, %c1_353, %c0_354] : memref<4x9x9x128xf32, #tpu.memory_space<vmem>>, vector<1x8x8x128xf32>
    %327 = vector.shape_cast %326 : vector<1x8x8x128xf32> to vector<8x8x128xf32>
    %328 = vector.shape_cast %327 : vector<8x8x128xf32> to vector<64x128xf32>
    %c8_355 = arith.constant 8 : index
    %c0_356 = arith.constant 0 : index
    %c0_357 = arith.constant 0 : index
    %329 = vector.load %arg4[%c8_355, %c0_356, %c0_357] : memref<9x128x8xf32, #tpu.memory_space<vmem>>, vector<1x128x8xf32>
    %330 = vector.shape_cast %329 : vector<1x128x8xf32> to vector<128x8xf32>
    %cst_358 = arith.constant dense<0.000000e+00> : vector<64x8xf32>
    %331 = tpu.matmul %328, %330, %cst_358 {dimension_numbers = #tpu.dot_dimension_numbers<[1], [0], [0], [1], [0, 0, 1, 1], [], []>} : vector<64x128xf32>, vector<128x8xf32>, vector<64x8xf32> -> vector<64x8xf32>
    %332 = arith.addf %325, %331 : vector<64x8xf32>
    %333 = tpu.transpose %332, [1, 0] : vector<64x8xf32> -> vector<8x64xf32>
    %334 = vector.extract_strided_slice %333 {offsets = [0, 0], sizes = [4, 64], strides = [1, 1]} : vector<8x64xf32> to vector<4x64xf32>
    %c0_359 = arith.constant 0 : index
    %c6_360 = arith.constant 6 : index
    %c0_361 = arith.constant 0 : index
    %c0_362 = arith.constant 0 : index
    %335 = vector.load %arg6[%c0_359, %c6_360, %c0_361, %c0_362] : memref<1x8x4x64xf32, #tpu.memory_space<vmem>>, vector<1x1x4x64xf32>
    %336 = vector.shape_cast %335 : vector<1x1x4x64xf32> to vector<4x64xf32>
    %337 = vector.shape_cast %334 : vector<4x64xf32> to vector<1x1x4x64xf32>
    tpu.vector_store %arg6[%c0_359, %c6_360, %c0_361, %c0_362], %337 {strides = array<i32>} : memref<1x8x4x64xf32, #tpu.memory_space<vmem>>, vector<1x1x4x64xf32>,
    %338 = vector.extract_strided_slice %333 {offsets = [4, 0], sizes = [4, 64], strides = [1, 1]} : vector<8x64xf32> to vector<4x64xf32>
    %c0_363 = arith.constant 0 : index
    %c7_364 = arith.constant 7 : index
    %c0_365 = arith.constant 0 : index
    %c0_366 = arith.constant 0 : index
    %339 = vector.load %arg6[%c0_363, %c7_364, %c0_365, %c0_366] : memref<1x8x4x64xf32, #tpu.memory_space<vmem>>, vector<1x1x4x64xf32>
    %340 = vector.shape_cast %339 : vector<1x1x4x64xf32> to vector<4x64xf32>
    %341 = vector.shape_cast %338 : vector<4x64xf32> to vector<1x1x4x64xf32>
    tpu.vector_store %arg6[%c0_363, %c7_364, %c0_365, %c0_366], %341 {strides = array<i32>} : memref<1x8x4x64xf32, #tpu.memory_space<vmem>>, vector<1x1x4x64xf32>,
    return
  }
  func.func @transform_0(%arg0: i32) -> (i32, i32, i32, i32) {
    %c0_i32 = arith.constant 0 : i32
    %c0_i32_0 = arith.constant 0 : i32
    %c0_i32_1 = arith.constant 0 : i32
    %c0_i32_2 = arith.constant 0 : i32
    return %arg0, %c0_i32, %c0_i32_0, %c0_i32_1 : i32, i32, i32, i32
  }
  func.func @transform_1(%arg0: i32) -> (i32, i32) {
    %c0_i32 = arith.constant 0 : i32
    %c0_i32_0 = arith.constant 0 : i32
    %c0_i32_1 = arith.constant 0 : i32
    return %c0_i32, %c0_i32_0 : i32, i32
  }
  func.func @transform_2(%arg0: i32) -> (i32, i32) {
    %c0_i32 = arith.constant 0 : i32
    %c0_i32_0 = arith.constant 0 : i32
    %c0_i32_1 = arith.constant 0 : i32
    return %c0_i32, %c0_i32_0 : i32, i32
  }
  func.func @transform_3(%arg0: i32) -> (i32, i32, i32) {
    %c0_i32 = arith.constant 0 : i32
    %c0_i32_0 = arith.constant 0 : i32
    %c0_i32_1 = arith.constant 0 : i32
    %c0_i32_2 = arith.constant 0 : i32
    return %c0_i32, %c0_i32_0, %c0_i32_1 : i32, i32, i32
  }
  func.func @transform_4(%arg0: i32) -> (i32, i32) {
    %c0_i32 = arith.constant 0 : i32
    %c0_i32_0 = arith.constant 0 : i32
    %c0_i32_1 = arith.constant 0 : i32
    return %c0_i32, %c0_i32_0 : i32, i32
  }
  func.func @transform_5(%arg0: i32) -> (i32, i32, i32, i32) {
    %c0_i32 = arith.constant 0 : i32
    %c0_i32_0 = arith.constant 0 : i32
    %c0_i32_1 = arith.constant 0 : i32
    %c0_i32_2 = arith.constant 0 : i32
    return %arg0, %c0_i32, %c0_i32_0, %c0_i32_1 : i32, i32, i32, i32
  }
}

module attributes {stable_mosaic.version = 11 : i64} {
  func.func @_iwt_in_spade_hwt_kernel(%arg0: i32, %arg1: i32, %arg2: memref<1x4x4x64xf32, #tpu.memory_space<vmem>>, %arg3: memref<1x8x4x64xf32, #tpu.memory_space<vmem>>, %arg4: memref<1x4x4x64xf32, #tpu.memory_space<vmem>>) attributes {dimension_semantics = [#tpu.dimension_semantics<parallel>, #tpu.dimension_semantics<parallel>], iteration_bounds = array<i64: 2, 1>, scalar_prefetch = 0 : i64, scratch_operands = 0 : i64, tpu.core_type = #tpu.core_type<tc>, window_params = [{transform_indices = @transform_0, window_bounds = array<i64: 1, 4, 4, 64>}, {transform_indices = @transform_1, window_bounds = array<i64: 1, 8, 4, 64>}, {transform_indices = @transform_2, window_bounds = array<i64: 1, 4, 4, 64>}]} {
    %c0 = arith.constant 0 : index
    %c0_0 = arith.constant 0 : index
    %c0_1 = arith.constant 0 : index
    %c0_2 = arith.constant 0 : index
    %0 = vector.load %arg2[%c0, %c0_0, %c0_1, %c0_2] : memref<1x4x4x64xf32, #tpu.memory_space<vmem>>, vector<1x1x4x64xf32>
    %1 = vector.shape_cast %0 : vector<1x1x4x64xf32> to vector<4x64xf32>
    %c0_3 = arith.constant 0 : index
    %c1 = arith.constant 1 : index
    %c0_4 = arith.constant 0 : index
    %c0_5 = arith.constant 0 : index
    %2 = vector.load %arg2[%c0_3, %c1, %c0_4, %c0_5] : memref<1x4x4x64xf32, #tpu.memory_space<vmem>>, vector<1x1x4x64xf32>
    %3 = vector.shape_cast %2 : vector<1x1x4x64xf32> to vector<4x64xf32>
    %c0_6 = arith.constant 0 : index
    %c2 = arith.constant 2 : index
    %c0_7 = arith.constant 0 : index
    %c0_8 = arith.constant 0 : index
    %4 = vector.load %arg2[%c0_6, %c2, %c0_7, %c0_8] : memref<1x4x4x64xf32, #tpu.memory_space<vmem>>, vector<1x1x4x64xf32>
    %5 = vector.shape_cast %4 : vector<1x1x4x64xf32> to vector<4x64xf32>
    %c0_9 = arith.constant 0 : index
    %c3 = arith.constant 3 : index
    %c0_10 = arith.constant 0 : index
    %c0_11 = arith.constant 0 : index
    %6 = vector.load %arg2[%c0_9, %c3, %c0_10, %c0_11] : memref<1x4x4x64xf32, #tpu.memory_space<vmem>>, vector<1x1x4x64xf32>
    %7 = vector.shape_cast %6 : vector<1x1x4x64xf32> to vector<4x64xf32>
    %8 = arith.addf %1, %3 : vector<4x64xf32>
    %9 = arith.subf %1, %3 : vector<4x64xf32>
    %10 = arith.addf %5, %7 : vector<4x64xf32>
    %11 = arith.subf %5, %7 : vector<4x64xf32>
    %12 = arith.addf %8, %10 : vector<4x64xf32>
    %cst = arith.constant 5.000000e-01 : f32
    %13 = vector.broadcast %cst : f32 to vector<4x64xf32>
    %14 = arith.mulf %13, %12 : vector<4x64xf32>
    %15 = arith.subf %8, %10 : vector<4x64xf32>
    %cst_12 = arith.constant 5.000000e-01 : f32
    %16 = vector.broadcast %cst_12 : f32 to vector<4x64xf32>
    %17 = arith.mulf %16, %15 : vector<4x64xf32>
    %18 = arith.addf %9, %11 : vector<4x64xf32>
    %cst_13 = arith.constant 5.000000e-01 : f32
    %19 = vector.broadcast %cst_13 : f32 to vector<4x64xf32>
    %20 = arith.mulf %19, %18 : vector<4x64xf32>
    %21 = arith.subf %9, %11 : vector<4x64xf32>
    %cst_14 = arith.constant 5.000000e-01 : f32
    %22 = vector.broadcast %cst_14 : f32 to vector<4x64xf32>
    %23 = arith.mulf %22, %21 : vector<4x64xf32>
    %24 = arith.addf %14, %17 : vector<4x64xf32>
    %25 = arith.addf %24, %20 : vector<4x64xf32>
    %26 = arith.addf %25, %23 : vector<4x64xf32>
    %cst_15 = arith.constant dense<0.000000e+00> : vector<4xf32>
    %27 = vector.multi_reduction <add>, %26, %cst_15 [1] : vector<4x64xf32> to vector<4xf32>
    %28 = vector.shape_cast %27 : vector<4xf32> to vector<4x1xf32>
    %cst_16 = arith.constant 3.906250e-03 : f32
    %29 = vector.broadcast %cst_16 : f32 to vector<4x1xf32>
    %30 = arith.mulf %28, %29 : vector<4x1xf32>
    %31 = vector.broadcast %30 : vector<4x1xf32> to vector<4x64xf32>
    %32 = arith.subf %14, %31 : vector<4x64xf32>
    %33 = vector.broadcast %30 : vector<4x1xf32> to vector<4x64xf32>
    %34 = arith.subf %17, %33 : vector<4x64xf32>
    %35 = vector.broadcast %30 : vector<4x1xf32> to vector<4x64xf32>
    %36 = arith.subf %20, %35 : vector<4x64xf32>
    %37 = vector.broadcast %30 : vector<4x1xf32> to vector<4x64xf32>
    %38 = arith.subf %23, %37 : vector<4x64xf32>
    %39 = arith.mulf %32, %32 : vector<4x64xf32>
    %40 = arith.mulf %34, %34 : vector<4x64xf32>
    %41 = arith.addf %39, %40 : vector<4x64xf32>
    %42 = arith.mulf %36, %36 : vector<4x64xf32>
    %43 = arith.addf %41, %42 : vector<4x64xf32>
    %44 = arith.mulf %38, %38 : vector<4x64xf32>
    %45 = arith.addf %43, %44 : vector<4x64xf32>
    %cst_17 = arith.constant dense<0.000000e+00> : vector<4xf32>
    %46 = vector.multi_reduction <add>, %45, %cst_17 [1] : vector<4x64xf32> to vector<4xf32>
    %47 = vector.shape_cast %46 : vector<4xf32> to vector<4x1xf32>
    %cst_18 = arith.constant 3.906250e-03 : f32
    %48 = vector.broadcast %cst_18 : f32 to vector<4x1xf32>
    %49 = arith.mulf %47, %48 : vector<4x1xf32>
    %cst_19 = arith.constant 9.99999974E-6 : f32
    %50 = vector.broadcast %cst_19 : f32 to vector<4x1xf32>
    %51 = arith.addf %49, %50 : vector<4x1xf32>
    %52 = math.rsqrt %51 : vector<4x1xf32>
    %53 = vector.broadcast %52 : vector<4x1xf32> to vector<4x64xf32>
    %54 = arith.mulf %32, %53 : vector<4x64xf32>
    %c0_20 = arith.constant 0 : index
    %c0_21 = arith.constant 0 : index
    %c0_22 = arith.constant 0 : index
    %c0_23 = arith.constant 0 : index
    %55 = vector.load %arg3[%c0_20, %c0_21, %c0_22, %c0_23] : memref<1x8x4x64xf32, #tpu.memory_space<vmem>>, vector<1x1x4x64xf32>
    %56 = vector.shape_cast %55 : vector<1x1x4x64xf32> to vector<4x64xf32>
    %cst_24 = arith.constant 1.000000e+00 : f32
    %57 = vector.broadcast %cst_24 : f32 to vector<4x64xf32>
    %58 = arith.addf %57, %56 : vector<4x64xf32>
    %59 = arith.mulf %54, %58 : vector<4x64xf32>
    %c0_25 = arith.constant 0 : index
    %c1_26 = arith.constant 1 : index
    %c0_27 = arith.constant 0 : index
    %c0_28 = arith.constant 0 : index
    %60 = vector.load %arg3[%c0_25, %c1_26, %c0_27, %c0_28] : memref<1x8x4x64xf32, #tpu.memory_space<vmem>>, vector<1x1x4x64xf32>
    %61 = vector.shape_cast %60 : vector<1x1x4x64xf32> to vector<4x64xf32>
    %62 = arith.addf %59, %61 : vector<4x64xf32>
    %63 = vector.broadcast %52 : vector<4x1xf32> to vector<4x64xf32>
    %64 = arith.mulf %34, %63 : vector<4x64xf32>
    %c0_29 = arith.constant 0 : index
    %c2_30 = arith.constant 2 : index
    %c0_31 = arith.constant 0 : index
    %c0_32 = arith.constant 0 : index
    %65 = vector.load %arg3[%c0_29, %c2_30, %c0_31, %c0_32] : memref<1x8x4x64xf32, #tpu.memory_space<vmem>>, vector<1x1x4x64xf32>
    %66 = vector.shape_cast %65 : vector<1x1x4x64xf32> to vector<4x64xf32>
    %cst_33 = arith.constant 1.000000e+00 : f32
    %67 = vector.broadcast %cst_33 : f32 to vector<4x64xf32>
    %68 = arith.addf %67, %66 : vector<4x64xf32>
    %69 = arith.mulf %64, %68 : vector<4x64xf32>
    %c0_34 = arith.constant 0 : index
    %c3_35 = arith.constant 3 : index
    %c0_36 = arith.constant 0 : index
    %c0_37 = arith.constant 0 : index
    %70 = vector.load %arg3[%c0_34, %c3_35, %c0_36, %c0_37] : memref<1x8x4x64xf32, #tpu.memory_space<vmem>>, vector<1x1x4x64xf32>
    %71 = vector.shape_cast %70 : vector<1x1x4x64xf32> to vector<4x64xf32>
    %72 = arith.addf %69, %71 : vector<4x64xf32>
    %73 = vector.broadcast %52 : vector<4x1xf32> to vector<4x64xf32>
    %74 = arith.mulf %36, %73 : vector<4x64xf32>
    %c0_38 = arith.constant 0 : index
    %c4 = arith.constant 4 : index
    %c0_39 = arith.constant 0 : index
    %c0_40 = arith.constant 0 : index
    %75 = vector.load %arg3[%c0_38, %c4, %c0_39, %c0_40] : memref<1x8x4x64xf32, #tpu.memory_space<vmem>>, vector<1x1x4x64xf32>
    %76 = vector.shape_cast %75 : vector<1x1x4x64xf32> to vector<4x64xf32>
    %cst_41 = arith.constant 1.000000e+00 : f32
    %77 = vector.broadcast %cst_41 : f32 to vector<4x64xf32>
    %78 = arith.addf %77, %76 : vector<4x64xf32>
    %79 = arith.mulf %74, %78 : vector<4x64xf32>
    %c0_42 = arith.constant 0 : index
    %c5 = arith.constant 5 : index
    %c0_43 = arith.constant 0 : index
    %c0_44 = arith.constant 0 : index
    %80 = vector.load %arg3[%c0_42, %c5, %c0_43, %c0_44] : memref<1x8x4x64xf32, #tpu.memory_space<vmem>>, vector<1x1x4x64xf32>
    %81 = vector.shape_cast %80 : vector<1x1x4x64xf32> to vector<4x64xf32>
    %82 = arith.addf %79, %81 : vector<4x64xf32>
    %83 = vector.broadcast %52 : vector<4x1xf32> to vector<4x64xf32>
    %84 = arith.mulf %38, %83 : vector<4x64xf32>
    %c0_45 = arith.constant 0 : index
    %c6 = arith.constant 6 : index
    %c0_46 = arith.constant 0 : index
    %c0_47 = arith.constant 0 : index
    %85 = vector.load %arg3[%c0_45, %c6, %c0_46, %c0_47] : memref<1x8x4x64xf32, #tpu.memory_space<vmem>>, vector<1x1x4x64xf32>
    %86 = vector.shape_cast %85 : vector<1x1x4x64xf32> to vector<4x64xf32>
    %cst_48 = arith.constant 1.000000e+00 : f32
    %87 = vector.broadcast %cst_48 : f32 to vector<4x64xf32>
    %88 = arith.addf %87, %86 : vector<4x64xf32>
    %89 = arith.mulf %84, %88 : vector<4x64xf32>
    %c0_49 = arith.constant 0 : index
    %c7 = arith.constant 7 : index
    %c0_50 = arith.constant 0 : index
    %c0_51 = arith.constant 0 : index
    %90 = vector.load %arg3[%c0_49, %c7, %c0_50, %c0_51] : memref<1x8x4x64xf32, #tpu.memory_space<vmem>>, vector<1x1x4x64xf32>
    %91 = vector.shape_cast %90 : vector<1x1x4x64xf32> to vector<4x64xf32>
    %92 = arith.addf %89, %91 : vector<4x64xf32>
    %93 = arith.addf %62, %72 : vector<4x64xf32>
    %94 = arith.subf %62, %72 : vector<4x64xf32>
    %95 = arith.addf %82, %92 : vector<4x64xf32>
    %96 = arith.subf %82, %92 : vector<4x64xf32>
    %97 = arith.addf %93, %95 : vector<4x64xf32>
    %cst_52 = arith.constant 5.000000e-01 : f32
    %98 = vector.broadcast %cst_52 : f32 to vector<4x64xf32>
    %99 = arith.mulf %98, %97 : vector<4x64xf32>
    %c0_53 = arith.constant 0 : index
    %c0_54 = arith.constant 0 : index
    %c0_55 = arith.constant 0 : index
    %c0_56 = arith.constant 0 : index
    %100 = vector.load %arg4[%c0_53, %c0_54, %c0_55, %c0_56] : memref<1x4x4x64xf32, #tpu.memory_space<vmem>>, vector<1x1x4x64xf32>
    %101 = vector.shape_cast %100 : vector<1x1x4x64xf32> to vector<4x64xf32>
    %102 = vector.shape_cast %99 : vector<4x64xf32> to vector<1x1x4x64xf32>
    tpu.vector_store %arg4[%c0_53, %c0_54, %c0_55, %c0_56], %102 {strides = array<i32>} : memref<1x4x4x64xf32, #tpu.memory_space<vmem>>, vector<1x1x4x64xf32>,
    %103 = arith.subf %93, %95 : vector<4x64xf32>
    %cst_57 = arith.constant 5.000000e-01 : f32
    %104 = vector.broadcast %cst_57 : f32 to vector<4x64xf32>
    %105 = arith.mulf %104, %103 : vector<4x64xf32>
    %c0_58 = arith.constant 0 : index
    %c1_59 = arith.constant 1 : index
    %c0_60 = arith.constant 0 : index
    %c0_61 = arith.constant 0 : index
    %106 = vector.load %arg4[%c0_58, %c1_59, %c0_60, %c0_61] : memref<1x4x4x64xf32, #tpu.memory_space<vmem>>, vector<1x1x4x64xf32>
    %107 = vector.shape_cast %106 : vector<1x1x4x64xf32> to vector<4x64xf32>
    %108 = vector.shape_cast %105 : vector<4x64xf32> to vector<1x1x4x64xf32>
    tpu.vector_store %arg4[%c0_58, %c1_59, %c0_60, %c0_61], %108 {strides = array<i32>} : memref<1x4x4x64xf32, #tpu.memory_space<vmem>>, vector<1x1x4x64xf32>,
    %109 = arith.addf %94, %96 : vector<4x64xf32>
    %cst_62 = arith.constant 5.000000e-01 : f32
    %110 = vector.broadcast %cst_62 : f32 to vector<4x64xf32>
    %111 = arith.mulf %110, %109 : vector<4x64xf32>
    %c0_63 = arith.constant 0 : index
    %c2_64 = arith.constant 2 : index
    %c0_65 = arith.constant 0 : index
    %c0_66 = arith.constant 0 : index
    %112 = vector.load %arg4[%c0_63, %c2_64, %c0_65, %c0_66] : memref<1x4x4x64xf32, #tpu.memory_space<vmem>>, vector<1x1x4x64xf32>
    %113 = vector.shape_cast %112 : vector<1x1x4x64xf32> to vector<4x64xf32>
    %114 = vector.shape_cast %111 : vector<4x64xf32> to vector<1x1x4x64xf32>
    tpu.vector_store %arg4[%c0_63, %c2_64, %c0_65, %c0_66], %114 {strides = array<i32>} : memref<1x4x4x64xf32, #tpu.memory_space<vmem>>, vector<1x1x4x64xf32>,
    %115 = arith.subf %94, %96 : vector<4x64xf32>
    %cst_67 = arith.constant 5.000000e-01 : f32
    %116 = vector.broadcast %cst_67 : f32 to vector<4x64xf32>
    %117 = arith.mulf %116, %115 : vector<4x64xf32>
    %c0_68 = arith.constant 0 : index
    %c3_69 = arith.constant 3 : index
    %c0_70 = arith.constant 0 : index
    %c0_71 = arith.constant 0 : index
    %118 = vector.load %arg4[%c0_68, %c3_69, %c0_70, %c0_71] : memref<1x4x4x64xf32, #tpu.memory_space<vmem>>, vector<1x1x4x64xf32>
    %119 = vector.shape_cast %118 : vector<1x1x4x64xf32> to vector<4x64xf32>
    %120 = vector.shape_cast %117 : vector<4x64xf32> to vector<1x1x4x64xf32>
    tpu.vector_store %arg4[%c0_68, %c3_69, %c0_70, %c0_71], %120 {strides = array<i32>} : memref<1x4x4x64xf32, #tpu.memory_space<vmem>>, vector<1x1x4x64xf32>,
    return
  }
  func.func @transform_0(%arg0: i32, %arg1: i32) -> (i32, i32, i32, i32) {
    %c0_i32 = arith.constant 0 : i32
    %c0_i32_0 = arith.constant 0 : i32
    %c0_i32_1 = arith.constant 0 : i32
    return %arg0, %c0_i32, %arg1, %c0_i32_0 : i32, i32, i32, i32
  }
  func.func @transform_1(%arg0: i32, %arg1: i32) -> (i32, i32, i32, i32) {
    %c0_i32 = arith.constant 0 : i32
    %c0_i32_0 = arith.constant 0 : i32
    %c0_i32_1 = arith.constant 0 : i32
    return %arg0, %c0_i32, %arg1, %c0_i32_0 : i32, i32, i32, i32
  }
  func.func @transform_2(%arg0: i32, %arg1: i32) -> (i32, i32, i32, i32) {
    %c0_i32 = arith.constant 0 : i32
    %c0_i32_0 = arith.constant 0 : i32
    %c0_i32_1 = arith.constant 0 : i32
    return %arg0, %c0_i32, %arg1, %c0_i32_0 : i32, i32, i32, i32
  }
}

</mosaic_0001>

<bundles_post_ra>
// kernel: iwt_spade_hwt.3
= control target key start
LH: loop header
LB: loop body
LE: loop exit
PB: predicated region body
PF: predicated region fallthrough
CT: control target
= control target key end

     0   :  { %s495_s9 = smov 0   ;;  %s497_s10 = smov 0   ;;  %s545_s0 = inlined_call_operand.vmem [shape: f32[2,4,4,64], index: 0, kind: input, shape index: {}]   ;;  %s546_s1 = inlined_call_operand.vmem [shape: f32[2,8,4,64], index: 1, kind: input, shape index: {}]   ;;  %s547_s2 = inlined_call_operand.vmem [shape: f32[2,4,4,64], index: 2, kind: output, shape index: {}]  }
   0x1   :  { %s499_s11 = smov 0  }
   0x2 LB: > { %s24_s12 = sadd.s32 1, %s474_s10  ;;  %p405_p0 = scmp.ge.s32.totalorder %s478_s11, 1  ;;  %s478_s11 = sphi %s499_s11, %s12_s11   ;;  %s474_s10 = sphi %s497_s10, %s549_s10   ;;  %s470_s9 = sphi %s495_s9, %s548_s9  }
   0x3   : > { %p26_p1 = scmp.ge.s32.totalorder %s24_s12, 2  ;;  %p146_p2 = scmp.lt.s32.totalorder %s478_s11, 3 }
   0x5   : > { %s551_s12 = smov (%p26_p1, %s24_s12), 0  ;;  %p147_p3 = pnand %p405_p0, %p146_p2 }
   0x6   : > { %p182_p4 = scmp.lt.s32.totalorder (!%p147_p3), %s470_s9, 1 }
   0x7   : > { %150 = sbr.rel (%p147_p3) target bundleno = 351 (0x15f), region = 28 }
   0xc   : > { %s553_s9 = smov (!%p182_p4, %s470_s9), 1  ;;  %vm228_vm0 = vcmask 519168  }
   0xd   : > { %s427_s13 = sshll.u32 %s553_s9, 4  ;;  %s428_s17 = sshll.u32 %s553_s9, 5 }
   0xe   : > { %s189_s16 = scalar_lea.vmem %s545_s0, %s427_s13  ;;  %s197_s20 = scalar_lea.vmem %s546_s1, %s428_s17 }
   0xf   : > { %v206_v0 = vld [vmem:[%s189_s16] sm:$0xf]  ;;  %v412_v1 = vld [vmem:[%s189_s16 + $0x4] sm:$0xf]  ;;  %v413_v2 = vld [vmem:[%s189_s16 + $0x8] sm:$0xf]  ;;  %s205_s23 = scalar_lea.vmem %s547_s2, %s427_s13 }
  0x10   : > { %v414_v3 = vld [vmem:[%s189_s16 + $0xc] sm:$0xf]  ;;  %v213_v4 = vadd.f32 %v412_v1, %v206_v0  ;;  %v214_v5 = vsub.f32 %v206_v0, %v412_v1  ;;  %v251_v37 = vld [vmem:[%s197_s20] sm:$0xf]  ;;  %v416_v38 = vld [vmem:[%s197_s20 + $0x8] sm:$0xf] }
  0x11   : > { %v215_v6 = vadd.f32 %v414_v3, %v413_v2  ;;  %v216_v7 = vsub.f32 %v413_v2, %v414_v3  ;;  %v418_v39 = vld [vmem:[%s197_s20 + $0x10] sm:$0xf]  ;;  %v420_v40 = vld [vmem:[%s197_s20 + $0x18] sm:$0xf]  ;;  %v252_v41 = vadd.f32 1.0, %v251_v37  ;;  %v260_v42 = vadd.f32 1.0, %v416_v38 }
  0x12   : > { %v268_v43 = vadd.f32 1.0, %v418_v39  ;;  %v276_v44 = vadd.f32 1.0, %v420_v40  ;;  %v415_v46 = vld [vmem:[%s197_s20 + $0x4] sm:$0xf]  ;;  %v417_v51 = vld [vmem:[%s197_s20 + $0xc] sm:$0xf] }
  0x13   : > { %v217_v8 = vadd.f32 %v215_v6, %v213_v4  ;;  %v219_v9 = vsub.f32 %v213_v4, %v215_v6  ;;  %v221_v10 = vadd.f32 %v216_v7, %v214_v5  ;;  %v223_v11 = vsub.f32 %v214_v5, %v216_v7  ;;  %v419_v52 = vld [vmem:[%s197_s20 + $0x14] sm:$0xf]  ;;  %v421_v53 = vld [vmem:[%s197_s20 + $0x1c] sm:$0xf] }
  0x15   : > { %v218_v12 = vmul.f32 0.5, %v217_v8  ;;  %v220_v13 = vmul.f32 0.5, %v219_v9  ;;  %v222_v14 = vmul.f32 0.5, %v221_v10  ;;  %v224_v15 = vmul.f32 0.5, %v223_v11 }
  0x17   : > { %v225_v16 = vadd.f32 %v220_v13, %v218_v12 }
  0x19   : > { %v226_v17 = vadd.f32 %v225_v16, %v222_v14 }
  0x1b   : > { %v227_v18 = vadd.f32 %v226_v17, %v224_v15 }
  0x1d   : > { %v229_v19 = vsel %vm228_vm0, %v227_v18, 0.0 }
  0x1e   : > { %230 = vadd.xlane.f32.xlu0 %v229_v19 }
  0xa7   : > { %v231_v20 = vpop.xlane.xlu0 %230 }
  0xa8   : > { %v232_v21 = vmul.f32 0.00390625, %v231_v20 }
  0xaa   : > { %v233_v22 = vsub.f32 %v218_v12, %v232_v21  ;;  %v234_v23 = vsub.f32 %v220_v13, %v232_v21  ;;  %v235_v24 = vsub.f32 %v222_v14, %v232_v21  ;;  %v236_v25 = vsub.f32 %v224_v15, %v232_v21 }
  0xac   : > { %v237_v26 = vmul.f32 %v233_v22, %v233_v22  ;;  %v238_v27 = vmul.f32 %v234_v23, %v234_v23  ;;  %v240_v29 = vmul.f32 %v235_v24, %v235_v24  ;;  %v242_v31 = vmul.f32 %v236_v25, %v236_v25 }
  0xae   : > { %v239_v28 = vadd.f32 %v238_v27, %v237_v26 }
  0xb0   : > { %v241_v30 = vadd.f32 %v240_v29, %v239_v28 }
  0xb2   : > { %v243_v32 = vadd.f32 %v242_v31, %v241_v30 }
  0xb4   : > { %v244_v33 = vsel %vm228_vm0, %v243_v32, 0.0 }
  0xb5   : > { %245 = vadd.xlane.f32.xlu0 %v244_v33 }
 0x13e   : > { %v246_v34 = vpop.xlane.xlu0 %245 }
 0x13f   : > { %v247_v35 = vmul.f32 0.00390625, %v246_v34 }
 0x141   : > { %v248_v36 = vadd.f32 1e-05, %v247_v35 }
 0x143   : > { %454 = vrsqrt.f32 %v248_v36 }
 0x150   : > { %v455_v45 = vpop.eup %454 }
 0x151   : > { %v250_v47 = vmul.f32 %v455_v45, %v233_v22  ;;  %v257_v48 = vmul.f32 %v455_v45, %v234_v23  ;;  %v265_v49 = vmul.f32 %v455_v45, %v235_v24  ;;  %v273_v50 = vmul.f32 %v455_v45, %v236_v25 }
 0x153   : > { %v253_v54 = vmul.f32 %v252_v41, %v250_v47  ;;  %v261_v55 = vmul.f32 %v260_v42, %v257_v48  ;;  %v269_v56 = vmul.f32 %v268_v43, %v265_v49  ;;  %v277_v57 = vmul.f32 %v276_v44, %v273_v50 }
 0x155   : > { %v256_v58 = vadd.f32 %v415_v46, %v253_v54  ;;  %v264_v59 = vadd.f32 %v417_v51, %v261_v55  ;;  %v272_v60 = vadd.f32 %v419_v52, %v269_v56  ;;  %v280_v61 = vadd.f32 %v421_v53, %v277_v57 }
 0x157   : > { %v281_v62 = vadd.f32 %v264_v59, %v256_v58  ;;  %v282_v63 = vsub.f32 %v256_v58, %v264_v59  ;;  %v283_v0 = vadd.f32 %v280_v61, %v272_v60  ;;  %v284_v1 = vsub.f32 %v272_v60, %v280_v61 }
 0x159   : > { %v285_v2 = vadd.f32 %v283_v0, %v281_v62  ;;  %v288_v3 = vsub.f32 %v281_v62, %v283_v0  ;;  %v292_v4 = vadd.f32 %v284_v1, %v282_v63  ;;  %v296_v5 = vsub.f32 %v282_v63, %v284_v1 }
 0x15b   : > { %v286_v6 = vmul.f32 0.5, %v285_v2  ;;  %v289_v7 = vmul.f32 0.5, %v288_v3  ;;  %v293_v8 = vmul.f32 0.5, %v292_v4  ;;  %v297_v9 = vmul.f32 0.5, %v296_v5 }
 0x15d   : > { %287 = vst.msk [vmem:[%s205_s23] sm:$0xf] %vm228_vm0, %v286_v6  ;;  %422 = vst.msk [vmem:[%s205_s23 + $0x4] sm:$0xf] %vm228_vm0, %v289_v7 }
 0x15e   : > { %423 = vst.msk [vmem:[%s205_s23 + $0x8] sm:$0xf] %vm228_vm0, %v293_v8  ;;  %424 = vst.msk [vmem:[%s205_s23 + $0xc] sm:$0xf] %vm228_vm0, %v297_v9 }
 0x15f PF: > { %s12_s11 = sadd.s32 1, %s478_s11   ;;  %s548_s9 = smov %s474_s10 }
 0x160   : > { %p9_p5 = scmp.ge.s32.totalorder %s12_s11, 4   ;;  %s549_s10 = smov %s551_s12 }
 0x162   :  { %11 = sbr.rel (!%p9_p5) target bundleno = 2 (0x2), region = 74 }

// kernel: iwt_spade_hwt.2
= control target key start
LH: loop header
LB: loop body
LE: loop exit
PB: predicated region body
PF: predicated region fallthrough
CT: control target
= control target key end

     0   :  { %s9343_s18 = smov 0   ;;  %s12548_s0 = inlined_call_operand.vmem [shape: f32[2,4,64,36], index: 0, kind: input, shape index: {}]   ;;  %s12549_s1 = inlined_call_operand.vmem [shape: f32[36,128], index: 1, kind: input, shape index: {}]   ;;  %s12550_s2 = inlined_call_operand.vmem [shape: f32[1,128], index: 2, kind: input, shape index: {}]   ;;  %s12551_s3 = inlined_call_operand.vmem [shape: f32[9,128,8], index: 3, kind: input, shape index: {}]   ;;  %s12552_s4 = inlined_call_operand.vmem [shape: f32[1,8], index: 4, kind: input, shape index: {}]   ;;  %s12553_s5 = inlined_call_operand.vmem [shape: f32[2,8,4,64], index: 5, kind: output, shape index: {}]  }
   0x1 LB: > { %s6107_s19 = sadd.s32 4294967295, %s9310_s18   ;;  %p6111_p0 = scmp.ge.s32.totalorder %s9310_s18, 1  ;;  %s9310_s18 = sphi %s9343_s18, %s15_s18  }
   0x2   : > { %p187_p1 = scmp.lt.s32.totalorder %s9310_s18, 3 }
   0x4   : > { %p188_p2 = pnand %p6111_p0, %p187_p1 }
   0x6   : > { %191 = sbr.rel (%p188_p2) target bundleno = 1255 (0x4e7), region = 40 }
   0xb   : > { %v310_v0 = vld [vmem:[%s12549_s1 + $0x20] sm:$0xf]  ;;  %vm342_vm0 = vcmask 1043456   ;;  %v9360_v2 = vld [vmem:[%s12549_s1 + $0x18] sm:$0xff]  ;;  %p9366_p3 = scmp.lt.s32.totalorder %s6107_s19, 1  ;;  %v9375_v3 = vld [vmem:[%s12549_s1 + $0x10] sm:$0xff] }
   0xc   : > { %v481_v1 = vld [vmem:[%s12549_s1 + $0x20] sm:$0xf]  ;;  %7617 = vmatprep.subr.msk.mxu0 %vm342_vm0, %v310_v0  ;;  %v9312_v4 = vmov 0.0   ;;  %v9446_v5 = vld [vmem:[%s12549_s1 + $0x8] sm:$0xff]  ;;  %vm317_vm1 = vcmask 293888   ;;  %v987_v31 = vld [vmem:[%s12551_s3 + $0x78] sm:$0xff] }
   0xd   : > { %7639 = vmatprep.subr.msk.mxu1 %vm342_vm0, %v481_v1  ;;  %7618 = vmatpush3.msk.msra.mxu0 %vm342_vm0, %v310_v0  ;;  %225 = vst [vmem:[#allocation2] sm:$0xff] %v9312_v4  ;;  %226 = vst [vmem:[#allocation2 + $0x8] sm:$0x1] %v9312_v4  ;;  %s12659_s19 = smov (!%p9366_p3, %s6107_s19), 1  ;;  %v9456_v6 = vld [vmem:[%s12549_s1] sm:$0xff]  ;;  %v6193_v32 = vld [vmem:[%s12551_s3 + $0xf8] sm:$0xff] }
   0xe   : > { %7640 = vmatpush3.msk.msra.mxu1 %vm342_vm0, %v481_v1  ;;  %227 = vst [vmem:[#allocation2 + $0x10] sm:$0xff] %v9312_v4  ;;  %228 = vst [vmem:[#allocation2 + $0x18] sm:$0x1] %v9312_v4  ;;  %7619 = vmatprep.subr.mxu0 %v9360_v2  ;;  %s6699_s6 = sshll.u32 %s12659_s19, 8  ;;  %v807_v11 = vld [vmem:[%s12549_s1 + $0x20] sm:$0xf] }
   0xf   : > { %229 = vst [vmem:[#allocation2 + $0x20] sm:$0xff] %v9312_v4  ;;  %230 = vst [vmem:[#allocation2 + $0x28] sm:$0x1] %v9312_v4  ;;  %7641 = vmatprep.subr.mxu1 %v9360_v2  ;;  %7620 = vmatpush3.msra.mxu0 %v9360_v2  ;;  %s9461_s11 = scalar_lea.vmem %s12548_s0, %s6699_s6  ;;  %v644_v12 = vld [vmem:[%s12549_s1 + $0x20] sm:$0xf]  ;;  %v6192_v43 = vld [vmem:[%s12551_s3 + $0xf0] sm:$0xff] }
  0x10   : > { %231 = vst [vmem:[#allocation2 + $0x30] sm:$0xff] %v9312_v4  ;;  %232 = vst [vmem:[#allocation2 + $0x38] sm:$0x1] %v9312_v4  ;;  %7642 = vmatpush3.msra.mxu1 %v9360_v2  ;;  %7621 = vmatprep.subr.mxu0 %v9375_v3  ;;  %v298_v7 = vld [vmem:[%s9461_s11] sm:$0xff]  ;;  %v299_v9 = vld [vmem:[%s9461_s11 + $0x8] sm:$0xff]  ;;  %s6700_s24 = sshll.u32 %s12659_s19, 5 }
  0x11   : > { %233 = vst [vmem:[#allocation2 + $0x40] sm:$0xff] %v9312_v4  ;;  %234 = vst [vmem:[#allocation2 + $0x48] sm:$0x1] %v9312_v4  ;;  %7643 = vmatprep.subr.mxu1 %v9375_v3  ;;  %7622 = vmatpush3.msra.mxu0 %v9375_v3  ;;  %v6126_v8 = vld [vmem:[%s9461_s11 + $0x40] sm:$0xff]  ;;  %v6127_v10 = vld [vmem:[%s9461_s11 + $0x48] sm:$0xff]  ;;  %vm2238_vm2 = vcmask 519168   ;;  %s12446_s27 = scalar_lea.vmem %s12553_s5, %s6700_s24 }
  0x12   : > { %235 = vst [vmem:[#allocation2 + $0x50] sm:$0xff] %v9312_v4  ;;  %236 = vst [vmem:[#allocation2 + $0x58] sm:$0x1] %v9312_v4  ;;  %7644 = vmatpush3.msra.mxu1 %v9375_v3  ;;  %7623 = vmatprep.subr.mxu0 %v9446_v5  ;;  %v300_v13 = vld [vmem:[%s9461_s11 + $0x10] sm:$0xff]  ;;  %v301_v15 = vld [vmem:[%s9461_s11 + $0x18] sm:$0xff]  ;;  %vm2241_vm3 = vcmask 523268  }
  0x13   : > { %237 = vst [vmem:[#allocation2 + $0x60] sm:$0xff] %v9312_v4  ;;  %238 = vst [vmem:[#allocation2 + $0x68] sm:$0x1] %v9312_v4  ;;  %7645 = vmatprep.subr.mxu1 %v9446_v5  ;;  %7624 = vmatpush3.msra.mxu0 %v9446_v5  ;;  %v6128_v14 = vld [vmem:[%s9461_s11 + $0x50] sm:$0xff]  ;;  %v6129_v16 = vld [vmem:[%s9461_s11 + $0x58] sm:$0xff] }
  0x14   : > { %239 = vst [vmem:[#allocation2 + $0x70] sm:$0xff] %v9312_v4  ;;  %240 = vst [vmem:[#allocation2 + $0x78] sm:$0x1] %v9312_v4  ;;  %7646 = vmatpush3.msra.mxu1 %v9446_v5  ;;  %7625 = vmatprep.subr.mxu0 %v9456_v6  ;;  %v302_v17 = vld [vmem:[%s9461_s11 + $0x20] sm:$0xff]  ;;  %v303_v19 = vld [vmem:[%s9461_s11 + $0x28] sm:$0xff] }
  0x15   : > { %241 = vst [vmem:[#allocation2 + $0x80] sm:$0xff] %v9312_v4  ;;  %242 = vst [vmem:[#allocation2 + $0x88] sm:$0x1] %v9312_v4  ;;  %7647 = vmatprep.subr.mxu1 %v9456_v6  ;;  %7626 = vmatpush3.msra.mxu0 %v9456_v6  ;;  %v6130_v18 = vld [vmem:[%s9461_s11 + $0x60] sm:$0xff]  ;;  %v6131_v20 = vld [vmem:[%s9461_s11 + $0x68] sm:$0xff] }
  0x16   : > { %243 = vst [vmem:[#allocation2 + $0x90] sm:$0xff] %v9312_v4  ;;  %244 = vst [vmem:[#allocation2 + $0x98] sm:$0x1] %v9312_v4  ;;  %7627 = vmatprep.mubr.msk.f32.mxu0 %vm317_vm1, %v298_v7  ;;  %7648 = vmatpush3.msra.mxu1 %v9456_v6  ;;  %v304_v21 = vld [vmem:[%s9461_s11 + $0x30] sm:$0xff]  ;;  %v305_v23 = vld [vmem:[%s9461_s11 + $0x38] sm:$0xff] }
  0x17   : > { %246 = vst [vmem:[#allocation2 + $0xa8] sm:$0x1] %v9312_v4  ;;  %248 = vst [vmem:[#allocation2 + $0xb8] sm:$0x1] %v9312_v4  ;;  %7649 = vmatprep.mubr.msk.f32.mxu1 %vm317_vm1, %v6126_v8  ;;  %7628 = vmatmul.mubr.msk.f32.vlgmr.msra.gmra.mxu0 %vm317_vm1, %v299_v9  ;;  %v6132_v22 = vld [vmem:[%s9461_s11 + $0x70] sm:$0xff]  ;;  %v6133_v24 = vld [vmem:[%s9461_s11 + $0x78] sm:$0xff] }
  0x18   : > { %250 = vst [vmem:[#allocation2 + $0xc8] sm:$0x1] %v9312_v4  ;;  %252 = vst [vmem:[#allocation2 + $0xd8] sm:$0x1] %v9312_v4  ;;  %7650 = vmatmul.mubr.msk.f32.vlgmr.msra.gmra.mxu1 %vm317_vm1, %v6127_v10  ;;  %7683 = vmatprep.subr.msk.mxu1 %vm342_vm0, %v807_v11  ;;  %v6143_v25 = vld [vmem:[%s9461_s11 + $0x80] sm:$0xff]  ;;  %v6144_v27 = vld [vmem:[%s9461_s11 + $0x88] sm:$0xff] }
  0x19   : > { %254 = vst [vmem:[#allocation2 + $0xe8] sm:$0x1] %v9312_v4  ;;  %256 = vst [vmem:[#allocation2 + $0xf8] sm:$0x1] %v9312_v4  ;;  %7661 = vmatprep.subr.msk.mxu0 %vm342_vm0, %v644_v12  ;;  %7684 = vmatpush3.msk.msra.mxu1 %vm342_vm0, %v807_v11  ;;  %v6160_v26 = vld [vmem:[%s9461_s11 + $0xc0] sm:$0xff]  ;;  %v6161_v28 = vld [vmem:[%s9461_s11 + $0xc8] sm:$0xff] }
  0x1a   : > { %258 = vst [vmem:[#allocation2 + $0x108] sm:$0x1] %v9312_v4  ;;  %260 = vst [vmem:[#allocation2 + $0x118] sm:$0x1] %v9312_v4  ;;  %7630 = vmatprep.mubr.msk.f32.mxu0 %vm317_vm1, %v300_v13  ;;  %7652 = vmatprep.mubr.msk.f32.mxu1 %vm317_vm1, %v6128_v14  ;;  %v6145_v29 = vld [vmem:[%s9461_s11 + $0x90] sm:$0xff]  ;;  %v6146_v33 = vld [vmem:[%s9461_s11 + $0x98] sm:$0xff] }
  0x1b   : > { %261 = vst [vmem:[#allocation2 + $0x120] sm:$0xff] %v9312_v4  ;;  %262 = vst [vmem:[#allocation2 + $0x128] sm:$0x1] %v9312_v4  ;;  %7662 = vmatpush3.msk.msra.mxu0 %vm342_vm0, %v644_v12  ;;  %7685 = vmatprep.subr.mxu1 %v9360_v2  ;;  %v6162_v30 = vld [vmem:[%s9461_s11 + $0xd0] sm:$0xff]  ;;  %v6163_v34 = vld [vmem:[%s9461_s11 + $0xd8] sm:$0xff] }
  0x1c   : > { %263 = vst [vmem:[#allocation2 + $0x130] sm:$0xff] %v9312_v4  ;;  %264 = vst [vmem:[#allocation2 + $0x138] sm:$0x1] %v9312_v4  ;;  %7631 = vmatmul.mubr.msk.f32.gmra.mxu0 %vm317_vm1, %v301_v15  ;;  %7653 = vmatmul.mubr.msk.f32.gmra.mxu1 %vm317_vm1, %v6129_v16  ;;  %v6147_v35 = vld [vmem:[%s9461_s11 + $0xa0] sm:$0xff]  ;;  %v6148_v37 = vld [vmem:[%s9461_s11 + $0xa8] sm:$0xff] }
  0x1d   : > { %265 = vst [vmem:[#allocation2 + $0x140] sm:$0xff] %v9312_v4  ;;  %266 = vst [vmem:[#allocation2 + $0x148] sm:$0x1] %v9312_v4  ;;  %7663 = vmatprep.subr.mxu0 %v9360_v2  ;;  %7686 = vmatpush3.msra.mxu1 %v9360_v2  ;;  %v6164_v36 = vld [vmem:[%s9461_s11 + $0xe0] sm:$0xff]  ;;  %v6165_v38 = vld [vmem:[%s9461_s11 + $0xe8] sm:$0xff] }
  0x1e   : > { %267 = vst [vmem:[#allocation2 + $0x150] sm:$0xff] %v9312_v4  ;;  %268 = vst [vmem:[#allocation2 + $0x158] sm:$0x1] %v9312_v4  ;;  %7633 = vmatprep.mubr.msk.f32.mxu0 %vm317_vm1, %v302_v17  ;;  %7655 = vmatprep.mubr.msk.f32.mxu1 %vm317_vm1, %v6130_v18  ;;  %v6149_v39 = vld [vmem:[%s9461_s11 + $0xb0] sm:$0xff]  ;;  %v6150_v41 = vld [vmem:[%s9461_s11 + $0xb8] sm:$0xff] }
  0x1f   : > { %269 = vst [vmem:[#allocation2 + $0x160] sm:$0xff] %v9312_v4  ;;  %270 = vst [vmem:[#allocation2 + $0x168] sm:$0x1] %v9312_v4  ;;  %7664 = vmatpush3.msra.mxu0 %v9360_v2  ;;  %7687 = vmatprep.subr.mxu1 %v9375_v3  ;;  %v6166_v40 = vld [vmem:[%s9461_s11 + $0xf0] sm:$0xff]  ;;  %v6167_v42 = vld [vmem:[%s9461_s11 + $0xf8] sm:$0xff] }
  0x20   : > { %271 = vst [vmem:[#allocation2 + $0x170] sm:$0xff] %v9312_v4  ;;  %272 = vst [vmem:[#allocation2 + $0x178] sm:$0x1] %v9312_v4  ;;  %7634 = vmatmul.mubr.msk.f32.gmra.mxu0 %vm317_vm1, %v303_v19  ;;  %7656 = vmatmul.mubr.msk.f32.gmra.mxu1 %vm317_vm1, %v6131_v20  ;;  %v6191_v44 = vld [vmem:[%s12551_s3 + $0xe8] sm:$0xff]  ;;  %v6190_v45 = vld [vmem:[%s12551_s3 + $0xe0] sm:$0xff] }
  0x21   : > { %273 = vst [vmem:[#allocation2 + $0x180] sm:$0xff] %v9312_v4  ;;  %274 = vst [vmem:[#allocation2 + $0x188] sm:$0x1] %v9312_v4  ;;  %7665 = vmatprep.subr.mxu0 %v9375_v3  ;;  %7688 = vmatpush3.msra.mxu1 %v9375_v3  ;;  %v6189_v46 = vld [vmem:[%s12551_s3 + $0xd8] sm:$0xff]  ;;  %v986_v47 = vld [vmem:[%s12551_s3 + $0x70] sm:$0xff] }
  0x22   : > { %275 = vst [vmem:[#allocation2 + $0x190] sm:$0xff] %v9312_v4  ;;  %276 = vst [vmem:[#allocation2 + $0x198] sm:$0x1] %v9312_v4  ;;  %7666 = vmatpush3.msra.mxu0 %v9375_v3  ;;  %7689 = vmatprep.subr.mxu1 %v9446_v5  ;;  %v6188_v48 = vld [vmem:[%s12551_s3 + $0xd0] sm:$0xff]  ;;  %v985_v49 = vld [vmem:[%s12551_s3 + $0x68] sm:$0xff] }
  0x23   : > { %277 = vst [vmem:[#allocation2 + $0x1a0] sm:$0xff] %v9312_v4  ;;  %278 = vst [vmem:[#allocation2 + $0x1a8] sm:$0x1] %v9312_v4  ;;  %7636 = vmatprep.mubr.msk.f32.mxu0 %vm317_vm1, %v304_v21  ;;  %7658 = vmatprep.mubr.msk.f32.mxu1 %vm317_vm1, %v6132_v22  ;;  %v6187_v50 = vld [vmem:[%s12551_s3 + $0xc8] sm:$0xff]  ;;  %v984_v51 = vld [vmem:[%s12551_s3 + $0x60] sm:$0xff] }
  0x24   : > { %280 = vst [vmem:[#allocation2 + $0x1b8] sm:$0x1] %v9312_v4  ;;  %282 = vst [vmem:[#allocation2 + $0x1c8] sm:$0x1] %v9312_v4  ;;  %7690 = vmatpush3.msra.mxu1 %v9446_v5  ;;  %7637 = vmatmul.mubr.msk.f32.gmra.mxu0 %vm317_vm1, %v305_v23  ;;  %v6186_v52 = vld [vmem:[%s12551_s3 + $0xc0] sm:$0xff]  ;;  %v983_v53 = vld [vmem:[%s12551_s3 + $0x58] sm:$0xff] }
  0x25   : > { %284 = vst [vmem:[#allocation2 + $0x1d8] sm:$0x1] %v9312_v4  ;;  %286 = vst [vmem:[#allocation2 + $0x1e8] sm:$0x1] %v9312_v4  ;;  %7659 = vmatmul.mubr.msk.f32.gmra.mxu1 %vm317_vm1, %v6133_v24  ;;  %7667 = vmatprep.subr.mxu0 %v9446_v5  ;;  %v6185_v54 = vld [vmem:[%s12551_s3 + $0xb8] sm:$0xff]  ;;  %v982_v55 = vld [vmem:[%s12551_s3 + $0x50] sm:$0xff] }
  0x26   : > { %288 = vst [vmem:[#allocation2 + $0x1f8] sm:$0x1] %v9312_v4  ;;  %290 = vst [vmem:[#allocation2 + $0x208] sm:$0x1] %v9312_v4  ;;  %7691 = vmatprep.subr.mxu1 %v9456_v6  ;;  %7668 = vmatpush3.msra.mxu0 %v9446_v5  ;;  %v6184_v56 = vld [vmem:[%s12551_s3 + $0xb0] sm:$0xff]  ;;  %v981_v57 = vld [vmem:[%s12551_s3 + $0x48] sm:$0xff] }
  0x27   : > { %292 = vst [vmem:[#allocation2 + $0x218] sm:$0x1] %v9312_v4  ;;  %294 = vst [vmem:[#allocation2 + $0x228] sm:$0x1] %v9312_v4  ;;  %7692 = vmatpush3.msra.mxu1 %v9456_v6  ;;  %7669 = vmatprep.subr.mxu0 %v9456_v6  ;;  %v6183_v58 = vld [vmem:[%s12551_s3 + $0xa8] sm:$0xff]  ;;  %v980_v59 = vld [vmem:[%s12551_s3 + $0x40] sm:$0xff] }
  0x28   : > { %295 = vst [vmem:[#allocation2 + $0x230] sm:$0xff] %v9312_v4  ;;  %296 = vst [vmem:[#allocation2 + $0x238] sm:$0x1] %v9312_v4  ;;  %7671 = vmatprep.mubr.msk.f32.mxu0 %vm317_vm1, %v6143_v25  ;;  %7670 = vmatpush3.msra.mxu0 %v9456_v6  ;;  %v6182_v60 = vld [vmem:[%s12551_s3 + $0xa0] sm:$0xff]  ;;  %v979_v61 = vld [vmem:[%s12551_s3 + $0x38] sm:$0xff] }
  0x29   : > { %7693 = vmatprep.mubr.msk.f32.mxu1 %vm317_vm1, %v6160_v26  ;;  %7672 = vmatmul.mubr.msk.f32.vlgmr.msra.gmra.mxu0 %vm317_vm1, %v6144_v27  ;;  %v6181_v62 = vld [vmem:[%s12551_s3 + $0x98] sm:$0xff]  ;;  %v978_v63 = vld [vmem:[%s12551_s3 + $0x30] sm:$0xff]  ;;  %v977_v1 = vld [vmem:[%s12551_s3 + $0x28] sm:$0xff] }
  0x2a   : > { %7694 = vmatmul.mubr.msk.f32.vlgmr.msra.gmra.mxu1 %vm317_vm1, %v6161_v28  ;;  %7674 = vmatprep.mubr.msk.f32.mxu0 %vm317_vm1, %v6145_v29  ;;  %v6180_v0 = vld [vmem:[%s12551_s3 + $0x90] sm:$0xff]  ;;  %v6179_v2 = vld [vmem:[%s12551_s3 + $0x88] sm:$0xff]  ;;  %v976_v3 = vld [vmem:[%s12551_s3 + $0x20] sm:$0xff] }
  0x2b   : > { %7696 = vmatprep.mubr.msk.f32.mxu1 %vm317_vm1, %v6162_v30  ;;  %7705 = vmatprep.subr.mxu0 %v987_v31  ;;  %v975_v5 = vld [vmem:[%s12551_s3 + $0x18] sm:$0xff]  ;;  %v974_v7 = vld [vmem:[%s12551_s3 + $0x10] sm:$0xff]  ;;  %v973_v8 = vld [vmem:[%s12551_s3 + $0x8] sm:$0xff] }
  0x2c   : > { %7749 = vmatprep.subr.mxu1 %v6193_v32  ;;  %7706 = vmatpush3.msra.mxu0 %v987_v31  ;;  %v9653_v6 = vld [vmem:[%s12551_s3 + $0x1f8] sm:$0xff]  ;;  %v972_v9 = vld [vmem:[%s12551_s3] sm:$0xff] }
  0x2d   : > { %7750 = vmatpush3.msra.mxu1 %v6193_v32  ;;  %7675 = vmatmul.mubr.msk.f32.gmra.mxu0 %vm317_vm1, %v6146_v33  ;;  %v9668_v10 = vld [vmem:[%s12551_s3 + $0x178] sm:$0xff]  ;;  %v9674_v11 = vld [vmem:[%s12550_s2] ss:$0 sm:$0xff] }
  0x2e   : > { %7697 = vmatmul.mubr.msk.f32.gmra.mxu1 %vm317_vm1, %v6163_v34  ;;  %7677 = vmatprep.mubr.msk.f32.mxu0 %vm317_vm1, %v6147_v35 }
  0x2f   : > { %7699 = vmatprep.mubr.msk.f32.mxu1 %vm317_vm1, %v6164_v36  ;;  %7751 = vmatprep.subr.mxu1 %v6192_v43 }
  0x30   : > { %7752 = vmatpush3.msra.mxu1 %v6192_v43  ;;  %7707 = vmatprep.subr.mxu0 %v986_v47 }
  0x31   : > { %7678 = vmatmul.mubr.msk.f32.gmra.mxu0 %vm317_vm1, %v6148_v37  ;;  %7753 = vmatprep.subr.mxu1 %v6191_v44 }
  0x32   : > { %7700 = vmatmul.mubr.msk.f32.gmra.mxu1 %vm317_vm1, %v6165_v38  ;;  %7680 = vmatprep.mubr.msk.f32.mxu0 %vm317_vm1, %v6149_v39 }
  0x33   : > { %7702 = vmatprep.mubr.msk.f32.mxu1 %vm317_vm1, %v6166_v40  ;;  %7754 = vmatpush3.msra.mxu1 %v6191_v44 }
  0x34   : > { %7755 = vmatprep.subr.mxu1 %v6190_v45  ;;  %7708 = vmatpush3.msra.mxu0 %v986_v47 }
  0x35   : > { %7681 = vmatmul.mubr.msk.f32.gmra.mxu0 %vm317_vm1, %v6150_v41  ;;  %7756 = vmatpush3.msra.mxu1 %v6190_v45 }
  0x36   : > { %7703 = vmatmul.mubr.msk.f32.gmra.mxu1 %vm317_vm1, %v6167_v42  ;;  %7737 = vmatprep.mubr.f32.mxu0 %v9312_v4 }
  0x37   : > { %7781 = vmatprep.mubr.f32.mxu1 %v9312_v4  ;;  %7757 = vmatprep.subr.mxu1 %v6189_v46  ;;  %v6178_v4 = vld [vmem:[%s12551_s3 + $0x80] sm:$0xff] }
  0x38   : > { %7758 = vmatpush3.msra.mxu1 %v6189_v46  ;;  %7709 = vmatprep.subr.mxu0 %v985_v49 }
  0x39   : > { %7759 = vmatprep.subr.mxu1 %v6188_v48  ;;  %7710 = vmatpush3.msra.mxu0 %v985_v49 }
  0x3a   : > { %7760 = vmatpush3.msra.mxu1 %v6188_v48  ;;  %7711 = vmatprep.subr.mxu0 %v984_v51 }
  0x3b   : > { %7761 = vmatprep.subr.mxu1 %v6187_v50  ;;  %7712 = vmatpush3.msra.mxu0 %v984_v51 }
  0x3c   : > { %7762 = vmatpush3.msra.mxu1 %v6187_v50  ;;  %7713 = vmatprep.subr.mxu0 %v983_v53 }
  0x3d   : > { %7763 = vmatprep.subr.mxu1 %v6186_v52  ;;  %7714 = vmatpush3.msra.mxu0 %v983_v53 }
  0x3e   : > { %7764 = vmatpush3.msra.mxu1 %v6186_v52  ;;  %7715 = vmatprep.subr.mxu0 %v982_v55 }
  0x3f   : > { %7765 = vmatprep.subr.mxu1 %v6185_v54  ;;  %7716 = vmatpush3.msra.mxu0 %v982_v55 }
  0x40   : > { %7766 = vmatpush3.msra.mxu1 %v6185_v54  ;;  %7717 = vmatprep.subr.mxu0 %v981_v57 }
  0x41   : > { %7767 = vmatprep.subr.mxu1 %v6184_v56  ;;  %7718 = vmatpush3.msra.mxu0 %v981_v57 }
  0x42   : > { %7768 = vmatpush3.msra.mxu1 %v6184_v56  ;;  %7719 = vmatprep.subr.mxu0 %v980_v59 }
  0x43   : > { %7769 = vmatprep.subr.mxu1 %v6183_v58  ;;  %7720 = vmatpush3.msra.mxu0 %v980_v59 }
  0x44   : > { %7770 = vmatpush3.msra.mxu1 %v6183_v58  ;;  %7721 = vmatprep.subr.mxu0 %v979_v61 }
  0x45   : > { %7771 = vmatprep.subr.mxu1 %v6182_v60  ;;  %7722 = vmatpush3.msra.mxu0 %v979_v61 }
  0x46   : > { %7772 = vmatpush3.msra.mxu1 %v6182_v60  ;;  %7723 = vmatprep.subr.mxu0 %v978_v63 }
  0x47   : > { %7773 = vmatprep.subr.mxu1 %v6181_v62  ;;  %7724 = vmatpush3.msra.mxu0 %v978_v63 }
  0x48   : > { %7774 = vmatpush3.msra.mxu1 %v6181_v62  ;;  %7725 = vmatprep.subr.mxu0 %v977_v1 }
  0x49   : > { %7775 = vmatprep.subr.mxu1 %v6180_v0  ;;  %7726 = vmatpush3.msra.mxu0 %v977_v1 }
  0x4a   : > { %7776 = vmatpush3.msra.mxu1 %v6180_v0  ;;  %7727 = vmatprep.subr.mxu0 %v976_v3 }
  0x4b   : > { %7777 = vmatprep.subr.mxu1 %v6179_v2  ;;  %7728 = vmatpush3.msra.mxu0 %v976_v3 }
  0x4c   : > { %7778 = vmatpush3.msra.mxu1 %v6179_v2  ;;  %7729 = vmatprep.subr.mxu0 %v975_v5 }
  0x4d   : > { %7779 = vmatprep.subr.mxu1 %v6178_v4  ;;  %7730 = vmatpush3.msra.mxu0 %v975_v5 }
  0x4e   : > { %7780 = vmatpush3.msra.mxu1 %v6178_v4  ;;  %7731 = vmatprep.subr.mxu0 %v974_v7 }
  0x4f   : > { %7837 = vmatprep.subr.mxu1 %v9653_v6  ;;  %7732 = vmatpush3.msra.mxu0 %v974_v7 }
  0x50   : > { %7733 = vmatprep.subr.mxu0 %v973_v8 }
  0x51   : > { %7734 = vmatpush3.msra.mxu0 %v973_v8 }
  0x52   : > { %7735 = vmatprep.subr.mxu0 %v972_v9 }
  0x53   : > { %7736 = vmatpush3.msra.mxu0 %v972_v9 }
  0x54   : > { %7793 = vmatprep.subr.mxu0 %v9668_v10 }
  0xd7   : > { %v7629_v12 = vpop.f32.mrf.mxu0 }
  0xd8   : > { %v7651_v13 = vpop.f32.mrf.mxu1  ;;  %v418_v14 = vadd.f32 %v7629_v12, %v9674_v11 }
  0xd9   : > { %v9678_v15 = vadd.f32 %v7651_v13, %v9674_v11  ;;  %v412_v16 = vpop.f32.mrf.mxu0 }
  0xda   : > { %v575_v17 = vpop.f32.mrf.mxu1  ;;  %v452_v18 = vmax.f32 %v418_v14, 0.0  ;;  %v9682_v20 = vadd.f32 %v9674_v11, %v412_v16 }
  0xdb   : > { %v615_v19 = vmax.f32 %v9678_v15, 0.0  ;;  %v9685_v21 = vadd.f32 %v9674_v11, %v575_v17  ;;  %v6224_v17 = vld [vmem:[%s12551_s3 + $0x1f0] sm:$0xff]  ;;  %v6271_v15 = vld [vmem:[%s12551_s3 + $0x368] sm:$0xff] }
  0xdc   : > { %v7632_v22 = vpop.f32.mrf.mxu0  ;;  %v7654_v23 = vpop.f32.mrf.mxu1  ;;  %461 = vst [vmem:[#allocation2 + $0x1c0] sm:$0xff] %v452_v18  ;;  %v451_v24 = vmax.f32 %v9682_v20, 0.0  ;;  %v6232_v20 = vld [vmem:[%s12551_s3 + $0x230] sm:$0xff] }
  0xdd   : > { %624 = vst [vmem:[#allocation2 + $0x131] sm:$0xff] %v615_v19  ;;  %v614_v25 = vmax.f32 %v9685_v21, 0.0  ;;  %v9692_v26 = vadd.f32 %v7632_v22, %v9674_v11  ;;  %v9695_v27 = vadd.f32 %v7654_v23, %v9674_v11  ;;  %v6231_v21 = vld [vmem:[%s12551_s3 + $0x228] sm:$0xff] }
  0xde   : > { %v422_v28 = vpop.f32.mrf.mxu0  ;;  %v585_v29 = vpop.f32.mrf.mxu1  ;;  %460 = vst [vmem:[#allocation2 + $0x1b0] sm:$0xff] %v451_v24 }
  0xdf   : > { %623 = vst [vmem:[#allocation2 + $0x121] sm:$0xff] %v614_v25  ;;  %v454_v30 = vmax.f32 %v9692_v26, 0.0  ;;  %v617_v31 = vmax.f32 %v9695_v27, 0.0  ;;  %v9704_v32 = vadd.f32 %v9674_v11, %v422_v28  ;;  %v9707_v33 = vadd.f32 %v9674_v11, %v585_v29  ;;  %v6269_v26 = vld [vmem:[%s12551_s3 + $0x358] sm:$0xff] }
  0xe0   : > { %v7635_v34 = vpop.f32.mrf.mxu0  ;;  %v7657_v38 = vpop.f32.mrf.mxu1  ;;  %v6285_v27 = vld [vmem:[%s12551_s3 + $0x3d8] sm:$0xff] }
  0xe1   : > { %463 = vst [vmem:[#allocation2 + $0x1e0] sm:$0xff] %v454_v30  ;;  %626 = vst [vmem:[#allocation2 + $0x151] sm:$0xff] %v617_v31  ;;  %v453_v35 = vmax.f32 %v9704_v32, 0.0  ;;  %v616_v36 = vmax.f32 %v9707_v33, 0.0  ;;  %v9716_v37 = vadd.f32 %v7635_v34, %v9674_v11  ;;  %v9719_v39 = vadd.f32 %v7657_v38, %v9674_v11  ;;  %v6223_v38 = vld [vmem:[%s12551_s3 + $0x1e8] sm:$0xff]  ;;  %v6270_v32 = vld [vmem:[%s12551_s3 + $0x360] sm:$0xff] }
  0xe2   : > { %v432_v40 = vpop.f32.mrf.mxu0  ;;  %v595_v43 = vpop.f32.mrf.mxu1  ;;  %v6286_v33 = vld [vmem:[%s12551_s3 + $0x3e0] sm:$0xff] }
  0xe3   : > { %462 = vst [vmem:[#allocation2 + $0x1d0] sm:$0xff] %v453_v35  ;;  %625 = vst [vmem:[#allocation2 + $0x141] sm:$0xff] %v616_v36  ;;  %v456_v41 = vmax.f32 %v9716_v37, 0.0  ;;  %v9727_v42 = vadd.f32 %v9674_v11, %v432_v40  ;;  %v619_v44 = vmax.f32 %v9719_v39, 0.0  ;;  %v9731_v45 = vadd.f32 %v9674_v11, %v595_v43  ;;  %v6267_v37 = vld [vmem:[%s12551_s3 + $0x348] sm:$0xff] }
  0xe4   : > { %v7638_v47 = vpop.f32.mrf.mxu0  ;;  %v6283_v39 = vld [vmem:[%s12551_s3 + $0x3c8] sm:$0xff] }
  0xe5   : > { %465 = vst [vmem:[#allocation2 + $0x200] sm:$0xff] %v456_v41  ;;  %v455_v46 = vmax.f32 %v9727_v42, 0.0  ;;  %v7660_v48 = vpop.f32.mrf.mxu1  ;;  %628 = vst [vmem:[#allocation2 + $0x171] sm:$0xff] %v619_v44  ;;  %v618_v49 = vmax.f32 %v9731_v45, 0.0  ;;  %v9740_v50 = vadd.f32 %v7638_v47, %v9674_v11  ;;  %v6282_v45 = vld [vmem:[%s12551_s3 + $0x3c0] sm:$0xff] }
  0xe6   : > { %v9743_v51 = vadd.f32 %v7660_v48, %v9674_v11  ;;  %v442_v52 = vpop.f32.mrf.mxu0 }
  0xe7   : > { %464 = vst [vmem:[#allocation2 + $0x1f0] sm:$0xff] %v455_v46  ;;  %v605_v53 = vpop.f32.mrf.mxu1  ;;  %627 = vst [vmem:[#allocation2 + $0x161] sm:$0xff] %v618_v49  ;;  %v12556_v54 = vmax.f32 %v9740_v50, 0.0  ;;  %v9752_v56 = vadd.f32 %v9674_v11, %v442_v52 }
  0xe8   : > { %v12555_v55 = vmax.f32 %v9743_v51, 0.0  ;;  %v9755_v57 = vadd.f32 %v9674_v11, %v605_v53  ;;  %v6222_v53 = vld [vmem:[%s12551_s3 + $0x1e0] sm:$0xff]  ;;  %v12576_v42 = vmax.f32 %v9743_v51, 0.0  ;;  %v6280_v51 = vld [vmem:[%s12551_s3 + $0x3b0] sm:$0xff] }
  0xe9   : > { %467 = vst [vmem:[#allocation2 + $0x220] sm:$0xff] %v12556_v54  ;;  %v12558_v58 = vmax.f32 %v9752_v56, 0.0  ;;  %v7673_v60 = vpop.f32.mrf.mxu0  ;;  %v6240_v54 = vld [vmem:[%s12551_s3 + $0x270] sm:$0xff] }
  0xea   : > { %630 = vst [vmem:[#allocation2 + $0x191] sm:$0xff] %v12555_v55  ;;  %v12557_v59 = vmax.f32 %v9755_v57, 0.0  ;;  %v7695_v61 = vpop.f32.mrf.mxu1  ;;  %v744_v62 = vadd.f32 %v7673_v60, %v9674_v11  ;;  %v6257_v55 = vld [vmem:[%s12551_s3 + $0x2f8] sm:$0xff] }
  0xeb   : > { %v9765_v63 = vadd.f32 %v7695_v61, %v9674_v11  ;;  %466 = vst [vmem:[#allocation2 + $0x210] sm:$0xff] %v12558_v58  ;;  %v738_v0 = vpop.f32.mrf.mxu0  ;;  %v6256_v58 = vld [vmem:[%s12551_s3 + $0x2f0] sm:$0xff] }
  0xec   : > { %629 = vst [vmem:[#allocation2 + $0x181] sm:$0xff] %v12557_v59  ;;  %v901_v1 = vpop.f32.mrf.mxu1  ;;  %v9771_v2 = vmax.f32 %v744_v62, 0.0  ;;  %v739_v4 = vadd.f32 %v9674_v11, %v738_v0  ;;  %v1380_v59 = vld [vmem:[#allocation2 + $0x140] sm:$0xff] }
  0xed   : > { %v941_v3 = vmax.f32 %v9765_v63, 0.0  ;;  %v9776_v5 = vadd.f32 %v9674_v11, %v901_v1  ;;  %v7676_v7 = vpop.f32.mrf.mxu0  ;;  %v6255_v63 = vld [vmem:[%s12551_s3 + $0x2e8] sm:$0xff] }
  0xee   : > { %v7698_v8 = vpop.f32.mrf.mxu1  ;;  %787 = vst [vmem:[#allocation2 + $0xb0] sm:$0xff] %v9771_v2  ;;  %v9781_v9 = vmax.f32 %v739_v4, 0.0  ;;  %v754_v13 = vadd.f32 %v7676_v7, %v9674_v11  ;;  %v6221_v7 = vld [vmem:[%s12551_s3 + $0x1d8] sm:$0xff] }
  0xef   : > { %950 = vst [vmem:[#allocation2 + $0x21] sm:$0xff] %v941_v3  ;;  %v940_v12 = vmax.f32 %v9776_v5, 0.0  ;;  %v9786_v14 = vadd.f32 %v7698_v8, %v9674_v11  ;;  %v748_v16 = vpop.f32.mrf.mxu0  ;;  %v6239_v5 = vld [vmem:[%s12551_s3 + $0x268] sm:$0xff] }
  0xf0   : > { %v911_v18 = vpop.f32.mrf.mxu1  ;;  %786 = vst [vmem:[#allocation2 + $0xa0] sm:$0xff] %v9781_v9  ;;  %v9794_v22 = vmax.f32 %v754_v13, 0.0  ;;  %v749_v23 = vadd.f32 %v9674_v11, %v748_v16  ;;  %7782 = vmatmul.mubr.f32.vlgmr.msra.gmra.mxu1 %v9781_v9 }
  0xf1   : > { %949 = vst [vmem:[#allocation2 + $0x11] sm:$0xff] %v940_v12  ;;  %v943_v28 = vmax.f32 %v9786_v14, 0.0  ;;  %v9800_v29 = vadd.f32 %v9674_v11, %v911_v18  ;;  %v7679_v34 = vpop.f32.mrf.mxu0  ;;  %7838 = vmatpush3.msra.mxu1 %v9653_v6  ;;  %7784 = vmatprep.mubr.f32.mxu1 %v9771_v2  ;;  %v1383_v14 = vld [vmem:[#allocation2 + $0x170] sm:$0xff] }
  0xf2   : > { %v7701_v40 = vpop.f32.mrf.mxu1  ;;  %789 = vst [vmem:[#allocation2 + $0xd0] sm:$0xff] %v9794_v22  ;;  %v9808_v43 = vmax.f32 %v749_v23, 0.0  ;;  %v764_v47 = vadd.f32 %v7679_v34, %v9674_v11  ;;  %7839 = vmatprep.subr.mxu1 %v6224_v17 }
  0xf3   : > { %952 = vst [vmem:[#allocation2 + $0x41] sm:$0xff] %v943_v28  ;;  %v942_v48 = vmax.f32 %v9800_v29, 0.0  ;;  %v9815_v6 = vadd.f32 %v7701_v40, %v9674_v11  ;;  %v758_v52 = vpop.f32.mrf.mxu0  ;;  %7840 = vmatpush3.msra.mxu1 %v6224_v17  ;;  %v1384_v29 = vld [vmem:[#allocation2 + $0x180] sm:$0xff] }
  0xf4   : > { %v921_v60 = vpop.f32.mrf.mxu1  ;;  %788 = vst [vmem:[#allocation2 + $0xc0] sm:$0xff] %v9808_v43  ;;  %v9821_v61 = vmax.f32 %v764_v47, 0.0  ;;  %v759_v62 = vadd.f32 %v9674_v11, %v758_v52  ;;  %7841 = vmatprep.subr.mxu1 %v6223_v38  ;;  %7785 = vmatmul.mubr.f32.gmra.mxu1 %v9808_v43 }
  0xf5   : > { %951 = vst [vmem:[#allocation2 + $0x31] sm:$0xff] %v942_v48  ;;  %v945_v0 = vmax.f32 %v9815_v6, 0.0  ;;  %v922_v1 = vadd.f32 %v9674_v11, %v921_v60  ;;  %v7682_v4 = vpop.f32.mrf.mxu0  ;;  %7842 = vmatpush3.msra.mxu1 %v6223_v38  ;;  %7787 = vmatprep.mubr.f32.mxu1 %v9794_v22  ;;  %v6208_v38 = vld [vmem:[%s12551_s3 + $0x170] sm:$0xff]  ;;  %v6251_v6 = vld [vmem:[%s12551_s3 + $0x2c8] sm:$0xff] }
  0xf6   : > { %v7704_v8 = vpop.f32.mrf.mxu1  ;;  %791 = vst [vmem:[#allocation2 + $0xf0] sm:$0xff] %v9821_v61  ;;  %v9834_v13 = vmax.f32 %v759_v62, 0.0  ;;  %v9837_v16 = vadd.f32 %v7682_v4, %v9674_v11  ;;  %7843 = vmatprep.subr.mxu1 %v6222_v53  ;;  %v9853_v60 = vld [vmem:[#allocation2 + $0x20] sm:$0xff]  ;;  %v6220_v4 = vld [vmem:[%s12551_s3 + $0x1d0] sm:$0xff] }
  0xf7   : > { %954 = vst [vmem:[#allocation2 + $0x61] sm:$0xff] %v945_v0  ;;  %v9841_v17 = vmax.f32 %v922_v1, 0.0  ;;  %v937_v18 = vadd.f32 %v7704_v8, %v9674_v11  ;;  %v768_v23 = vpop.f32.mrf.mxu0  ;;  %7844 = vmatpush3.msra.mxu1 %v6222_v53  ;;  %v6207_v53 = vld [vmem:[%s12551_s3 + $0x168] sm:$0xff] }
  0xf8   : > { %v9844_v34 = vld [vmem:[#allocation2 + $0x10] sm:$0xff]  ;;  %v931_v40 = vpop.f32.mrf.mxu1  ;;  %790 = vst [vmem:[#allocation2 + $0xe0] sm:$0xff] %v9834_v13  ;;  %v12554_v47 = vmax.f32 %v9837_v16, 0.0  ;;  %v769_v52 = vadd.f32 %v9674_v11, %v768_v23  ;;  %7845 = vmatprep.subr.mxu1 %v6221_v7  ;;  %7788 = vmatmul.mubr.f32.gmra.mxu1 %v9834_v13  ;;  %v6205_v23 = vld [vmem:[%s12551_s3 + $0x158] sm:$0xff] }
  0xf9   : > { %7738 = vmatmul.mubr.f32.vlgmr.msra.gmra.mxu0 %v9844_v34  ;;  %953 = vst [vmem:[#allocation2 + $0x51] sm:$0xff] %v9841_v17  ;;  %v947_v62 = vmax.f32 %v937_v18, 0.0  ;;  %v932_v1 = vadd.f32 %v9674_v11, %v931_v40  ;;  %v6206_v11 = vld [vmem:[%s12551_s3 + $0x160] sm:$0xff]  ;;  %7846 = vmatpush3.msra.mxu1 %v6221_v7  ;;  %v6219_v18 = vld [vmem:[%s12551_s3 + $0x1c8] sm:$0xff]  ;;  %v6204_v7 = vld [vmem:[%s12551_s3 + $0x150] sm:$0xff] }
  0xfa   : > { %7794 = vmatpush3.msra.mxu0 %v9668_v10  ;;  %7740 = vmatprep.mubr.f32.mxu0 %v9853_v60  ;;  %793 = vst [vmem:[#allocation2 + $0x110] sm:$0xff] %v12554_v47  ;;  %v9867_v8 = vmax.f32 %v769_v52, 0.0  ;;  %v6203_v40 = vld [vmem:[%s12551_s3 + $0x148] sm:$0xff]  ;;  %v1378_v52 = vld [vmem:[#allocation2 + $0x120] sm:$0xff] }
  0xfb   : > { %7795 = vmatprep.subr.mxu0 %v6208_v38  ;;  %956 = vst [vmem:[#allocation2 + $0x81] sm:$0xff] %v947_v62  ;;  %v9870_v10 = vmax.f32 %v932_v1, 0.0  ;;  %7847 = vmatprep.subr.mxu1 %v6220_v4  ;;  %v6217_v62 = vld [vmem:[%s12551_s3 + $0x1b8] sm:$0xff]  ;;  %v6202_v1 = vld [vmem:[%s12551_s3 + $0x140] sm:$0xff] }
  0xfc   : > { %7796 = vmatpush3.msra.mxu0 %v6208_v38  ;;  %792 = vst [vmem:[#allocation2 + $0x100] sm:$0xff] %v9867_v8  ;;  %7848 = vmatpush3.msra.mxu1 %v6220_v4  ;;  %v6218_v38 = vld [vmem:[%s12551_s3 + $0x1c0] sm:$0xff]  ;;  %v6201_v4 = vld [vmem:[%s12551_s3 + $0x138] sm:$0xff] }
  0xfd   : > { %7797 = vmatprep.subr.mxu0 %v6207_v53  ;;  %955 = vst [vmem:[#allocation2 + $0x71] sm:$0xff] %v9870_v10  ;;  %7790 = vmatprep.mubr.f32.mxu1 %v9821_v61  ;;  %v9969_v47 = vld [vmem:[#allocation2 + $0x1] sm:$0xff] }
  0xfe   : > { %7798 = vmatpush3.msra.mxu0 %v6207_v53  ;;  %7849 = vmatprep.subr.mxu1 %v6219_v18  ;;  %v6216_v53 = vld [vmem:[%s12551_s3 + $0x1b0] sm:$0xff] }
  0xff   : > { %7799 = vmatprep.subr.mxu0 %v6206_v11  ;;  %7791 = vmatmul.mubr.f32.gmra.mxu1 %v9867_v8 }
 0x100   : > { %7800 = vmatpush3.msra.mxu0 %v6206_v11  ;;  %7850 = vmatpush3.msra.mxu1 %v6219_v18  ;;  %v9906_v11 = vld [vmem:[#allocation2 + $0x30] sm:$0xff] }
 0x101   : > { %7801 = vmatprep.subr.mxu0 %v6205_v23  ;;  %7851 = vmatprep.subr.mxu1 %v6218_v38  ;;  %v6200_v18 = vld [vmem:[%s12551_s3 + $0x130] sm:$0xff] }
 0x102   : > { %7802 = vmatpush3.msra.mxu0 %v6205_v23  ;;  %7869 = vmatprep.mubr.f32.mxu1 %v1378_v52  ;;  %v9911_v23 = vld [vmem:[#allocation2 + $0x40] sm:$0xff]  ;;  %v9924_v52 = vld [vmem:[#allocation2 + $0x50] sm:$0xff] }
 0x103   : > { %7803 = vmatprep.subr.mxu0 %v6204_v7  ;;  %7852 = vmatpush3.msra.mxu1 %v6218_v38  ;;  %v6199_v38 = vld [vmem:[%s12551_s3 + $0x128] sm:$0xff] }
 0x104   : > { %7804 = vmatpush3.msra.mxu0 %v6204_v7  ;;  %7853 = vmatprep.subr.mxu1 %v6217_v62  ;;  %v6215_v7 = vld [vmem:[%s12551_s3 + $0x1a8] sm:$0xff] }
 0x105   : > { %7805 = vmatprep.subr.mxu0 %v6203_v40  ;;  %7854 = vmatpush3.msra.mxu1 %v6217_v62  ;;  %v6198_v62 = vld [vmem:[%s12551_s3 + $0x120] sm:$0xff] }
 0x106   : > { %7806 = vmatpush3.msra.mxu0 %v6203_v40  ;;  %7855 = vmatprep.subr.mxu1 %v6216_v53  ;;  %v6214_v40 = vld [vmem:[%s12551_s3 + $0x1a0] sm:$0xff] }
 0x107   : > { %7807 = vmatprep.subr.mxu0 %v6202_v1  ;;  %7741 = vmatmul.mubr.f32.gmra.mxu0 %v9906_v11 }
 0x108   : > { %7808 = vmatpush3.msra.mxu0 %v6202_v1  ;;  %7856 = vmatpush3.msra.mxu1 %v6216_v53  ;;  %v9929_v1 = vld [vmem:[#allocation2 + $0x60] sm:$0xff]  ;;  %v6197_v53 = vld [vmem:[%s12551_s3 + $0x118] sm:$0xff] }
 0x109   : > { %7809 = vmatprep.subr.mxu0 %v6201_v4  ;;  %7743 = vmatprep.mubr.f32.mxu0 %v9911_v23 }
 0x10a   : > { %7810 = vmatpush3.msra.mxu0 %v6201_v4  ;;  %7857 = vmatprep.subr.mxu1 %v6215_v7  ;;  %v6213_v4 = vld [vmem:[%s12551_s3 + $0x198] sm:$0xff] }
 0x10b   : > { %7811 = vmatprep.subr.mxu0 %v6200_v18  ;;  %7858 = vmatpush3.msra.mxu1 %v6215_v7  ;;  %v9944_v7 = vld [vmem:[%s12551_s3 + $0x110] sm:$0xff] }
 0x10c   : > { %7812 = vmatpush3.msra.mxu0 %v6200_v18  ;;  %7859 = vmatprep.subr.mxu1 %v6214_v40  ;;  %v9938_v18 = vld [vmem:[#allocation2 + $0x70] sm:$0xff] }
 0x10d   : > { %7813 = vmatprep.subr.mxu0 %v6199_v38  ;;  %7744 = vmatmul.mubr.f32.gmra.mxu0 %v9924_v52 }
 0x10e   : > { %7814 = vmatpush3.msra.mxu0 %v6199_v38  ;;  %7860 = vmatpush3.msra.mxu1 %v6214_v40  ;;  %v6212_v38 = vld [vmem:[%s12551_s3 + $0x190] sm:$0xff]  ;;  %v9953_v40 = vld [vmem:[%s12551_s3 + $0x108] sm:$0xff] }
 0x10f   : > { %7815 = vmatprep.subr.mxu0 %v6198_v62  ;;  %7746 = vmatprep.mubr.f32.mxu0 %v9929_v1 }
 0x110   : > { %7816 = vmatpush3.msra.mxu0 %v6198_v62  ;;  %7861 = vmatprep.subr.mxu1 %v6213_v4  ;;  %v6211_v62 = vld [vmem:[%s12551_s3 + $0x188] sm:$0xff] }
 0x111   : > { %7817 = vmatprep.subr.mxu0 %v6197_v53  ;;  %7862 = vmatpush3.msra.mxu1 %v6213_v4  ;;  %v6210_v4 = vld [vmem:[%s12551_s3 + $0x180] sm:$0xff] }
 0x112   : > { %7818 = vmatpush3.msra.mxu0 %v6197_v53  ;;  %7863 = vmatprep.subr.mxu1 %v6212_v38  ;;  %v9963_v53 = vld [vmem:[%s12551_s3 + $0x100] sm:$0xff] }
 0x113   : > { %7747 = vmatmul.mubr.f32.gmra.mxu0 %v9938_v18  ;;  %7819 = vmatprep.subr.mxu0 %v9944_v7 }
 0x114   : > { %7820 = vmatpush3.msra.mxu0 %v9944_v7  ;;  %7864 = vmatpush3.msra.mxu1 %v6212_v38  ;;  %v6241_v38 = vld [vmem:[%s12551_s3 + $0x278] sm:$0xff] }
 0x115   : > { %7821 = vmatprep.subr.mxu0 %v9953_v40  ;;  %7865 = vmatprep.subr.mxu1 %v6211_v62 }
 0x116   : > { %7822 = vmatpush3.msra.mxu0 %v9953_v40  ;;  %7866 = vmatpush3.msra.mxu1 %v6211_v62  ;;  %v1379_v62 = vld [vmem:[#allocation2 + $0x130] sm:$0xff] }
 0x117   : > { %7823 = vmatprep.subr.mxu0 %v9963_v53  ;;  %7867 = vmatprep.subr.mxu1 %v6210_v4 }
 0x118   : > { %7824 = vmatpush3.msra.mxu0 %v9963_v53  ;;  %7825 = vmatprep.mubr.f32.mxu0 %v9969_v47 }
 0x119   : > { %7868 = vmatpush3.msra.mxu1 %v6210_v4  ;;  %7826 = vmatmul.mubr.f32.vlgmr.msra.gmra.mxu0 %v940_v12  ;;  %v6253_v12 = vld [vmem:[%s12551_s3 + $0x2d8] sm:$0xff]  ;;  %v6235_v4 = vld [vmem:[%s12551_s3 + $0x248] sm:$0xff] }
 0x11a   : > { %7870 = vmatmul.mubr.f32.vlgmr.msra.gmra.mxu1 %v1379_v62  ;;  %7881 = vmatprep.subr.mxu0 %v6241_v38  ;;  %v6250_v62 = vld [vmem:[%s12551_s3 + $0x2c0] sm:$0xff] }
 0x11b   : > { %7925 = vmatprep.subr.mxu1 %v6257_v55  ;;  %7828 = vmatprep.mubr.f32.mxu0 %v941_v3  ;;  %v1381_v3 = vld [vmem:[#allocation2 + $0x150] sm:$0xff] }
 0x11c   : > { %7872 = vmatprep.mubr.f32.mxu1 %v1380_v59  ;;  %7882 = vmatpush3.msra.mxu0 %v6241_v38  ;;  %v6254_v59 = vld [vmem:[%s12551_s3 + $0x2e0] sm:$0xff] }
 0x11d   : > { %7926 = vmatpush3.msra.mxu1 %v6257_v55  ;;  %7883 = vmatprep.subr.mxu0 %v6240_v54  ;;  %v6238_v55 = vld [vmem:[%s12551_s3 + $0x260] sm:$0xff] }
 0x11e   : > { %7927 = vmatprep.subr.mxu1 %v6256_v58  ;;  %7884 = vmatpush3.msra.mxu0 %v6240_v54  ;;  %v1382_v54 = vld [vmem:[#allocation2 + $0x160] sm:$0xff] }
 0x11f   : > { %7928 = vmatpush3.msra.mxu1 %v6256_v58  ;;  %7829 = vmatmul.mubr.f32.gmra.mxu0 %v942_v48  ;;  %v6237_v58 = vld [vmem:[%s12551_s3 + $0x258] sm:$0xff]  ;;  %v6252_v48 = vld [vmem:[%s12551_s3 + $0x2d0] sm:$0xff]  ;;  %v6234_v38 = vld [vmem:[%s12551_s3 + $0x240] sm:$0xff] }
 0x120   : > { %7873 = vmatmul.mubr.f32.gmra.mxu1 %v1381_v3  ;;  %7885 = vmatprep.subr.mxu0 %v6239_v5  ;;  %v6230_v3 = vld [vmem:[%s12551_s3 + $0x220] sm:$0xff] }
 0x121   : > { %7929 = vmatprep.subr.mxu1 %v6255_v63  ;;  %7831 = vmatprep.mubr.f32.mxu0 %v943_v28  ;;  %v6236_v28 = vld [vmem:[%s12551_s3 + $0x250] sm:$0xff] }
 0x122   : > { %7875 = vmatprep.mubr.f32.mxu1 %v1382_v54  ;;  %7886 = vmatpush3.msra.mxu0 %v6239_v5  ;;  %v6233_v5 = vld [vmem:[%s12551_s3 + $0x238] sm:$0xff] }
 0x123   : > { %7930 = vmatpush3.msra.mxu1 %v6255_v63  ;;  %7887 = vmatprep.subr.mxu0 %v6238_v55  ;;  %v6249_v63 = vld [vmem:[%s12551_s3 + $0x2b8] sm:$0xff] }
 0x124   : > { %7931 = vmatprep.subr.mxu1 %v6254_v59  ;;  %7888 = vmatpush3.msra.mxu0 %v6238_v55  ;;  %v6246_v55 = vld [vmem:[%s12551_s3 + $0x2a0] sm:$0xff]  ;;  %v6229_v54 = vld [vmem:[%s12551_s3 + $0x218] sm:$0xff] }
 0x125   : > { %7932 = vmatpush3.msra.mxu1 %v6254_v59  ;;  %7832 = vmatmul.mubr.f32.gmra.mxu0 %v9841_v17  ;;  %v6245_v59 = vld [vmem:[%s12551_s3 + $0x298] sm:$0xff] }
 0x126   : > { %7876 = vmatmul.mubr.f32.gmra.mxu1 %v1383_v14  ;;  %7889 = vmatprep.subr.mxu0 %v6237_v58  ;;  %v6227_v14 = vld [vmem:[%s12551_s3 + $0x208] sm:$0xff] }
 0x127   : > { %7933 = vmatprep.subr.mxu1 %v6253_v12  ;;  %7834 = vmatprep.mubr.f32.mxu0 %v945_v0  ;;  %v1385_v0 = vld [vmem:[#allocation2 + $0x190] sm:$0xff] }
 0x128   : > { %7878 = vmatprep.mubr.f32.mxu1 %v1384_v29  ;;  %7890 = vmatpush3.msra.mxu0 %v6237_v58  ;;  %v6228_v58 = vld [vmem:[%s12551_s3 + $0x210] sm:$0xff]  ;;  %v6226_v29 = vld [vmem:[%s12551_s3 + $0x200] sm:$0xff] }
 0x129   : > { %7934 = vmatpush3.msra.mxu1 %v6253_v12  ;;  %7891 = vmatprep.subr.mxu0 %v6236_v28  ;;  %v6244_v12 = vld [vmem:[%s12551_s3 + $0x290] sm:$0xff] }
 0x12a   : > { %7935 = vmatprep.subr.mxu1 %v6252_v48  ;;  %7892 = vmatpush3.msra.mxu0 %v6236_v28  ;;  %v6243_v28 = vld [vmem:[%s12551_s3 + $0x288] sm:$0xff] }
 0x12b   : > { %7936 = vmatpush3.msra.mxu1 %v6252_v48  ;;  %7835 = vmatmul.mubr.f32.gmra.mxu0 %v9870_v10  ;;  %v6242_v48 = vld [vmem:[%s12551_s3 + $0x280] sm:$0xff] }
 0x12c   : > { %7879 = vmatmul.mubr.f32.gmra.mxu1 %v1385_v0  ;;  %7893 = vmatprep.subr.mxu0 %v6235_v4  ;;  %v6289_v0 = vld [vmem:[%s12551_s3 + $0x3f8] sm:$0xff] }
 0x12d   : > { %7937 = vmatprep.subr.mxu1 %v6251_v6  ;;  %7894 = vmatpush3.msra.mxu0 %v6235_v4  ;;  %v6273_v4 = vld [vmem:[%s12551_s3 + $0x378] sm:$0xff] }
 0x12e   : > { %7913 = vmatprep.mubr.f32.mxu0 %v451_v24  ;;  %7938 = vmatpush3.msra.mxu1 %v6251_v6  ;;  %v6248_v24 = vld [vmem:[%s12551_s3 + $0x2b0] sm:$0xff]  ;;  %v10090_v6 = vld [vmem:[#allocation2 + $0x1c0] sm:$0xff] }
 0x12f   : > { %7957 = vmatprep.mubr.f32.mxu1 %v614_v25  ;;  %7895 = vmatprep.subr.mxu0 %v6234_v38  ;;  %v6247_v25 = vld [vmem:[%s12551_s3 + $0x2a8] sm:$0xff] }
 0x130   : > { %7939 = vmatprep.subr.mxu1 %v6250_v62  ;;  %7896 = vmatpush3.msra.mxu0 %v6234_v38  ;;  %v6272_v38 = vld [vmem:[%s12551_s3 + $0x370] sm:$0xff] }
 0x131   : > { %7940 = vmatpush3.msra.mxu1 %v6250_v62  ;;  %7897 = vmatprep.subr.mxu0 %v6233_v5  ;;  %v6288_v62 = vld [vmem:[%s12551_s3 + $0x3f0] sm:$0xff] }
 0x132   : > { %7941 = vmatprep.subr.mxu1 %v6249_v63  ;;  %7898 = vmatpush3.msra.mxu0 %v6233_v5  ;;  %v6261_v5 = vld [vmem:[%s12551_s3 + $0x318] sm:$0xff] }
 0x133   : > { %7942 = vmatpush3.msra.mxu1 %v6249_v63  ;;  %7899 = vmatprep.subr.mxu0 %v6232_v20  ;;  %v6277_v63 = vld [vmem:[%s12551_s3 + $0x398] sm:$0xff] }
 0x134   : > { %7943 = vmatprep.subr.mxu1 %v6248_v24  ;;  %7900 = vmatpush3.msra.mxu0 %v6232_v20  ;;  %v6260_v20 = vld [vmem:[%s12551_s3 + $0x310] sm:$0xff] }
 0x135   : > { %7944 = vmatpush3.msra.mxu1 %v6248_v24  ;;  %7901 = vmatprep.subr.mxu0 %v6231_v21  ;;  %v6276_v24 = vld [vmem:[%s12551_s3 + $0x390] sm:$0xff] }
 0x136   : > { %7945 = vmatprep.subr.mxu1 %v6247_v25  ;;  %7902 = vmatpush3.msra.mxu0 %v6231_v21  ;;  %v6259_v21 = vld [vmem:[%s12551_s3 + $0x308] sm:$0xff] }
 0x137   : > { %7946 = vmatpush3.msra.mxu1 %v6247_v25  ;;  %7903 = vmatprep.subr.mxu0 %v6230_v3  ;;  %v6275_v25 = vld [vmem:[%s12551_s3 + $0x388] sm:$0xff] }
 0x138   : > { %7947 = vmatprep.subr.mxu1 %v6246_v55  ;;  %7904 = vmatpush3.msra.mxu0 %v6230_v3  ;;  %v6258_v3 = vld [vmem:[%s12551_s3 + $0x300] sm:$0xff] }
 0x139   : > { %7948 = vmatpush3.msra.mxu1 %v6246_v55  ;;  %7905 = vmatprep.subr.mxu0 %v6229_v54  ;;  %v6274_v55 = vld [vmem:[%s12551_s3 + $0x380] sm:$0xff] }
 0x13a   : > { %7949 = vmatprep.subr.mxu1 %v6245_v59  ;;  %7906 = vmatpush3.msra.mxu0 %v6229_v54  ;;  %v6305_v54 = vld [vmem:[%s12551_s3 + $0x478] sm:$0xff] }
 0x13b   : > { %7950 = vmatpush3.msra.mxu1 %v6245_v59  ;;  %7907 = vmatprep.subr.mxu0 %v6228_v58  ;;  %v2266_v59 = vld [vmem:[%s12551_s3 + $0x78] sm:$0xff] }
 0x13c   : > { %7951 = vmatprep.subr.mxu1 %v6244_v12  ;;  %7908 = vmatpush3.msra.mxu0 %v6228_v58  ;;  %v6304_v58 = vld [vmem:[%s12551_s3 + $0x470] sm:$0xff] }
 0x13d   : > { %7952 = vmatpush3.msra.mxu1 %v6244_v12  ;;  %7909 = vmatprep.subr.mxu0 %v6227_v14  ;;  %v2265_v12 = vld [vmem:[%s12551_s3 + $0x70] sm:$0xff] }
 0x13e   : > { %7953 = vmatprep.subr.mxu1 %v6243_v28  ;;  %7910 = vmatpush3.msra.mxu0 %v6227_v14  ;;  %v12577_v14 = vmax.f32 %v9837_v16, 0.0  ;;  %v6297_v16 = vld [vmem:[%s12551_s3 + $0x438] sm:$0xff] }
 0x13f   : > { %7954 = vmatpush3.msra.mxu1 %v6243_v28  ;;  %7911 = vmatprep.subr.mxu0 %v6226_v29  ;;  %v2259_v28 = vld [vmem:[%s12551_s3 + $0x40] sm:$0xff] }
 0x140   : > { %7955 = vmatprep.subr.mxu1 %v6242_v48  ;;  %7912 = vmatpush3.msra.mxu0 %v6226_v29  ;;  %v10276_v29 = vld [vmem:[#allocation2 + $0x11] sm:$0xff] }
 0x141   : > { %7956 = vmatpush3.msra.mxu1 %v6242_v48  ;;  %7914 = vmatmul.mubr.f32.vlgmr.msra.gmra.mxu0 %v10090_v6  ;;  %v2258_v48 = vld [vmem:[%s12551_s3 + $0x38] sm:$0xff] }
 0x142   : > { %7958 = vmatmul.mubr.f32.vlgmr.msra.gmra.mxu1 %v615_v19  ;;  %7969 = vmatprep.subr.mxu0 %v6273_v4  ;;  %v6287_v19 = vld [vmem:[%s12551_s3 + $0x3e8] sm:$0xff] }
 0x143   : > { %8013 = vmatprep.subr.mxu1 %v6289_v0  ;;  %7916 = vmatprep.mubr.f32.mxu0 %v453_v35  ;;  %v6284_v35 = vld [vmem:[%s12551_s3 + $0x3d0] sm:$0xff] }
 0x144   : > { %7960 = vmatprep.mubr.f32.mxu1 %v616_v36  ;;  %7970 = vmatpush3.msra.mxu0 %v6273_v4  ;;  %v12574_v36 = vmax.f32 %v9755_v57, 0.0  ;;  %v6279_v57 = vld [vmem:[%s12551_s3 + $0x3a8] sm:$0xff]  ;;  %v6296_v4 = vld [vmem:[%s12551_s3 + $0x430] sm:$0xff] }
 0x145   : > { %8014 = vmatpush3.msra.mxu1 %v6289_v0  ;;  %7971 = vmatprep.subr.mxu0 %v6272_v38  ;;  %v2257_v0 = vld [vmem:[%s12551_s3 + $0x30] sm:$0xff] }
 0x146   : > { %8015 = vmatprep.subr.mxu1 %v6288_v62  ;;  %7972 = vmatpush3.msra.mxu0 %v6272_v38  ;;  %v6295_v38 = vld [vmem:[%s12551_s3 + $0x428] sm:$0xff] }
 0x147   : > { %8016 = vmatpush3.msra.mxu1 %v6288_v62  ;;  %7917 = vmatmul.mubr.f32.gmra.mxu0 %v454_v30  ;;  %v6268_v30 = vld [vmem:[%s12551_s3 + $0x350] sm:$0xff]  ;;  %v2256_v62 = vld [vmem:[%s12551_s3 + $0x28] sm:$0xff] }
 0x148   : > { %7961 = vmatmul.mubr.f32.gmra.mxu1 %v617_v31  ;;  %7973 = vmatprep.subr.mxu0 %v6271_v15  ;;  %v12573_v31 = vmax.f32 %v9752_v56, 0.0  ;;  %v6263_v56 = vld [vmem:[%s12551_s3 + $0x328] sm:$0xff] }
 0x149   : > { %8017 = vmatprep.subr.mxu1 %v6287_v19  ;;  %7919 = vmatprep.mubr.f32.mxu0 %v455_v46  ;;  %v6265_v46 = vld [vmem:[%s12551_s3 + $0x338] sm:$0xff] }
 0x14a   : > { %7963 = vmatprep.mubr.f32.mxu1 %v618_v49  ;;  %7974 = vmatpush3.msra.mxu0 %v6271_v15  ;;  %v6281_v49 = vld [vmem:[%s12551_s3 + $0x3b8] sm:$0xff]  ;;  %v6294_v15 = vld [vmem:[%s12551_s3 + $0x420] sm:$0xff] }
 0x14b   : > { %8018 = vmatpush3.msra.mxu1 %v6287_v19  ;;  %7975 = vmatprep.subr.mxu0 %v6270_v32  ;;  %v2255_v19 = vld [vmem:[%s12551_s3 + $0x20] sm:$0xff] }
 0x14c   : > { %8019 = vmatprep.subr.mxu1 %v6286_v33  ;;  %7976 = vmatpush3.msra.mxu0 %v6270_v32  ;;  %v6293_v32 = vld [vmem:[%s12551_s3 + $0x418] sm:$0xff] }
 0x14d   : > { %8020 = vmatpush3.msra.mxu1 %v6286_v33  ;;  %7920 = vmatmul.mubr.f32.gmra.mxu0 %v456_v41  ;;  %v12575_v41 = vmax.f32 %v9740_v50, 0.0  ;;  %v6264_v50 = vld [vmem:[%s12551_s3 + $0x330] sm:$0xff]  ;;  %v2254_v33 = vld [vmem:[%s12551_s3 + $0x18] sm:$0xff] }
 0x14e   : > { %7964 = vmatmul.mubr.f32.gmra.mxu1 %v619_v44  ;;  %7977 = vmatprep.subr.mxu0 %v6269_v26  ;;  %v6266_v44 = vld [vmem:[%s12551_s3 + $0x340] sm:$0xff] }
 0x14f   : > { %8021 = vmatprep.subr.mxu1 %v6285_v27  ;;  %7922 = vmatprep.mubr.f32.mxu0 %v12573_v31  ;;  %v2252_v31 = vld [vmem:[%s12551_s3 + $0x8] sm:$0xff] }
 0x150   : > { %7966 = vmatprep.mubr.f32.mxu1 %v12574_v36  ;;  %7978 = vmatpush3.msra.mxu0 %v6269_v26  ;;  %v6292_v26 = vld [vmem:[%s12551_s3 + $0x410] sm:$0xff]  ;;  %v2251_v36 = vld [vmem:[%s12551_s3] sm:$0xff] }
 0x151   : > { %8022 = vmatpush3.msra.mxu1 %v6285_v27  ;;  %7979 = vmatprep.subr.mxu0 %v6268_v30  ;;  %v2253_v27 = vld [vmem:[%s12551_s3 + $0x10] sm:$0xff] }
 0x152   : > { %8023 = vmatprep.subr.mxu1 %v6284_v35  ;;  %7980 = vmatpush3.msra.mxu0 %v6268_v30  ;;  %v6291_v30 = vld [vmem:[%s12551_s3 + $0x408] sm:$0xff] }
 0x153   : > { %8024 = vmatpush3.msra.mxu1 %v6284_v35  ;;  %7923 = vmatmul.mubr.f32.gmra.mxu0 %v12575_v41  ;;  %v6290_v35 = vld [vmem:[%s12551_s3 + $0x400] sm:$0xff]  ;;  %v6338_v41 = vld [vmem:[%s12551_s3 + $0x178] sm:$0xff] }
 0x154   : > { %7967 = vmatmul.mubr.f32.gmra.mxu1 %v12576_v42  ;;  %7981 = vmatprep.subr.mxu0 %v6267_v37  ;;  %v9298_v42 = vld [vmem:[#allocation2] sm:$0xff] }
 0x155   : > { %8025 = vmatprep.subr.mxu1 %v6283_v39  ;;  %7982 = vmatpush3.msra.mxu0 %v6267_v37  ;;  %v6322_v37 = vld [vmem:[%s12551_s3 + $0xf8] sm:$0xff] }
 0x156   : > { %8001 = vmatprep.mubr.f32.mxu0 %v9844_v34  ;;  %8026 = vmatpush3.msra.mxu1 %v6283_v39  ;;  %v6278_v34 = vld [vmem:[%s12551_s3 + $0x3a0] sm:$0xff] }
 0x157   : > { %8045 = vmatprep.mubr.f32.mxu1 %v9781_v9  ;;  %7983 = vmatprep.subr.mxu0 %v6266_v44  ;;  %v6262_v9 = vld [vmem:[%s12551_s3 + $0x320] sm:$0xff] }
 0x158   : > { %8027 = vmatprep.subr.mxu1 %v6282_v45  ;;  %7984 = vmatpush3.msra.mxu0 %v6266_v44  ;;  %v10330_v39 = vld [vmem:[#allocation2 + $0x21] sm:$0xff] }
 0x159   : > { %8028 = vmatpush3.msra.mxu1 %v6282_v45  ;;  %7985 = vmatprep.subr.mxu0 %v6265_v46  ;;  %v10336_v44 = vld [vmem:[#allocation2 + $0xa0] sm:$0xff]  ;;  %v10339_v45 = vld [vmem:[#allocation2 + $0x31] sm:$0xff] }
 0x15a   : > { %8029 = vmatprep.subr.mxu1 %v6281_v49  ;;  %7986 = vmatpush3.msra.mxu0 %v6265_v46  ;;  %v6321_v46 = vld [vmem:[%s12551_s3 + $0xf0] sm:$0xff] }
 0x15b   : > { %8030 = vmatpush3.msra.mxu1 %v6281_v49  ;;  %7987 = vmatprep.subr.mxu0 %v6264_v50  ;;  %v10345_v49 = vld [vmem:[#allocation2 + $0xb0] sm:$0xff] }
 0x15c   : > { %8031 = vmatprep.subr.mxu1 %v6280_v51  ;;  %7988 = vmatpush3.msra.mxu0 %v6264_v50  ;;  %v6337_v50 = vld [vmem:[%s12551_s3 + $0x170] sm:$0xff] }
 0x15d   : > { %8032 = vmatpush3.msra.mxu1 %v6280_v51  ;;  %7989 = vmatprep.subr.mxu0 %v6263_v56  ;;  %v6320_v51 = vld [vmem:[%s12551_s3 + $0xe8] sm:$0xff] }
 0x15e   : > { %8033 = vmatprep.subr.mxu1 %v6279_v57  ;;  %7990 = vmatpush3.msra.mxu0 %v6263_v56  ;;  %v10354_v56 = vld [vmem:[#allocation2 + $0x41] sm:$0xff] }
 0x15f   : > { %8034 = vmatpush3.msra.mxu1 %v6279_v57  ;;  %7991 = vmatprep.subr.mxu0 %v6262_v9  ;;  %v6336_v57 = vld [vmem:[%s12551_s3 + $0x168] sm:$0xff] }
 0x160   : > { %8035 = vmatprep.subr.mxu1 %v6278_v34  ;;  %7992 = vmatpush3.msra.mxu0 %v6262_v9  ;;  %v10360_v9 = vld [vmem:[#allocation2 + $0xc0] sm:$0xff] }
 0x161   : > { %8036 = vmatpush3.msra.mxu1 %v6278_v34  ;;  %7993 = vmatprep.subr.mxu0 %v6261_v5  ;;  %v6319_v34 = vld [vmem:[%s12551_s3 + $0xe0] sm:$0xff] }
 0x162   : > { %8037 = vmatprep.subr.mxu1 %v6277_v63  ;;  %7994 = vmatpush3.msra.mxu0 %v6261_v5  ;;  %v10367_v5 = vld [vmem:[#allocation2 + $0xd0] sm:$0xff] }
 0x163   : > { %8038 = vmatpush3.msra.mxu1 %v6277_v63  ;;  %7995 = vmatprep.subr.mxu0 %v6260_v20  ;;  %v6335_v63 = vld [vmem:[%s12551_s3 + $0x160] sm:$0xff] }
 0x164   : > { %8039 = vmatprep.subr.mxu1 %v6276_v24  ;;  %7996 = vmatpush3.msra.mxu0 %v6260_v20  ;;  %v6318_v20 = vld [vmem:[%s12551_s3 + $0xd8] sm:$0xff] }
 0x165   : > { %8040 = vmatpush3.msra.mxu1 %v6276_v24  ;;  %7997 = vmatprep.subr.mxu0 %v6259_v21  ;;  %v10376_v24 = vld [vmem:[#allocation2 + $0x61] sm:$0xff] }
 0x166   : > { %8041 = vmatprep.subr.mxu1 %v6275_v25  ;;  %7998 = vmatpush3.msra.mxu0 %v6259_v21  ;;  %v10382_v21 = vld [vmem:[#allocation2 + $0xe0] sm:$0xff] }
 0x167   : > { %8042 = vmatpush3.msra.mxu1 %v6275_v25  ;;  %7999 = vmatprep.subr.mxu0 %v6258_v3  ;;  %v6317_v25 = vld [vmem:[%s12551_s3 + $0xd0] sm:$0xff] }
 0x168   : > { %8043 = vmatprep.subr.mxu1 %v6274_v55  ;;  %8000 = vmatpush3.msra.mxu0 %v6258_v3  ;;  %v10389_v3 = vld [vmem:[#allocation2 + $0xf0] sm:$0xff] }
 0x169   : > { %8044 = vmatpush3.msra.mxu1 %v6274_v55  ;;  %8002 = vmatmul.mubr.f32.vlgmr.msra.gmra.mxu0 %v9853_v60  ;;  %v2264_v60 = vld [vmem:[%s12551_s3 + $0x68] sm:$0xff]  ;;  %v6333_v55 = vld [vmem:[%s12551_s3 + $0x150] sm:$0xff] }
 0x16a   : > { %8046 = vmatmul.mubr.f32.vlgmr.msra.gmra.mxu1 %v9771_v2  ;;  %8057 = vmatprep.subr.mxu0 %v6305_v54  ;;  %v6303_v2 = vld [vmem:[%s12551_s3 + $0x468] sm:$0xff] }
 0x16b   : > { %8101 = vmatprep.subr.mxu1 %v2266_v59  ;;  %8004 = vmatprep.mubr.f32.mxu0 %v9906_v11  ;;  %v2263_v11 = vld [vmem:[%s12551_s3 + $0x60] sm:$0xff] }
 0x16c   : > { %8048 = vmatprep.mubr.f32.mxu1 %v9808_v43  ;;  %8058 = vmatpush3.msra.mxu0 %v6305_v54  ;;  %v6302_v43 = vld [vmem:[%s12551_s3 + $0x460] sm:$0xff]  ;;  %v6316_v54 = vld [vmem:[%s12551_s3 + $0xc8] sm:$0xff] }
 0x16d   : > { %8102 = vmatpush3.msra.mxu1 %v2266_v59  ;;  %8059 = vmatprep.subr.mxu0 %v6304_v58  ;;  %v2075_v59 = vld [vmem:[#allocation2 + $0x81] sm:$0xff] }
 0x16e   : > { %8103 = vmatprep.subr.mxu1 %v2265_v12  ;;  %8060 = vmatpush3.msra.mxu0 %v6304_v58  ;;  %v10401_v58 = vld [vmem:[#allocation2 + $0x100] sm:$0xff] }
 0x16f   : > { %8104 = vmatpush3.msra.mxu1 %v2265_v12  ;;  %8005 = vmatmul.mubr.f32.gmra.mxu0 %v9911_v23  ;;  %v2262_v23 = vld [vmem:[%s12551_s3 + $0x58] sm:$0xff]  ;;  %v6315_v12 = vld [vmem:[%s12551_s3 + $0xc0] sm:$0xff] }
 0x170   : > { %8049 = vmatmul.mubr.f32.gmra.mxu1 %v9794_v22  ;;  %8061 = vmatprep.subr.mxu0 %v6303_v2  ;;  %v6301_v22 = vld [vmem:[%s12551_s3 + $0x458] sm:$0xff] }
 0x171   : > { %8105 = vmatprep.subr.mxu1 %v2264_v60  ;;  %8007 = vmatprep.mubr.f32.mxu0 %v9924_v52  ;;  %v2261_v52 = vld [vmem:[%s12551_s3 + $0x50] sm:$0xff] }
 0x172   : > { %8051 = vmatprep.mubr.f32.mxu1 %v9834_v13  ;;  %8062 = vmatpush3.msra.mxu0 %v6303_v2  ;;  %v6300_v13 = vld [vmem:[%s12551_s3 + $0x450] sm:$0xff]  ;;  %v6331_v2 = vld [vmem:[%s12551_s3 + $0x140] sm:$0xff] }
 0x173   : > { %8106 = vmatpush3.msra.mxu1 %v2264_v60  ;;  %8063 = vmatprep.subr.mxu0 %v6302_v43  ;;  %v6314_v60 = vld [vmem:[%s12551_s3 + $0xb8] sm:$0xff] }
 0x174   : > { %8107 = vmatprep.subr.mxu1 %v2263_v11  ;;  %8064 = vmatpush3.msra.mxu0 %v6302_v43  ;;  %v6330_v43 = vld [vmem:[%s12551_s3 + $0x138] sm:$0xff] }
 0x175   : > { %8108 = vmatpush3.msra.mxu1 %v2263_v11  ;;  %8008 = vmatmul.mubr.f32.gmra.mxu0 %v9929_v1  ;;  %v1799_v1 = vld [vmem:[#allocation2 + $0x80] sm:$0xff]  ;;  %v6313_v11 = vld [vmem:[%s12551_s3 + $0xb0] sm:$0xff] }
 0x176   : > { %8052 = vmatmul.mubr.f32.gmra.mxu1 %v9821_v61  ;;  %8065 = vmatprep.subr.mxu0 %v6301_v22  ;;  %v6299_v61 = vld [vmem:[%s12551_s3 + $0x448] sm:$0xff] }
 0x177   : > { %8109 = vmatprep.subr.mxu1 %v2262_v23  ;;  %8010 = vmatprep.mubr.f32.mxu0 %v9938_v18  ;;  %v2260_v18 = vld [vmem:[%s12551_s3 + $0x48] sm:$0xff] }
 0x178   : > { %8054 = vmatprep.mubr.f32.mxu1 %v9867_v8  ;;  %8066 = vmatpush3.msra.mxu0 %v6301_v22  ;;  %v6298_v8 = vld [vmem:[%s12551_s3 + $0x440] sm:$0xff]  ;;  %v6329_v22 = vld [vmem:[%s12551_s3 + $0x130] sm:$0xff] }
 0x179   : > { %8110 = vmatpush3.msra.mxu1 %v2262_v23  ;;  %8067 = vmatprep.subr.mxu0 %v6300_v13  ;;  %v6312_v23 = vld [vmem:[%s12551_s3 + $0xa8] sm:$0xff] }
 0x17a   : > { %8111 = vmatprep.subr.mxu1 %v2261_v52  ;;  %8068 = vmatpush3.msra.mxu0 %v6300_v13  ;;  %v6328_v13 = vld [vmem:[%s12551_s3 + $0x128] sm:$0xff] }
 0x17b   : > { %8112 = vmatpush3.msra.mxu1 %v2261_v52  ;;  %8011 = vmatmul.mubr.f32.gmra.mxu0 %v1799_v1  ;;  %v6311_v52 = vld [vmem:[%s12551_s3 + $0xa0] sm:$0xff]  ;;  %v6310_v1 = vld [vmem:[%s12551_s3 + $0x98] sm:$0xff] }
 0x17c   : > { %8055 = vmatmul.mubr.f32.gmra.mxu1 %v12577_v14  ;;  %8069 = vmatprep.subr.mxu0 %v6299_v61  ;;  %v6309_v14 = vld [vmem:[%s12551_s3 + $0x90] sm:$0xff] }
 0x17d   : > { %8113 = vmatprep.subr.mxu1 %v2260_v18  ;;  %8070 = vmatpush3.msra.mxu0 %v6299_v61  ;;  %v6327_v61 = vld [vmem:[%s12551_s3 + $0x120] sm:$0xff] }
 0x17e   : > { %8089 = vmatprep.mubr.f32.mxu0 %v10276_v29  ;;  %8114 = vmatpush3.msra.mxu1 %v2260_v18  ;;  %v6326_v18 = vld [vmem:[%s12551_s3 + $0x118] sm:$0xff] }
 0x17f   : > { %8071 = vmatprep.subr.mxu0 %v6298_v8  ;;  %8115 = vmatprep.subr.mxu1 %v2259_v28 }
 0x180   : > { %8072 = vmatpush3.msra.mxu0 %v6298_v8  ;;  %8116 = vmatpush3.msra.mxu1 %v2259_v28  ;;  %v6308_v8 = vld [vmem:[%s12551_s3 + $0x88] sm:$0xff]  ;;  %v6307_v28 = vld [vmem:[%s12551_s3 + $0x80] sm:$0xff] }
 0x181   : > { %8073 = vmatprep.subr.mxu0 %v6297_v16  ;;  %8117 = vmatprep.subr.mxu1 %v2258_v48 }
 0x182   : > { %8074 = vmatpush3.msra.mxu0 %v6297_v16  ;;  %8118 = vmatpush3.msra.mxu1 %v2258_v48  ;;  %v2517_v16 = vld [vmem:[#allocation2 + $0x91] sm:$0xff] }
 0x183   : > { %8075 = vmatprep.subr.mxu0 %v6296_v4  ;;  %8119 = vmatprep.subr.mxu1 %v2257_v0  ;;  %v6354_v48 = vld [vmem:[%s12551_s3 + $0x1f8] sm:$0xff] }
 0x184   : > { %8076 = vmatpush3.msra.mxu0 %v6296_v4  ;;  %8120 = vmatpush3.msra.mxu1 %v2257_v0  ;;  %v6353_v4 = vld [vmem:[%s12551_s3 + $0x1f0] sm:$0xff]  ;;  %v6368_v0 = vld [vmem:[%s12551_s3 + $0x268] sm:$0xff] }
 0x185   : > { %8077 = vmatprep.subr.mxu0 %v6295_v38  ;;  %8121 = vmatprep.subr.mxu1 %v2256_v62 }
 0x186   : > { %8078 = vmatpush3.msra.mxu0 %v6295_v38  ;;  %8122 = vmatpush3.msra.mxu1 %v2256_v62  ;;  %v10485_v62 = vld [vmem:[#allocation2 + $0xc1] sm:$0xff] }
 0x187   : > { %8079 = vmatprep.subr.mxu0 %v6294_v15  ;;  %8123 = vmatprep.subr.mxu1 %v2255_v19 }
 0x188   : > { %8080 = vmatpush3.msra.mxu0 %v6294_v15  ;;  %8124 = vmatpush3.msra.mxu1 %v2255_v19  ;;  %v6351_v15 = vld [vmem:[%s12551_s3 + $0x1e0] sm:$0xff]  ;;  %v10492_v19 = vld [vmem:[#allocation2 + $0xd1] sm:$0xff] }
 0x189   : > { %8081 = vmatprep.subr.mxu0 %v6293_v32  ;;  %8125 = vmatprep.subr.mxu1 %v2254_v33 }
 0x18a   : > { %8082 = vmatpush3.msra.mxu0 %v6293_v32  ;;  %8126 = vmatpush3.msra.mxu1 %v2254_v33  ;;  %v6367_v32 = vld [vmem:[%s12551_s3 + $0x260] sm:$0xff] }
 0x18b   : > { %8083 = vmatprep.subr.mxu0 %v6292_v26  ;;  %8127 = vmatprep.subr.mxu1 %v2253_v27 }
 0x18c   : > { %8084 = vmatpush3.msra.mxu0 %v6292_v26  ;;  %8128 = vmatpush3.msra.mxu1 %v2253_v27  ;;  %v6350_v27 = vld [vmem:[%s12551_s3 + $0x1d8] sm:$0xff] }
 0x18d   : > { %8085 = vmatprep.subr.mxu0 %v6291_v30  ;;  %8129 = vmatprep.subr.mxu1 %v2252_v31 }
 0x18e   : > { %8086 = vmatpush3.msra.mxu0 %v6291_v30  ;;  %8130 = vmatpush3.msra.mxu1 %v2252_v31  ;;  %v10505_v30 = vld [vmem:[#allocation2 + $0x51] sm:$0xff] }
 0x18f   : > { %8087 = vmatprep.subr.mxu0 %v6290_v35  ;;  %8131 = vmatprep.subr.mxu1 %v2251_v36  ;;  %v6366_v31 = vld [vmem:[%s12551_s3 + $0x258] sm:$0xff] }
 0x190   : > { %8088 = vmatpush3.msra.mxu0 %v6290_v35  ;;  %8132 = vmatpush3.msra.mxu1 %v2251_v36  ;;  %v10513_v36 = vld [vmem:[#allocation2 + $0xe1] sm:$0xff] }
 0x191   : > { %8133 = vmatprep.mubr.f32.mxu1 %v9298_v42  ;;  %8090 = vmatmul.mubr.f32.vlgmr.msra.gmra.mxu0 %v10330_v39  ;;  %v6365_v42 = vld [vmem:[%s12551_s3 + $0x250] sm:$0xff] }
 0x192   : > { %8134 = vmatmul.mubr.f32.vlgmr.msra.gmra.mxu1 %v10336_v44  ;;  %8145 = vmatprep.subr.mxu0 %v6322_v37 }
 0x193   : > { %8189 = vmatprep.subr.mxu1 %v6338_v41  ;;  %8092 = vmatprep.mubr.f32.mxu0 %v10339_v45 }
 0x194   : > { %8136 = vmatprep.mubr.f32.mxu1 %v10345_v49  ;;  %8146 = vmatpush3.msra.mxu0 %v6322_v37  ;;  %v6349_v37 = vld [vmem:[%s12551_s3 + $0x1d0] sm:$0xff] }
 0x195   : > { %8190 = vmatpush3.msra.mxu1 %v6338_v41  ;;  %8147 = vmatprep.subr.mxu0 %v6321_v46  ;;  %v10522_v41 = vld [vmem:[#allocation2 + $0xf1] sm:$0xff] }
 0x196   : > { %8191 = vmatprep.subr.mxu1 %v6337_v50  ;;  %8148 = vmatpush3.msra.mxu0 %v6321_v46 }
 0x197   : > { %8192 = vmatpush3.msra.mxu1 %v6337_v50  ;;  %8093 = vmatmul.mubr.f32.gmra.mxu0 %v10354_v56  ;;  %v6348_v50 = vld [vmem:[%s12551_s3 + $0x1c8] sm:$0xff] }
 0x198   : > { %8137 = vmatmul.mubr.f32.gmra.mxu1 %v10360_v9  ;;  %8149 = vmatprep.subr.mxu0 %v6320_v51 }
 0x199   : > { %8193 = vmatprep.subr.mxu1 %v6336_v57  ;;  %8095 = vmatprep.mubr.f32.mxu0 %v9841_v17  ;;  %v6334_v17 = vld [vmem:[%s12551_s3 + $0x158] sm:$0xff] }
 0x19a   : > { %8139 = vmatprep.mubr.f32.mxu1 %v10367_v5  ;;  %8150 = vmatpush3.msra.mxu0 %v6320_v51  ;;  %v10535_v51 = vld [vmem:[#allocation2 + $0x71] sm:$0xff] }
 0x19b   : > { %8194 = vmatpush3.msra.mxu1 %v6336_v57  ;;  %8151 = vmatprep.subr.mxu0 %v6319_v34 }
 0x19c   : > { %8195 = vmatprep.subr.mxu1 %v6335_v63  ;;  %8152 = vmatpush3.msra.mxu0 %v6319_v34  ;;  %v10543_v34 = vld [vmem:[#allocation2 + $0x101] sm:$0xff] }
 0x19d   : > { %8196 = vmatpush3.msra.mxu1 %v6335_v63  ;;  %8096 = vmatmul.mubr.f32.gmra.mxu0 %v10376_v24  ;;  %v6347_v63 = vld [vmem:[%s12551_s3 + $0x1c0] sm:$0xff] }
 0x19e   : > { %8140 = vmatmul.mubr.f32.gmra.mxu1 %v10382_v21  ;;  %8153 = vmatprep.subr.mxu0 %v6318_v20 }
 0x19f   : > { %8197 = vmatprep.subr.mxu1 %v6334_v17  ;;  %8098 = vmatprep.mubr.f32.mxu0 %v9870_v10  ;;  %v6332_v10 = vld [vmem:[%s12551_s3 + $0x148] sm:$0xff] }
 0x1a0   : > { %8142 = vmatprep.mubr.f32.mxu1 %v10389_v3  ;;  %8154 = vmatpush3.msra.mxu0 %v6318_v20 }
 0x1a1   : > { %8198 = vmatpush3.msra.mxu1 %v6334_v17  ;;  %8155 = vmatprep.subr.mxu0 %v6317_v25  ;;  %v6363_v17 = vld [vmem:[%s12551_s3 + $0x240] sm:$0xff] }
 0x1a2   : > { %8199 = vmatprep.subr.mxu1 %v6333_v55  ;;  %8156 = vmatpush3.msra.mxu0 %v6317_v25  ;;  %v2791_v25 = vld [vmem:[#allocation2 + $0x121] sm:$0xff] }
 0x1a3   : > { %8200 = vmatpush3.msra.mxu1 %v6333_v55  ;;  %8099 = vmatmul.mubr.f32.gmra.mxu0 %v2075_v59  ;;  %v6346_v55 = vld [vmem:[%s12551_s3 + $0x1b8] sm:$0xff] }
 0x1a4   : > { %8143 = vmatmul.mubr.f32.gmra.mxu1 %v10401_v58  ;;  %8157 = vmatprep.subr.mxu0 %v6316_v54  ;;  %v6362_v59 = vld [vmem:[%s12551_s3 + $0x238] sm:$0xff] }
 0x1a5   : > { %8201 = vmatprep.subr.mxu1 %v6332_v10  ;;  %8158 = vmatpush3.msra.mxu0 %v6316_v54 }
 0x1a6   : > { %8202 = vmatpush3.msra.mxu1 %v6332_v10  ;;  %8159 = vmatprep.subr.mxu0 %v6315_v12  ;;  %v6345_v10 = vld [vmem:[%s12551_s3 + $0x1b0] sm:$0xff] }
 0x1a7   : > { %8203 = vmatprep.subr.mxu1 %v6331_v2  ;;  %8160 = vmatpush3.msra.mxu0 %v6315_v12 }
 0x1a8   : > { %8204 = vmatpush3.msra.mxu1 %v6331_v2  ;;  %8161 = vmatprep.subr.mxu0 %v6314_v60 }
 0x1a9   : > { %8205 = vmatprep.subr.mxu1 %v6330_v43  ;;  %8162 = vmatpush3.msra.mxu0 %v6314_v60  ;;  %v6361_v60 = vld [vmem:[%s12551_s3 + $0x230] sm:$0xff] }
 0x1aa   : > { %8206 = vmatpush3.msra.mxu1 %v6330_v43  ;;  %8163 = vmatprep.subr.mxu0 %v6313_v11  ;;  %v6344_v43 = vld [vmem:[%s12551_s3 + $0x1a8] sm:$0xff] }
 0x1ab   : > { %8207 = vmatprep.subr.mxu1 %v6329_v22  ;;  %8164 = vmatpush3.msra.mxu0 %v6313_v11  ;;  %v6177_v11 = vld [vmem:[%s12552_s4] ss:$0 sm:$0xff] }
 0x1ac   : > { %8208 = vmatpush3.msra.mxu1 %v6329_v22  ;;  %8165 = vmatprep.subr.mxu0 %v6312_v23 }
 0x1ad   : > { %8209 = vmatprep.subr.mxu1 %v6328_v13  ;;  %8166 = vmatpush3.msra.mxu0 %v6312_v23  ;;  %v6360_v23 = vld [vmem:[%s12551_s3 + $0x228] sm:$0xff] }
 0x1ae   : > { %8210 = vmatpush3.msra.mxu1 %v6328_v13  ;;  %8167 = vmatprep.subr.mxu0 %v6311_v52 }
 0x1af   : > { %8211 = vmatprep.subr.mxu1 %v6327_v61  ;;  %8168 = vmatpush3.msra.mxu0 %v6311_v52  ;;  %v6343_v52 = vld [vmem:[%s12551_s3 + $0x1a0] sm:$0xff] }
 0x1b0   : > { %8212 = vmatpush3.msra.mxu1 %v6327_v61  ;;  %8169 = vmatprep.subr.mxu0 %v6310_v1  ;;  %v10482_v38 = vpop.f32.mrf.mxu1 }
 0x1b1   : > { %8213 = vmatprep.subr.mxu1 %v6326_v18  ;;  %8170 = vmatpush3.msra.mxu0 %v6310_v1  ;;  %v6359_v1 = vld [vmem:[%s12551_s3 + $0x220] sm:$0xff] }
 0x1b2   : > { %8214 = vmatpush3.msra.mxu1 %v6326_v18  ;;  %8171 = vmatprep.subr.mxu0 %v6309_v14  ;;  %v10500_v26 = vpop.f32.mrf.mxu1 }
 0x1b3   : > { %8215 = vmatprep.subr.mxu1 %v9944_v7  ;;  %8172 = vmatpush3.msra.mxu0 %v6309_v14  ;;  %v6342_v14 = vld [vmem:[%s12551_s3 + $0x198] sm:$0xff] }
 0x1b4   : > { %8216 = vmatpush3.msra.mxu1 %v9944_v7  ;;  %8173 = vmatprep.subr.mxu0 %v6308_v8  ;;  %v6370_v7 = vld [vmem:[%s12551_s3 + $0x278] sm:$0xff]  ;;  %v10510_v35 = vpop.f32.mrf.mxu1 }
 0x1b5   : > { %8217 = vmatprep.subr.mxu1 %v9953_v40  ;;  %8174 = vmatpush3.msra.mxu0 %v6308_v8  ;;  %v6358_v8 = vld [vmem:[%s12551_s3 + $0x218] sm:$0xff] }
 0x1b6   : > { %8218 = vmatpush3.msra.mxu1 %v9953_v40  ;;  %8175 = vmatprep.subr.mxu0 %v6307_v28  ;;  %v10463_v40 = vld [vmem:[#allocation2 + $0xa1] sm:$0xff]  ;;  %v10530_v46 = vpop.f32.mrf.mxu1 }
 0x1b7   : > { %8219 = vmatprep.subr.mxu1 %v9963_v53  ;;  %8176 = vmatpush3.msra.mxu0 %v6307_v28 }
 0x1b8   : > { %8177 = vmatprep.mubr.f32.mxu0 %v9969_v47  ;;  %8220 = vmatpush3.msra.mxu1 %v9963_v53  ;;  %v10470_v47 = vld [vmem:[#allocation2 + $0xb1] sm:$0xff]  ;;  %v10549_v20 = vpop.f32.mrf.mxu1 }
 0x1b9   : > { %8221 = vmatprep.mubr.f32.mxu1 %v2517_v16  ;;  %8178 = vmatmul.mubr.f32.vlgmr.msra.gmra.mxu0 %v10276_v29  ;;  %v6369_v53 = vld [vmem:[%s12551_s3 + $0x270] sm:$0xff]  ;;  %v6352_v29 = vld [vmem:[%s12551_s3 + $0x1e8] sm:$0xff]  ;;  %v10498_v33 = vpop.f32.mrf.mxu0 }
 0x1ba   : > { %8222 = vmatmul.mubr.f32.vlgmr.msra.gmra.mxu1 %v10463_v40  ;;  %8233 = vmatprep.subr.mxu0 %v6354_v48  ;;  %v10570_v2 = vpop.f32.mrf.mxu1  ;;  %v6341_v16 = vld [vmem:[%s12551_s3 + $0x190] sm:$0xff] }
 0x1bb   : > { %8277 = vmatprep.subr.mxu1 %v6370_v7  ;;  %8180 = vmatprep.mubr.f32.mxu0 %v10330_v39  ;;  %v10519_v39 = vpop.f32.mrf.mxu0 }
 0x1bc   : > { %8224 = vmatprep.mubr.f32.mxu1 %v10470_v47  ;;  %8234 = vmatpush3.msra.mxu0 %v6354_v48  ;;  %v6357_v48 = vld [vmem:[%s12551_s3 + $0x210] sm:$0xff] }
 0x1bd   : > { %8278 = vmatpush3.msra.mxu1 %v6370_v7  ;;  %8235 = vmatprep.subr.mxu0 %v6353_v4 }
 0x1be   : > { %8279 = vmatprep.subr.mxu1 %v6369_v53  ;;  %8236 = vmatpush3.msra.mxu0 %v6353_v4  ;;  %v6340_v4 = vld [vmem:[%s12551_s3 + $0x188] sm:$0xff] }
 0x1bf   : > { %8280 = vmatpush3.msra.mxu1 %v6369_v53  ;;  %8181 = vmatmul.mubr.f32.gmra.mxu0 %v10339_v45  ;;  %v7792_v61 = vpop.f32.mrf.mxu1  ;;  %v6356_v53 = vld [vmem:[%s12551_s3 + $0x208] sm:$0xff] }
 0x1c0   : > { %8225 = vmatmul.mubr.f32.gmra.mxu1 %v10485_v62  ;;  %8237 = vmatprep.subr.mxu0 %v6352_v29 }
 0x1c1   : > { %8281 = vmatprep.subr.mxu1 %v6368_v0  ;;  %8183 = vmatprep.mubr.f32.mxu0 %v10354_v56  ;;  %v6364_v56 = vld [vmem:[%s12551_s3 + $0x248] sm:$0xff] }
 0x1c2   : > { %8227 = vmatprep.mubr.f32.mxu1 %v10492_v19  ;;  %8238 = vmatpush3.msra.mxu0 %v6352_v29 }
 0x1c3   : > { %8282 = vmatpush3.msra.mxu1 %v6368_v0  ;;  %8239 = vmatprep.subr.mxu0 %v6351_v15  ;;  %v6339_v0 = vld [vmem:[%s12551_s3 + $0x180] sm:$0xff] }
 0x1c4   : > { %8283 = vmatprep.subr.mxu1 %v6367_v32  ;;  %8240 = vmatpush3.msra.mxu0 %v6351_v15  ;;  %v6355_v15 = vld [vmem:[%s12551_s3 + $0x200] sm:$0xff] }
 0x1c5   : > { %8284 = vmatpush3.msra.mxu1 %v6367_v32  ;;  %8184 = vmatmul.mubr.f32.gmra.mxu0 %v10505_v30  ;;  %v6386_v32 = vld [vmem:[%s12551_s3 + $0x2f8] sm:$0xff] }
 0x1c6   : > { %8228 = vmatmul.mubr.f32.gmra.mxu1 %v10513_v36  ;;  %8241 = vmatprep.subr.mxu0 %v6350_v27 }
 0x1c7   : > { %8285 = vmatprep.subr.mxu1 %v6366_v31  ;;  %8186 = vmatprep.mubr.f32.mxu0 %v10376_v24  ;;  %v10528_v45 = vpop.f32.mrf.mxu0  ;;  %v10551_v24 = vld [vmem:[#allocation2 + $0x1b0] sm:$0xff] }
 0x1c8   : > { %8230 = vmatprep.mubr.f32.mxu1 %v10522_v41  ;;  %8242 = vmatpush3.msra.mxu0 %v6350_v27 }
 0x1c9   : > { %8286 = vmatpush3.msra.mxu1 %v6366_v31  ;;  %8243 = vmatprep.subr.mxu0 %v6349_v37  ;;  %v10540_v57 = vpop.f32.mrf.mxu0  ;;  %v6402_v31 = vld [vmem:[%s12551_s3 + $0x378] sm:$0xff] }
 0x1ca   : > { %8287 = vmatprep.subr.mxu1 %v6365_v42  ;;  %8244 = vmatpush3.msra.mxu0 %v6349_v37  ;;  %v2792_v37 = vld [vmem:[#allocation2 + $0x131] sm:$0xff] }
 0x1cb   : > { %8288 = vmatpush3.msra.mxu1 %v6365_v42  ;;  %8187 = vmatmul.mubr.f32.gmra.mxu0 %v10535_v51 }
 0x1cc   : > { %8231 = vmatmul.mubr.f32.gmra.mxu1 %v10543_v34  ;;  %8245 = vmatprep.subr.mxu0 %v6348_v50 }
 0x1cd   : > { %8289 = vmatprep.subr.mxu1 %v6364_v56  ;;  %8246 = vmatpush3.msra.mxu0 %v6348_v50  ;;  %v10560_v54 = vpop.f32.mrf.mxu0  ;;  %v10633_v50 = vld [vmem:[#allocation2 + $0x1d0] sm:$0xff] }
 0x1ce   : > { %8265 = vmatprep.mubr.f32.mxu0 %v10551_v24  ;;  %8290 = vmatpush3.msra.mxu1 %v6364_v56  ;;  %v6385_v56 = vld [vmem:[%s12551_s3 + $0x2f0] sm:$0xff] }
 0x1cf   : > { %8309 = vmatprep.mubr.f32.mxu1 %v2791_v25  ;;  %8247 = vmatprep.subr.mxu0 %v6347_v63  ;;  %v10568_v12 = vpop.f32.mrf.mxu0 }
 0x1d0   : > { %8291 = vmatprep.subr.mxu1 %v6363_v17  ;;  %8248 = vmatpush3.msra.mxu0 %v6347_v63  ;;  %v2793_v63 = vld [vmem:[#allocation2 + $0x141] sm:$0xff] }
 0x1d1   : > { %8292 = vmatpush3.msra.mxu1 %v6363_v17  ;;  %8249 = vmatprep.subr.mxu0 %v6346_v55  ;;  %v6401_v17 = vld [vmem:[%s12551_s3 + $0x370] sm:$0xff] }
 0x1d2   : > { %8293 = vmatprep.subr.mxu1 %v6362_v59  ;;  %8250 = vmatpush3.msra.mxu0 %v6346_v55  ;;  %v10647_v55 = vld [vmem:[#allocation2 + $0x1e0] sm:$0xff] }
 0x1d3   : > { %v7748_v22 = vpop.f32.mrf.mxu0  ;;  %8294 = vmatpush3.msra.mxu1 %v6362_v59  ;;  %8251 = vmatprep.subr.mxu0 %v6345_v10  ;;  %v6400_v59 = vld [vmem:[%s12551_s3 + $0x368] sm:$0xff] }
 0x1d4   : > { %v1100_v13 = vadd.f32 %v7748_v22, %v6177_v11  ;;  %8295 = vmatprep.subr.mxu1 %v6361_v60  ;;  %8252 = vmatpush3.msra.mxu0 %v6345_v10  ;;  %v2794_v10 = vld [vmem:[#allocation2 + $0x151] sm:$0xff]  ;;  %v6383_v11 = vld [vmem:[%s12551_s3 + $0x2e0] sm:$0xff] }
 0x1d5   : > { %8296 = vmatpush3.msra.mxu1 %v6361_v60  ;;  %8253 = vmatprep.subr.mxu0 %v6344_v43  ;;  %v10598_v28 = vpop.f32.mrf.mxu0  ;;  %v2795_v22 = vld [vmem:[#allocation2 + $0x161] sm:$0xff] }
 0x1d6   : > { %v10590_v18 = vadd.f32 %v7792_v61, %v1100_v13  ;;  %8297 = vmatprep.subr.mxu1 %v6360_v23  ;;  %8254 = vmatpush3.msra.mxu0 %v6344_v43  ;;  %v10655_v43 = vld [vmem:[#allocation2 + $0x1f0] sm:$0xff]  ;;  %v6382_v13 = vld [vmem:[%s12551_s3 + $0x2d8] sm:$0xff]  ;;  %v10667_v61 = vld [vmem:[#allocation2 + $0x200] sm:$0xff] }
 0x1d7   : > { %8298 = vmatpush3.msra.mxu1 %v6360_v23  ;;  %8255 = vmatprep.subr.mxu0 %v6343_v52  ;;  %v6399_v23 = vld [vmem:[%s12551_s3 + $0x360] sm:$0xff] }
 0x1d8   : > { %8299 = vmatprep.subr.mxu1 %v6359_v1  ;;  %8256 = vmatpush3.msra.mxu0 %v6343_v52 }
 0x1d9   : > { %8300 = vmatpush3.msra.mxu1 %v6359_v1  ;;  %8257 = vmatprep.subr.mxu0 %v6342_v14  ;;  %v10606_v7 = vpop.f32.mrf.mxu0  ;;  %v6398_v1 = vld [vmem:[%s12551_s3 + $0x358] sm:$0xff] }
 0x1da   : > { %8301 = vmatprep.subr.mxu1 %v6358_v8  ;;  %8258 = vmatpush3.msra.mxu0 %v6342_v14 }
 0x1db   : > { %8302 = vmatpush3.msra.mxu1 %v6358_v8  ;;  %8259 = vmatprep.subr.mxu0 %v6341_v16  ;;  %v10614_v29 = vpop.f32.mrf.mxu0  ;;  %v2796_v8 = vld [vmem:[#allocation2 + $0x171] sm:$0xff] }
 0x1dc   : > { %8303 = vmatprep.subr.mxu1 %v6357_v48  ;;  %8260 = vmatpush3.msra.mxu0 %v6341_v16  ;;  %v10676_v16 = vld [vmem:[#allocation2 + $0x210] sm:$0xff] }
 0x1dd   : > { %8304 = vmatpush3.msra.mxu1 %v6357_v48  ;;  %8261 = vmatprep.subr.mxu0 %v6340_v4  ;;  %v6381_v48 = vld [vmem:[%s12551_s3 + $0x2d0] sm:$0xff] }
 0x1de   : > { %8305 = vmatprep.subr.mxu1 %v6356_v53  ;;  %8262 = vmatpush3.msra.mxu0 %v6340_v4  ;;  %v2797_v4 = vld [vmem:[#allocation2 + $0x181] sm:$0xff] }
 0x1df   : > { %8306 = vmatpush3.msra.mxu1 %v6356_v53  ;;  %8263 = vmatprep.subr.mxu0 %v6339_v0  ;;  %v10625_v27 = vpop.f32.mrf.mxu0  ;;  %v6380_v53 = vld [vmem:[%s12551_s3 + $0x2c8] sm:$0xff] }
 0x1e0   : > { %8307 = vmatprep.subr.mxu1 %v6355_v15  ;;  %8264 = vmatpush3.msra.mxu0 %v6339_v0  ;;  %v10688_v0 = vld [vmem:[#allocation2 + $0x220] sm:$0xff] }
 0x1e1   : > { %8308 = vmatpush3.msra.mxu1 %v6355_v15  ;;  %8266 = vmatmul.mubr.f32.vlgmr.msra.gmra.mxu0 %v10090_v6  ;;  %v10631_v42 = vpop.f32.mrf.mxu0  ;;  %v6384_v6 = vld [vmem:[%s12551_s3 + $0x2e8] sm:$0xff] }
 0x1e2   : > { %8310 = vmatmul.mubr.f32.vlgmr.msra.gmra.mxu1 %v2792_v37  ;;  %8321 = vmatprep.subr.mxu0 %v6386_v32  ;;  %v6396_v15 = vld [vmem:[%s12551_s3 + $0x348] sm:$0xff]  ;;  %v2928_v37 = vld [vmem:[#allocation2 + $0x1b1] sm:$0xff] }
 0x1e3   : > { %8365 = vmatprep.subr.mxu1 %v6402_v31  ;;  %8268 = vmatprep.mubr.f32.mxu0 %v10633_v50 }
 0x1e4   : > { %8312 = vmatprep.mubr.f32.mxu1 %v2793_v63  ;;  %8322 = vmatpush3.msra.mxu0 %v6386_v32  ;;  %v2798_v32 = vld [vmem:[#allocation2 + $0x191] sm:$0xff] }
 0x1e5   : > { %8366 = vmatpush3.msra.mxu1 %v6402_v31  ;;  %8323 = vmatprep.subr.mxu0 %v6385_v56  ;;  %v10645_v25 = vpop.f32.mrf.mxu0  ;;  %v6379_v31 = vld [vmem:[%s12551_s3 + $0x2c0] sm:$0xff]  ;;  %v6378_v63 = vld [vmem:[%s12551_s3 + $0x2b8] sm:$0xff] }
 0x1e6   : > { %8367 = vmatprep.subr.mxu1 %v6401_v17  ;;  %8324 = vmatpush3.msra.mxu0 %v6385_v56  ;;  %v6395_v56 = vld [vmem:[%s12551_s3 + $0x340] sm:$0xff] }
 0x1e7   : > { %8368 = vmatpush3.msra.mxu1 %v6401_v17  ;;  %8269 = vmatmul.mubr.f32.gmra.mxu0 %v10647_v55  ;;  %v10653_v60 = vpop.f32.mrf.mxu0  ;;  %v6394_v17 = vld [vmem:[%s12551_s3 + $0x338] sm:$0xff] }
 0x1e8   : > { %8313 = vmatmul.mubr.f32.gmra.mxu1 %v2794_v10  ;;  %8325 = vmatprep.subr.mxu0 %v6384_v6  ;;  %v6392_v10 = vld [vmem:[%s12551_s3 + $0x328] sm:$0xff] }
 0x1e9   : > { %8369 = vmatprep.subr.mxu1 %v6400_v59  ;;  %8271 = vmatprep.mubr.f32.mxu0 %v10655_v43 }
 0x1ea   : > { %8315 = vmatprep.mubr.f32.mxu1 %v2795_v22  ;;  %8326 = vmatpush3.msra.mxu0 %v6384_v6  ;;  %v6377_v6 = vld [vmem:[%s12551_s3 + $0x2b0] sm:$0xff]  ;;  %v6391_v22 = vld [vmem:[%s12551_s3 + $0x320] sm:$0xff] }
 0x1eb   : > { %8370 = vmatpush3.msra.mxu1 %v6400_v59  ;;  %8327 = vmatprep.subr.mxu0 %v6383_v11  ;;  %v7836_v52 = vpop.f32.mrf.mxu0  ;;  %v6393_v59 = vld [vmem:[%s12551_s3 + $0x330] sm:$0xff] }
 0x1ec   : > { %8371 = vmatprep.subr.mxu1 %v6399_v23  ;;  %8328 = vmatpush3.msra.mxu0 %v6383_v11  ;;  %v10673_v14 = vadd.f32 %v7836_v52, %v10590_v18  ;;  %v6397_v18 = vld [vmem:[%s12551_s3 + $0x350] sm:$0xff]  ;;  %v6375_v11 = vld [vmem:[%s12551_s3 + $0x2a0] sm:$0xff]  ;;  %v6390_v52 = vld [vmem:[%s12551_s3 + $0x318] sm:$0xff] }
 0x1ed   : > { %8372 = vmatpush3.msra.mxu1 %v6399_v23  ;;  %8272 = vmatmul.mubr.f32.gmra.mxu0 %v10667_v61  ;;  %v6374_v23 = vld [vmem:[%s12551_s3 + $0x298] sm:$0xff] }
 0x1ee   : > { %12578 = vst [vmem:[#allocation3_spill] sm:$0xff] %v10673_v14  ;;  %8316 = vmatmul.mubr.f32.gmra.mxu1 %v2796_v8  ;;  %8329 = vmatprep.subr.mxu0 %v6382_v13  ;;  %v6389_v8 = vld [vmem:[%s12551_s3 + $0x310] sm:$0xff] }
 0x1ef   : > { %8373 = vmatprep.subr.mxu1 %v6398_v1  ;;  %8274 = vmatprep.mubr.f32.mxu0 %v10676_v16 }
 0x1f0   : > { %8318 = vmatprep.mubr.f32.mxu1 %v2797_v4  ;;  %8330 = vmatpush3.msra.mxu0 %v6382_v13  ;;  %v10728_v13 = vpop.f32.mrf.mxu1 }
 0x1f1   : > { %8374 = vmatpush3.msra.mxu1 %v6398_v1  ;;  %8331 = vmatprep.subr.mxu0 %v6381_v48  ;;  %v6373_v1 = vld [vmem:[%s12551_s3 + $0x290] sm:$0xff] }
 0x1f2   : > { %8375 = vmatprep.subr.mxu1 %v6397_v18  ;;  %8332 = vmatpush3.msra.mxu0 %v6381_v48  ;;  %v6372_v48 = vld [vmem:[%s12551_s3 + $0x288] sm:$0xff]  ;;  %v10742_v4 = vpop.f32.mrf.mxu1 }
 0x1f3   : > { %8376 = vmatpush3.msra.mxu1 %v6397_v18  ;;  %8275 = vmatmul.mubr.f32.gmra.mxu0 %v10688_v0  ;;  %v6388_v18 = vld [vmem:[%s12551_s3 + $0x308] sm:$0xff] }
 0x1f4   : > { %8319 = vmatmul.mubr.f32.gmra.mxu1 %v2798_v32  ;;  %8333 = vmatprep.subr.mxu0 %v6380_v53  ;;  %v10753_v32 = vpop.f32.mrf.mxu1 }
 0x1f5   : > { %8377 = vmatprep.subr.mxu1 %v6396_v15  ;;  %8334 = vmatpush3.msra.mxu0 %v6380_v53  ;;  %v6371_v53 = vld [vmem:[%s12551_s3 + $0x280] sm:$0xff] }
 0x1f6   : > { %8353 = vmatprep.mubr.f32.mxu0 %v2928_v37  ;;  %8378 = vmatpush3.msra.mxu1 %v6396_v15  ;;  %v6387_v15 = vld [vmem:[%s12551_s3 + $0x300] sm:$0xff] }
 0x1f7   : > { %8397 = vmatprep.mubr.f32.mxu1 %v10336_v44  ;;  %8335 = vmatprep.subr.mxu0 %v6379_v31  ;;  %v6376_v44 = vld [vmem:[%s12551_s3 + $0x2a8] sm:$0xff] }
 0x1f8   : > { %8379 = vmatprep.subr.mxu1 %v6395_v56  ;;  %8336 = vmatpush3.msra.mxu0 %v6379_v31  ;;  %v6418_v31 = vld [vmem:[%s12551_s3 + $0x3f8] sm:$0xff]  ;;  %v2929_v37 = vld [vmem:[#allocation2 + $0x1c1] sm:$0xff] }
 0x1f9   : > { %8380 = vmatpush3.msra.mxu1 %v6395_v56  ;;  %8337 = vmatprep.subr.mxu0 %v6378_v63  ;;  %v6434_v56 = vld [vmem:[%s12551_s3 + $0x478] sm:$0xff] }
 0x1fa   : > { %8381 = vmatprep.subr.mxu1 %v6394_v17  ;;  %8338 = vmatpush3.msra.mxu0 %v6378_v63  ;;  %v2930_v63 = vld [vmem:[#allocation2 + $0x1d1] sm:$0xff] }
 0x1fb   : > { %8382 = vmatpush3.msra.mxu1 %v6394_v17  ;;  %8339 = vmatprep.subr.mxu0 %v6377_v6  ;;  %v6417_v17 = vld [vmem:[%s12551_s3 + $0x3f0] sm:$0xff] }
 0x1fc   : > { %8383 = vmatprep.subr.mxu1 %v6393_v59  ;;  %8340 = vmatpush3.msra.mxu0 %v6377_v6  ;;  %v10765_v6 = vpop.f32.mrf.mxu1 }
 0x1fd   : > { %8384 = vmatpush3.msra.mxu1 %v6393_v59  ;;  %8341 = vmatprep.subr.mxu0 %v6376_v44  ;;  %v6433_v59 = vld [vmem:[%s12551_s3 + $0x470] sm:$0xff] }
 0x1fe   : > { %8385 = vmatprep.subr.mxu1 %v6392_v10  ;;  %8342 = vmatpush3.msra.mxu0 %v6376_v44  ;;  %v2931_v44 = vld [vmem:[#allocation2 + $0x1e1] sm:$0xff] }
 0x1ff   : > { %8386 = vmatpush3.msra.mxu1 %v6392_v10  ;;  %8343 = vmatprep.subr.mxu0 %v6375_v11  ;;  %v6432_v10 = vld [vmem:[%s12551_s3 + $0x468] sm:$0xff] }
 0x200   : > { %8387 = vmatprep.subr.mxu1 %v6391_v22  ;;  %8344 = vmatpush3.msra.mxu0 %v6375_v11  ;;  %v10777_v11 = vpop.f32.mrf.mxu1 }
 0x201   : > { %8388 = vmatpush3.msra.mxu1 %v6391_v22  ;;  %8345 = vmatprep.subr.mxu0 %v6374_v23  ;;  %v6415_v22 = vld [vmem:[%s12551_s3 + $0x3e0] sm:$0xff] }
 0x202   : > { %8389 = vmatprep.subr.mxu1 %v6390_v52  ;;  %8346 = vmatpush3.msra.mxu0 %v6374_v23  ;;  %v6431_v23 = vld [vmem:[%s12551_s3 + $0x460] sm:$0xff] }
 0x203   : > { %8390 = vmatpush3.msra.mxu1 %v6390_v52  ;;  %8347 = vmatprep.subr.mxu0 %v6373_v1  ;;  %v10787_v52 = vpop.f32.mrf.mxu1 }
 0x204   : > { %8391 = vmatprep.subr.mxu1 %v6389_v8  ;;  %8348 = vmatpush3.msra.mxu0 %v6373_v1  ;;  %v2933_v1 = vld [vmem:[#allocation2 + $0x201] sm:$0xff] }
 0x205   : > { %8392 = vmatpush3.msra.mxu1 %v6389_v8  ;;  %8349 = vmatprep.subr.mxu0 %v6372_v48  ;;  %v6430_v8 = vld [vmem:[%s12551_s3 + $0x458] sm:$0xff] }
 0x206   : > { %8393 = vmatprep.subr.mxu1 %v6388_v18  ;;  %8350 = vmatpush3.msra.mxu0 %v6372_v48  ;;  %v10796_v48 = vpop.f32.mrf.mxu1 }
 0x207   : > { %8394 = vmatpush3.msra.mxu1 %v6388_v18  ;;  %8351 = vmatprep.subr.mxu0 %v6371_v53  ;;  %v6413_v18 = vld [vmem:[%s12551_s3 + $0x3d0] sm:$0xff] }
 0x208   : > { %8395 = vmatprep.subr.mxu1 %v6387_v15  ;;  %8352 = vmatpush3.msra.mxu0 %v6371_v53  ;;  %v6429_v53 = vld [vmem:[%s12551_s3 + $0x450] sm:$0xff] }
 0x209   : > { %8396 = vmatpush3.msra.mxu1 %v6387_v15  ;;  %8354 = vmatmul.mubr.f32.vlgmr.msra.gmra.mxu0 %v2929_v37  ;;  %v10808_v15 = vpop.f32.mrf.mxu1  ;;  %v6428_v37 = vld [vmem:[%s12551_s3 + $0x448] sm:$0xff] }
 0x20a   : > { %8398 = vmatmul.mubr.f32.vlgmr.msra.gmra.mxu1 %v10345_v49  ;;  %8409 = vmatprep.subr.mxu0 %v6418_v31  ;;  %v6416_v49 = vld [vmem:[%s12551_s3 + $0x3e8] sm:$0xff]  ;;  %12579 = vst [vmem:[#allocation4_spill] sm:$0xff] %v10808_v15 }
 0x20b   : > { %8453 = vmatprep.subr.mxu1 %v6434_v56  ;;  %8356 = vmatprep.mubr.f32.mxu0 %v2930_v63  ;;  %v10816_v63 = vld [vmem:[#allocation2 + $0x11] sm:$0xff] }
 0x20c   : > { %8400 = vmatprep.mubr.f32.mxu1 %v10360_v9  ;;  %8410 = vmatpush3.msra.mxu0 %v6418_v31  ;;  %v2932_v9 = vld [vmem:[#allocation2 + $0x1f1] sm:$0xff]  ;;  %v2935_v31 = vld [vmem:[#allocation2 + $0x221] sm:$0xff] }
 0x20d   : > { %8454 = vmatpush3.msra.mxu1 %v6434_v56  ;;  %8411 = vmatprep.subr.mxu0 %v6417_v17  ;;  %v3072_v56 = vld [vmem:[#allocation2 + $0x110] sm:$0xff] }
 0x20e   : > { %8455 = vmatprep.subr.mxu1 %v6433_v59  ;;  %8412 = vmatpush3.msra.mxu0 %v6417_v17  ;;  %v10818_v17 = vpop.f32.mrf.mxu0 }
 0x20f   : > { %8456 = vmatpush3.msra.mxu1 %v6433_v59  ;;  %8357 = vmatmul.mubr.f32.gmra.mxu0 %v2931_v44  ;;  %v6427_v59 = vld [vmem:[%s12551_s3 + $0x440] sm:$0xff]  ;;  %v6410_v44 = vld [vmem:[%s12551_s3 + $0x3b8] sm:$0xff] }
 0x210   : > { %8401 = vmatmul.mubr.f32.gmra.mxu1 %v10367_v5  ;;  %8413 = vmatprep.subr.mxu0 %v6416_v49  ;;  %v6414_v5 = vld [vmem:[%s12551_s3 + $0x3d8] sm:$0xff] }
 0x211   : > { %8457 = vmatprep.subr.mxu1 %v6432_v10  ;;  %8359 = vmatprep.mubr.f32.mxu0 %v2932_v9  ;;  %v10833_v9 = vpop.f32.mrf.mxu0 }
 0x212   : > { %8403 = vmatprep.mubr.f32.mxu1 %v10382_v21  ;;  %8414 = vmatpush3.msra.mxu0 %v6416_v49  ;;  %v2934_v21 = vld [vmem:[#allocation2 + $0x211] sm:$0xff]  ;;  %v10824_v49 = vpop.f32.mrf.mxu1 }
 0x213   : > { %8458 = vmatpush3.msra.mxu1 %v6432_v10  ;;  %8415 = vmatprep.subr.mxu0 %v6415_v22  ;;  %v6426_v10 = vld [vmem:[%s12551_s3 + $0x438] sm:$0xff] }
 0x214   : > { %8459 = vmatprep.subr.mxu1 %v6431_v23  ;;  %8416 = vmatpush3.msra.mxu0 %v6415_v22  ;;  %v6409_v22 = vld [vmem:[%s12551_s3 + $0x3b0] sm:$0xff] }
 0x215   : > { %8460 = vmatpush3.msra.mxu1 %v6431_v23  ;;  %8360 = vmatmul.mubr.f32.gmra.mxu0 %v2933_v1  ;;  %v10838_v23 = vpop.f32.mrf.mxu1  ;;  %v6424_v1 = vld [vmem:[%s12551_s3 + $0x428] sm:$0xff] }
 0x216   : > { %8404 = vmatmul.mubr.f32.gmra.mxu1 %v10389_v3  ;;  %8417 = vmatprep.subr.mxu0 %v6414_v5  ;;  %v6412_v3 = vld [vmem:[%s12551_s3 + $0x3c8] sm:$0xff] }
 0x217   : > { %8461 = vmatprep.subr.mxu1 %v6430_v8  ;;  %8362 = vmatprep.mubr.f32.mxu0 %v2934_v21  ;;  %v6407_v21 = vld [vmem:[%s12551_s3 + $0x3a0] sm:$0xff] }
 0x218   : > { %8406 = vmatprep.mubr.f32.mxu1 %v10401_v58  ;;  %8418 = vmatpush3.msra.mxu0 %v6414_v5  ;;  %v6411_v58 = vld [vmem:[%s12551_s3 + $0x3c0] sm:$0xff]  ;;  %v6408_v5 = vld [vmem:[%s12551_s3 + $0x3a8] sm:$0xff] }
 0x219   : > { %8462 = vmatpush3.msra.mxu1 %v6430_v8  ;;  %8419 = vmatprep.subr.mxu0 %v6413_v18  ;;  %v10849_v8 = vpop.f32.mrf.mxu0 }
 0x21a   : > { %8463 = vmatprep.subr.mxu1 %v6429_v53  ;;  %8420 = vmatpush3.msra.mxu0 %v6413_v18  ;;  %v10854_v18 = vpop.f32.mrf.mxu1 }
 0x21b   : > { %8464 = vmatpush3.msra.mxu1 %v6429_v53  ;;  %8363 = vmatmul.mubr.f32.gmra.mxu0 %v2935_v31  ;;  %v6423_v53 = vld [vmem:[%s12551_s3 + $0x420] sm:$0xff]  ;;  %v6422_v31 = vld [vmem:[%s12551_s3 + $0x418] sm:$0xff] }
 0x21c   : > { %8407 = vmatmul.mubr.f32.gmra.mxu1 %v3072_v56  ;;  %8421 = vmatprep.subr.mxu0 %v6412_v3  ;;  %v6405_v56 = vld [vmem:[%s12551_s3 + $0x390] sm:$0xff] }
 0x21d   : > { %8465 = vmatprep.subr.mxu1 %v6428_v37  ;;  %8422 = vmatpush3.msra.mxu0 %v6412_v3  ;;  %v6406_v3 = vld [vmem:[%s12551_s3 + $0x398] sm:$0xff] }
 0x21e   : > { %8441 = vmatprep.mubr.f32.mxu0 %v10816_v63  ;;  %8466 = vmatpush3.msra.mxu1 %v6428_v37  ;;  %v10865_v37 = vpop.f32.mrf.mxu0 }
 0x21f   : > { %8485 = vmatprep.mubr.f32.mxu1 %v10463_v40  ;;  %8423 = vmatprep.subr.mxu0 %v6411_v58  ;;  %v6425_v40 = vld [vmem:[%s12551_s3 + $0x430] sm:$0xff] }
 0x220   : > { %8467 = vmatprep.subr.mxu1 %v6427_v59  ;;  %8424 = vmatpush3.msra.mxu0 %v6411_v58  ;;  %v10870_v58 = vpop.f32.mrf.mxu1 }
 0x221   : > { %8468 = vmatpush3.msra.mxu1 %v6427_v59  ;;  %8425 = vmatprep.subr.mxu0 %v6410_v44  ;;  %v6421_v59 = vld [vmem:[%s12551_s3 + $0x410] sm:$0xff] }
 0x222   : > { %8469 = vmatprep.subr.mxu1 %v6426_v10  ;;  %8426 = vmatpush3.msra.mxu0 %v6410_v44  ;;  %v6404_v44 = vld [vmem:[%s12551_s3 + $0x388] sm:$0xff] }
 0x223   : > { %8470 = vmatpush3.msra.mxu1 %v6426_v10  ;;  %8427 = vmatprep.subr.mxu0 %v6409_v22  ;;  %v6420_v10 = vld [vmem:[%s12551_s3 + $0x408] sm:$0xff] }
 0x224   : > { %8471 = vmatprep.subr.mxu1 %v6425_v40  ;;  %8428 = vmatpush3.msra.mxu0 %v6409_v22  ;;  %v10881_v22 = vpop.f32.mrf.mxu0 }
 0x225   : > { %8472 = vmatpush3.msra.mxu1 %v6425_v40  ;;  %8429 = vmatprep.subr.mxu0 %v6408_v5  ;;  %v6403_v40 = vld [vmem:[%s12551_s3 + $0x380] sm:$0xff] }
 0x226   : > { %8473 = vmatprep.subr.mxu1 %v6424_v1  ;;  %8430 = vmatpush3.msra.mxu0 %v6408_v5  ;;  %v10886_v5 = vpop.f32.mrf.mxu1 }
 0x227   : > { %8474 = vmatpush3.msra.mxu1 %v6424_v1  ;;  %8431 = vmatprep.subr.mxu0 %v6407_v21  ;;  %v6419_v1 = vld [vmem:[%s12551_s3 + $0x400] sm:$0xff] }
 0x228   : > { %8475 = vmatprep.subr.mxu1 %v6423_v53  ;;  %8432 = vmatpush3.msra.mxu0 %v6407_v21  ;;  %v3535_v21 = vld [vmem:[%s12551_s3 + $0x78] sm:$0xff] }
 0x229   : > { %8476 = vmatpush3.msra.mxu1 %v6423_v53  ;;  %8433 = vmatprep.subr.mxu0 %v6406_v3  ;;  %v10894_v53 = vpop.f32.mrf.mxu0 }
 0x22a   : > { %8477 = vmatprep.subr.mxu1 %v6422_v31  ;;  %8434 = vmatpush3.msra.mxu0 %v6406_v3  ;;  %v10896_v3 = vld [vmem:[#allocation2 + $0x21] sm:$0xff] }
 0x22b   : > { %8478 = vmatpush3.msra.mxu1 %v6422_v31  ;;  %8435 = vmatprep.subr.mxu0 %v6405_v56  ;;  %12580 = vst [vmem:[#allocation5_spill] sm:$0xff] %v10896_v3  ;;  %v6452_v31 = vld [vmem:[%s12551_s3 + $0xf8] sm:$0xff] }
 0x22c   : > { %8479 = vmatprep.subr.mxu1 %v6421_v59  ;;  %8436 = vmatpush3.msra.mxu0 %v6405_v56  ;;  %v10901_v56 = vpop.f32.mrf.mxu1 }
 0x22d   : > { %8480 = vmatpush3.msra.mxu1 %v6421_v59  ;;  %8437 = vmatprep.subr.mxu0 %v6404_v44  ;;  %12581 = vst [vmem:[#allocation6_spill] sm:$0xff] %v10901_v56  ;;  %v10905_v59 = vld [vmem:[#allocation2 + $0x31] sm:$0xff] }
 0x22e   : > { %8481 = vmatprep.subr.mxu1 %v6420_v10  ;;  %8438 = vmatpush3.msra.mxu0 %v6404_v44  ;;  %12582 = vst [vmem:[#allocation7_spill] sm:$0xff] %v10905_v59  ;;  %v3534_v44 = vld [vmem:[%s12551_s3 + $0x70] sm:$0xff] }
 0x22f   : > { %8482 = vmatpush3.msra.mxu1 %v6420_v10  ;;  %8439 = vmatprep.subr.mxu0 %v6403_v40  ;;  %v6451_v10 = vld [vmem:[%s12551_s3 + $0xf0] sm:$0xff] }
 0x230   : > { %8483 = vmatprep.subr.mxu1 %v6419_v1  ;;  %8440 = vmatpush3.msra.mxu0 %v6403_v40  ;;  %v10914_v40 = vpop.f32.mrf.mxu0 }
 0x231   : > { %8484 = vmatpush3.msra.mxu1 %v6419_v1  ;;  %8442 = vmatmul.mubr.f32.vlgmr.msra.gmra.mxu0 %v10896_v3  ;;  %v3533_v1 = vld [vmem:[%s12551_s3 + $0x68] sm:$0xff] }
 0x232   : > { %8486 = vmatmul.mubr.f32.vlgmr.msra.gmra.mxu1 %v10470_v47  ;;  %8497 = vmatprep.subr.mxu0 %v3535_v21  ;;  %v10917_v47 = vpop.f32.mrf.mxu1  ;;  %v6450_v3 = vld [vmem:[%s12551_s3 + $0xe8] sm:$0xff] }
 0x233   : > { %8541 = vmatprep.subr.mxu1 %v6452_v31  ;;  %8444 = vmatprep.mubr.f32.mxu0 %v10905_v59  ;;  %v10922_v59 = vld [vmem:[#allocation2 + $0x41] sm:$0xff] }
 0x234   : > { %8488 = vmatprep.mubr.f32.mxu1 %v10485_v62  ;;  %8498 = vmatpush3.msra.mxu0 %v3535_v21  ;;  %12583 = vst [vmem:[#allocation8_spill] sm:$0xff] %v10922_v59  ;;  %v10928_v62 = vpop.f32.mrf.mxu0  ;;  %v3532_v21 = vld [vmem:[%s12551_s3 + $0x60] sm:$0xff] }
 0x235   : > { %8542 = vmatpush3.msra.mxu1 %v6452_v31  ;;  %8499 = vmatprep.subr.mxu0 %v3534_v44  ;;  %12584 = vst [vmem:[#allocation9_spill] sm:$0xff] %v10928_v62  ;;  %v10934_v31 = vpop.f32.mrf.mxu1 }
 0x236   : > { %8543 = vmatprep.subr.mxu1 %v6451_v10  ;;  %8500 = vmatpush3.msra.mxu0 %v3534_v44  ;;  %12585 = vst [vmem:[#allocation10_spill] sm:$0xff] %v10934_v31  ;;  %v6449_v44 = vld [vmem:[%s12551_s3 + $0xe0] sm:$0xff] }
 0x237   : > { %8544 = vmatpush3.msra.mxu1 %v6451_v10  ;;  %8445 = vmatmul.mubr.f32.gmra.mxu0 %v10922_v59  ;;  %v10944_v10 = vpop.f32.mrf.mxu0  ;;  %v10946_v59 = vld [vmem:[#allocation2 + $0x61] sm:$0xff]  ;;  %v10951_v31 = vpop.f32.mrf.mxu1 }
 0x238   : > { %8489 = vmatmul.mubr.f32.gmra.mxu1 %v10492_v19  ;;  %8501 = vmatprep.subr.mxu0 %v3533_v1  ;;  %v3531_v19 = vld [vmem:[%s12551_s3 + $0x58] sm:$0xff]  ;;  %12586 = vst [vmem:[#allocation11_spill] sm:$0xff] %v10944_v10  ;;  %12587 = vst [vmem:[#allocation12_spill] sm:$0xff] %v10946_v59 }
 0x239   : > { %8545 = vmatprep.subr.mxu1 %v6450_v3  ;;  %8447 = vmatprep.mubr.f32.mxu0 %v10505_v30  ;;  %v6448_v30 = vld [vmem:[%s12551_s3 + $0xd8] sm:$0xff]  ;;  %12588 = vst [vmem:[#allocation13_spill] sm:$0xff] %v10951_v31 }
 0x23a   : > { %8491 = vmatprep.mubr.f32.mxu1 %v10513_v36  ;;  %8502 = vmatpush3.msra.mxu0 %v3533_v1  ;;  %v10954_v36 = vpop.f32.mrf.mxu0  ;;  %v10960_v1 = vpop.f32.mrf.mxu1 }
 0x23b   : > { %8546 = vmatpush3.msra.mxu1 %v6450_v3  ;;  %8503 = vmatprep.subr.mxu0 %v3532_v21  ;;  %v3530_v3 = vld [vmem:[%s12551_s3 + $0x50] sm:$0xff] }
 0x23c   : > { %8547 = vmatprep.subr.mxu1 %v6449_v44  ;;  %8504 = vmatpush3.msra.mxu0 %v3532_v21  ;;  %v6447_v21 = vld [vmem:[%s12551_s3 + $0xd0] sm:$0xff]  ;;  %v10977_v62 = vpop.f32.mrf.mxu1 }
 0x23d   : > { %8548 = vmatpush3.msra.mxu1 %v6449_v44  ;;  %8448 = vmatmul.mubr.f32.gmra.mxu0 %v10946_v59  ;;  %v10970_v44 = vpop.f32.mrf.mxu0  ;;  %v10972_v59 = vld [vmem:[#allocation2 + $0x81] sm:$0xff] }
 0x23e   : > { %8492 = vmatmul.mubr.f32.gmra.mxu1 %v10522_v41  ;;  %8505 = vmatprep.subr.mxu0 %v3531_v19  ;;  %v3529_v41 = vld [vmem:[%s12551_s3 + $0x48] sm:$0xff]  ;;  %12589 = vst [vmem:[#allocation14_spill] sm:$0xff] %v10972_v59 }
 0x23f   : > { %8549 = vmatprep.subr.mxu1 %v6448_v30  ;;  %8450 = vmatprep.mubr.f32.mxu0 %v10535_v51  ;;  %v6446_v51 = vld [vmem:[%s12551_s3 + $0xc8] sm:$0xff]  ;;  %v10986_v15 = vpop.f32.mrf.mxu0 }
 0x240   : > { %8494 = vmatprep.mubr.f32.mxu1 %v10543_v34  ;;  %8506 = vmatpush3.msra.mxu0 %v3531_v19  ;;  %v3346_v34 = vld [vmem:[#allocation2 + $0x111] sm:$0xff]  ;;  %v3528_v19 = vld [vmem:[%s12551_s3 + $0x40] sm:$0xff] }
 0x241   : > { %8550 = vmatpush3.msra.mxu1 %v6448_v30  ;;  %8507 = vmatprep.subr.mxu0 %v3530_v3  ;;  %v3512_v30 = vld [vmem:[#allocation2 + $0x120] sm:$0xff] }
 0x242   : > { %8551 = vmatprep.subr.mxu1 %v6447_v21  ;;  %8508 = vmatpush3.msra.mxu0 %v3530_v3  ;;  %v6445_v3 = vld [vmem:[%s12551_s3 + $0xc0] sm:$0xff] }
 0x243   : > { %8552 = vmatpush3.msra.mxu1 %v6447_v21  ;;  %8451 = vmatmul.mubr.f32.gmra.mxu0 %v10972_v59  ;;  %v3527_v21 = vld [vmem:[%s12551_s3 + $0x38] sm:$0xff]  ;;  %v11003_v59 = vpop.f32.mrf.mxu0 }
 0x244   : > { %8495 = vmatmul.mubr.f32.gmra.mxu1 %v3346_v34  ;;  %8509 = vmatprep.subr.mxu0 %v3529_v41  ;;  %v10991_v34 = vpop.f32.mrf.mxu1 }
 0x245   : > { %8553 = vmatprep.subr.mxu1 %v6446_v51  ;;  %8510 = vmatpush3.msra.mxu0 %v3529_v41  ;;  %v6444_v41 = vld [vmem:[%s12551_s3 + $0xb8] sm:$0xff]  ;;  %v11019_v31 = vpop.f32.mrf.mxu0 }
 0x246   : > { %8529 = vmatprep.mubr.f32.mxu0 %v3512_v30  ;;  %8554 = vmatpush3.msra.mxu1 %v6446_v51  ;;  %v3526_v30 = vld [vmem:[%s12551_s3 + $0x30] sm:$0xff]  ;;  %v11008_v14 = vpop.f32.mrf.mxu1  ;;  %12590 = vst [vmem:[#allocation15_spill] sm:$0xff] %v11019_v31 }
 0x247   : > { %8573 = vmatprep.mubr.f32.mxu1 %v10551_v24  ;;  %8511 = vmatprep.subr.mxu0 %v3528_v19  ;;  %v6443_v51 = vld [vmem:[%s12551_s3 + $0xb0] sm:$0xff]  ;;  %v3525_v24 = vld [vmem:[%s12551_s3 + $0x28] sm:$0xff]  ;;  %v11035_v31 = vpop.f32.mrf.mxu0 }
 0x248   : > { %8555 = vmatprep.subr.mxu1 %v6445_v3  ;;  %8512 = vmatpush3.msra.mxu0 %v3528_v19  ;;  %v6442_v19 = vld [vmem:[%s12551_s3 + $0xa8] sm:$0xff]  ;;  %v11024_v10 = vpop.f32.mrf.mxu1 }
 0x249   : > { %8556 = vmatpush3.msra.mxu1 %v6445_v3  ;;  %8513 = vmatprep.subr.mxu0 %v3527_v21  ;;  %v3524_v3 = vld [vmem:[%s12551_s3 + $0x20] sm:$0xff]  ;;  %12591 = vst [vmem:[#allocation16_spill] sm:$0xff] %v11024_v10  ;;  %v11051_v56 = vpop.f32.mrf.mxu0 }
 0x24a   : > { %8557 = vmatprep.subr.mxu1 %v6444_v41  ;;  %8514 = vmatpush3.msra.mxu0 %v3527_v21  ;;  %v6441_v21 = vld [vmem:[%s12551_s3 + $0xa0] sm:$0xff]  ;;  %v11040_v10 = vpop.f32.mrf.mxu1  ;;  %12593 = vst [vmem:[#allocation18_spill] sm:$0xff] %v11051_v56 }
 0x24b   : > { %8558 = vmatpush3.msra.mxu1 %v6444_v41  ;;  %8515 = vmatprep.subr.mxu0 %v3526_v30  ;;  %v3523_v41 = vld [vmem:[%s12551_s3 + $0x18] sm:$0xff]  ;;  %12592 = vst [vmem:[#allocation17_spill] sm:$0xff] %v11040_v10 }
 0x24c   : > { %8559 = vmatprep.subr.mxu1 %v6443_v51  ;;  %8516 = vmatpush3.msra.mxu0 %v3526_v30  ;;  %v6440_v30 = vld [vmem:[%s12551_s3 + $0x98] sm:$0xff] }
 0x24d   : > { %8560 = vmatpush3.msra.mxu1 %v6443_v51  ;;  %8517 = vmatprep.subr.mxu0 %v3525_v24  ;;  %v3522_v51 = vld [vmem:[%s12551_s3 + $0x10] sm:$0xff]  ;;  %v6484_v10 = vld [vmem:[%s12551_s3 + $0x1f8] sm:$0xff] }
 0x24e   : > { %8561 = vmatprep.subr.mxu1 %v6442_v19  ;;  %8518 = vmatpush3.msra.mxu0 %v3525_v24  ;;  %v6439_v24 = vld [vmem:[%s12551_s3 + $0x90] sm:$0xff] }
 0x24f   : > { %8562 = vmatpush3.msra.mxu1 %v6442_v19  ;;  %8519 = vmatprep.subr.mxu0 %v3524_v3  ;;  %v3521_v19 = vld [vmem:[%s12551_s3 + $0x8] sm:$0xff] }
 0x250   : > { %8563 = vmatprep.subr.mxu1 %v6441_v21  ;;  %8520 = vmatpush3.msra.mxu0 %v3524_v3  ;;  %v6438_v3 = vld [vmem:[%s12551_s3 + $0x88] sm:$0xff] }
 0x251   : > { %8564 = vmatpush3.msra.mxu1 %v6441_v21  ;;  %8521 = vmatprep.subr.mxu0 %v3523_v41  ;;  %v3520_v21 = vld [vmem:[%s12551_s3] sm:$0xff] }
 0x252   : > { %8565 = vmatprep.subr.mxu1 %v6440_v30  ;;  %8522 = vmatpush3.msra.mxu0 %v3523_v41  ;;  %v6437_v41 = vld [vmem:[%s12551_s3 + $0x80] sm:$0xff] }
 0x253   : > { %8566 = vmatpush3.msra.mxu1 %v6440_v30  ;;  %8523 = vmatprep.subr.mxu0 %v3522_v51  ;;  %v11053_v30 = vpop.f32.mrf.mxu1 }
 0x254   : > { %8567 = vmatprep.subr.mxu1 %v6439_v24  ;;  %8524 = vmatpush3.msra.mxu0 %v3522_v51  ;;  %12594 = vst [vmem:[#allocation19_spill] sm:$0xff] %v11053_v30  ;;  %v6468_v51 = vld [vmem:[%s12551_s3 + $0x178] sm:$0xff]  ;;  %v11066_v30 = vpop.f32.mrf.mxu0 }
 0x255   : > { %8568 = vmatpush3.msra.mxu1 %v6439_v24  ;;  %8525 = vmatprep.subr.mxu0 %v3521_v19  ;;  %v11058_v24 = vld [vmem:[#allocation2 + $0x130] sm:$0xff]  ;;  %12597 = vst [vmem:[#allocation22_spill] sm:$0xff] %v11066_v30  ;;  %v11074_v56 = vpop.f32.mrf.mxu1  ;;  %v6482_v30 = vld [vmem:[%s12551_s3 + $0x1e8] sm:$0xff] }
 0x256   : > { %8569 = vmatprep.subr.mxu1 %v6438_v3  ;;  %8526 = vmatpush3.msra.mxu0 %v3521_v19  ;;  %12595 = vst [vmem:[#allocation20_spill] sm:$0xff] %v11058_v24  ;;  %v11064_v19 = vld [vmem:[#allocation2 + $0x1c0] sm:$0xff]  ;;  %12599 = vst [vmem:[#allocation24_spill] sm:$0xff] %v11074_v56  ;;  %v6466_v56 = vld [vmem:[%s12551_s3 + $0x168] sm:$0xff] }
 0x257   : > { %8570 = vmatpush3.msra.mxu1 %v6438_v3  ;;  %8527 = vmatprep.subr.mxu0 %v3520_v21  ;;  %12596 = vst [vmem:[#allocation21_spill] sm:$0xff] %v11064_v19  ;;  %v11069_v3 = vld [vmem:[#allocation2 + $0x140] sm:$0xff] }
 0x258   : > { %8571 = vmatprep.subr.mxu1 %v6437_v41  ;;  %8528 = vmatpush3.msra.mxu0 %v3520_v21  ;;  %12598 = vst [vmem:[#allocation23_spill] sm:$0xff] %v11069_v3  ;;  %v6467_v21 = vld [vmem:[%s12551_s3 + $0x170] sm:$0xff] }
 0x259   : > { %8572 = vmatpush3.msra.mxu1 %v6437_v41  ;;  %8530 = vmatmul.mubr.f32.vlgmr.msra.gmra.mxu0 %v11058_v24  ;;  %v6483_v41 = vld [vmem:[%s12551_s3 + $0x1f0] sm:$0xff]  ;;  %v11080_v24 = vpop.f32.mrf.mxu0 }
 0x25a   : > { %8574 = vmatmul.mubr.f32.vlgmr.msra.gmra.mxu1 %v11064_v19  ;;  %8585 = vmatprep.subr.mxu0 %v6468_v51  ;;  %v11083_v19 = vpop.f32.mrf.mxu1 }
 0x25b   : > { %8629 = vmatprep.subr.mxu1 %v6484_v10  ;;  %8532 = vmatprep.mubr.f32.mxu0 %v11069_v3  ;;  %12600 = vst [vmem:[#allocation25_spill] sm:$0xff] %v11083_v19  ;;  %v11088_v3 = vld [vmem:[#allocation2 + $0x150] sm:$0xff] }
 0x25c   : > { %8576 = vmatprep.mubr.f32.mxu1 %v10633_v50  ;;  %8586 = vmatpush3.msra.mxu0 %v6468_v51  ;;  %12601 = vst [vmem:[#allocation26_spill] sm:$0xff] %v11088_v3  ;;  %v11094_v50 = vpop.f32.mrf.mxu0  ;;  %v6465_v51 = vld [vmem:[%s12551_s3 + $0x160] sm:$0xff] }
 0x25d   : > { %8630 = vmatpush3.msra.mxu1 %v6484_v10  ;;  %8587 = vmatprep.subr.mxu0 %v6467_v21  ;;  %v11097_v10 = vld [vmem:[#allocation2 + $0x160] sm:$0xff] }
 0x25e   : > { %8631 = vmatprep.subr.mxu1 %v6483_v41  ;;  %8588 = vmatpush3.msra.mxu0 %v6467_v21  ;;  %12602 = vst [vmem:[#allocation27_spill] sm:$0xff] %v11097_v10  ;;  %v11102_v21 = vpop.f32.mrf.mxu1  ;;  %v11112_v19 = vpop.f32.mrf.mxu0 }
 0x25f   : > { %8632 = vmatpush3.msra.mxu1 %v6483_v41  ;;  %8533 = vmatmul.mubr.f32.gmra.mxu0 %v11088_v3  ;;  %12603 = vst [vmem:[#allocation28_spill] sm:$0xff] %v11102_v21  ;;  %v6481_v41 = vld [vmem:[%s12551_s3 + $0x1e0] sm:$0xff]  ;;  %v11114_v21 = vld [vmem:[#allocation2 + $0x170] sm:$0xff] }
 0x260   : > { %8577 = vmatmul.mubr.f32.gmra.mxu1 %v10647_v55  ;;  %8589 = vmatprep.subr.mxu0 %v6466_v56  ;;  %v6464_v55 = vld [vmem:[%s12551_s3 + $0x158] sm:$0xff]  ;;  %12604 = vst [vmem:[#allocation29_spill] sm:$0xff] %v11114_v21  ;;  %v11119_v3 = vpop.f32.mrf.mxu1 }
 0x261   : > { %8633 = vmatprep.subr.mxu1 %v6482_v30  ;;  %8535 = vmatprep.mubr.f32.mxu0 %v11097_v10  ;;  %v6480_v10 = vld [vmem:[%s12551_s3 + $0x1d8] sm:$0xff]  ;;  %12605 = vst [vmem:[#allocation30_spill] sm:$0xff] %v11119_v3  ;;  %v11140_v3 = vld [vmem:[#allocation2 + $0x190] sm:$0xff] }
 0x262   : > { %8579 = vmatprep.mubr.f32.mxu1 %v10655_v43  ;;  %8590 = vmatpush3.msra.mxu0 %v6466_v56  ;;  %v11123_v43 = vld [vmem:[#allocation2 + $0x180] sm:$0xff]  ;;  %v6463_v56 = vld [vmem:[%s12551_s3 + $0x150] sm:$0xff]  ;;  %12608 = vst [vmem:[#allocation33_spill] sm:$0xff] %v11140_v3 }
 0x263   : > { %8634 = vmatpush3.msra.mxu1 %v6482_v30  ;;  %8591 = vmatprep.subr.mxu0 %v6465_v51  ;;  %12606 = vst [vmem:[#allocation31_spill] sm:$0xff] %v11123_v43  ;;  %v6479_v30 = vld [vmem:[%s12551_s3 + $0x1d0] sm:$0xff] }
 0x264   : > { %8635 = vmatprep.subr.mxu1 %v6481_v41  ;;  %8592 = vmatpush3.msra.mxu0 %v6465_v51  ;;  %v11132_v51 = vpop.f32.mrf.mxu0 }
 0x265   : > { %8636 = vmatpush3.msra.mxu1 %v6481_v41  ;;  %8536 = vmatmul.mubr.f32.gmra.mxu0 %v11114_v21  ;;  %v6462_v41 = vld [vmem:[%s12551_s3 + $0x148] sm:$0xff] }
 0x266   : > { %8580 = vmatmul.mubr.f32.gmra.mxu1 %v10667_v61  ;;  %8593 = vmatprep.subr.mxu0 %v6464_v55  ;;  %v11135_v61 = vpop.f32.mrf.mxu1 }
 0x267   : > { %8637 = vmatprep.subr.mxu1 %v6480_v10  ;;  %8538 = vmatprep.mubr.f32.mxu0 %v11123_v43  ;;  %12607 = vst [vmem:[#allocation32_spill] sm:$0xff] %v11135_v61  ;;  %v6478_v43 = vld [vmem:[%s12551_s3 + $0x1c8] sm:$0xff]  ;;  %v3923_v61 = vld [vmem:[#allocation2 + $0x10] sm:$0xff] }
 0x268   : > { %8582 = vmatprep.mubr.f32.mxu1 %v10676_v16  ;;  %8594 = vmatpush3.msra.mxu0 %v6464_v55  ;;  %v11146_v16 = vpop.f32.mrf.mxu0  ;;  %v11152_v55 = vpop.f32.mrf.mxu1 }
 0x269   : > { %8638 = vmatpush3.msra.mxu1 %v6480_v10  ;;  %8595 = vmatprep.subr.mxu0 %v6463_v56  ;;  %12609 = vst [vmem:[#allocation34_spill] sm:$0xff] %v11146_v16  ;;  %v6461_v10 = vld [vmem:[%s12551_s3 + $0x140] sm:$0xff]  ;;  %12610 = vst [vmem:[#allocation35_spill] sm:$0xff] %v11152_v55  ;;  %v6459_v55 = vld [vmem:[%s12551_s3 + $0x130] sm:$0xff] }
 0x26a   : > { %8639 = vmatprep.subr.mxu1 %v6479_v30  ;;  %8596 = vmatpush3.msra.mxu0 %v6463_v56  ;;  %v3786_v56 = vld [vmem:[#allocation2 + $0x121] sm:$0xff]  ;;  %v11175_v21 = vpop.f32.mrf.mxu1 }
 0x26b   : > { %8640 = vmatpush3.msra.mxu1 %v6479_v30  ;;  %8539 = vmatmul.mubr.f32.gmra.mxu0 %v11140_v3  ;;  %v6477_v30 = vld [vmem:[%s12551_s3 + $0x1c0] sm:$0xff]  ;;  %12612 = vst [vmem:[#allocation37_spill] sm:$0xff] %v11175_v21  ;;  %v6474_v21 = vld [vmem:[%s12551_s3 + $0x1a8] sm:$0xff] }
 0x26c   : > { %8583 = vmatmul.mubr.f32.gmra.mxu1 %v10688_v0  ;;  %8597 = vmatprep.subr.mxu0 %v6462_v41  ;;  %v6460_v0 = vld [vmem:[%s12551_s3 + $0x138] sm:$0xff]  ;;  %v11163_v3 = vld [vmem:[%s12552_s4] ss:$0 sm:$0xff]  ;;  %v11192_v16 = vpop.f32.mrf.mxu1 }
 0x26d   : > { %8641 = vmatprep.subr.mxu1 %v6478_v43  ;;  %8598 = vmatpush3.msra.mxu0 %v6462_v41  ;;  %v1093_v41 = vadd.f32 %v11163_v3, %v10519_v39  ;;  %v6475_v39 = vld [vmem:[%s12551_s3 + $0x1b0] sm:$0xff] }
 0x26e   : > { %8617 = vmatprep.mubr.f32.mxu0 %v3786_v56  ;;  %8642 = vmatpush3.msra.mxu1 %v6478_v43  ;;  %v6476_v56 = vld [vmem:[%s12551_s3 + $0x1b8] sm:$0xff]  ;;  %v11170_v43 = vpop.f32.mrf.mxu0 }
 0x26f   : > { %8661 = vmatprep.mubr.f32.mxu1 %v3923_v61  ;;  %8599 = vmatprep.subr.mxu0 %v6461_v10  ;;  %12611 = vst [vmem:[#allocation36_spill] sm:$0xff] %v11170_v43  ;;  %v6458_v61 = vld [vmem:[%s12551_s3 + $0x128] sm:$0xff] }
 0x270   : > { %8643 = vmatprep.subr.mxu1 %v6477_v30  ;;  %8600 = vmatpush3.msra.mxu0 %v6461_v10  ;;  %v1232_v10 = vadd.f32 %v10500_v26, %v1093_v41  ;;  %v6473_v26 = vld [vmem:[%s12551_s3 + $0x1a0] sm:$0xff]  ;;  %v6472_v41 = vld [vmem:[%s12551_s3 + $0x198] sm:$0xff] }
 0x271   : > { %8644 = vmatpush3.msra.mxu1 %v6477_v30  ;;  %8601 = vmatprep.subr.mxu0 %v6460_v0  ;;  %v11187_v30 = vpop.f32.mrf.mxu0 }
 0x272   : > { %8645 = vmatprep.subr.mxu1 %v6476_v56  ;;  %8602 = vmatpush3.msra.mxu0 %v6460_v0  ;;  %12613 = vst [vmem:[#allocation38_spill] sm:$0xff] %v11187_v30  ;;  %v6457_v0 = vld [vmem:[%s12551_s3 + $0x120] sm:$0xff]  ;;  %v1370_v43 = vadd.f32 %v10614_v29, %v1232_v10  ;;  %v1094_v29 = vadd.f32 %v11163_v3, %v10498_v33  ;;  %v6471_v10 = vld [vmem:[%s12551_s3 + $0x190] sm:$0xff]  ;;  %v6454_v33 = vld [vmem:[%s12551_s3 + $0x108] sm:$0xff] }
 0x273   : > { %8646 = vmatpush3.msra.mxu1 %v6476_v56  ;;  %8603 = vmatprep.subr.mxu0 %v6459_v55  ;;  %v11204_v56 = vpop.f32.mrf.mxu0 }
 0x274   : > { %8647 = vmatprep.subr.mxu1 %v6475_v39  ;;  %8604 = vmatpush3.msra.mxu0 %v6459_v55  ;;  %v6456_v55 = vld [vmem:[%s12551_s3 + $0x118] sm:$0xff] }
 0x275   : > { %8648 = vmatpush3.msra.mxu1 %v6475_v39  ;;  %8605 = vmatprep.subr.mxu0 %v6458_v61  ;;  %v6455_v39 = vld [vmem:[%s12551_s3 + $0x110] sm:$0xff] }
 0x276   : > { %8649 = vmatprep.subr.mxu1 %v6474_v21  ;;  %8606 = vmatpush3.msra.mxu0 %v6458_v61  ;;  %v11211_v61 = vpop.f32.mrf.mxu1 }
 0x277   : > { %8650 = vmatpush3.msra.mxu1 %v6474_v21  ;;  %8607 = vmatprep.subr.mxu0 %v6457_v0  ;;  %12614 = vst [vmem:[#allocation39_spill] sm:$0xff] %v11211_v61  ;;  %v1508_v21 = vadd.f32 %v10753_v32, %v1370_v43  ;;  %v6470_v32 = vld [vmem:[%s12551_s3 + $0x188] sm:$0xff] }
 0x278   : > { %8651 = vmatprep.subr.mxu1 %v6473_v26  ;;  %8608 = vmatpush3.msra.mxu0 %v6457_v0 }
 0x279   : > { %8652 = vmatpush3.msra.mxu1 %v6473_v26  ;;  %8609 = vmatprep.subr.mxu0 %v6456_v55  ;;  %v11217_v30 = vpop.f32.mrf.mxu0  ;;  %v1646_v61 = vadd.f32 %v10849_v8, %v1508_v21  ;;  %v1233_v26 = vadd.f32 %v10482_v38, %v1094_v29  ;;  %v6469_v8 = vld [vmem:[%s12551_s3 + $0x180] sm:$0xff]  ;;  %v6500_v29 = vld [vmem:[%s12551_s3 + $0x278] sm:$0xff] }
 0x27a   : > { %12615 = vst [vmem:[#allocation40_spill] sm:$0xff] %v11217_v30  ;;  %8653 = vmatprep.subr.mxu1 %v6472_v41  ;;  %8610 = vmatpush3.msra.mxu0 %v6456_v55  ;;  %v11222_v0 = vpop.f32.mrf.mxu1  ;;  %v6453_v55 = vld [vmem:[%s12551_s3 + $0x100] sm:$0xff] }
 0x27b   : > { %8654 = vmatpush3.msra.mxu1 %v6472_v41  ;;  %8611 = vmatprep.subr.mxu0 %v6455_v39  ;;  %v11228_v43 = vpop.f32.mrf.mxu0  ;;  %v1095_v41 = vadd.f32 %v11163_v3, %v10540_v57  ;;  %v1371_v21 = vadd.f32 %v10606_v7, %v1233_v26  ;;  %v1784_v38 = vadd.f32 %v10854_v18, %v1646_v61  ;;  %v6516_v57 = vld [vmem:[%s12551_s3 + $0x2f8] sm:$0xff]  ;;  %v3924_v61 = vld [vmem:[#allocation2 + $0x20] sm:$0xff] }
 0x27c   : > { %8655 = vmatprep.subr.mxu1 %v6471_v10  ;;  %8612 = vmatpush3.msra.mxu0 %v6455_v39  ;;  %v11234_v30 = vpop.f32.mrf.mxu1 }
 0x27d   : > { %8656 = vmatpush3.msra.mxu1 %v6471_v10  ;;  %8613 = vmatprep.subr.mxu0 %v6454_v33  ;;  %v11248_v10 = vld [vmem:[#allocation2 + $0x131] sm:$0xff]  ;;  %v1922_v18 = vadd.f32 %v10970_v44, %v1784_v38  ;;  %v1509_v26 = vadd.f32 %v10742_v4, %v1371_v21  ;;  %v1096_v44 = vadd.f32 %v11163_v3, %v10528_v45  ;;  %v6498_v45 = vld [vmem:[%s12551_s3 + $0x268] sm:$0xff] }
 0x27e   : > { %8657 = vmatprep.subr.mxu1 %v6470_v32  ;;  %8614 = vmatpush3.msra.mxu0 %v6454_v33 }
 0x27f   : > { %8658 = vmatpush3.msra.mxu1 %v6470_v32  ;;  %8615 = vmatprep.subr.mxu0 %v6453_v55  ;;  %v11246_v39 = vpop.f32.mrf.mxu0  ;;  %v1234_v32 = vadd.f32 %v10530_v46, %v1095_v41  ;;  %v6515_v46 = vld [vmem:[%s12551_s3 + $0x2f0] sm:$0xff]  ;;  %v1647_v41 = vadd.f32 %v10833_v9, %v1509_v26  ;;  %v2060_v21 = vadd.f32 %v10977_v62, %v1922_v18 }
 0x280   : > { %12616 = vst [vmem:[#allocation41_spill] sm:$0xff] %v11246_v39  ;;  %8659 = vmatprep.subr.mxu1 %v6469_v8  ;;  %8616 = vmatpush3.msra.mxu0 %v6453_v55  ;;  %v11253_v7 = vpop.f32.mrf.mxu1  ;;  %v11261_v55 = vld [vmem:[#allocation2 + $0x141] sm:$0xff]  ;;  %v1235_v62 = vadd.f32 %v10510_v35, %v1096_v44 }
 0x281   : > { %12617 = vst [vmem:[#allocation42_spill] sm:$0xff] %v11253_v7  ;;  %8660 = vmatpush3.msra.mxu1 %v6469_v8  ;;  %8618 = vmatmul.mubr.f32.vlgmr.msra.gmra.mxu0 %v11248_v10  ;;  %v11257_v33 = vpop.f32.mrf.mxu0  ;;  %v6499_v7 = vld [vmem:[%s12551_s3 + $0x270] sm:$0xff]  ;;  %v1372_v4 = vadd.f32 %v10631_v42, %v1234_v32  ;;  %v6514_v42 = vld [vmem:[%s12551_s3 + $0x2e8] sm:$0xff]  ;;  %v2198_v18 = vadd.f32 %v11094_v50, %v2060_v21  ;;  %v6497_v50 = vld [vmem:[%s12551_s3 + $0x260] sm:$0xff] }
 0x282   : > { %8662 = vmatmul.mubr.f32.vlgmr.msra.gmra.mxu1 %v3924_v61  ;;  %8673 = vmatprep.subr.mxu0 %v6500_v29  ;;  %v11266_v39 = vpop.f32.mrf.mxu1  ;;  %v3925_v8 = vld [vmem:[#allocation2 + $0x30] sm:$0xff]  ;;  %v1785_v26 = vadd.f32 %v10838_v23, %v1647_v41  ;;  %v1373_v35 = vadd.f32 %v10625_v27, %v1235_v62  ;;  %v2379_v27 = vadd.f32 %v11163_v3, %v11192_v16 }
 0x283   : > { %8717 = vmatprep.subr.mxu1 %v6516_v57  ;;  %8620 = vmatprep.mubr.f32.mxu0 %v11261_v55  ;;  %v11282_v61 = vld [vmem:[#allocation2 + $0x151] sm:$0xff]  ;;  %v1510_v32 = vadd.f32 %v10777_v11, %v1372_v4  ;;  %v6513_v11 = vld [vmem:[%s12551_s3 + $0x2e0] sm:$0xff]  ;;  %v1098_v4 = vadd.f32 %v11163_v3, %v10560_v54 }
 0x284   : > { %8664 = vmatprep.mubr.f32.mxu1 %v3925_v8  ;;  %8674 = vmatpush3.msra.mxu0 %v6500_v29  ;;  %v1097_v29 = vadd.f32 %v11163_v3, %v10568_v12  ;;  %v11298_v8 = vld [vmem:[#allocation2 + $0x161] sm:$0xff]  ;;  %v3927_v12 = vld [vmem:[#allocation2 + $0x50] sm:$0xff]  ;;  %v1511_v16 = vadd.f32 %v10765_v6, %v1373_v35 }
 0x285   : > { %8718 = vmatpush3.msra.mxu1 %v6516_v57  ;;  %8675 = vmatprep.subr.mxu0 %v6499_v7  ;;  %v11280_v38 = vpop.f32.mrf.mxu0  ;;  %v3926_v57 = vld [vmem:[#allocation2 + $0x40] sm:$0xff]  ;;  %v1648_v23 = vadd.f32 %v10881_v22, %v1510_v32  ;;  %v6496_v22 = vld [vmem:[%s12551_s3 + $0x258] sm:$0xff]  ;;  %v1237_v32 = vadd.f32 %v10549_v20, %v1098_v4  ;;  %v6511_v20 = vld [vmem:[%s12551_s3 + $0x2d0] sm:$0xff] }
 0x286   : > { %8719 = vmatprep.subr.mxu1 %v6515_v46  ;;  %8676 = vmatpush3.msra.mxu0 %v6499_v7  ;;  %v11287_v9 = vpop.f32.mrf.mxu1  ;;  %v1236_v41 = vadd.f32 %v10570_v2, %v1097_v29  ;;  %v11325_v2 = vld [vmem:[#allocation2 + $0x171] sm:$0xff]  ;;  %v1649_v6 = vadd.f32 %v10865_v37, %v1511_v16  ;;  %v4060_v4 = vld [vmem:[#allocation2 + $0xa0] sm:$0xff] }
 0x287   : > { %8720 = vmatpush3.msra.mxu1 %v6515_v46  ;;  %8621 = vmatmul.mubr.f32.gmra.mxu0 %v11282_v61  ;;  %v11294_v7 = vpop.f32.mrf.mxu0  ;;  %v1923_v46 = vadd.f32 %v10954_v36, %v1785_v26  ;;  %v6512_v36 = vld [vmem:[%s12551_s3 + $0x2d8] sm:$0xff]  ;;  %v1786_v29 = vadd.f32 %v10886_v5, %v1648_v23  ;;  %v3929_v26 = vld [vmem:[#allocation2 + $0x70] sm:$0xff]  ;;  %v3930_v23 = vld [vmem:[#allocation2 + $0x80] sm:$0xff] }
 0x288   : > { %8665 = vmatmul.mubr.f32.gmra.mxu1 %v3926_v57  ;;  %8677 = vmatprep.subr.mxu0 %v6498_v45  ;;  %v11308_v44 = vpop.f32.mrf.mxu1  ;;  %v1374_v54 = vadd.f32 %v10653_v60, %v1236_v41  ;;  %v11334_v60 = vld [vmem:[#allocation2 + $0x181] sm:$0xff]  ;;  %v6495_v5 = vld [vmem:[%s12551_s3 + $0x250] sm:$0xff] }
 0x289   : > { %8721 = vmatprep.subr.mxu1 %v6514_v42  ;;  %8623 = vmatprep.mubr.f32.mxu0 %v11298_v8  ;;  %v2061_v57 = vadd.f32 %v10960_v1, %v1923_v46  ;;  %v1099_v1 = vadd.f32 %v11163_v3, %v10598_v28  ;;  %v1924_v35 = vadd.f32 %v11003_v59, %v1786_v29  ;;  %v6494_v28 = vld [vmem:[%s12551_s3 + $0x248] sm:$0xff]  ;;  %v11354_v3 = vld [vmem:[#allocation2 + $0x191] sm:$0xff] }
 0x28a   : > { %8667 = vmatprep.mubr.f32.mxu1 %v3927_v12  ;;  %8678 = vmatpush3.msra.mxu0 %v6498_v45  ;;  %v1512_v37 = vadd.f32 %v10796_v48, %v1374_v54  ;;  %v1787_v59 = vadd.f32 %v10870_v58, %v1649_v6  ;;  %v6510_v48 = vld [vmem:[%s12551_s3 + $0x2c8] sm:$0xff]  ;;  %v12620_v16 = vld [vmem:[#allocation17_spill] sm:$0xff]  ;;  %v6505_v6 = vld [vmem:[%s12551_s3 + $0x2a0] sm:$0xff] }
 0x28b   : > { %8722 = vmatpush3.msra.mxu1 %v6514_v42  ;;  %2206 = vxpose.xlu0.b32.start [1/8] (short) (narrow) %v2198_v18, 8  ;;  %v8188_v21 = vpop.f32.mrf.mxu0  ;;  %v3928_v42 = vld [vmem:[#allocation2 + $0x60] sm:$0xff]  ;;  %v2199_v12 = vadd.f32 %v11080_v24, %v2061_v57  ;;  %v12622_v29 = vld [vmem:[#allocation36_spill] sm:$0xff] }
 0x28c   : > { %8679 = vmatprep.subr.mxu0 %v6497_v50  ;;  %8723 = vmatprep.subr.mxu1 %v6513_v11  ;;  %v2516_v45 = vadd.f32 %v8188_v21, %v2379_v27  ;;  %v8232_v62 = vpop.f32.mrf.mxu1  ;;  %v1650_v24 = vadd.f32 %v10914_v40, %v1512_v37  ;;  %v1925_v58 = vadd.f32 %v10986_v15, %v1787_v59  ;;  %v6504_v37 = vld [vmem:[%s12551_s3 + $0x298] sm:$0xff] }
 0x28d   : > { %8680 = vmatpush3.msra.mxu0 %v6497_v50  ;;  %8724 = vmatpush3.msra.mxu1 %v6513_v11  ;;  %v1375_v50 = vadd.f32 %v10645_v25, %v1237_v32  ;;  %v1238_v25 = vadd.f32 %v10728_v13, %v1099_v1  ;;  %v2062_v11 = vadd.f32 %v11008_v14, %v1924_v35  ;;  %v6493_v14 = vld [vmem:[%s12551_s3 + $0x240] sm:$0xff]  ;;  %v12625_v35 = vld [vmem:[#allocation4_spill] sm:$0xff]  ;;  %v12627_v59 = vld [vmem:[#allocation22_spill] sm:$0xff] }
 0x28e   : > { %8624 = vmatmul.mubr.f32.gmra.mxu0 %v11325_v2  ;;  %8668 = vmatmul.mubr.f32.gmra.mxu1 %v3928_v42  ;;  %v11330_v18 = vadd.f32 %v8232_v62, %v2516_v45  ;;  %v6509_v13 = vld [vmem:[%s12551_s3 + $0x2c0] sm:$0xff]  ;;  %v1788_v15 = vadd.f32 %v10917_v47, %v1650_v24  ;;  %v2063_v41 = vadd.f32 %v10991_v34, %v1925_v58  ;;  %v6507_v34 = vld [vmem:[%s12551_s3 + $0x2b0] sm:$0xff] }
 0x28f   : > { %8681 = vmatprep.subr.mxu0 %v6496_v22  ;;  %8725 = vmatprep.subr.mxu1 %v6512_v36  ;;  %v1513_v40 = vadd.f32 %v10787_v52, %v1375_v50  ;;  %v1376_v46 = vadd.f32 %v10818_v17, %v1238_v25  ;;  %v2200_v27 = vadd.f32 %v11132_v51, %v2062_v11  ;;  %v6492_v17 = vld [vmem:[%s12551_s3 + $0x238] sm:$0xff]  ;;  %v12621_v42 = vld [vmem:[#allocation15_spill] sm:$0xff]  ;;  %v12626_v50 = vld [vmem:[#allocation16_spill] sm:$0xff] }
 0x290   : > { %8626 = vmatprep.mubr.f32.mxu0 %v11334_v60  ;;  %8670 = vmatprep.mubr.f32.mxu1 %v3929_v26  ;;  %v6508_v51 = vld [vmem:[%s12551_s3 + $0x2b8] sm:$0xff]  ;;  %v1926_v21 = vadd.f32 %v11035_v31, %v1788_v15  ;;  %v6489_v32 = vld [vmem:[%s12551_s3 + $0x220] sm:$0xff]  ;;  %v12623_v26 = vld [vmem:[#allocation13_spill] sm:$0xff] }
 0x291   : > { %8682 = vmatpush3.msra.mxu0 %v6496_v22  ;;  %8726 = vmatpush3.msra.mxu1 %v6512_v36  ;;  %v1651_v52 = vadd.f32 %v10894_v53, %v1513_v40  ;;  %v1514_v47 = vadd.f32 %v10824_v49, %v1376_v46  ;;  %v2201_v53 = vadd.f32 %v11112_v19, %v2063_v41  ;;  %v12618_v22 = vld [vmem:[#allocation6_spill] sm:$0xff]  ;;  %v12619_v36 = vld [vmem:[#allocation11_spill] sm:$0xff]  ;;  %v6490_v49 = vld [vmem:[%s12551_s3 + $0x228] sm:$0xff] }
 0x292   : > { %2207 = vxpose.xlu0.b32.cont [2/8] (short) (narrow) %v2199_v12, 8  ;;  %8683 = vmatprep.subr.mxu0 %v6495_v5  ;;  %v2064_v54 = vadd.f32 %v12620_v16, %v1926_v21  ;;  %v6506_v19 = vld [vmem:[%s12551_s3 + $0x2a8] sm:$0xff]  ;;  %v12624_v1 = vld [vmem:[#allocation3_spill] sm:$0xff]  ;;  %v6487_v11 = vld [vmem:[%s12551_s3 + $0x210] sm:$0xff] }
 0x293   : > { %8727 = vmatprep.subr.mxu1 %v6511_v20  ;;  %8684 = vmatpush3.msra.mxu0 %v6495_v5  ;;  %v1789_v31 = vadd.f32 %v12618_v22, %v1651_v52  ;;  %v1652_v45 = vadd.f32 %v12619_v36, %v1514_v47  ;;  %v1515_v12 = vadd.f32 %v12625_v35, %v12624_v1  ;;  %v6503_v40 = vld [vmem:[%s12551_s3 + $0x290] sm:$0xff]  ;;  %v6486_v46 = vld [vmem:[%s12551_s3 + $0x208] sm:$0xff]  ;;  %v12632_v41 = vld [vmem:[#allocation18_spill] sm:$0xff] }
 0x294   : > { %8728 = vmatpush3.msra.mxu1 %v6511_v20  ;;  %8627 = vmatmul.mubr.f32.gmra.mxu0 %v11354_v3  ;;  %v2202_v57 = vadd.f32 %v12622_v29, %v2064_v54  ;;  %v6488_v20 = vld [vmem:[%s12551_s3 + $0x218] sm:$0xff]  ;;  %v12634_v22 = vld [vmem:[#allocation5_spill] sm:$0xff]  ;;  %v12636_v16 = vld [vmem:[#allocation7_spill] sm:$0xff] }
 0x295   : > { %8671 = vmatmul.mubr.f32.gmra.mxu1 %v3930_v23  ;;  %8685 = vmatprep.subr.mxu0 %v6494_v28  ;;  %v1927_v62 = vadd.f32 %v12621_v42, %v1789_v31  ;;  %v1790_v5 = vadd.f32 %v12623_v26, %v1652_v45  ;;  %v12629_v23 = vld [vmem:[#allocation34_spill] sm:$0xff]  ;;  %v4062_v31 = vld [vmem:[#allocation2 + $0xc0] sm:$0xff]  ;;  %v6531_v36 = vld [vmem:[%s12551_s3 + $0x370] sm:$0xff] }
 0x296   : > { %8729 = vmatprep.subr.mxu1 %v6510_v48  ;;  %8686 = vmatpush3.msra.mxu0 %v6494_v28  ;;  %v6548_v47 = vld [vmem:[%s12551_s3 + $0x3f8] sm:$0xff]  ;;  %v6547_v54 = vld [vmem:[%s12551_s3 + $0x3f0] sm:$0xff]  ;;  %v12637_v29 = vld [vmem:[#allocation8_spill] sm:$0xff] }
 0x297   : > { %8705 = vmatprep.mubr.f32.mxu0 %v4060_v4  ;;  %8730 = vmatpush3.msra.mxu1 %v6510_v48  ;;  %v2065_v28 = vadd.f32 %v12626_v50, %v1927_v62  ;;  %v1928_v24 = vadd.f32 %v12627_v59, %v1790_v5  ;;  %v12628_v48 = vld [vmem:[#allocation9_spill] sm:$0xff]  ;;  %v12635_v45 = vld [vmem:[#allocation38_spill] sm:$0xff]  ;;  %v6546_v62 = vld [vmem:[%s12551_s3 + $0x3e8] sm:$0xff] }
 0x298   : > { %8749 = vmatprep.mubr.f32.mxu1 %v10816_v63  ;;  %2208 = vxpose.xlu0.b32.cont [3/8] (short) (narrow) %v2200_v27, 8  ;;  %v6491_v63 = vld [vmem:[%s12551_s3 + $0x230] sm:$0xff]  ;;  %v1653_v25 = vadd.f32 %v12628_v48, %v1515_v12  ;;  %v12630_v27 = vld [vmem:[#allocation24_spill] sm:$0xff]  ;;  %v6545_v26 = vld [vmem:[%s12551_s3 + $0x3e0] sm:$0xff] }
 0x299   : > { %8687 = vmatprep.subr.mxu0 %v6493_v14  ;;  %8731 = vmatprep.subr.mxu1 %v6509_v13  ;;  %v2203_v58 = vadd.f32 %v12629_v23, %v2065_v28  ;;  %v2066_v4 = vadd.f32 %v12630_v27, %v1928_v24  ;;  %v4063_v42 = vld [vmem:[#allocation2 + $0xd0] sm:$0xff]  ;;  %v6528_v5 = vld [vmem:[%s12551_s3 + $0x358] sm:$0xff]  ;;  %v12638_v12 = vld [vmem:[#allocation12_spill] sm:$0xff] }
 0x29a   : > { %8688 = vmatpush3.msra.mxu0 %v6493_v14  ;;  %8732 = vmatpush3.msra.mxu1 %v6509_v13  ;;  %v6502_v14 = vld [vmem:[%s12551_s3 + $0x288] sm:$0xff]  ;;  %v12631_v13 = vld [vmem:[#allocation10_spill] sm:$0xff]  ;;  %v4065_v1 = vld [vmem:[#allocation2 + $0xf0] sm:$0xff] }
 0x29b   : > { %8689 = vmatprep.subr.mxu0 %v6492_v17  ;;  %8733 = vmatprep.subr.mxu1 %v6508_v51  ;;  %v1791_v15 = vadd.f32 %v12631_v13, %v1653_v25  ;;  %v2204_v52 = vadd.f32 %v11204_v56, %v2066_v4  ;;  %v6532_v56 = vld [vmem:[%s12551_s3 + $0x378] sm:$0xff]  ;;  %v6543_v28 = vld [vmem:[%s12551_s3 + $0x3d0] sm:$0xff]  ;;  %v6526_v59 = vld [vmem:[%s12551_s3 + $0x348] sm:$0xff] }
 0x29c   : > { %8690 = vmatpush3.msra.mxu0 %v6492_v17  ;;  %8734 = vmatpush3.msra.mxu1 %v6508_v51  ;;  %v6485_v17 = vld [vmem:[%s12551_s3 + $0x200] sm:$0xff]  ;;  %v6544_v35 = vld [vmem:[%s12551_s3 + $0x3d8] sm:$0xff]  ;;  %v4067_v24 = vld [vmem:[#allocation2 + $0x110] sm:$0xff] }
 0x29d   : > { %2209 = vxpose.xlu0.b32.cont [4/8] (short) (narrow) %v2201_v53, 8  ;;  %8691 = vmatprep.subr.mxu0 %v6491_v63  ;;  %v6501_v51 = vld [vmem:[%s12551_s3 + $0x280] sm:$0xff]  ;;  %v1929_v21 = vadd.f32 %v12632_v41, %v1791_v15  ;;  %v4203_v50 = vld [vmem:[#allocation2 + $0x71] sm:$0xff]  ;;  %v6542_v48 = vld [vmem:[%s12551_s3 + $0x3c8] sm:$0xff] }
 0x29e   : > { %8735 = vmatprep.subr.mxu1 %v6507_v34  ;;  %8692 = vmatpush3.msra.mxu0 %v6491_v63  ;;  %v4061_v63 = vld [vmem:[#allocation2 + $0xb0] sm:$0xff]  ;;  %v12633_v53 = vld [vmem:[#allocation19_spill] sm:$0xff]  ;;  %v12639_v25 = vld [vmem:[#allocation14_spill] sm:$0xff] }
 0x29f   : > { %8736 = vmatpush3.msra.mxu1 %v6507_v34  ;;  %8693 = vmatprep.subr.mxu0 %v6490_v49  ;;  %v2067_v34 = vadd.f32 %v12633_v53, %v1929_v21  ;;  %v6541_v23 = vld [vmem:[%s12551_s3 + $0x3c0] sm:$0xff]  ;;  %v6540_v27 = vld [vmem:[%s12551_s3 + $0x3b8] sm:$0xff]  ;;  %v6523_v4 = vld [vmem:[%s12551_s3 + $0x330] sm:$0xff] }
 0x2a0   : > { %8737 = vmatprep.subr.mxu1 %v6506_v19  ;;  %8694 = vmatpush3.msra.mxu0 %v6490_v49  ;;  %v6522_v13 = vld [vmem:[%s12551_s3 + $0x328] sm:$0xff]  ;;  %v6536_v41 = vld [vmem:[%s12551_s3 + $0x398] sm:$0xff]  ;;  %v6519_v21 = vld [vmem:[%s12551_s3 + $0x310] sm:$0xff] }
 0x2a1   : > { %8738 = vmatpush3.msra.mxu1 %v6506_v19  ;;  %2210 = vxpose.xlu0.b32.cont [5/8] (short) (narrow) %v2202_v57, 8  ;;  %v2205_v49 = vadd.f32 %v12635_v45, %v2067_v34  ;;  %v6530_v19 = vld [vmem:[%s12551_s3 + $0x368] sm:$0xff]  ;;  %v4064_v57 = vld [vmem:[#allocation2 + $0xe0] sm:$0xff]  ;;  %v11555_v45 = vld [vmem:[#allocation2 + $0x1d0] sm:$0xff] }
 0x2a2   : > { %8695 = vmatprep.subr.mxu0 %v6489_v32  ;;  %8739 = vmatprep.subr.mxu1 %v6505_v6  ;;  %v6538_v15 = vld [vmem:[%s12551_s3 + $0x3a8] sm:$0xff]  ;;  %v6517_v53 = vld [vmem:[%s12551_s3 + $0x300] sm:$0xff] }
 0x2a3   : > { %8696 = vmatpush3.msra.mxu0 %v6489_v32  ;;  %8740 = vmatpush3.msra.mxu1 %v6505_v6  ;;  %v6529_v32 = vld [vmem:[%s12551_s3 + $0x360] sm:$0xff]  ;;  %v4201_v6 = vld [vmem:[#allocation2 + $0x51] sm:$0xff] }
 0x2a4   : > { %8697 = vmatprep.subr.mxu0 %v6488_v20  ;;  %8741 = vmatprep.subr.mxu1 %v6504_v37  ;;  %v6533_v34 = vld [vmem:[%s12551_s3 + $0x380] sm:$0xff] }
 0x2a5   : > { %8698 = vmatpush3.msra.mxu0 %v6488_v20  ;;  %8742 = vmatpush3.msra.mxu1 %v6504_v37  ;;  %v4066_v20 = vld [vmem:[#allocation2 + $0x100] sm:$0xff]  ;;  %v6527_v37 = vld [vmem:[%s12551_s3 + $0x350] sm:$0xff] }
 0x2a6   : > { %2211 = vxpose.xlu0.b32.cont [6/8] (short) (narrow) %v2203_v58, 8  ;;  %8699 = vmatprep.subr.mxu0 %v6487_v11  ;;  %v12640_v58 = vld [vmem:[#allocation20_spill] sm:$0xff] }
 0x2a7   : > { %8743 = vmatprep.subr.mxu1 %v6503_v40  ;;  %8700 = vmatpush3.msra.mxu0 %v6487_v11  ;;  %v6525_v11 = vld [vmem:[%s12551_s3 + $0x340] sm:$0xff] }
 0x2a8   : > { %8744 = vmatpush3.msra.mxu1 %v6503_v40  ;;  %8701 = vmatprep.subr.mxu0 %v6486_v46  ;;  %v6524_v40 = vld [vmem:[%s12551_s3 + $0x338] sm:$0xff] }
 0x2a9   : > { %8745 = vmatprep.subr.mxu1 %v6502_v14  ;;  %8702 = vmatpush3.msra.mxu0 %v6486_v46  ;;  %v12641_v46 = vld [vmem:[#allocation21_spill] sm:$0xff] }
 0x2aa   : > { %8746 = vmatpush3.msra.mxu1 %v6502_v14  ;;  %2212 = vxpose.xlu0.b32.cont [7/8] (short) (narrow) %v2204_v52, 8  ;;  %v6539_v14 = vld [vmem:[%s12551_s3 + $0x3b0] sm:$0xff]  ;;  %v6521_v52 = vld [vmem:[%s12551_s3 + $0x320] sm:$0xff] }
 0x2ab   : > { %8703 = vmatprep.subr.mxu0 %v6485_v17  ;;  %8747 = vmatprep.subr.mxu1 %v6501_v51 }
 0x2ac   : > { %8704 = vmatpush3.msra.mxu0 %v6485_v17  ;;  %8748 = vmatpush3.msra.mxu1 %v6501_v51  ;;  %v6537_v17 = vld [vmem:[%s12551_s3 + $0x3a0] sm:$0xff]  ;;  %v6520_v51 = vld [vmem:[%s12551_s3 + $0x318] sm:$0xff] }
 0x2ad   : > { %8706 = vmatmul.mubr.f32.vlgmr.msra.gmra.mxu0 %v4061_v63  ;;  %8750 = vmatmul.mubr.f32.vlgmr.msra.gmra.mxu1 %v12634_v22  ;;  %v6534_v63 = vld [vmem:[%s12551_s3 + $0x388] sm:$0xff]  ;;  %v6564_v22 = vld [vmem:[%s12551_s3 + $0x478] sm:$0xff] }
 0x2ae   : > { %8761 = vmatprep.subr.mxu0 %v6532_v56  ;;  %8805 = vmatprep.subr.mxu1 %v6548_v47 }
 0x2af   : > { %8708 = vmatprep.mubr.f32.mxu0 %v4062_v31  ;;  %8752 = vmatprep.mubr.f32.mxu1 %v12636_v16  ;;  %v4806_v31 = vld [vmem:[%s12551_s3 + $0x78] sm:$0xff] }
 0x2b0   : > { %8762 = vmatpush3.msra.mxu0 %v6532_v56  ;;  %8806 = vmatpush3.msra.mxu1 %v6548_v47  ;;  %v6535_v56 = vld [vmem:[%s12551_s3 + $0x390] sm:$0xff]  ;;  %v6518_v47 = vld [vmem:[%s12551_s3 + $0x308] sm:$0xff]  ;;  %v12643_v16 = vld [vmem:[#allocation26_spill] sm:$0xff] }
 0x2b1   : > { %2213 = vxpose.xlu0.b32.end [8/8] (short) (narrow) %v2205_v49, 8  ;;  %8763 = vmatprep.subr.mxu0 %v6531_v36  ;;  %v6563_v49 = vld [vmem:[%s12551_s3 + $0x470] sm:$0xff] }
 0x2b2   : > { %8807 = vmatprep.subr.mxu1 %v6547_v54  ;;  %8764 = vmatpush3.msra.mxu0 %v6531_v36  ;;  %v12642_v36 = vld [vmem:[#allocation23_spill] sm:$0xff] }
 0x2b3   : > { %8808 = vmatpush3.msra.mxu1 %v6547_v54  ;;  %8709 = vmatmul.mubr.f32.gmra.mxu0 %v4063_v42  ;;  %v11562_v54 = vld [vmem:[#allocation2 + $0x1e0] sm:$0xff]  ;;  %v6562_v42 = vld [vmem:[%s12551_s3 + $0x468] sm:$0xff] }
 0x2b4   : > { %8753 = vmatmul.mubr.f32.gmra.mxu1 %v12637_v29  ;;  %8765 = vmatprep.subr.mxu0 %v6530_v19  ;;  %v12644_v29 = vld [vmem:[#allocation27_spill] sm:$0xff] }
 0x2b5   : > { %8809 = vmatprep.subr.mxu1 %v6546_v62  ;;  %8711 = vmatprep.mubr.f32.mxu0 %v4064_v57  ;;  %v11575_v57 = vld [vmem:[#allocation2 + $0x1f0] sm:$0xff] }
 0x2b6   : > { %8755 = vmatprep.mubr.f32.mxu1 %v4201_v6  ;;  %8766 = vmatpush3.msra.mxu0 %v6530_v19  ;;  %v4805_v19 = vld [vmem:[%s12551_s3 + $0x70] sm:$0xff] }
 0x2b7   : > { %8810 = vmatpush3.msra.mxu1 %v6546_v62  ;;  %8767 = vmatprep.subr.mxu0 %v6529_v32  ;;  %v4804_v62 = vld [vmem:[%s12551_s3 + $0x68] sm:$0xff]  ;;  %v12645_v6 = vld [vmem:[#allocation29_spill] sm:$0xff] }
 0x2b8   : > { %8811 = vmatprep.subr.mxu1 %v6545_v26  ;;  %8768 = vmatpush3.msra.mxu0 %v6529_v32  ;;  %v6561_v32 = vld [vmem:[%s12551_s3 + $0x460] sm:$0xff] }
 0x2b9   : > { %8812 = vmatpush3.msra.mxu1 %v6545_v26  ;;  %8712 = vmatmul.mubr.f32.gmra.mxu0 %v4065_v1  ;;  %v11582_v26 = vld [vmem:[#allocation2 + $0x200] sm:$0xff]  ;;  %v6560_v1 = vld [vmem:[%s12551_s3 + $0x458] sm:$0xff] }
 0x2ba   : > { %8756 = vmatmul.mubr.f32.gmra.mxu1 %v12638_v12  ;;  %8769 = vmatprep.subr.mxu0 %v6528_v5  ;;  %v12646_v12 = vld [vmem:[#allocation31_spill] sm:$0xff] }
 0x2bb   : > { %8813 = vmatprep.subr.mxu1 %v6544_v35  ;;  %8714 = vmatprep.mubr.f32.mxu0 %v4066_v20  ;;  %v11595_v20 = vld [vmem:[#allocation2 + $0x210] sm:$0xff] }
 0x2bc   : > { %8758 = vmatprep.mubr.f32.mxu1 %v4203_v50  ;;  %8770 = vmatpush3.msra.mxu0 %v6528_v5  ;;  %v4803_v5 = vld [vmem:[%s12551_s3 + $0x60] sm:$0xff]  ;;  %v12647_v50 = vld [vmem:[#allocation33_spill] sm:$0xff] }
 0x2bd   : > { %8814 = vmatpush3.msra.mxu1 %v6544_v35  ;;  %8771 = vmatprep.subr.mxu0 %v6527_v37  ;;  %v4802_v35 = vld [vmem:[%s12551_s3 + $0x58] sm:$0xff] }
 0x2be   : > { %8815 = vmatprep.subr.mxu1 %v6543_v28  ;;  %8772 = vmatpush3.msra.mxu0 %v6527_v37  ;;  %v6559_v37 = vld [vmem:[%s12551_s3 + $0x450] sm:$0xff] }
 0x2bf   : > { %8816 = vmatpush3.msra.mxu1 %v6543_v28  ;;  %8715 = vmatmul.mubr.f32.gmra.mxu0 %v4067_v24  ;;  %v11602_v28 = vld [vmem:[#allocation2 + $0x220] sm:$0xff]  ;;  %v11607_v24 = vpop.f32.mrf.mxu0 }
 0x2c0   : > { %8759 = vmatmul.mubr.f32.gmra.mxu1 %v12639_v25  ;;  %8773 = vmatprep.subr.mxu0 %v6526_v59 }
 0x2c1   : > { %8817 = vmatprep.subr.mxu1 %v6542_v48  ;;  %8774 = vmatpush3.msra.mxu0 %v6526_v59  ;;  %v4801_v59 = vld [vmem:[%s12551_s3 + $0x50] sm:$0xff]  ;;  %v11613_v25 = vpop.f32.mrf.mxu0 }
 0x2c2   : > { %8793 = vmatprep.mubr.f32.mxu0 %v12640_v58  ;;  %8818 = vmatpush3.msra.mxu1 %v6542_v48  ;;  %v6558_v48 = vld [vmem:[%s12551_s3 + $0x448] sm:$0xff]  ;;  %v6557_v58 = vld [vmem:[%s12551_s3 + $0x440] sm:$0xff] }
 0x2c3   : > { %8837 = vmatprep.mubr.f32.mxu1 %v12641_v46  ;;  %8775 = vmatprep.subr.mxu0 %v6525_v11  ;;  %v11624_v46 = vpop.f32.mrf.mxu1 }
 0x2c4   : > { %8819 = vmatprep.subr.mxu1 %v6541_v23  ;;  %8776 = vmatpush3.msra.mxu0 %v6525_v11  ;;  %v4800_v11 = vld [vmem:[%s12551_s3 + $0x48] sm:$0xff] }
 0x2c5   : > { %8820 = vmatpush3.msra.mxu1 %v6541_v23  ;;  %8777 = vmatprep.subr.mxu0 %v6524_v40  ;;  %v9300_v23 = vld [vmem:[#allocation2] sm:$0xff] }
 0x2c6   : > { %8821 = vmatprep.subr.mxu1 %v6540_v27  ;;  %8778 = vmatpush3.msra.mxu0 %v6524_v40  ;;  %v4799_v40 = vld [vmem:[%s12551_s3 + $0x40] sm:$0xff] }
 0x2c7   : > { %8822 = vmatpush3.msra.mxu1 %v6540_v27  ;;  %8779 = vmatprep.subr.mxu0 %v6523_v4  ;;  %v11626_v27 = vpop.f32.mrf.mxu0 }
 0x2c8   : > { %8823 = vmatprep.subr.mxu1 %v6539_v14  ;;  %8780 = vmatpush3.msra.mxu0 %v6523_v4  ;;  %v4783_v4 = vld [vmem:[#allocation2 + $0x1b0] sm:$0xff] }
 0x2c9   : > { %8824 = vmatpush3.msra.mxu1 %v6539_v14  ;;  %8781 = vmatprep.subr.mxu0 %v6522_v13  ;;  %v6556_v14 = vld [vmem:[%s12551_s3 + $0x438] sm:$0xff] }
 0x2ca   : > { %8825 = vmatprep.subr.mxu1 %v6538_v15  ;;  %8782 = vmatpush3.msra.mxu0 %v6522_v13  ;;  %v4798_v13 = vld [vmem:[%s12551_s3 + $0x38] sm:$0xff] }
 0x2cb   : > { %8826 = vmatpush3.msra.mxu1 %v6538_v15  ;;  %8783 = vmatprep.subr.mxu0 %v6521_v52  ;;  %v11635_v15 = vpop.f32.mrf.mxu1 }
 0x2cc   : > { %8827 = vmatprep.subr.mxu1 %v6537_v17  ;;  %8784 = vmatpush3.msra.mxu0 %v6521_v52  ;;  %v4797_v52 = vld [vmem:[%s12551_s3 + $0x30] sm:$0xff] }
 0x2cd   : > { %8828 = vmatpush3.msra.mxu1 %v6537_v17  ;;  %8785 = vmatprep.subr.mxu0 %v6520_v51  ;;  %v11643_v17 = vpop.f32.mrf.mxu0 }
 0x2ce   : > { %8829 = vmatprep.subr.mxu1 %v6536_v41  ;;  %8786 = vmatpush3.msra.mxu0 %v6520_v51  ;;  %v6554_v51 = vld [vmem:[%s12551_s3 + $0x428] sm:$0xff] }
 0x2cf   : > { %8830 = vmatpush3.msra.mxu1 %v6536_v41  ;;  %8787 = vmatprep.subr.mxu0 %v6519_v21  ;;  %v4796_v41 = vld [vmem:[%s12551_s3 + $0x28] sm:$0xff] }
 0x2d0   : > { %8831 = vmatprep.subr.mxu1 %v6535_v56  ;;  %8788 = vmatpush3.msra.mxu0 %v6519_v21  ;;  %v11651_v21 = vpop.f32.mrf.mxu1 }
 0x2d1   : > { %8832 = vmatpush3.msra.mxu1 %v6535_v56  ;;  %8789 = vmatprep.subr.mxu0 %v6518_v47  ;;  %v6553_v56 = vld [vmem:[%s12551_s3 + $0x420] sm:$0xff] }
 0x2d2   : > { %8833 = vmatprep.subr.mxu1 %v6534_v63  ;;  %8790 = vmatpush3.msra.mxu0 %v6518_v47  ;;  %v4795_v47 = vld [vmem:[%s12551_s3 + $0x20] sm:$0xff] }
 0x2d3   : > { %8834 = vmatpush3.msra.mxu1 %v6534_v63  ;;  %8791 = vmatprep.subr.mxu0 %v6517_v53  ;;  %v11659_v63 = vpop.f32.mrf.mxu0 }
 0x2d4   : > { %8835 = vmatprep.subr.mxu1 %v6533_v34  ;;  %8792 = vmatpush3.msra.mxu0 %v6517_v53  ;;  %v6552_v53 = vld [vmem:[%s12551_s3 + $0x418] sm:$0xff] }
 0x2d5   : > { %8836 = vmatpush3.msra.mxu1 %v6533_v34  ;;  %8794 = vmatmul.mubr.f32.vlgmr.msra.gmra.mxu0 %v12642_v36  ;;  %v4794_v34 = vld [vmem:[%s12551_s3 + $0x18] sm:$0xff]  ;;  %v4793_v36 = vld [vmem:[%s12551_s3 + $0x10] sm:$0xff] }
 0x2d6   : > { %8838 = vmatmul.mubr.f32.vlgmr.msra.gmra.mxu1 %v11555_v45  ;;  %8849 = vmatprep.subr.mxu0 %v6564_v22 }
 0x2d7   : > { %8893 = vmatprep.subr.mxu1 %v4806_v31  ;;  %8796 = vmatprep.mubr.f32.mxu0 %v12643_v16  ;;  %v6550_v16 = vld [vmem:[%s12551_s3 + $0x408] sm:$0xff] }
 0x2d8   : > { %8840 = vmatprep.mubr.f32.mxu1 %v11562_v54  ;;  %8850 = vmatpush3.msra.mxu0 %v6564_v22  ;;  %v11667_v22 = vpop.f32.mrf.mxu1 }
 0x2d9   : > { %8894 = vmatpush3.msra.mxu1 %v4806_v31  ;;  %8851 = vmatprep.subr.mxu0 %v6563_v49  ;;  %v6551_v31 = vld [vmem:[%s12551_s3 + $0x410] sm:$0xff] }
 0x2da   : > { %8895 = vmatprep.subr.mxu1 %v4805_v19  ;;  %8852 = vmatpush3.msra.mxu0 %v6563_v49  ;;  %v11675_v49 = vpop.f32.mrf.mxu0 }
 0x2db   : > { %8896 = vmatpush3.msra.mxu1 %v4805_v19  ;;  %8797 = vmatmul.mubr.f32.gmra.mxu0 %v12644_v29  ;;  %v4792_v19 = vld [vmem:[%s12551_s3 + $0x8] sm:$0xff]  ;;  %v4791_v29 = vld [vmem:[%s12551_s3] sm:$0xff] }
 0x2dc   : > { %8841 = vmatmul.mubr.f32.gmra.mxu1 %v11575_v57  ;;  %8853 = vmatprep.subr.mxu0 %v6562_v42 }
 0x2dd   : > { %8897 = vmatprep.subr.mxu1 %v4804_v62  ;;  %8799 = vmatprep.mubr.f32.mxu0 %v12645_v6  ;;  %v6582_v6 = vld [vmem:[%s12551_s3 + $0xf8] sm:$0xff] }
 0x2de   : > { %8843 = vmatprep.mubr.f32.mxu1 %v11582_v26  ;;  %8854 = vmatpush3.msra.mxu0 %v6562_v42  ;;  %v11683_v42 = vpop.f32.mrf.mxu1 }
 0x2df   : > { %8898 = vmatpush3.msra.mxu1 %v4804_v62  ;;  %8855 = vmatprep.subr.mxu0 %v6561_v32  ;;  %v6549_v62 = vld [vmem:[%s12551_s3 + $0x400] sm:$0xff] }
 0x2e0   : > { %8899 = vmatprep.subr.mxu1 %v4803_v5  ;;  %8856 = vmatpush3.msra.mxu0 %v6561_v32  ;;  %v11691_v32 = vpop.f32.mrf.mxu0 }
 0x2e1   : > { %8900 = vmatpush3.msra.mxu1 %v4803_v5  ;;  %8800 = vmatmul.mubr.f32.gmra.mxu0 %v12646_v12  ;;  %v11696_v5 = vpop.f32.mrf.mxu1 }
 0x2e2   : > { %8844 = vmatmul.mubr.f32.gmra.mxu1 %v11595_v20  ;;  %8857 = vmatprep.subr.mxu0 %v6560_v1  ;;  %v11704_v12 = vpop.f32.mrf.mxu0 }
 0x2e3   : > { %8901 = vmatprep.subr.mxu1 %v4802_v35  ;;  %8802 = vmatprep.mubr.f32.mxu0 %v12647_v50  ;;  %v6597_v50 = vld [vmem:[%s12551_s3 + $0x170] sm:$0xff] }
 0x2e4   : > { %8846 = vmatprep.mubr.f32.mxu1 %v11602_v28  ;;  %8858 = vmatpush3.msra.mxu0 %v6560_v1  ;;  %v6598_v1 = vld [vmem:[%s12551_s3 + $0x178] sm:$0xff] }
 0x2e5   : > { %8902 = vmatpush3.msra.mxu1 %v4802_v35  ;;  %8859 = vmatprep.subr.mxu0 %v6559_v37  ;;  %v11702_v35 = vld [vmem:[#allocation2 + $0x1c0] sm:$0xff] }
 0x2e6   : > { %8903 = vmatprep.subr.mxu1 %v4801_v59  ;;  %8860 = vmatpush3.msra.mxu0 %v6559_v37  ;;  %v6581_v37 = vld [vmem:[%s12551_s3 + $0xf0] sm:$0xff] }
 0x2e7   : > { %8904 = vmatpush3.msra.mxu1 %v4801_v59  ;;  %8803 = vmatmul.mubr.f32.gmra.mxu0 %v9300_v23  ;;  %v11714_v59 = vpop.f32.mrf.mxu1 }
 0x2e8   : > { %8847 = vmatmul.mubr.f32.gmra.mxu1 %v9300_v23  ;;  %8861 = vmatprep.subr.mxu0 %v6558_v48  ;;  %v6579_v23 = vld [vmem:[%s12551_s3 + $0xe0] sm:$0xff] }
 0x2e9   : > { %8905 = vmatprep.subr.mxu1 %v4800_v11  ;;  %8862 = vmatpush3.msra.mxu0 %v6558_v48  ;;  %v11720_v48 = vpop.f32.mrf.mxu0 }
 0x2ea   : > { %8881 = vmatprep.mubr.f32.mxu0 %v11248_v10  ;;  %8906 = vmatpush3.msra.mxu1 %v4800_v11  ;;  %v6555_v10 = vld [vmem:[%s12551_s3 + $0x430] sm:$0xff]  ;;  %v11726_v11 = vpop.f32.mrf.mxu1 }
 0x2eb   : > { %8925 = vmatprep.mubr.f32.mxu1 %v4783_v4  ;;  %8863 = vmatprep.subr.mxu0 %v6557_v58  ;;  %v6577_v4 = vld [vmem:[%s12551_s3 + $0xd0] sm:$0xff] }
 0x2ec   : > { %8907 = vmatprep.subr.mxu1 %v4799_v40  ;;  %8864 = vmatpush3.msra.mxu0 %v6557_v58  ;;  %v6595_v58 = vld [vmem:[%s12551_s3 + $0x160] sm:$0xff] }
 0x2ed   : > { %8908 = vmatpush3.msra.mxu1 %v4799_v40  ;;  %8865 = vmatprep.subr.mxu0 %v6556_v14 }
 0x2ee   : > { %8909 = vmatprep.subr.mxu1 %v4798_v13  ;;  %8866 = vmatpush3.msra.mxu0 %v6556_v14  ;;  %v6593_v14 = vld [vmem:[%s12551_s3 + $0x150] sm:$0xff] }
 0x2ef   : > { %8910 = vmatpush3.msra.mxu1 %v4798_v13  ;;  %8867 = vmatprep.subr.mxu0 %v6555_v10 }
 0x2f0   : > { %8911 = vmatprep.subr.mxu1 %v4797_v52  ;;  %8868 = vmatpush3.msra.mxu0 %v6555_v10 }
 0x2f1   : > { %8912 = vmatpush3.msra.mxu1 %v4797_v52  ;;  %8869 = vmatprep.subr.mxu0 %v6554_v51 }
 0x2f2   : > { %8913 = vmatprep.subr.mxu1 %v4796_v41  ;;  %8870 = vmatpush3.msra.mxu0 %v6554_v51  ;;  %v4920_v51 = vld [vmem:[#allocation2 + $0x121] sm:$0xff] }
 0x2f3   : > { %8914 = vmatpush3.msra.mxu1 %v4796_v41  ;;  %8871 = vmatprep.subr.mxu0 %v6553_v56  ;;  %v6591_v41 = vld [vmem:[%s12551_s3 + $0x140] sm:$0xff] }
 0x2f4   : > { %8915 = vmatprep.subr.mxu1 %v4795_v47  ;;  %8872 = vmatpush3.msra.mxu0 %v6553_v56 }
 0x2f5   : > { %8916 = vmatpush3.msra.mxu1 %v4795_v47  ;;  %8873 = vmatprep.subr.mxu0 %v6552_v53  ;;  %v5057_v47 = vld [vmem:[#allocation2 + $0x1b1] sm:$0xff] }
 0x2f6   : > { %8917 = vmatprep.subr.mxu1 %v4794_v34  ;;  %8874 = vmatpush3.msra.mxu0 %v6552_v53  ;;  %v6590_v53 = vld [vmem:[%s12551_s3 + $0x138] sm:$0xff] }
 0x2f7   : > { %8918 = vmatpush3.msra.mxu1 %v4794_v34  ;;  %8875 = vmatprep.subr.mxu0 %v6551_v31 }
 0x2f8   : > { %8919 = vmatprep.subr.mxu1 %v4793_v36  ;;  %8876 = vmatpush3.msra.mxu0 %v6551_v31  ;;  %v6573_v31 = vld [vmem:[%s12551_s3 + $0xb0] sm:$0xff] }
 0x2f9   : > { %8920 = vmatpush3.msra.mxu1 %v4793_v36  ;;  %8877 = vmatprep.subr.mxu0 %v6550_v16  ;;  %v11796_v36 = vld [vmem:[%s12552_s4] ss:$0 sm:$0xff] }
 0x2fa   : > { %8921 = vmatprep.subr.mxu1 %v4792_v19  ;;  %8878 = vmatpush3.msra.mxu0 %v6550_v16  ;;  %v12648_v16 = vld [vmem:[#allocation28_spill] sm:$0xff] }
 0x2fb   : > { %8922 = vmatpush3.msra.mxu1 %v4792_v19  ;;  %8879 = vmatprep.subr.mxu0 %v6549_v62  ;;  %v2372_v19 = vadd.f32 %v11796_v36, %v12648_v16 }
 0x2fc   : > { %8923 = vmatprep.subr.mxu1 %v4791_v29  ;;  %8880 = vmatpush3.msra.mxu0 %v6549_v62  ;;  %v6589_v62 = vld [vmem:[%s12551_s3 + $0x130] sm:$0xff] }
 0x2fd   : > { %8924 = vmatpush3.msra.mxu1 %v4791_v29  ;;  %8882 = vmatmul.mubr.f32.vlgmr.msra.gmra.mxu0 %v11261_v55  ;;  %v6580_v55 = vld [vmem:[%s12551_s3 + $0xe8] sm:$0xff] }
 0x2fe   : > { %8926 = vmatmul.mubr.f32.vlgmr.msra.gmra.mxu1 %v11702_v35  ;;  %8937 = vmatprep.subr.mxu0 %v6582_v6 }
 0x2ff   : > { %8981 = vmatprep.subr.mxu1 %v6598_v1  ;;  %8884 = vmatprep.mubr.f32.mxu0 %v11282_v61  ;;  %v6596_v61 = vld [vmem:[%s12551_s3 + $0x168] sm:$0xff] }
 0x300   : > { %8928 = vmatprep.mubr.f32.mxu1 %v11555_v45  ;;  %8938 = vmatpush3.msra.mxu0 %v6582_v6  ;;  %v11728_v45 = vpop.f32.mrf.mxu0  ;;  %v6572_v6 = vld [vmem:[%s12551_s3 + $0xa8] sm:$0xff] }
 0x301   : > { %8982 = vmatpush3.msra.mxu1 %v6598_v1  ;;  %8939 = vmatprep.subr.mxu0 %v6581_v37  ;;  %v2509_v1 = vadd.f32 %v11228_v43, %v2372_v19  ;;  %v6587_v43 = vld [vmem:[%s12551_s3 + $0x120] sm:$0xff] }
 0x302   : > { %8983 = vmatprep.subr.mxu1 %v6597_v50  ;;  %8940 = vmatpush3.msra.mxu0 %v6581_v37  ;;  %v11744_v40 = vpop.f32.mrf.mxu0  ;;  %v6588_v37 = vld [vmem:[%s12551_s3 + $0x128] sm:$0xff] }
 0x303   : > { %8984 = vmatpush3.msra.mxu1 %v6597_v50  ;;  %8885 = vmatmul.mubr.f32.gmra.mxu0 %v11298_v8  ;;  %v6578_v8 = vld [vmem:[%s12551_s3 + $0xd8] sm:$0xff] }
 0x304   : > { %8929 = vmatmul.mubr.f32.gmra.mxu1 %v11562_v54  ;;  %8941 = vmatprep.subr.mxu0 %v6580_v55  ;;  %v11742_v54 = vpop.f32.mrf.mxu1  ;;  %v11760_v13 = vpop.f32.mrf.mxu0 }
 0x305   : > { %8985 = vmatprep.subr.mxu1 %v6596_v61  ;;  %8887 = vmatprep.mubr.f32.mxu0 %v11325_v2  ;;  %v6594_v2 = vld [vmem:[%s12551_s3 + $0x158] sm:$0xff] }
 0x306   : > { %8931 = vmatprep.mubr.f32.mxu1 %v11575_v57  ;;  %8942 = vmatpush3.msra.mxu0 %v6580_v55  ;;  %v11750_v57 = vpop.f32.mrf.mxu1  ;;  %v11771_v52 = vpop.f32.mrf.mxu0  ;;  %v6571_v55 = vld [vmem:[%s12551_s3 + $0xa0] sm:$0xff] }
 0x307   : > { %8986 = vmatpush3.msra.mxu1 %v6596_v61  ;;  %8943 = vmatprep.subr.mxu0 %v6579_v23 }
 0x308   : > { %8987 = vmatprep.subr.mxu1 %v6595_v58  ;;  %8944 = vmatpush3.msra.mxu0 %v6579_v23  ;;  %v11766_v10 = vpop.f32.mrf.mxu1  ;;  %v11788_v34 = vpop.f32.mrf.mxu0  ;;  %v6570_v23 = vld [vmem:[%s12551_s3 + $0x98] sm:$0xff] }
 0x309   : > { %8988 = vmatpush3.msra.mxu1 %v6595_v58  ;;  %8888 = vmatmul.mubr.f32.gmra.mxu0 %v11334_v60  ;;  %v4617_v60 = vld [vmem:[#allocation2 + $0x1a1] sm:$0xff]  ;;  %v2646_v58 = vadd.f32 %v11234_v30, %v2509_v1  ;;  %v6585_v30 = vld [vmem:[%s12551_s3 + $0x110] sm:$0xff] }
 0x30a   : > { %8932 = vmatmul.mubr.f32.gmra.mxu1 %v11582_v26  ;;  %8945 = vmatprep.subr.mxu0 %v6578_v8  ;;  %v6576_v26 = vld [vmem:[%s12551_s3 + $0xc8] sm:$0xff]  ;;  %v11780_v56 = vpop.f32.mrf.mxu1  ;;  %v11812_v50 = vpop.f32.mrf.mxu0 }
 0x30b   : > { %8989 = vmatprep.subr.mxu1 %v6594_v2  ;;  %8890 = vmatprep.mubr.f32.mxu0 %v11354_v3  ;;  %v6592_v3 = vld [vmem:[%s12551_s3 + $0x148] sm:$0xff] }
 0x30c   : > { %8934 = vmatprep.mubr.f32.mxu1 %v11595_v20  ;;  %8946 = vmatpush3.msra.mxu0 %v6578_v8  ;;  %v6575_v20 = vld [vmem:[%s12551_s3 + $0xc0] sm:$0xff]  ;;  %v11803_v29 = vpop.f32.mrf.mxu1  ;;  %v6586_v8 = vld [vmem:[%s12551_s3 + $0x118] sm:$0xff] }
 0x30d   : > { %8990 = vmatpush3.msra.mxu1 %v6594_v2  ;;  %8947 = vmatprep.subr.mxu0 %v6577_v4  ;;  %v11829_v2 = vpop.f32.mrf.mxu0 }
 0x30e   : > { %8991 = vmatprep.subr.mxu1 %v6593_v14  ;;  %8948 = vmatpush3.msra.mxu0 %v6577_v4  ;;  %v11820_v61 = vpop.f32.mrf.mxu1  ;;  %v6569_v4 = vld [vmem:[%s12551_s3 + $0x90] sm:$0xff] }
 0x30f   : > { %8992 = vmatpush3.msra.mxu1 %v6593_v14  ;;  %8891 = vmatmul.mubr.f32.gmra.mxu0 %v4617_v60  ;;  %v2783_v14 = vadd.f32 %v11626_v27, %v2646_v58  ;;  %v12649_v60 = vld [vmem:[#allocation25_spill] sm:$0xff]  ;;  %v6584_v27 = vld [vmem:[%s12551_s3 + $0x108] sm:$0xff] }
 0x310   : > { %8935 = vmatmul.mubr.f32.gmra.mxu1 %v11602_v28  ;;  %8949 = vmatprep.subr.mxu0 %v6576_v26  ;;  %v6574_v28 = vld [vmem:[%s12551_s3 + $0xb8] sm:$0xff] }
 0x311   : > { %8993 = vmatprep.subr.mxu1 %v6592_v3  ;;  %8950 = vmatpush3.msra.mxu0 %v6576_v26  ;;  %v2373_v26 = vadd.f32 %v11796_v36, %v12649_v60 }
 0x312   : > { %8969 = vmatprep.mubr.f32.mxu0 %v4920_v51  ;;  %8994 = vmatpush3.msra.mxu1 %v6592_v3  ;;  %v11840_v3 = vpop.f32.mrf.mxu1  ;;  %v12650_v51 = vld [vmem:[#allocation40_spill] sm:$0xff] }
 0x313   : > { %9013 = vmatprep.mubr.f32.mxu1 %v5057_v47  ;;  %8951 = vmatprep.subr.mxu0 %v6575_v20  ;;  %v11849_v47 = vpop.f32.mrf.mxu0 }
 0x314   : > { %8995 = vmatprep.subr.mxu1 %v6591_v41  ;;  %8952 = vmatpush3.msra.mxu0 %v6575_v20  ;;  %v6568_v20 = vld [vmem:[%s12551_s3 + $0x88] sm:$0xff]  ;;  %v11858_v16 = vpop.f32.mrf.mxu1 }
 0x315   : > { %8996 = vmatpush3.msra.mxu1 %v6591_v41  ;;  %8953 = vmatprep.subr.mxu0 %v6574_v28  ;;  %v2510_v41 = vadd.f32 %v12650_v51, %v2373_v26  ;;  %v11860_v19 = vpop.f32.mrf.mxu0  ;;  %v12652_v26 = vld [vmem:[#allocation30_spill] sm:$0xff] }
 0x316   : > { %8997 = vmatprep.subr.mxu1 %v6590_v53  ;;  %8954 = vmatpush3.msra.mxu0 %v6574_v28  ;;  %v6567_v28 = vld [vmem:[%s12551_s3 + $0x80] sm:$0xff] }
 0x317   : > { %8998 = vmatpush3.msra.mxu1 %v6590_v53  ;;  %8955 = vmatprep.subr.mxu0 %v6573_v31  ;;  %v2920_v53 = vadd.f32 %v11651_v21, %v2783_v14  ;;  %v6614_v21 = vld [vmem:[%s12551_s3 + $0x1f8] sm:$0xff]  ;;  %v6613_v14 = vld [vmem:[%s12551_s3 + $0x1f0] sm:$0xff] }
 0x318   : > { %8999 = vmatprep.subr.mxu1 %v6589_v62  ;;  %8956 = vmatpush3.msra.mxu0 %v6573_v31  ;;  %v6583_v31 = vld [vmem:[%s12551_s3 + $0x100] sm:$0xff] }
 0x319   : > { %9000 = vmatpush3.msra.mxu1 %v6589_v62  ;;  %8957 = vmatprep.subr.mxu0 %v6572_v6  ;;  %v3057_v62 = vadd.f32 %v11744_v40, %v2920_v53  ;;  %v11875_v40 = vld [vmem:[#allocation2 + $0x1c1] sm:$0xff] }
 0x31a   : > { %9001 = vmatprep.subr.mxu1 %v6588_v37  ;;  %8958 = vmatpush3.msra.mxu0 %v6572_v6  ;;  %v12651_v6 = vld [vmem:[#allocation32_spill] sm:$0xff] }
 0x31b   : > { %9002 = vmatpush3.msra.mxu1 %v6588_v37  ;;  %8959 = vmatprep.subr.mxu0 %v6571_v55  ;;  %v2374_v1 = vadd.f32 %v11796_v36, %v12651_v6  ;;  %v2647_v37 = vadd.f32 %v11222_v0, %v2510_v41  ;;  %v11882_v0 = vld [vmem:[#allocation2 + $0x141] sm:$0xff] }
 0x31c   : > { %9003 = vmatprep.subr.mxu1 %v6587_v43  ;;  %8960 = vmatpush3.msra.mxu0 %v6571_v55  ;;  %v11869_v55 = vld [vmem:[#allocation2 + $0x131] sm:$0xff]  ;;  %v6628_v53 = vld [vmem:[%s12551_s3 + $0x268] sm:$0xff] }
 0x31d   : > { %9004 = vmatpush3.msra.mxu1 %v6587_v43  ;;  %8961 = vmatprep.subr.mxu0 %v6570_v23  ;;  %v6630_v43 = vld [vmem:[%s12551_s3 + $0x278] sm:$0xff]  ;;  %v2784_v58 = vadd.f32 %v11613_v25, %v2647_v37  ;;  %v6629_v25 = vld [vmem:[%s12551_s3 + $0x270] sm:$0xff]  ;;  %v6611_v37 = vld [vmem:[%s12551_s3 + $0x1e0] sm:$0xff] }
 0x31e   : > { %9005 = vmatprep.subr.mxu1 %v6586_v8  ;;  %8962 = vmatpush3.msra.mxu0 %v6570_v23  ;;  %v2511_v23 = vadd.f32 %v11257_v33, %v2374_v1  ;;  %v11889_v33 = vld [vmem:[#allocation2 + $0x1d1] sm:$0xff]  ;;  %v11916_v1 = vld [vmem:[#allocation2 + $0x161] sm:$0xff] }
 0x31f   : > { %9006 = vmatpush3.msra.mxu1 %v6586_v8  ;;  %8963 = vmatprep.subr.mxu0 %v6569_v4  ;;  %v11879_v8 = vpop.f32.mrf.mxu1  ;;  %v2921_v41 = vadd.f32 %v11635_v15, %v2784_v58  ;;  %v11924_v58 = vld [vmem:[#allocation2 + $0x1f1] sm:$0xff] }
 0x320   : > { %9007 = vmatprep.subr.mxu1 %v6585_v30  ;;  %8964 = vmatpush3.msra.mxu0 %v6569_v4  ;;  %v3292_v4 = vpop.f32.mrf.mxu0  ;;  %v2648_v51 = vadd.f32 %v11266_v39, %v2511_v23 }
 0x321   : > { %9008 = vmatpush3.msra.mxu1 %v6585_v30  ;;  %8965 = vmatprep.subr.mxu0 %v6568_v20  ;;  %v3194_v30 = vadd.f32 %v11766_v10, %v3057_v62  ;;  %v11894_v60 = vpop.f32.mrf.mxu1  ;;  %v6612_v10 = vld [vmem:[%s12551_s3 + $0x1e8] sm:$0xff]  ;;  %v3058_v39 = vadd.f32 %v11728_v45, %v2921_v41 }
 0x322   : > { %9009 = vmatprep.subr.mxu1 %v6584_v27  ;;  %8966 = vmatpush3.msra.mxu0 %v6568_v20  ;;  %v2375_v20 = vadd.f32 %v11796_v36, %v12652_v26  ;;  %v2785_v6 = vadd.f32 %v11659_v63, %v2648_v51  ;;  %v6627_v63 = vld [vmem:[%s12551_s3 + $0x260] sm:$0xff]  ;;  %v11943_v51 = vld [vmem:[#allocation2 + $0x171] sm:$0xff] }
 0x323   : > { %9010 = vmatpush3.msra.mxu1 %v6584_v27  ;;  %8967 = vmatprep.subr.mxu0 %v6567_v28  ;;  %v3331_v27 = vadd.f32 %v3292_v4, %v3194_v30  ;;  %v3429_v15 = vpop.f32.mrf.mxu1  ;;  %v12655_v4 = vld [vmem:[#allocation42_spill] sm:$0xff]  ;;  %v11945_v41 = vld [vmem:[#allocation2 + $0x201] sm:$0xff] }
 0x324   : > { %9011 = vmatprep.subr.mxu1 %v6583_v31  ;;  %8968 = vmatpush3.msra.mxu0 %v6567_v28  ;;  %v11904_v28 = vld [vmem:[#allocation2 + $0x151] sm:$0xff]  ;;  %v2922_v26 = vadd.f32 %v11683_v42, %v2785_v6  ;;  %v12656_v42 = vld [vmem:[#allocation35_spill] sm:$0xff] }
 0x325   : > { %9012 = vmatpush3.msra.mxu1 %v6583_v31  ;;  %8970 = vmatmul.mubr.f32.vlgmr.msra.gmra.mxu0 %v11869_v55  ;;  %v12653_v31 = vld [vmem:[#allocation41_spill] sm:$0xff]  ;;  %v3468_v45 = vadd.f32 %v3429_v15, %v3331_v27  ;;  %v6610_v27 = vld [vmem:[%s12551_s3 + $0x1d8] sm:$0xff] }
 0x326   : > { %9014 = vmatmul.mubr.f32.vlgmr.msra.gmra.mxu1 %v11875_v40  ;;  %9025 = vmatprep.subr.mxu0 %v6614_v21  ;;  %v2512_v62 = vadd.f32 %v12653_v31, %v2375_v20  ;;  %v3195_v20 = vadd.f32 %v11750_v57, %v3058_v39  ;;  %v2377_v57 = vadd.f32 %v11796_v36, %v12656_v42  ;;  %v11956_v39 = vld [vmem:[#allocation2 + $0x211] sm:$0xff] }
 0x327   : > { %9069 = vmatprep.subr.mxu1 %v6630_v43  ;;  %8972 = vmatprep.mubr.f32.mxu0 %v11882_v0  ;;  %v6609_v15 = vld [vmem:[%s12551_s3 + $0x1d0] sm:$0xff] }
 0x328   : > { %9016 = vmatprep.mubr.f32.mxu1 %v11889_v33  ;;  %9026 = vmatpush3.msra.mxu0 %v6614_v21  ;;  %v11911_v21 = vld [vmem:[#allocation2 + $0x1e1] sm:$0xff]  ;;  %v3332_v31 = vadd.f32 %v11860_v19, %v3195_v20  ;;  %v2514_v19 = vadd.f32 %v11280_v38, %v2377_v57  ;;  %v5331_v57 = vld [vmem:[#allocation2 + $0x11] sm:$0xff] }
 0x329   : > { %9070 = vmatpush3.msra.mxu1 %v6630_v43  ;;  %9027 = vmatprep.subr.mxu0 %v6613_v14  ;;  %v12654_v43 = vld [vmem:[#allocation37_spill] sm:$0xff]  ;;  %v6608_v38 = vld [vmem:[%s12551_s3 + $0x1c8] sm:$0xff]  ;;  %v6607_v20 = vld [vmem:[%s12551_s3 + $0x1c0] sm:$0xff] }
 0x32a   : > { %9071 = vmatprep.subr.mxu1 %v6629_v25  ;;  %9028 = vmatpush3.msra.mxu0 %v6613_v14  ;;  %v2376_v23 = vadd.f32 %v11796_v36, %v12654_v43  ;;  %v2649_v14 = vadd.f32 %v12655_v4, %v2512_v62  ;;  %v11953_v62 = vld [vmem:[#allocation2 + $0x181] sm:$0xff] }
 0x32b   : > { %9072 = vmatpush3.msra.mxu1 %v6629_v25  ;;  %8973 = vmatmul.mubr.f32.gmra.mxu0 %v11904_v28  ;;  %v11932_v25 = vpop.f32.mrf.mxu0  ;;  %v12657_v43 = vld [vmem:[#allocation39_spill] sm:$0xff] }
 0x32c   : > { %9017 = vmatmul.mubr.f32.gmra.mxu1 %v11911_v21  ;;  %9029 = vmatprep.subr.mxu0 %v6612_v10  ;;  %v2513_v30 = vadd.f32 %v11294_v7, %v2376_v23  ;;  %v2786_v7 = vadd.f32 %v11643_v17, %v2649_v14  ;;  %v2378_v23 = vadd.f32 %v11796_v36, %v12657_v43  ;;  %v6624_v36 = vld [vmem:[%s12551_s3 + $0x248] sm:$0xff] }
 0x32d   : > { %9073 = vmatprep.subr.mxu1 %v6628_v53  ;;  %8975 = vmatprep.mubr.f32.mxu0 %v11916_v1  ;;  %v3302_v6 = vpop.f32.mrf.mxu0 }
 0x32e   : > { %9019 = vmatprep.mubr.f32.mxu1 %v11924_v58  ;;  %9030 = vmatpush3.msra.mxu0 %v6612_v10  ;;  %v6626_v10 = vld [vmem:[%s12551_s3 + $0x258] sm:$0xff]  ;;  %v2650_v17 = vadd.f32 %v11308_v44, %v2513_v30  ;;  %v2923_v44 = vadd.f32 %v11667_v22, %v2786_v7  ;;  %v8490_v22 = vpop.f32.mrf.mxu1 }
 0x32f   : > { %9074 = vmatpush3.msra.mxu1 %v6628_v53  ;;  %9031 = vmatprep.subr.mxu0 %v6611_v37  ;;  %v3059_v53 = vadd.f32 %v11771_v52, %v2922_v26  ;;  %v6625_v52 = vld [vmem:[%s12551_s3 + $0x250] sm:$0xff]  ;;  %v11977_v14 = vpop.f32.mrf.mxu0 }
 0x330   : > { %9075 = vmatprep.subr.mxu1 %v6627_v63  ;;  %9032 = vmatpush3.msra.mxu0 %v6611_v37  ;;  %v2787_v37 = vadd.f32 %v11691_v32, %v2650_v17  ;;  %v3060_v4 = vadd.f32 %v11760_v13, %v2923_v44  ;;  %v11979_v32 = vld [vmem:[#allocation2 + $0x191] sm:$0xff]  ;;  %v11987_v13 = vld [vmem:[#allocation2 + $0x221] sm:$0xff]  ;;  %v3439_v7 = vpop.f32.mrf.mxu1 }
 0x331   : > { %9076 = vmatpush3.msra.mxu1 %v6627_v63  ;;  %3476 = vxpose.xlu1.b32.start [1/8] (short) (narrow) %v3468_v45, 8  ;;  %v3196_v63 = vadd.f32 %v11803_v29, %v3059_v53  ;;  %v3469_v45 = vadd.f32 %v11894_v60, %v3332_v31  ;;  %v2651_v29 = vadd.f32 %v11287_v9, %v2514_v19  ;;  %v5194_v9 = vld [vmem:[#allocation2 + $0xa0] sm:$0xff]  ;;  %v3312_v42 = vpop.f32.mrf.mxu0 }
 0x332   : > { %8976 = vmatmul.mubr.f32.gmra.mxu0 %v11943_v51  ;;  %9020 = vmatmul.mubr.f32.gmra.mxu1 %v11945_v41  ;;  %v2515_v60 = vadd.f32 %v11607_v24, %v2378_v23  ;;  %v2924_v26 = vadd.f32 %v11714_v59, %v2787_v37  ;;  %v6623_v24 = vld [vmem:[%s12551_s3 + $0x240] sm:$0xff] }
 0x333   : > { %9033 = vmatprep.subr.mxu0 %v6610_v27  ;;  %9077 = vmatprep.subr.mxu1 %v6626_v10  ;;  %v3333_v30 = vadd.f32 %v3302_v6, %v3196_v63  ;;  %v12017_v19 = vpop.f32.mrf.mxu0  ;;  %v6619_v63 = vld [vmem:[%s12551_s3 + $0x220] sm:$0xff] }
 0x334   : > { %8978 = vmatprep.mubr.f32.mxu0 %v11953_v62  ;;  %9022 = vmatprep.mubr.f32.mxu1 %v11956_v39  ;;  %v3061_v59 = vadd.f32 %v11812_v50, %v2924_v26  ;;  %v2652_v53 = vadd.f32 %v11624_v46, %v2515_v60  ;;  %v6605_v46 = vld [vmem:[%s12551_s3 + $0x1b0] sm:$0xff] }
 0x335   : > { %9034 = vmatpush3.msra.mxu0 %v6610_v27  ;;  %9078 = vmatpush3.msra.mxu1 %v6626_v10  ;;  %v2788_v27 = vadd.f32 %v11675_v49, %v2651_v29  ;;  %v3197_v10 = vadd.f32 %v11780_v56, %v3060_v4  ;;  %v3470_v31 = vadd.f32 %v3439_v7, %v3333_v30  ;;  %v6606_v49 = vld [vmem:[%s12551_s3 + $0x1b8] sm:$0xff]  ;;  %v3322_v23 = vpop.f32.mrf.mxu0 }
 0x336   : > { %9035 = vmatprep.subr.mxu0 %v6609_v15  ;;  %9079 = vmatprep.subr.mxu1 %v6625_v52  ;;  %v6622_v56 = vld [vmem:[%s12551_s3 + $0x238] sm:$0xff]  ;;  %v2789_v6 = vadd.f32 %v11720_v48, %v2652_v53  ;;  %v6604_v48 = vld [vmem:[%s12551_s3 + $0x1a8] sm:$0xff] }
 0x337   : > { %9036 = vmatpush3.msra.mxu0 %v6609_v15  ;;  %9080 = vmatpush3.msra.mxu1 %v6625_v52  ;;  %v3334_v50 = vadd.f32 %v11932_v25, %v3197_v10  ;;  %v2925_v17 = vadd.f32 %v11696_v5, %v2788_v27  ;;  %v6621_v15 = vld [vmem:[%s12551_s3 + $0x230] sm:$0xff]  ;;  %v3198_v52 = vadd.f32 %v11840_v3, %v3061_v59  ;;  %v8493_v25 = vpop.f32.mrf.mxu1  ;;  %v6620_v3 = vld [vmem:[%s12551_s3 + $0x228] sm:$0xff]  ;;  %v6618_v29 = vld [vmem:[%s12551_s3 + $0x218] sm:$0xff] }
 0x338   : > { %3477 = vxpose.xlu1.b32.cont [2/8] (short) (narrow) %v3469_v45, 8  ;;  %8979 = vmatmul.mubr.f32.gmra.mxu0 %v11979_v32  ;;  %v2926_v43 = vadd.f32 %v11742_v54, %v2789_v6  ;;  %v2790_v54 = vadd.f32 %v11704_v12, %v11330_v18  ;;  %v6601_v18 = vld [vmem:[%s12551_s3 + $0x190] sm:$0xff]  ;;  %v6615_v10 = vld [vmem:[%s12551_s3 + $0x200] sm:$0xff]  ;;  %v6662_v53 = vld [vmem:[%s12551_s3 + $0x378] sm:$0xff] }
 0x339   : > { %9023 = vmatmul.mubr.f32.gmra.mxu1 %v11987_v13  ;;  %9037 = vmatprep.subr.mxu0 %v6608_v38  ;;  %v3062_v5 = vadd.f32 %v11788_v34, %v2925_v17  ;;  %v3471_v44 = vadd.f32 %v8490_v22, %v3334_v50  ;;  %v3335_v37 = vadd.f32 %v3312_v42, %v3198_v52  ;;  %v6603_v34 = vld [vmem:[%s12551_s3 + $0x1a0] sm:$0xff]  ;;  %v3449_v4 = vpop.f32.mrf.mxu1  ;;  %v6617_v12 = vld [vmem:[%s12551_s3 + $0x210] sm:$0xff]  ;;  %v6644_v52 = vld [vmem:[%s12551_s3 + $0x2e8] sm:$0xff] }
 0x33a   : > { %9081 = vmatprep.subr.mxu1 %v6624_v36  ;;  %9038 = vmatpush3.msra.mxu0 %v6608_v38  ;;  %v3063_v38 = vadd.f32 %v11849_v47, %v2926_v43  ;;  %v2927_v30 = vadd.f32 %v11726_v11, %v2790_v54  ;;  %v6599_v11 = vld [vmem:[%s12551_s3 + $0x180] sm:$0xff]  ;;  %v5333_v17 = vld [vmem:[#allocation2 + $0x31] sm:$0xff] }
 0x33b   : > { %9057 = vmatprep.mubr.f32.mxu0 %v5194_v9  ;;  %9082 = vmatpush3.msra.mxu1 %v6624_v36  ;;  %v3199_v45 = vadd.f32 %v11820_v61, %v3062_v5  ;;  %v3472_v22 = vadd.f32 %v3449_v4, %v3335_v37  ;;  %v6602_v36 = vld [vmem:[%s12551_s3 + $0x198] sm:$0xff]  ;;  %v12043_v61 = vpop.f32.mrf.mxu0  ;;  %v8496_v26 = vpop.f32.mrf.mxu1  ;;  %v5196_v50 = vld [vmem:[#allocation2 + $0xc0] sm:$0xff]  ;;  %v6645_v6 = vld [vmem:[%s12551_s3 + $0x2f0] sm:$0xff] }
 0x33c   : > { %9101 = vmatprep.mubr.f32.mxu1 %v5331_v57  ;;  %9039 = vmatprep.subr.mxu0 %v6607_v20  ;;  %v3200_v60 = vadd.f32 %v11879_v8, %v3063_v38  ;;  %v6616_v8 = vld [vmem:[%s12551_s3 + $0x208] sm:$0xff]  ;;  %v6646_v57 = vld [vmem:[%s12551_s3 + $0x2f8] sm:$0xff]  ;;  %v5197_v5 = vld [vmem:[#allocation2 + $0xd0] sm:$0xff] }
 0x33d   : > { %9083 = vmatprep.subr.mxu1 %v6623_v24  ;;  %9040 = vmatpush3.msra.mxu0 %v6607_v20  ;;  %v3336_v47 = vadd.f32 %v11977_v14, %v3199_v45  ;;  %v6600_v14 = vld [vmem:[%s12551_s3 + $0x188] sm:$0xff]  ;;  %v12057_v20 = vpop.f32.mrf.mxu0  ;;  %v3459_v59 = vpop.f32.mrf.mxu1  ;;  %v6643_v37 = vld [vmem:[%s12551_s3 + $0x2e0] sm:$0xff]  ;;  %v6658_v45 = vld [vmem:[%s12551_s3 + $0x358] sm:$0xff] }
 0x33e   : > { %9084 = vmatpush3.msra.mxu1 %v6623_v24  ;;  %3478 = vxpose.xlu1.b32.cont [3/8] (short) (narrow) %v3470_v31, 8  ;;  %v3337_v9 = vadd.f32 %v3322_v23, %v3200_v60  ;;  %v3064_v24 = vadd.f32 %v11829_v2, %v2927_v30  ;;  %v5195_v31 = vld [vmem:[#allocation2 + $0xb0] sm:$0xff]  ;;  %v6659_v43 = vld [vmem:[%s12551_s3 + $0x360] sm:$0xff]  ;;  %v6642_v23 = vld [vmem:[%s12551_s3 + $0x2d8] sm:$0xff] }
 0x33f   : > { %9041 = vmatprep.subr.mxu0 %v6606_v49  ;;  %9085 = vmatprep.subr.mxu1 %v6622_v56  ;;  %v3473_v27 = vadd.f32 %v8493_v25, %v3336_v47  ;;  %v12069_v7 = vpop.f32.mrf.mxu0  ;;  %v6660_v25 = vld [vmem:[%s12551_s3 + $0x368] sm:$0xff]  ;;  %v5200_v54 = vld [vmem:[#allocation2 + $0x100] sm:$0xff]  ;;  %v6657_v47 = vld [vmem:[%s12551_s3 + $0x350] sm:$0xff] }
 0x340   : > { %9042 = vmatpush3.msra.mxu0 %v6606_v49  ;;  %9086 = vmatpush3.msra.mxu1 %v6622_v56  ;;  %v3474_v42 = vadd.f32 %v3459_v59, %v3337_v9  ;;  %v3201_v2 = vadd.f32 %v11858_v16, %v3064_v24  ;;  %v5332_v49 = vld [vmem:[#allocation2 + $0x21] sm:$0xff]  ;;  %v5201_v60 = vld [vmem:[#allocation2 + $0x110] sm:$0xff]  ;;  %v6654_v59 = vld [vmem:[%s12551_s3 + $0x338] sm:$0xff] }
 0x341   : > { %9043 = vmatprep.subr.mxu0 %v6605_v46  ;;  %9087 = vmatprep.subr.mxu1 %v6621_v15  ;;  %v12079_v16 = vpop.f32.mrf.mxu0  ;;  %v5336_v38 = vld [vmem:[#allocation2 + $0x61] sm:$0xff] }
 0x342   : > { %9044 = vmatpush3.msra.mxu0 %v6605_v46  ;;  %9088 = vmatpush3.msra.mxu1 %v6621_v15  ;;  %v3338_v56 = vadd.f32 %v12017_v19, %v3201_v2  ;;  %v6661_v46 = vld [vmem:[%s12551_s3 + $0x370] sm:$0xff]  ;;  %v6656_v30 = vld [vmem:[%s12551_s3 + $0x348] sm:$0xff]  ;;  %v6639_v9 = vld [vmem:[%s12551_s3 + $0x2c0] sm:$0xff] }
 0x343   : > { %3479 = vxpose.xlu1.b32.cont [4/8] (short) (narrow) %v3471_v44, 8  ;;  %9045 = vmatprep.subr.mxu0 %v6604_v48  ;;  %v12090_v19 = vpop.f32.mrf.mxu0  ;;  %v5198_v44 = vld [vmem:[#allocation2 + $0xe0] sm:$0xff]  ;;  %v6637_v2 = vld [vmem:[%s12551_s3 + $0x2b0] sm:$0xff] }
 0x344   : > { %9089 = vmatprep.subr.mxu1 %v6620_v3  ;;  %9046 = vmatpush3.msra.mxu0 %v6604_v48  ;;  %v3475_v15 = vadd.f32 %v8496_v26, %v3338_v56  ;;  %v5334_v48 = vld [vmem:[#allocation2 + $0x41] sm:$0xff] }
 0x345   : > { %9090 = vmatpush3.msra.mxu1 %v6620_v3  ;;  %9047 = vmatprep.subr.mxu0 %v6603_v34  ;;  %v5335_v3 = vld [vmem:[#allocation2 + $0x51] sm:$0xff]  ;;  %v6655_v24 = vld [vmem:[%s12551_s3 + $0x340] sm:$0xff] }
 0x346   : > { %9091 = vmatprep.subr.mxu1 %v6619_v63  ;;  %9048 = vmatpush3.msra.mxu0 %v6603_v34  ;;  %v12101_v34 = vpop.f32.mrf.mxu0  ;;  %v6635_v56 = vld [vmem:[%s12551_s3 + $0x2a0] sm:$0xff] }
 0x347   : > { %9092 = vmatpush3.msra.mxu1 %v6619_v63  ;;  %3480 = vxpose.xlu1.b32.cont [5/8] (short) (narrow) %v3472_v22, 8  ;;  %v5199_v63 = vld [vmem:[#allocation2 + $0xf0] sm:$0xff] }
 0x348   : > { %9049 = vmatprep.subr.mxu0 %v6602_v36  ;;  %9093 = vmatprep.subr.mxu1 %v6618_v29  ;;  %v12109_v4 = vpop.f32.mrf.mxu0  ;;  %v6641_v22 = vld [vmem:[%s12551_s3 + $0x2d0] sm:$0xff] }
 0x349   : > { %9050 = vmatpush3.msra.mxu0 %v6602_v36  ;;  %9094 = vmatpush3.msra.mxu1 %v6618_v29  ;;  %v12114_v36 = vpop.f32.mrf.mxu1  ;;  %v5337_v29 = vld [vmem:[#allocation2 + $0x71] sm:$0xff] }
 0x34a   : > { %9051 = vmatprep.subr.mxu0 %v6601_v18  ;;  %9095 = vmatprep.subr.mxu1 %v6617_v12 }
 0x34b   : > { %9052 = vmatpush3.msra.mxu0 %v6601_v18  ;;  %9096 = vmatpush3.msra.mxu1 %v6617_v12  ;;  %v6640_v18 = vld [vmem:[%s12551_s3 + $0x2c8] sm:$0xff]  ;;  %v12122_v12 = vpop.f32.mrf.mxu0  ;;  %v12127_v26 = vpop.f32.mrf.mxu1 }
 0x34c   : > { %3481 = vxpose.xlu1.b32.cont [6/8] (short) (narrow) %v3473_v27, 8  ;;  %9053 = vmatprep.subr.mxu0 %v6600_v14 }
 0x34d   : > { %9097 = vmatprep.subr.mxu1 %v6616_v8  ;;  %9054 = vmatpush3.msra.mxu0 %v6600_v14  ;;  %v5338_v14 = vld [vmem:[#allocation2 + $0x81] sm:$0xff]  ;;  %v12129_v27 = vpop.f32.mrf.mxu0 }
 0x34e   : > { %9098 = vmatpush3.msra.mxu1 %v6616_v8  ;;  %9055 = vmatprep.subr.mxu0 %v6599_v11  ;;  %v5468_v8 = vld [vmem:[#allocation2 + $0xa1] sm:$0xff] }
 0x34f   : > { %9099 = vmatprep.subr.mxu1 %v6615_v10  ;;  %9056 = vmatpush3.msra.mxu0 %v6599_v11  ;;  %v6638_v11 = vld [vmem:[%s12551_s3 + $0x2b8] sm:$0xff] }
 0x350   : > { %9100 = vmatpush3.msra.mxu1 %v6615_v10  ;;  %3482 = vxpose.xlu1.b32.cont [7/8] (short) (narrow) %v3474_v42, 8  ;;  %v12140_v10 = vpop.f32.mrf.mxu1  ;;  %v12146_v42 = vpop.f32.mrf.mxu0 }
 0x351   : > { %9058 = vmatmul.mubr.f32.vlgmr.msra.gmra.mxu0 %v5195_v31  ;;  %9102 = vmatmul.mubr.f32.vlgmr.msra.gmra.mxu1 %v5332_v49  ;;  %v6652_v31 = vld [vmem:[%s12551_s3 + $0x328] sm:$0xff] }
 0x352   : > { %9113 = vmatprep.subr.mxu0 %v6646_v57  ;;  %9157 = vmatprep.subr.mxu1 %v6662_v53  ;;  %v12162_v49 = vpop.f32.mrf.mxu0 }
 0x353   : > { %9060 = vmatprep.mubr.f32.mxu0 %v5196_v50  ;;  %9104 = vmatprep.mubr.f32.mxu1 %v5333_v17  ;;  %v6651_v50 = vld [vmem:[%s12551_s3 + $0x320] sm:$0xff]  ;;  %v6634_v17 = vld [vmem:[%s12551_s3 + $0x298] sm:$0xff] }
 0x354   : > { %9114 = vmatpush3.msra.mxu0 %v6646_v57  ;;  %9158 = vmatpush3.msra.mxu1 %v6662_v53  ;;  %v6653_v57 = vld [vmem:[%s12551_s3 + $0x330] sm:$0xff]  ;;  %v12157_v53 = vpop.f32.mrf.mxu1 }
 0x355   : > { %9115 = vmatprep.subr.mxu0 %v6645_v6  ;;  %9159 = vmatprep.subr.mxu1 %v6661_v46 }
 0x356   : > { %9116 = vmatpush3.msra.mxu0 %v6645_v6  ;;  %9160 = vmatpush3.msra.mxu1 %v6661_v46  ;;  %v12173_v6 = vpop.f32.mrf.mxu1  ;;  %v6650_v46 = vld [vmem:[%s12551_s3 + $0x318] sm:$0xff] }
 0x357   : > { %3483 = vxpose.xlu1.b32.end [8/8] (short) (narrow) %v3475_v15, 8  ;;  %9061 = vmatmul.mubr.f32.gmra.mxu0 %v5197_v5  ;;  %v12178_v15 = vpop.f32.mrf.mxu0  ;;  %v6649_v5 = vld [vmem:[%s12551_s3 + $0x310] sm:$0xff] }
 0x358   : > { %9105 = vmatmul.mubr.f32.gmra.mxu1 %v5334_v48  ;;  %9117 = vmatprep.subr.mxu0 %v6644_v52  ;;  %v12189_v48 = vpop.f32.mrf.mxu1 }
 0x359   : > { %9161 = vmatprep.subr.mxu1 %v6660_v25  ;;  %9063 = vmatprep.mubr.f32.mxu0 %v5198_v44  ;;  %v6648_v44 = vld [vmem:[%s12551_s3 + $0x308] sm:$0xff] }
 0x35a   : > { %9107 = vmatprep.mubr.f32.mxu1 %v5335_v3  ;;  %9118 = vmatpush3.msra.mxu0 %v6644_v52  ;;  %v6633_v52 = vld [vmem:[%s12551_s3 + $0x290] sm:$0xff]  ;;  %v6631_v3 = vld [vmem:[%s12551_s3 + $0x280] sm:$0xff] }
 0x35b   : > { %9162 = vmatpush3.msra.mxu1 %v6660_v25  ;;  %9119 = vmatprep.subr.mxu0 %v6643_v37  ;;  %v6632_v25 = vld [vmem:[%s12551_s3 + $0x288] sm:$0xff] }
 0x35c   : > { %9163 = vmatprep.subr.mxu1 %v6659_v43  ;;  %9120 = vmatpush3.msra.mxu0 %v6643_v37  ;;  %v12194_v37 = vpop.f32.mrf.mxu0 }
 0x35d   : > { %9164 = vmatpush3.msra.mxu1 %v6659_v43  ;;  %9064 = vmatmul.mubr.f32.gmra.mxu0 %v5199_v63  ;;  %v6647_v43 = vld [vmem:[%s12551_s3 + $0x300] sm:$0xff]  ;;  %v6678_v63 = vld [vmem:[%s12551_s3 + $0x3f8] sm:$0xff] }
 0x35e   : > { %9108 = vmatmul.mubr.f32.gmra.mxu1 %v5336_v38  ;;  %9121 = vmatprep.subr.mxu0 %v6642_v23  ;;  %v5469_v38 = vld [vmem:[#allocation2 + $0xb1] sm:$0xff] }
 0x35f   : > { %9165 = vmatprep.subr.mxu1 %v6658_v45  ;;  %9066 = vmatprep.mubr.f32.mxu0 %v5200_v54  ;;  %v6694_v54 = vld [vmem:[%s12551_s3 + $0x478] sm:$0xff] }
 0x360   : > { %9110 = vmatprep.mubr.f32.mxu1 %v5337_v29  ;;  %9122 = vmatpush3.msra.mxu0 %v6642_v23  ;;  %v12202_v23 = vpop.f32.mrf.mxu1  ;;  %v5470_v29 = vld [vmem:[#allocation2 + $0xc1] sm:$0xff] }
 0x361   : > { %9166 = vmatpush3.msra.mxu1 %v6658_v45  ;;  %9123 = vmatprep.subr.mxu0 %v6641_v22  ;;  %v12207_v45 = vpop.f32.mrf.mxu0 }
 0x362   : > { %9167 = vmatprep.subr.mxu1 %v6657_v47  ;;  %9124 = vmatpush3.msra.mxu0 %v6641_v22  ;;  %v5606_v22 = vld [vmem:[#allocation2 + $0x1d0] sm:$0xff] }
 0x363   : > { %9168 = vmatpush3.msra.mxu1 %v6657_v47  ;;  %9067 = vmatmul.mubr.f32.gmra.mxu0 %v5201_v60  ;;  %v6677_v47 = vld [vmem:[%s12551_s3 + $0x3f0] sm:$0xff]  ;;  %v5607_v60 = vld [vmem:[#allocation2 + $0x1e0] sm:$0xff] }
 0x364   : > { %9111 = vmatmul.mubr.f32.gmra.mxu1 %v5338_v14  ;;  %9125 = vmatprep.subr.mxu0 %v6640_v18  ;;  %v12220_v14 = vpop.f32.mrf.mxu0 }
 0x365   : > { %9169 = vmatprep.subr.mxu1 %v6656_v30  ;;  %9126 = vmatpush3.msra.mxu0 %v6640_v18  ;;  %v12215_v18 = vpop.f32.mrf.mxu1 }
 0x366   : > { %9145 = vmatprep.mubr.f32.mxu0 %v5468_v8  ;;  %9170 = vmatpush3.msra.mxu1 %v6656_v30  ;;  %v6693_v30 = vld [vmem:[%s12551_s3 + $0x470] sm:$0xff]  ;;  %v6676_v8 = vld [vmem:[%s12551_s3 + $0x3e8] sm:$0xff] }
 0x367   : > { %9189 = vmatprep.mubr.f32.mxu1 %v11702_v35  ;;  %9127 = vmatprep.subr.mxu0 %v6639_v9  ;;  %v6636_v35 = vld [vmem:[%s12551_s3 + $0x2a8] sm:$0xff] }
 0x368   : > { %9171 = vmatprep.subr.mxu1 %v6655_v24  ;;  %9128 = vmatpush3.msra.mxu0 %v6639_v9  ;;  %v12222_v9 = vpop.f32.mrf.mxu1 }
 0x369   : > { %9172 = vmatpush3.msra.mxu1 %v6655_v24  ;;  %9129 = vmatprep.subr.mxu0 %v6638_v11  ;;  %v5471_v24 = vld [vmem:[#allocation2 + $0xd1] sm:$0xff] }
 0x36a   : > { %9173 = vmatprep.subr.mxu1 %v6654_v59  ;;  %9130 = vmatpush3.msra.mxu0 %v6638_v11  ;;  %v6692_v11 = vld [vmem:[%s12551_s3 + $0x468] sm:$0xff] }
 0x36b   : > { %9174 = vmatpush3.msra.mxu1 %v6654_v59  ;;  %9131 = vmatprep.subr.mxu0 %v6637_v2  ;;  %v5608_v59 = vld [vmem:[#allocation2 + $0x1f0] sm:$0xff] }
 0x36c   : > { %9175 = vmatprep.subr.mxu1 %v6653_v57  ;;  %9132 = vmatpush3.msra.mxu0 %v6637_v2  ;;  %v12230_v2 = vpop.f32.mrf.mxu0 }
 0x36d   : > { %9176 = vmatpush3.msra.mxu1 %v6653_v57  ;;  %9133 = vmatprep.subr.mxu0 %v6636_v35  ;;  %v5472_v57 = vld [vmem:[#allocation2 + $0xe1] sm:$0xff] }
 0x36e   : > { %9177 = vmatprep.subr.mxu1 %v6652_v31  ;;  %9134 = vmatpush3.msra.mxu0 %v6636_v35  ;;  %v6675_v35 = vld [vmem:[%s12551_s3 + $0x3e0] sm:$0xff] }
 0x36f   : > { %9178 = vmatpush3.msra.mxu1 %v6652_v31  ;;  %9135 = vmatprep.subr.mxu0 %v6635_v56  ;;  %v12235_v31 = vpop.f32.mrf.mxu1 }
 0x370   : > { %9179 = vmatprep.subr.mxu1 %v6651_v50  ;;  %9136 = vmatpush3.msra.mxu0 %v6635_v56  ;;  %v5609_v56 = vld [vmem:[#allocation2 + $0x200] sm:$0xff] }
 0x371   : > { %9180 = vmatpush3.msra.mxu1 %v6651_v50  ;;  %9137 = vmatprep.subr.mxu0 %v6634_v17  ;;  %v6691_v50 = vld [vmem:[%s12551_s3 + $0x460] sm:$0xff] }
 0x372   : > { %9181 = vmatprep.subr.mxu1 %v6650_v46  ;;  %9138 = vmatpush3.msra.mxu0 %v6634_v17  ;;  %v12240_v17 = vpop.f32.mrf.mxu0 }
 0x373   : > { %9182 = vmatpush3.msra.mxu1 %v6650_v46  ;;  %9139 = vmatprep.subr.mxu0 %v6633_v52  ;;  %v6674_v46 = vld [vmem:[%s12551_s3 + $0x3d8] sm:$0xff] }
 0x374   : > { %9183 = vmatprep.subr.mxu1 %v6649_v5  ;;  %9140 = vmatpush3.msra.mxu0 %v6633_v52  ;;  %v5473_v52 = vld [vmem:[#allocation2 + $0xf1] sm:$0xff] }
 0x375   : > { %9184 = vmatpush3.msra.mxu1 %v6649_v5  ;;  %9141 = vmatprep.subr.mxu0 %v6632_v25  ;;  %v6690_v5 = vld [vmem:[%s12551_s3 + $0x458] sm:$0xff] }
 0x376   : > { %9185 = vmatprep.subr.mxu1 %v6648_v44  ;;  %9142 = vmatpush3.msra.mxu0 %v6632_v25  ;;  %v12248_v25 = vpop.f32.mrf.mxu1 }
 0x377   : > { %9186 = vmatpush3.msra.mxu1 %v6648_v44  ;;  %9143 = vmatprep.subr.mxu0 %v6631_v3  ;;  %v5610_v44 = vld [vmem:[#allocation2 + $0x210] sm:$0xff] }
 0x378   : > { %9187 = vmatprep.subr.mxu1 %v6647_v43  ;;  %9144 = vmatpush3.msra.mxu0 %v6631_v3  ;;  %v12250_v3 = vpop.f32.mrf.mxu0 }
 0x379   : > { %9188 = vmatpush3.msra.mxu1 %v6647_v43  ;;  %9146 = vmatmul.mubr.f32.vlgmr.msra.gmra.mxu0 %v5469_v38  ;;  %v5474_v43 = vld [vmem:[#allocation2 + $0x101] sm:$0xff] }
 0x37a   : > { %9190 = vmatmul.mubr.f32.vlgmr.msra.gmra.mxu1 %v5606_v22  ;;  %9201 = vmatprep.subr.mxu0 %v6678_v63  ;;  %v5611_v38 = vld [vmem:[#allocation2 + $0x220] sm:$0xff]  ;;  %v12258_v22 = vpop.f32.mrf.mxu1 }
 0x37b   : > { %9245 = vmatprep.subr.mxu1 %v6694_v54  ;;  %9148 = vmatprep.mubr.f32.mxu0 %v5470_v29  ;;  %v6672_v29 = vld [vmem:[%s12551_s3 + $0x3c8] sm:$0xff] }
 0x37c   : > { %9192 = vmatprep.mubr.f32.mxu1 %v5607_v60  ;;  %9202 = vmatpush3.msra.mxu0 %v6678_v63  ;;  %v6673_v63 = vld [vmem:[%s12551_s3 + $0x3d0] sm:$0xff] }
 0x37d   : > { %9246 = vmatpush3.msra.mxu1 %v6694_v54  ;;  %9203 = vmatprep.subr.mxu0 %v6677_v47  ;;  %v6689_v54 = vld [vmem:[%s12551_s3 + $0x450] sm:$0xff] }
 0x37e   : > { %9247 = vmatprep.subr.mxu1 %v6693_v30  ;;  %9204 = vmatpush3.msra.mxu0 %v6677_v47  ;;  %v12263_v47 = vpop.f32.mrf.mxu0  ;;  %v5475_v60 = vld [vmem:[#allocation2 + $0x111] sm:$0xff] }
 0x37f   : > { %9248 = vmatpush3.msra.mxu1 %v6693_v30  ;;  %9149 = vmatmul.mubr.f32.gmra.mxu0 %v5471_v24  ;;  %v6688_v30 = vld [vmem:[%s12551_s3 + $0x448] sm:$0xff]  ;;  %v6671_v24 = vld [vmem:[%s12551_s3 + $0x3c0] sm:$0xff] }
 0x380   : > { %9193 = vmatmul.mubr.f32.gmra.mxu1 %v5608_v59  ;;  %9205 = vmatprep.subr.mxu0 %v6676_v8  ;;  %v6687_v59 = vld [vmem:[%s12551_s3 + $0x440] sm:$0xff] }
 0x381   : > { %9249 = vmatprep.subr.mxu1 %v6692_v11  ;;  %9151 = vmatprep.mubr.f32.mxu0 %v5472_v57  ;;  %v12276_v57 = vpop.f32.mrf.mxu0 }
 0x382   : > { %9195 = vmatprep.mubr.f32.mxu1 %v5609_v56  ;;  %9206 = vmatpush3.msra.mxu0 %v6676_v8  ;;  %v9302_v8 = vld [vmem:[#allocation2] sm:$0xff]  ;;  %v6686_v56 = vld [vmem:[%s12551_s3 + $0x438] sm:$0xff] }
 0x383   : > { %9250 = vmatpush3.msra.mxu1 %v6692_v11  ;;  %9207 = vmatprep.subr.mxu0 %v6675_v35  ;;  %v12271_v11 = vpop.f32.mrf.mxu1 }
 0x384   : > { %9251 = vmatprep.subr.mxu1 %v6691_v50  ;;  %9208 = vmatpush3.msra.mxu0 %v6675_v35  ;;  %v6670_v35 = vld [vmem:[%s12551_s3 + $0x3b8] sm:$0xff] }
 0x385   : > { %9252 = vmatpush3.msra.mxu1 %v6691_v50  ;;  %9152 = vmatmul.mubr.f32.gmra.mxu0 %v5473_v52  ;;  %v6669_v50 = vld [vmem:[%s12551_s3 + $0x3b0] sm:$0xff]  ;;  %v6668_v52 = vld [vmem:[%s12551_s3 + $0x3a8] sm:$0xff] }
 0x386   : > { %9196 = vmatmul.mubr.f32.gmra.mxu1 %v5610_v44  ;;  %9209 = vmatprep.subr.mxu0 %v6674_v46  ;;  %v6667_v44 = vld [vmem:[%s12551_s3 + $0x3a0] sm:$0xff] }
 0x387   : > { %9253 = vmatprep.subr.mxu1 %v6690_v5  ;;  %9154 = vmatprep.mubr.f32.mxu0 %v5474_v43 }
 0x388   : > { %9198 = vmatprep.mubr.f32.mxu1 %v5611_v38  ;;  %9210 = vmatpush3.msra.mxu0 %v6674_v46  ;;  %v12289_v46 = vpop.f32.mrf.mxu1 }
 0x389   : > { %9254 = vmatpush3.msra.mxu1 %v6690_v5  ;;  %9211 = vmatprep.subr.mxu0 %v6673_v63  ;;  %v6684_v5 = vld [vmem:[%s12551_s3 + $0x428] sm:$0xff] }
 0x38a   : > { %9255 = vmatprep.subr.mxu1 %v6689_v54  ;;  %9212 = vmatpush3.msra.mxu0 %v6673_v63  ;;  %v12305_v43 = vpop.f32.mrf.mxu1  ;;  %v6683_v63 = vld [vmem:[%s12551_s3 + $0x420] sm:$0xff] }
 0x38b   : > { %9256 = vmatpush3.msra.mxu1 %v6689_v54  ;;  %9155 = vmatmul.mubr.f32.gmra.mxu0 %v5475_v60  ;;  %v6666_v54 = vld [vmem:[%s12551_s3 + $0x398] sm:$0xff]  ;;  %v6665_v60 = vld [vmem:[%s12551_s3 + $0x390] sm:$0xff] }
 0x38c   : > { %9199 = vmatmul.mubr.f32.gmra.mxu1 %v9302_v8  ;;  %9213 = vmatprep.subr.mxu0 %v6672_v29  ;;  %v6681_v8 = vld [vmem:[%s12551_s3 + $0x410] sm:$0xff] }
 0x38d   : > { %9257 = vmatprep.subr.mxu1 %v6688_v30  ;;  %9214 = vmatpush3.msra.mxu0 %v6672_v29  ;;  %v6682_v29 = vld [vmem:[%s12551_s3 + $0x418] sm:$0xff] }
 0x38e   : > { %9233 = vmatprep.mubr.f32.mxu0 %v11869_v55  ;;  %9258 = vmatpush3.msra.mxu1 %v6688_v30  ;;  %v6685_v55 = vld [vmem:[%s12551_s3 + $0x430] sm:$0xff]  ;;  %v12321_v30 = vpop.f32.mrf.mxu1 }
 0x38f   : > { %9277 = vmatprep.mubr.f32.mxu1 %v11875_v40  ;;  %9215 = vmatprep.subr.mxu0 %v6671_v24  ;;  %v12294_v40 = vpop.f32.mrf.mxu0 }
 0x390   : > { %9259 = vmatprep.subr.mxu1 %v6687_v59  ;;  %9216 = vmatpush3.msra.mxu0 %v6671_v24 }
 0x391   : > { %9260 = vmatpush3.msra.mxu1 %v6687_v59  ;;  %9217 = vmatprep.subr.mxu0 %v6670_v35  ;;  %v12310_v38 = vpop.f32.mrf.mxu0  ;;  %v6664_v59 = vld [vmem:[%s12551_s3 + $0x388] sm:$0xff] }
 0x392   : > { %9261 = vmatprep.subr.mxu1 %v6686_v56  ;;  %9218 = vmatpush3.msra.mxu0 %v6670_v35  ;;  %v6680_v35 = vld [vmem:[%s12551_s3 + $0x408] sm:$0xff] }
 0x393   : > { %9262 = vmatpush3.msra.mxu1 %v6686_v56  ;;  %9219 = vmatprep.subr.mxu0 %v6669_v50  ;;  %v12326_v24 = vpop.f32.mrf.mxu0  ;;  %v12334_v56 = vpop.f32.mrf.mxu1 }
 0x394   : > { %9263 = vmatprep.subr.mxu1 %v6685_v55  ;;  %9220 = vmatpush3.msra.mxu0 %v6669_v50  ;;  %v6663_v50 = vld [vmem:[%s12551_s3 + $0x380] sm:$0xff] }
 0x395   : > { %9264 = vmatpush3.msra.mxu1 %v6685_v55  ;;  %9221 = vmatprep.subr.mxu0 %v6668_v52  ;;  %v6679_v55 = vld [vmem:[%s12551_s3 + $0x400] sm:$0xff] }
 0x396   : > { %9265 = vmatprep.subr.mxu1 %v6684_v5  ;;  %9222 = vmatpush3.msra.mxu0 %v6668_v52  ;;  %v12342_v52 = vpop.f32.mrf.mxu0 }
 0x397   : > { %9266 = vmatpush3.msra.mxu1 %v6684_v5  ;;  %9223 = vmatprep.subr.mxu0 %v6667_v44  ;;  %v4287_v5 = vpop.f32.mrf.mxu1 }
 0x398   : > { %9267 = vmatprep.subr.mxu1 %v6683_v63  ;;  %9224 = vmatpush3.msra.mxu0 %v6667_v44  ;;  %v12344_v44 = vpop.f32.mrf.mxu0 }
 0x399   : > { %9268 = vmatpush3.msra.mxu1 %v6683_v63  ;;  %9225 = vmatprep.subr.mxu0 %v6666_v54  ;;  %v12350_v63 = vpop.f32.mrf.mxu1 }
 0x39a   : > { %9269 = vmatprep.subr.mxu1 %v6682_v29  ;;  %9226 = vmatpush3.msra.mxu0 %v6666_v54  ;;  %v4425_v54 = vpop.f32.mrf.mxu0 }
 0x39b   : > { %9270 = vmatpush3.msra.mxu1 %v6682_v29  ;;  %9227 = vmatprep.subr.mxu0 %v6665_v60  ;;  %v4297_v29 = vpop.f32.mrf.mxu1 }
 0x39c   : > { %9271 = vmatprep.subr.mxu1 %v6681_v8  ;;  %9228 = vmatpush3.msra.mxu0 %v6665_v60  ;;  %v12356_v60 = vpop.f32.mrf.mxu0 }
 0x39d   : > { %9272 = vmatpush3.msra.mxu1 %v6681_v8  ;;  %9229 = vmatprep.subr.mxu0 %v6664_v59 }
 0x39e   : > { %9273 = vmatprep.subr.mxu1 %v6680_v35  ;;  %9230 = vmatpush3.msra.mxu0 %v6664_v59 }
 0x39f   : > { %9274 = vmatpush3.msra.mxu1 %v6680_v35  ;;  %9231 = vmatprep.subr.mxu0 %v6663_v50 }
 0x3a0   : > { %9275 = vmatprep.subr.mxu1 %v6679_v55  ;;  %9232 = vmatpush3.msra.mxu0 %v6663_v50 }
 0x3a1   : > { %9276 = vmatpush3.msra.mxu1 %v6679_v55  ;;  %9234 = vmatmul.mubr.f32.vlgmr.msra.gmra.mxu0 %v11882_v0  ;;  %v12361_v0 = vld [vmem:[%s12552_s4] ss:$0 sm:$0xff] }
 0x3a2   : > { %9278 = vmatmul.mubr.f32.vlgmr.msra.gmra.mxu1 %v11889_v33  ;;  %9236 = vmatprep.mubr.f32.mxu0 %v11904_v28  ;;  %v3641_v33 = vadd.f32 %v12361_v0, %v12057_v20  ;;  %v5749_v28 = vld [vmem:[#allocation2 + $0x1a1] sm:$0xff]  ;;  %v3643_v8 = vadd.f32 %v12361_v0, %v12079_v16 }
 0x3a3   : > { %9280 = vmatprep.mubr.f32.mxu1 %v11911_v21  ;;  %v12368_v21 = vpop.f32.mrf.mxu1 }
 0x3a5   : > { %9237 = vmatmul.mubr.f32.gmra.mxu0 %v11916_v1  ;;  %v5886_v1 = vld [vmem:[#allocation2 + $0x231] sm:$0xff] }
 0x3a6   : > { %9281 = vmatmul.mubr.f32.gmra.mxu1 %v11924_v58  ;;  %9239 = vmatprep.mubr.f32.mxu0 %v11943_v51  ;;  %v4435_v58 = vpop.f32.mrf.mxu0  ;;  %v3642_v51 = vadd.f32 %v12361_v0, %v12043_v61 }
 0x3a7   : > { %9283 = vmatprep.mubr.f32.mxu1 %v11945_v41  ;;  %v3778_v41 = vadd.f32 %v12127_v26, %v3641_v33  ;;  %v3644_v26 = vadd.f32 %v12361_v0, %v12069_v7 }
 0x3a9   : > { %9240 = vmatmul.mubr.f32.gmra.mxu0 %v11953_v62  ;;  %v3915_v20 = vadd.f32 %v12146_v42, %v3778_v41  ;;  %v4307_v62 = vpop.f32.mrf.mxu1  ;;  %v3780_v42 = vadd.f32 %v12157_v53, %v3643_v8 }
 0x3aa   : > { %9284 = vmatmul.mubr.f32.gmra.mxu1 %v11956_v39  ;;  %9242 = vmatprep.mubr.f32.mxu0 %v11979_v32  ;;  %v12375_v39 = vpop.f32.mrf.mxu0  ;;  %v3779_v32 = vadd.f32 %v12114_v36, %v3642_v51 }
 0x3ab   : > { %9286 = vmatprep.mubr.f32.mxu1 %v11987_v13  ;;  %v4052_v59 = vadd.f32 %v12235_v31, %v3915_v20  ;;  %v12382_v35 = vpop.f32.mrf.mxu1  ;;  %v3917_v36 = vadd.f32 %v12178_v15, %v3780_v42  ;;  %v3645_v31 = vadd.f32 %v12361_v0, %v12101_v34  ;;  %v3646_v15 = vadd.f32 %v12361_v0, %v12090_v19 }
 0x3ac   : > { %v3916_v13 = vadd.f32 %v12129_v27, %v3779_v32  ;;  %v4445_v61 = vpop.f32.mrf.mxu0  ;;  %v3781_v27 = vadd.f32 %v12140_v10, %v3644_v26  ;;  %v3647_v19 = vadd.f32 %v12361_v0, %v12122_v12 }
 0x3ad   : > { %9243 = vmatmul.mubr.f32.gmra.mxu0 %v5749_v28  ;;  %v4189_v50 = vadd.f32 %v12250_v3, %v4052_v59  ;;  %v12390_v33 = vpop.f32.mrf.mxu1  ;;  %v4054_v3 = vadd.f32 %v12258_v22, %v3917_v36  ;;  %v3782_v41 = vadd.f32 %v12189_v48, %v3645_v31 }
 0x3ae   : > { %9287 = vmatmul.mubr.f32.gmra.mxu1 %v5886_v1  ;;  %v4053_v55 = vadd.f32 %v12222_v9, %v3916_v13  ;;  %v12392_v16 = vpop.f32.mrf.mxu0  ;;  %v3918_v53 = vadd.f32 %v12162_v49, %v3781_v27  ;;  %v3784_v42 = vadd.f32 %v12215_v18, %v3647_v19  ;;  %v2222_v19 = vpop.trf.xlu0 }
 0x3af   : > { %v4326_v7 = vadd.f32 %v4287_v5, %v4189_v50  ;;  %v8839_v1 = vpop.f32.mrf.mxu1  ;;  %v4191_v20 = vadd.f32 %v12276_v57, %v4054_v3  ;;  %v3919_v5 = vadd.f32 %v12207_v45, %v3782_v41  ;;  %2239 = vst.msk [vmem:[%s12446_s27] sm:$0xf] %vm2238_vm2, %v2222_v19 }
 0x3b0   : > { %v4190_v28 = vadd.f32 %v12240_v17, %v4053_v55  ;;  %v4455_v51 = vpop.f32.mrf.mxu0  ;;  %v4055_v17 = vadd.f32 %v12248_v25, %v3918_v53  ;;  %6306 = vst.msk [vmem:[%s12446_s27] sm:$0xf0] %vm2241_vm3, %v2222_v19 }
 0x3b1   : > { %v4464_v9 = vadd.f32 %v4425_v54, %v4326_v7  ;;  %v4563_v34 = vpop.f32.mrf.mxu1  ;;  %v3783_v54 = vadd.f32 %v12173_v6, %v3646_v15  ;;  %v4056_v25 = vadd.f32 %v12289_v46, %v3919_v5  ;;  %v3921_v46 = vadd.f32 %v12230_v2, %v3784_v42 }
 0x3b2   : > { %v4327_v10 = vadd.f32 %v12334_v56, %v4190_v28  ;;  %v4192_v48 = vadd.f32 %v12263_v47, %v4055_v17  ;;  %v4328_v56 = vadd.f32 %v4297_v29, %v4191_v20 }
 0x3b3   : > { %v4602_v22 = vadd.f32 %v4563_v34, %v4464_v9  ;;  %v8842_v57 = vpop.f32.mrf.mxu1  ;;  %v3920_v59 = vadd.f32 %v12194_v37, %v3783_v54  ;;  %v4193_v47 = vadd.f32 %v12310_v38, %v4056_v25  ;;  %v4058_v7 = vadd.f32 %v12321_v30, %v3921_v46 }
 0x3b4   : > { %v4465_v49 = vadd.f32 %v12344_v44, %v4327_v10  ;;  %v4466_v45 = vadd.f32 %v4435_v58, %v4328_v56  ;;  %v3648_v44 = vadd.f32 %v12361_v0, %v12109_v4  ;;  %v4329_v12 = vadd.f32 %v12350_v63, %v4192_v48 }
 0x3b5   : > { %v4573_v50 = vpop.f32.mrf.mxu1  ;;  %v4057_v37 = vadd.f32 %v12271_v11, %v3920_v59  ;;  %v4330_v18 = vadd.f32 %v4307_v62, %v4193_v47 }
 0x3b6   : > { %v4603_v26 = vadd.f32 %v8839_v1, %v4465_v49  ;;  %v4467_v58 = vadd.f32 %v12356_v60, %v4329_v12  ;;  %v4604_v36 = vadd.f32 %v4573_v50, %v4466_v45  ;;  %v3785_v4 = vadd.f32 %v12202_v23, %v3648_v44 }
 0x3b7   : > { %v4194_v27 = vadd.f32 %v12294_v40, %v4057_v37  ;;  %v8845_v63 = vpop.f32.mrf.mxu1  ;;  %v4468_v11 = vadd.f32 %v4445_v61, %v4330_v18  ;;  %v4195_v60 = vadd.f32 %v12342_v52, %v4058_v7 }
 0x3b8   : > { %v3922_v38 = vadd.f32 %v12220_v14, %v3785_v4  ;;  %v4605_v1 = vadd.f32 %v8842_v57, %v4467_v58 }
 0x3b9   : > { %v4331_v2 = vadd.f32 %v12368_v21, %v4194_v27  ;;  %v4583_v3 = vpop.f32.mrf.mxu1  ;;  %v4332_v30 = vadd.f32 %v12390_v33, %v4195_v60 }
 0x3ba   : > { %v4059_v40 = vadd.f32 %v12305_v43, %v3922_v38  ;;  %v4606_v9 = vadd.f32 %v4583_v3, %v4468_v11 }
 0x3bb   : > { %v4469_v62 = vadd.f32 %v12375_v39, %v4331_v2  ;;  %v8848_v15 = vpop.f32.mrf.mxu1  ;;  %v4470_v21 = vadd.f32 %v4455_v51, %v4332_v30 }
 0x3bc   : > { %v4196_v14 = vadd.f32 %v12326_v24, %v4059_v40 }
 0x3bd   : > { %v8883_v32 = vpop.f32.mrf.mxu0  ;;  %v4607_v10 = vadd.f32 %v8845_v63, %v4469_v62  ;;  %v4593_v52 = vpop.f32.mrf.mxu1 }
 0x3be   : > { %v4740_v29 = vadd.f32 %v8883_v32, %v4603_v26  ;;  %v4333_v20 = vadd.f32 %v12382_v35, %v4196_v14  ;;  %v4608_v39 = vadd.f32 %v4593_v52, %v4470_v21 }
 0x3bf   : > { %v4700_v8 = vpop.f32.mrf.mxu0  ;;  %v8927_v33 = vpop.f32.mrf.mxu1 }
 0x3c0   : > { %v4739_v13 = vadd.f32 %v4700_v8, %v4602_v22  ;;  %v4471_v43 = vadd.f32 %v12392_v16, %v4333_v20  ;;  %v3492_v16 = vpop.trf.xlu1 }
 0x3c1   : > { %v4873_v49 = vpop.f32.mrf.mxu1  ;;  %6435 = vst.msk [vmem:[%s12446_s27 + $0x8] sm:$0xf] %vm2238_vm2, %v3492_v16 }
 0x3c2   : > { %4747 = vxpose.xlu0.b32.start [1/8] (short) (narrow) %v4739_v13, 8  ;;  %v4609_v5 = vadd.f32 %v8848_v15, %v4471_v43  ;;  %6436 = vst.msk [vmem:[%s12446_s27 + $0x8] sm:$0xf0] %vm2241_vm3, %v3492_v16  ;;  %v4912_v30 = vadd.f32 %v12361_v0, %v4873_v49 }
 0x3c3   : > { %v8886_v6 = vpop.f32.mrf.mxu0 }
 0x3c4   : > { %v4742_v53 = vadd.f32 %v8886_v6, %v4605_v1  ;;  %v12434_v22 = vpop.f32.mrf.mxu1 }
 0x3c5   : > { %v4710_v55 = vpop.f32.mrf.mxu0 }
 0x3c6   : > { %4748 = vxpose.xlu0.b32.cont [2/8] (short) (narrow) %v4740_v29, 8  ;;  %v4741_v31 = vadd.f32 %v4710_v55, %v4604_v36  ;;  %v4883_v51 = vpop.f32.mrf.mxu1 }
 0x3c7   : > { %v4914_v20 = vadd.f32 %v12361_v0, %v4883_v51 }
 0x3c9   : > { %v8889_v28 = vpop.f32.mrf.mxu0 }
 0x3ca   : > { %4749 = vxpose.xlu0.b32.cont [3/8] (short) (narrow) %v4741_v31, 8  ;;  %v4744_v34 = vadd.f32 %v8889_v28, %v4607_v10  ;;  %v12436_v54 = vpop.f32.mrf.mxu1 }
 0x3cb   : > { %v4720_v23 = vpop.f32.mrf.mxu0 }
 0x3cc   : > { %v4743_v61 = vadd.f32 %v4720_v23, %v4606_v9  ;;  %v12438_v35 = vpop.f32.mrf.mxu1 }
 0x3cd   : > { %v4916_v51 = vadd.f32 %v12361_v0, %v12438_v35 }
 0x3ce   : > { %4750 = vxpose.xlu0.b32.cont [4/8] (short) (narrow) %v4742_v53, 8 }
 0x3cf   : > { %v8892_v41 = vpop.f32.mrf.mxu0 }
 0x3d0   : > { %v4746_v24 = vadd.f32 %v8892_v41, %v4609_v5  ;;  %v12440_v8 = vpop.f32.mrf.mxu1 }
 0x3d1   : > { %v4730_v32 = vpop.f32.mrf.mxu0 }
 0x3d2   : > { %4751 = vxpose.xlu0.b32.cont [5/8] (short) (narrow) %v4743_v61, 8  ;;  %v4745_v17 = vadd.f32 %v4730_v32, %v4608_v39  ;;  %v12456_v56 = vpop.f32.mrf.mxu1  ;;  %v4913_v61 = vadd.f32 %v12361_v0, %v8927_v33 }
 0x3d6   : > { %4752 = vxpose.xlu0.b32.cont [6/8] (short) (narrow) %v4744_v34, 8 }
 0x3da   : > { %4753 = vxpose.xlu0.b32.cont [7/8] (short) (narrow) %v4745_v17, 8 }
 0x3de   : > { %4754 = vxpose.xlu0.b32.end [8/8] (short) (narrow) %v4746_v24, 8  ;;  %v4915_v24 = vadd.f32 %v12361_v0, %v12434_v22 }
 0x3e5   : > { %v8971_v48 = vpop.f32.mrf.mxu0 }
 0x3e6   : > { %v9015_v13 = vpop.f32.mrf.mxu1  ;;  %v5050_v52 = vadd.f32 %v8971_v48, %v4913_v61 }
 0x3e7   : > { %v5010_v57 = vpop.f32.mrf.mxu0 }
 0x3e8   : > { %v5147_v59 = vpop.f32.mrf.mxu1  ;;  %v5049_v41 = vadd.f32 %v5010_v57, %v4912_v30  ;;  %v5187_v39 = vadd.f32 %v9015_v13, %v5050_v52  ;;  %v4917_v52 = vadd.f32 %v12361_v0, %v12436_v54 }
 0x3ea   : > { %v5186_v34 = vadd.f32 %v5147_v59, %v5049_v41 }
 0x3eb   : > { %v8974_v25 = vpop.f32.mrf.mxu0 }
 0x3ec   : > { %v9018_v26 = vpop.f32.mrf.mxu1  ;;  %v5052_v19 = vadd.f32 %v8974_v25, %v4915_v24 }
 0x3ed   : > { %v5020_v45 = vpop.f32.mrf.mxu0 }
 0x3ee   : > { %v5157_v44 = vpop.f32.mrf.mxu1  ;;  %v5051_v17 = vadd.f32 %v5020_v45, %v4914_v20  ;;  %v5189_v61 = vadd.f32 %v9018_v26, %v5052_v19 }
 0x3f0   : > { %v5188_v57 = vadd.f32 %v5157_v44, %v5051_v17 }
 0x3f2   : > { %v12458_v6 = vpop.f32.mrf.mxu0  ;;  %v12460_v42 = vpop.f32.mrf.mxu1 }
 0x3f3   : > { %v5054_v35 = vadd.f32 %v12458_v6, %v4917_v52 }
 0x3f4   : > { %v5030_v12 = vpop.f32.mrf.mxu0  ;;  %v12462_v47 = vpop.f32.mrf.mxu1 }
 0x3f5   : > { %v5053_v41 = vadd.f32 %v5030_v12, %v4916_v51 }
 0x3f8   : > { %v12464_v29 = vpop.f32.mrf.mxu0 }
 0x3f9   : > { %v12466_v50 = vpop.f32.mrf.mxu1 }
 0x3fa   : > { %v12468_v55 = vpop.f32.mrf.mxu0 }
 0x3fb   : > { %v12470_v46 = vpop.f32.mrf.mxu1 }
 0x411   : > { %v9059_v37 = vpop.f32.mrf.mxu0  ;;  %v9103_v58 = vpop.f32.mrf.mxu1 }
 0x412   : > { %v5324_v49 = vadd.f32 %v9059_v37, %v5187_v39  ;;  %v4918_v39 = vadd.f32 %v12361_v0, %v12456_v56  ;;  %v4919_v56 = vadd.f32 %v12361_v0, %v12440_v8 }
 0x413   : > { %v5284_v36 = vpop.f32.mrf.mxu0  ;;  %v5421_v4 = vpop.f32.mrf.mxu1 }
 0x414   : > { %v5323_v5 = vadd.f32 %v5284_v36, %v5186_v34  ;;  %v5461_v59 = vadd.f32 %v9103_v58, %v5324_v49  ;;  %v5056_v51 = vadd.f32 %v12464_v29, %v4919_v56 }
 0x416   : > { %v5460_v48 = vadd.f32 %v5421_v4, %v5323_v5 }
 0x417   : > { %v9062_v27 = vpop.f32.mrf.mxu0 }
 0x418   : > { %v12472_v18 = vpop.f32.mrf.mxu1  ;;  %v5326_v44 = vadd.f32 %v9062_v27, %v5189_v61 }
 0x419   : > { %v5294_v31 = vpop.f32.mrf.mxu0 }
 0x41a   : > { %v5431_v63 = vpop.f32.mrf.mxu1  ;;  %v5325_v13 = vadd.f32 %v5294_v31, %v5188_v57  ;;  %v5190_v31 = vadd.f32 %v12462_v47, %v5053_v41  ;;  %v5463_v27 = vadd.f32 %v12472_v18, %v5326_v44  ;;  %v5191_v47 = vadd.f32 %v12460_v42, %v5054_v35 }
 0x41c   : > { %v5462_v4 = vadd.f32 %v5431_v63, %v5325_v13 }
 0x41d   : > { %v12474_v28 = vpop.f32.mrf.mxu0 }
 0x41e   : > { %v12476_v38 = vpop.f32.mrf.mxu1  ;;  %v5328_v18 = vadd.f32 %v12474_v28, %v5191_v47 }
 0x41f   : > { %v5304_v7 = vpop.f32.mrf.mxu0 }
 0x420   : > { %v12478_v1 = vpop.f32.mrf.mxu1  ;;  %v5327_v63 = vadd.f32 %v5304_v7, %v5190_v31 }
 0x422   : > { %v5464_v7 = vadd.f32 %v12478_v1, %v5327_v63  ;;  %v5193_v1 = vadd.f32 %v12466_v50, %v5056_v51 }
 0x423   : > { %v12480_v11 = vpop.f32.mrf.mxu0 }
 0x424   : > { %v12482_v2 = vpop.f32.mrf.mxu1 }
 0x425   : > { %v12484_v60 = vpop.f32.mrf.mxu0 }
 0x426   : > { %v12486_v3 = vpop.f32.mrf.mxu1 }
 0x439   : > { %v9147_v53 = vpop.f32.mrf.mxu0 }
 0x43a   : > { %v9191_v23 = vpop.f32.mrf.mxu1  ;;  %v5598_v22 = vadd.f32 %v9147_v53, %v5461_v59  ;;  %v5465_v59 = vadd.f32 %v12476_v38, %v5328_v18 }
 0x43b   : > { %v5558_v40 = vpop.f32.mrf.mxu0 }
 0x43c   : > { %v5695_v62 = vpop.f32.mrf.mxu1  ;;  %v5597_v45 = vadd.f32 %v5558_v40, %v5460_v48  ;;  %v5735_v26 = vadd.f32 %v9191_v23, %v5598_v22  ;;  %v5055_v23 = vadd.f32 %v12468_v55, %v4918_v39 }
 0x43e   : > { %v5734_v20 = vadd.f32 %v5695_v62, %v5597_v45  ;;  %v4763_v17 = vpop.trf.xlu0  ;;  %v5192_v42 = vadd.f32 %v12470_v46, %v5055_v23 }
 0x43f   : > { %v9150_v9 = vpop.f32.mrf.mxu0  ;;  %6565 = vst.msk [vmem:[%s12446_s27 + $0x10] sm:$0xf] %vm2238_vm2, %v4763_v17 }
 0x440   : > { %v12488_v15 = vpop.f32.mrf.mxu1  ;;  %6566 = vst.msk [vmem:[%s12446_s27 + $0x10] sm:$0xf0] %vm2241_vm3, %v4763_v17  ;;  %v5329_v0 = vadd.f32 %v12484_v60, %v5192_v42 }
 0x441   : > { %v5568_v14 = vpop.f32.mrf.mxu0 }
 0x442   : > { %v5705_v10 = vpop.f32.mrf.mxu1  ;;  %v5599_v12 = vadd.f32 %v5568_v14, %v5462_v4  ;;  %v5600_v14 = vadd.f32 %v9150_v9, %v5463_v27 }
 0x444   : > { %v5736_v24 = vadd.f32 %v5705_v10, %v5599_v12  ;;  %v5737_v55 = vadd.f32 %v12488_v15, %v5600_v14  ;;  %v5330_v15 = vadd.f32 %v12480_v11, %v5193_v1 }
 0x445   : > { %v12492_v21 = vpop.f32.mrf.mxu0 }
 0x446   : > { %v12495_v32 = vpop.f32.mrf.mxu1  ;;  %v5602_v45 = vadd.f32 %v12492_v21, %v5465_v59  ;;  %v5467_v50 = vadd.f32 %v12482_v2, %v5330_v15 }
 0x447   : > { %v5578_v43 = vpop.f32.mrf.mxu0 }
 0x448   : > { %v12499_v16 = vpop.f32.mrf.mxu1  ;;  %v5601_v9 = vadd.f32 %v5578_v43, %v5464_v7  ;;  %v5466_v43 = vadd.f32 %v12486_v3, %v5329_v0  ;;  %v5739_v60 = vadd.f32 %v12495_v32, %v5602_v45 }
 0x44a   : > { %v5738_v29 = vadd.f32 %v12499_v16, %v5601_v9 }
 0x44b   : > { %v12501_v33 = vpop.f32.mrf.mxu0 }
 0x44c   : > { %v12503_v30 = vpop.f32.mrf.mxu1  ;;  %v5604_v11 = vadd.f32 %v12501_v33, %v5467_v50 }
 0x44d   : > { %v5588_v36 = vpop.f32.mrf.mxu0 }
 0x44e   : > { %v12507_v37 = vpop.f32.mrf.mxu1  ;;  %v5603_v22 = vadd.f32 %v5588_v36, %v5466_v43  ;;  %v5741_v32 = vadd.f32 %v12503_v30, %v5604_v11 }
 0x450   : > { %v5740_v3 = vadd.f32 %v12507_v37, %v5603_v22 }
 0x461   : > { %v9235_v25 = vpop.f32.mrf.mxu0 }
 0x462   : > { %v9279_v34 = vpop.f32.mrf.mxu1  ;;  %v5872_v62 = vadd.f32 %v9235_v25, %v5735_v26 }
 0x463   : > { %v5832_v58 = vpop.f32.mrf.mxu0 }
 0x464   : > { %v5871_v53 = vadd.f32 %v5832_v58, %v5734_v20  ;;  %v5969_v40 = vpop.f32.mrf.mxu1  ;;  %v6009_v19 = vadd.f32 %v9279_v34, %v5872_v62 }
 0x465   : > { %v9238_v54 = vpop.f32.mrf.mxu0 }
 0x466   : > { %v6008_v5 = vadd.f32 %v5969_v40, %v5871_v53  ;;  %v9282_v49 = vpop.f32.mrf.mxu1  ;;  %v5874_v8 = vadd.f32 %v9238_v54, %v5737_v55 }
 0x467   : > { %v5842_v6 = vpop.f32.mrf.mxu0 }
 0x468   : > { %6016 = vxpose.xlu1.b32.start [1/8] (short) (narrow) %v6008_v5, 8  ;;  %v5873_v57 = vadd.f32 %v5842_v6, %v5736_v24  ;;  %v5979_v10 = vpop.f32.mrf.mxu1  ;;  %v6011_v61 = vadd.f32 %v9282_v49, %v5874_v8 }
 0x469   : > { %v9241_v48 = vpop.f32.mrf.mxu0 }
 0x46a   : > { %v6010_v28 = vadd.f32 %v5979_v10, %v5873_v57  ;;  %v9285_v46 = vpop.f32.mrf.mxu1  ;;  %v5876_v25 = vadd.f32 %v9241_v48, %v5739_v60 }
 0x46b   : > { %v5852_v13 = vpop.f32.mrf.mxu0 }
 0x46c   : > { %6017 = vxpose.xlu1.b32.cont [2/8] (short) (narrow) %v6009_v19, 8  ;;  %v5875_v41 = vadd.f32 %v5852_v13, %v5738_v29  ;;  %v5989_v52 = vpop.f32.mrf.mxu1  ;;  %v6013_v4 = vadd.f32 %v9285_v46, %v5876_v25 }
 0x46d   : > { %v9244_v38 = vpop.f32.mrf.mxu0 }
 0x46e   : > { %v6012_v21 = vadd.f32 %v5989_v52, %v5875_v41  ;;  %v9288_v16 = vpop.f32.mrf.mxu1  ;;  %v5878_v36 = vadd.f32 %v9244_v38, %v5741_v32 }
 0x46f   : > { %v5862_v44 = vpop.f32.mrf.mxu0 }
 0x470   : > { %6018 = vxpose.xlu1.b32.cont [3/8] (short) (narrow) %v6010_v28, 8  ;;  %v5877_v20 = vadd.f32 %v5862_v44, %v5740_v3  ;;  %v5999_v34 = vpop.f32.mrf.mxu1  ;;  %v6015_v2 = vadd.f32 %v9288_v16, %v5878_v36 }
 0x472   : > { %v6014_v35 = vadd.f32 %v5999_v34, %v5877_v20 }
 0x474   : > { %6019 = vxpose.xlu1.b32.cont [4/8] (short) (narrow) %v6011_v61, 8 }
 0x478   : > { %6020 = vxpose.xlu1.b32.cont [5/8] (short) (narrow) %v6012_v21, 8 }
 0x47c   : > { %6021 = vxpose.xlu1.b32.cont [6/8] (short) (narrow) %v6013_v4, 8 }
 0x480   : > { %6022 = vxpose.xlu1.b32.cont [7/8] (short) (narrow) %v6014_v35, 8 }
 0x484   : > { %6023 = vxpose.xlu1.b32.end [8/8] (short) (narrow) %v6015_v2, 8 }
 0x4e4   : > { %v6032_v58 = vpop.trf.xlu1 }
 0x4e5   : > { %6695 = vst.msk [vmem:[%s12446_s27 + $0x18] sm:$0xf] %vm2238_vm2, %v6032_v58 }
 0x4e6   : > { %6696 = vst.msk [vmem:[%s12446_s27 + $0x18] sm:$0xf0] %vm2241_vm3, %v6032_v58 }
 0x4e7 PF: > { %s15_s18 = sadd.s32 1, %s9310_s18  }
 0x4e8   : > { %p12_p4 = scmp.ge.s32.totalorder %s15_s18, 4  }
 0x4ea   :  { %14 = sbr.rel (!%p12_p4) target bundleno = 1 (0x1), region = 95 }

</bundles_post_ra>
